<compile_context>
chip_gen: v6e
topology: v6e:2x2x1
jax: 0.10.0
libtpu: 0.0.40
codegen_flags: <defaults>
</compile_context>

<pallas_src>
import jax
import jax.numpy as jnp
from jax import lax
from jax.experimental import pallas as pl
from jax.experimental.pallas import tpu as pltpu


def _round_up(a, b):
    return (a + b - 1) // b * b


def make_residual_block_kernel(W, Wp, M, Cop, has_projection):
    F = _round_up(Wp + 1, 8)      # aligned zero border in front of the conv2 input
    BAND = M + 2 * Wp             # rows covering all three row (ky) taps
    base0 = F - Wp - 1            # conv2 tap (ky=0, kx=0) offset into the scratch

    def kernel(*refs):
        if has_projection:
            (x_ref, w1_ref, s1_ref, b1_ref, w2_ref, s2_ref, b2_ref,
             ws_ref, ss_ref, bs_ref, out_ref, acc_ref, h1x_ref) = refs
        else:
            (x_ref, w1_ref, s1_ref, b1_ref, w2_ref, s2_ref, b2_ref,
             out_ref, acc_ref, h1x_ref) = refs

        # ---- conv1 (3x3, stride=1, pad=1): 9 shifted lane-dense matmuls ----
        for kx in range(3):
            band = x_ref[0, kx:kx + BAND, :].astype(jnp.bfloat16)   # (BAND, Cip)
            part = jnp.dot(band[0:M], w1_ref[0, kx],
                           preferred_element_type=jnp.float32)
            for ky in range(1, 3):
                part = part + jnp.dot(band[ky * Wp:ky * Wp + M], w1_ref[ky, kx],
                                      preferred_element_type=jnp.float32)
            if kx == 0:
                acc_ref[...] = part
            else:
                acc_ref[...] += part

        # ---- bn1 + relu; zero the Wp-W padding columns ----------------------
        col = lax.broadcasted_iota(jnp.int32, (M, 1), 0) % Wp
        h1 = jnp.maximum(acc_ref[...] * s1_ref[...] + b1_ref[...], 0.0)
        h1 = jnp.where(col < W, h1, 0.0)

        # conv2 input = h1 with a 1-pixel zero border, kept in the same
        # flattened row-major layout: only the small borders are (re)written and
        # the activation is stored with one aligned, lane-dense store.
        h1x_ref[0:F, :] = jnp.zeros((F, Cop), jnp.float32)
        h1x_ref[F + M:M + 2 * F, :] = jnp.zeros((F, Cop), jnp.float32)
        h1x_ref[F:F + M, :] = h1

        # ---- conv2 (3x3, stride=1, pad=1) + bn2 ------------------------------
        for kx in range(3):
            band = h1x_ref[base0 + kx:base0 + kx + BAND, :].astype(jnp.bfloat16)
            part = jnp.dot(band[0:M], w2_ref[0, kx],
                           preferred_element_type=jnp.float32)
            for ky in range(1, 3):
                part = part + jnp.dot(band[ky * Wp:ky * Wp + M], w2_ref[ky, kx],
                                      preferred_element_type=jnp.float32)
            if kx == 0:
                acc_ref[...] = part
            else:
                acc_ref[...] += part
        out2 = acc_ref[...] * s2_ref[...] + b2_ref[...]

        # ---- shortcut --------------------------------------------------------
        xin = x_ref[0, Wp + 1:Wp + 1 + M, :]            # input at the centre tap
        if has_projection:
            sc = jnp.dot(xin.astype(jnp.bfloat16), ws_ref[...],
                         preferred_element_type=jnp.float32)
            sc = sc * ss_ref[...] + bs_ref[...]
        else:
            sc = xin                                     # identity: no 1x1 matmul

        # ---- residual add + relu (last dim = 128 -> unmasked stores) --------
        out_ref[0] = jnp.maximum(out2 + sc, 0.0).astype(out_ref.dtype)

    return kernel


def fold_bn(bn, cop, eps=1e-5):
    gamma, beta, mean, var = bn
    scale = gamma / jnp.sqrt(var + eps)
    bias = beta - mean * scale
    pad = cop - scale.shape[0]
    scale = jnp.pad(scale, (0, pad)).reshape(1, cop).astype(jnp.float32)
    bias = jnp.pad(bias, (0, pad)).reshape(1, cop).astype(jnp.float32)
    return scale, bias


def residual_block_forward(x_nhwc, params, stride=1):
    """Fused ResidualBlock forward (inference-mode BN). x_nhwc: (N, H, W, Cin) f32."""
    # TODO(synk): stride != 1 (strided conv1 / strided 1x1 shortcut) not implemented.
    assert stride == 1, "only stride=1 implemented in the Pallas kernel"
    N, H, W, Cin = x_nhwc.shape
    Cout = params["w1"].shape[-1]
    has_projection = params.get("ws") is not None
    if not has_projection:
        assert Cin == Cout, "identity shortcut requires in_channels == out_channels"

    LANE = 128
    Cip = _round_up(Cin, LANE)        # lane-dense contraction dim
    Cop = _round_up(Cout, LANE)       # lane-dense output dim
    Wp = _round_up(W + 2, 8)          # padded row width: ky taps sublane-aligned
    Hrows = H + 3                     # 1 top halo row + 2 bottom zero rows
    M = H * Wp                        # flattened rows computed per image
    Mtot = Hrows * Wp

    # fold BN, pad channels, cast weights to bf16 for the MXU.
    s1, b1 = fold_bn(params["bn1"], Cop)
    s2, b2 = fold_bn(params["bn2"], Cop)
    w1 = jnp.pad(params["w1"],
                 ((0, 0), (0, 0), (0, Cip - Cin), (0, Cop - Cout))).astype(jnp.bfloat16)
    w2 = jnp.pad(params["w2"],
                 ((0, 0), (0, 0), (0, Cop - Cout), (0, Cop - Cout))).astype(jnp.bfloat16)

    # zero-pad spatially (1 top / 1 left halo + zeros up to Hrows x Wp) and on
    # the channel dim, then flatten (H, W) row-major.
    xpad = jnp.pad(x_nhwc, ((0, 0), (1, Hrows - H - 1), (1, Wp - W - 1), (0, Cip - Cin)))
    xflat = xpad.reshape(N, Mtot, Cip)

    vec_spec = pl.BlockSpec((1, Cop), lambda n: (0, 0))
    in_specs = [
        pl.BlockSpec((1, Mtot, Cip), lambda n: (n, 0, 0)),
        pl.BlockSpec((3, 3, Cip, Cop), lambda n: (0, 0, 0, 0)),
        vec_spec, vec_spec,
        pl.BlockSpec((3, 3, Cop, Cop), lambda n: (0, 0, 0, 0)),
        vec_spec, vec_spec,
    ]
    inputs = [xflat, w1, s1, b1, w2, s2, b2]
    if has_projection:
        ws = jnp.pad(params["ws"], ((0, Cip - Cin), (0, Cop - Cout))).astype(jnp.bfloat16)
        ss, bs = fold_bn(params["bns"], Cop)
        in_specs += [pl.BlockSpec((Cip, Cop), lambda n: (0, 0)), vec_spec, vec_spec]
        inputs += [ws, ss, bs]

    F = _round_up(Wp + 1, 8)
    kernel = make_residual_block_kernel(W, Wp, M, Cop, has_projection)

    # TODO(synk): for large images add a second (H row-tile) grid axis with a
    # 2-row halo (manual DMA) so the pipeline / megacore has more than N steps.
    out_flat = pl.pallas_call(
        kernel,
        out_shape=jax.ShapeDtypeStruct((N, M, Cop), x_nhwc.dtype),
        grid=(N,),
        in_specs=in_specs,
        out_specs=pl.BlockSpec((1, M, Cop), lambda n: (n, 0, 0)),
        scratch_shapes=[pltpu.VMEM((M, Cop), jnp.float32),          # shared conv accumulator
                        pltpu.VMEM((M + 2 * F, Cop), jnp.float32)], # bordered conv2 input
        compiler_params=pltpu.CompilerParams(dimension_semantics=("parallel",)),
    )(*inputs)

    # un-flatten and drop the width / channel padding (kernel stays lane-dense,
    # compaction happens on the XLA side).
    return out_flat.reshape(N, H, Wp, Cop)[:, :, :W, :Cout]


def reference_forward(x_nhwc, params, eps=1e-5, quantize_intermediate=False):
    """Plain-JAX reference (inference-mode BN), for validation only."""
    def conv(x, w, pad):
        return lax.conv_general_dilated(
            x, w, (1, 1), ((pad, pad), (pad, pad)),
            dimension_numbers=("NHWC", "HWIO", "NHWC"))

    def bn(x, p):
        g, b, m, v = p
        return (x - m) / jnp.sqrt(v + eps) * g + b

    out = jax.nn.relu(bn(conv(x_nhwc, params["w1"], 1), params["bn1"]))
    if quantize_intermediate:   # mimic the kernel's bf16 feed into conv2
        out = out.astype(jnp.bfloat16).astype(jnp.float32)
    out = bn(conv(out, params["w2"], 1), params["bn2"])
    if params.get("ws") is None:
        sc = x_nhwc
    else:
        Cin, Cout = params["ws"].shape
        sc = bn(conv(x_nhwc, params["ws"].reshape(1, 1, Cin, Cout), 0), params["bns"])
    return jax.nn.relu(out + sc)


if __name__ == "__main__":
    # Small shapes consistent with the module: batch=2, in_channels=4,
    # out_channels=8, spatial 16x16, stride=1 (projection shortcut, Cin != Cout).
    N, Cin, Cout, H, W = 2, 4, 8, 16, 16

    key = jax.random.PRNGKey(0)
    ks = jax.random.split(key, 12)

    def q(a):
        # keep operands bf16-representable so the f32 reference is directly
        # comparable with the bf16-MXU kernel.
        return a.astype(jnp.bfloat16).astype(jnp.float32)

    def bn_params(k, c):
        k1, k2, k3, k4 = jax.random.split(k, 4)
        gamma = 1.0 + 0.1 * jax.random.normal(k1, (c,), jnp.float32)
        beta = 0.1 * jax.random.normal(k2, (c,), jnp.float32)
        mean = 0.05 * jax.random.normal(k3, (c,), jnp.float32)
        var = jnp.abs(1.0 + 0.1 * jax.random.normal(k4, (c,), jnp.float32))
        return (gamma, beta, mean, var)

    # --- projection-shortcut block (Cin != Cout) -----------------------------
    params = {
        # conv weights stored HWIO (kh, kw, in, out)
        "w1": q(0.2 * jax.random.normal(ks[0], (3, 3, Cin, Cout), jnp.float32)),
        "bn1": bn_params(ks[1], Cout),
        "w2": q(0.2 * jax.random.normal(ks[2], (3, 3, Cout, Cout), jnp.float32)),
        "bn2": bn_params(ks[3], Cout),
        "ws": q(0.2 * jax.random.normal(ks[4], (Cin, Cout), jnp.float32)),
        "bns": bn_params(ks[5], Cout),
    }
    x_nchw = jax.random.normal(ks[6], (N, Cin, H, W), jnp.float32)  # PyTorch layout
    x_nhwc = q(jnp.transpose(x_nchw, (0, 2, 3, 1)))

    out = jax.block_until_ready(residual_block_forward(x_nhwc, params, stride=1))
    assert out.shape == (N, H, W, Cout)
    ref_q = jax.block_until_ready(reference_forward(x_nhwc, params, quantize_intermediate=True))
    ref_f = jax.block_until_ready(reference_forward(x_nhwc, params))
    assert jnp.allclose(out, ref_q, atol=2e-3, rtol=2e-3), "projection block mismatch (bf16 ref)"
    assert jnp.allclose(out, ref_f, atol=3e-2, rtol=3e-2), "projection block mismatch (f32 ref)"

    # --- identity-shortcut block (Cin == Cout): 1x1 matmul skipped in-kernel --
    params_id = {
        "w1": q(0.2 * jax.random.normal(ks[7], (3, 3, Cout, Cout), jnp.float32)),
        "bn1": bn_params(ks[8], Cout),
        "w2": q(0.2 * jax.random.normal(ks[9], (3, 3, Cout, Cout), jnp.float32)),
        "bn2": bn_params(ks[10], Cout),
        "ws": None,
        "bns": None,
    }
    x2 = q(jax.random.normal(ks[11], (N, H, W, Cout), jnp.float32))
    out_id = jax.block_until_ready(residual_block_forward(x2, params_id, stride=1))
    ref_id_q = jax.block_until_ready(reference_forward(x2, params_id, quantize_intermediate=True))
    ref_id_f = jax.block_until_ready(reference_forward(x2, params_id))
    assert jnp.allclose(out_id, ref_id_q, atol=2e-3, rtol=2e-3), "identity block mismatch (bf16 ref)"
    assert jnp.allclose(out_id, ref_id_f, atol=3e-2, rtol=3e-2), "identity block mismatch (f32 ref)"

    print("KERNEL_OK")
</pallas_src>

<mosaic_0001>
module attributes {stable_mosaic.version = 11 : i64} {
  func.func @kernel(%arg0: i32, %arg1: memref<1x456x128xf32, #tpu.memory_space<vmem>>, %arg2: memref<3x3x128x128xbf16, #tpu.memory_space<vmem>>, %arg3: memref<1x128xf32, #tpu.memory_space<vmem>>, %arg4: memref<1x128xf32, #tpu.memory_space<vmem>>, %arg5: memref<3x3x128x128xbf16, #tpu.memory_space<vmem>>, %arg6: memref<1x128xf32, #tpu.memory_space<vmem>>, %arg7: memref<1x128xf32, #tpu.memory_space<vmem>>, %arg8: memref<128x128xbf16, #tpu.memory_space<vmem>>, %arg9: memref<1x128xf32, #tpu.memory_space<vmem>>, %arg10: memref<1x128xf32, #tpu.memory_space<vmem>>, %arg11: memref<1x384x128xf32, #tpu.memory_space<vmem>>, %arg12: memref<384x128xf32, #tpu.memory_space<vmem>>, %arg13: memref<448x128xf32, #tpu.memory_space<vmem>>) attributes {dimension_semantics = [#tpu.dimension_semantics<parallel>], iteration_bounds = array<i64: 2>, scalar_prefetch = 0 : i64, scratch_operands = 2 : i64, tpu.core_type = #tpu.core_type<tc>, window_params = [{transform_indices = @transform_0, window_bounds = array<i64: 1, 456, 128>}, {pipeline_mode = #tpu.pipeline_mode<synchronous>, transform_indices = @transform_1, window_bounds = array<i64: 3, 3, 128, 128>}, {pipeline_mode = #tpu.pipeline_mode<synchronous>, transform_indices = @transform_2, window_bounds = array<i64: 1, 128>}, {pipeline_mode = #tpu.pipeline_mode<synchronous>, transform_indices = @transform_3, window_bounds = array<i64: 1, 128>}, {pipeline_mode = #tpu.pipeline_mode<synchronous>, transform_indices = @transform_4, window_bounds = array<i64: 3, 3, 128, 128>}, {pipeline_mode = #tpu.pipeline_mode<synchronous>, transform_indices = @transform_5, window_bounds = array<i64: 1, 128>}, {pipeline_mode = #tpu.pipeline_mode<synchronous>, transform_indices = @transform_6, window_bounds = array<i64: 1, 128>}, {pipeline_mode = #tpu.pipeline_mode<synchronous>, transform_indices = @transform_7, window_bounds = array<i64: 128, 128>}, {pipeline_mode = #tpu.pipeline_mode<synchronous>, transform_indices = @transform_8, window_bounds = array<i64: 1, 128>}, {pipeline_mode = #tpu.pipeline_mode<synchronous>, transform_indices = @transform_9, window_bounds = array<i64: 1, 128>}, {transform_indices = @transform_10, window_bounds = array<i64: 1, 384, 128>}]} {
    %c0 = arith.constant 0 : index
    %c0_0 = arith.constant 0 : index
    %c0_1 = arith.constant 0 : index
    %0 = vector.load %arg1[%c0, %c0_0, %c0_1] : memref<1x456x128xf32, #tpu.memory_space<vmem>>, vector<1x432x128xf32>
    %1 = vector.shape_cast %0 : vector<1x432x128xf32> to vector<432x128xf32>
    %2 = arith.truncf %1 : vector<432x128xf32> to vector<432x128xbf16>
    %3 = vector.extract_strided_slice %2 {offsets = [0, 0], sizes = [384, 128], strides = [1, 1]} : vector<432x128xbf16> to vector<384x128xbf16>
    %c0_2 = arith.constant 0 : index
    %c0_3 = arith.constant 0 : index
    %c0_4 = arith.constant 0 : index
    %c0_5 = arith.constant 0 : index
    %4 = vector.load %arg2[%c0_2, %c0_3, %c0_4, %c0_5] : memref<3x3x128x128xbf16, #tpu.memory_space<vmem>>, vector<1x1x128x128xbf16>
    %5 = vector.shape_cast %4 : vector<1x1x128x128xbf16> to vector<128x128xbf16>
    %cst = arith.constant dense<0.000000e+00> : vector<384x128xf32>
    %6 = tpu.matmul %3, %5, %cst {dimension_numbers = #tpu.dot_dimension_numbers<[1], [0], [0], [1], [0, 0, 1, 1], [], []>} : vector<384x128xbf16>, vector<128x128xbf16>, vector<384x128xf32> -> vector<384x128xf32>
    %7 = vector.extract_strided_slice %2 {offsets = [24, 0], sizes = [384, 128], strides = [1, 1]} : vector<432x128xbf16> to vector<384x128xbf16>
    %c1 = arith.constant 1 : index
    %c0_6 = arith.constant 0 : index
    %c0_7 = arith.constant 0 : index
    %c0_8 = arith.constant 0 : index
    %8 = vector.load %arg2[%c1, %c0_6, %c0_7, %c0_8] : memref<3x3x128x128xbf16, #tpu.memory_space<vmem>>, vector<1x1x128x128xbf16>
    %9 = vector.shape_cast %8 : vector<1x1x128x128xbf16> to vector<128x128xbf16>
    %cst_9 = arith.constant dense<0.000000e+00> : vector<384x128xf32>
    %10 = tpu.matmul %7, %9, %cst_9 {dimension_numbers = #tpu.dot_dimension_numbers<[1], [0], [0], [1], [0, 0, 1, 1], [], []>} : vector<384x128xbf16>, vector<128x128xbf16>, vector<384x128xf32> -> vector<384x128xf32>
    %11 = arith.addf %6, %10 : vector<384x128xf32>
    %12 = vector.extract_strided_slice %2 {offsets = [48, 0], sizes = [384, 128], strides = [1, 1]} : vector<432x128xbf16> to vector<384x128xbf16>
    %c2 = arith.constant 2 : index
    %c0_10 = arith.constant 0 : index
    %c0_11 = arith.constant 0 : index
    %c0_12 = arith.constant 0 : index
    %13 = vector.load %arg2[%c2, %c0_10, %c0_11, %c0_12] : memref<3x3x128x128xbf16, #tpu.memory_space<vmem>>, vector<1x1x128x128xbf16>
    %14 = vector.shape_cast %13 : vector<1x1x128x128xbf16> to vector<128x128xbf16>
    %cst_13 = arith.constant dense<0.000000e+00> : vector<384x128xf32>
    %15 = tpu.matmul %12, %14, %cst_13 {dimension_numbers = #tpu.dot_dimension_numbers<[1], [0], [0], [1], [0, 0, 1, 1], [], []>} : vector<384x128xbf16>, vector<128x128xbf16>, vector<384x128xf32> -> vector<384x128xf32>
    %16 = arith.addf %11, %15 : vector<384x128xf32>
    %c0_14 = arith.constant 0 : index
    %c0_15 = arith.constant 0 : index
    %17 = vector.load %arg12[%c0_14, %c0_15] : memref<384x128xf32, #tpu.memory_space<vmem>>, vector<384x128xf32>
    tpu.vector_store %arg12[%c0_14, %c0_15], %16 {strides = array<i32>} : memref<384x128xf32, #tpu.memory_space<vmem>>, vector<384x128xf32>,
    %c0_16 = arith.constant 0 : index
    %c1_17 = arith.constant 1 : index
    %c0_18 = arith.constant 0 : index
    %18 = vector.load %arg1[%c0_16, %c1_17, %c0_18] : memref<1x456x128xf32, #tpu.memory_space<vmem>>, vector<1x432x128xf32>
    %19 = vector.shape_cast %18 : vector<1x432x128xf32> to vector<432x128xf32>
    %20 = arith.truncf %19 : vector<432x128xf32> to vector<432x128xbf16>
    %21 = vector.extract_strided_slice %20 {offsets = [0, 0], sizes = [384, 128], strides = [1, 1]} : vector<432x128xbf16> to vector<384x128xbf16>
    %c0_19 = arith.constant 0 : index
    %c1_20 = arith.constant 1 : index
    %c0_21 = arith.constant 0 : index
    %c0_22 = arith.constant 0 : index
    %22 = vector.load %arg2[%c0_19, %c1_20, %c0_21, %c0_22] : memref<3x3x128x128xbf16, #tpu.memory_space<vmem>>, vector<1x1x128x128xbf16>
    %23 = vector.shape_cast %22 : vector<1x1x128x128xbf16> to vector<128x128xbf16>
    %cst_23 = arith.constant dense<0.000000e+00> : vector<384x128xf32>
    %24 = tpu.matmul %21, %23, %cst_23 {dimension_numbers = #tpu.dot_dimension_numbers<[1], [0], [0], [1], [0, 0, 1, 1], [], []>} : vector<384x128xbf16>, vector<128x128xbf16>, vector<384x128xf32> -> vector<384x128xf32>
    %25 = vector.extract_strided_slice %20 {offsets = [24, 0], sizes = [384, 128], strides = [1, 1]} : vector<432x128xbf16> to vector<384x128xbf16>
    %c1_24 = arith.constant 1 : index
    %c1_25 = arith.constant 1 : index
    %c0_26 = arith.constant 0 : index
    %c0_27 = arith.constant 0 : index
    %26 = vector.load %arg2[%c1_24, %c1_25, %c0_26, %c0_27] : memref<3x3x128x128xbf16, #tpu.memory_space<vmem>>, vector<1x1x128x128xbf16>
    %27 = vector.shape_cast %26 : vector<1x1x128x128xbf16> to vector<128x128xbf16>
    %cst_28 = arith.constant dense<0.000000e+00> : vector<384x128xf32>
    %28 = tpu.matmul %25, %27, %cst_28 {dimension_numbers = #tpu.dot_dimension_numbers<[1], [0], [0], [1], [0, 0, 1, 1], [], []>} : vector<384x128xbf16>, vector<128x128xbf16>, vector<384x128xf32> -> vector<384x128xf32>
    %29 = arith.addf %24, %28 : vector<384x128xf32>
    %30 = vector.extract_strided_slice %20 {offsets = [48, 0], sizes = [384, 128], strides = [1, 1]} : vector<432x128xbf16> to vector<384x128xbf16>
    %c2_29 = arith.constant 2 : index
    %c1_30 = arith.constant 1 : index
    %c0_31 = arith.constant 0 : index
    %c0_32 = arith.constant 0 : index
    %31 = vector.load %arg2[%c2_29, %c1_30, %c0_31, %c0_32] : memref<3x3x128x128xbf16, #tpu.memory_space<vmem>>, vector<1x1x128x128xbf16>
    %32 = vector.shape_cast %31 : vector<1x1x128x128xbf16> to vector<128x128xbf16>
    %cst_33 = arith.constant dense<0.000000e+00> : vector<384x128xf32>
    %33 = tpu.matmul %30, %32, %cst_33 {dimension_numbers = #tpu.dot_dimension_numbers<[1], [0], [0], [1], [0, 0, 1, 1], [], []>} : vector<384x128xbf16>, vector<128x128xbf16>, vector<384x128xf32> -> vector<384x128xf32>
    %34 = arith.addf %29, %33 : vector<384x128xf32>
    %c0_34 = arith.constant 0 : index
    %c0_35 = arith.constant 0 : index
    %35 = vector.load %arg12[%c0_34, %c0_35] : memref<384x128xf32, #tpu.memory_space<vmem>>, vector<384x128xf32>
    %36 = arith.addf %35, %34 : vector<384x128xf32>
    %c0_36 = arith.constant 0 : index
    %c0_37 = arith.constant 0 : index
    %37 = vector.load %arg12[%c0_36, %c0_37] : memref<384x128xf32, #tpu.memory_space<vmem>>, vector<384x128xf32>
    tpu.vector_store %arg12[%c0_36, %c0_37], %36 {strides = array<i32>} : memref<384x128xf32, #tpu.memory_space<vmem>>, vector<384x128xf32>,
    %c0_38 = arith.constant 0 : index
    %c2_39 = arith.constant 2 : index
    %c0_40 = arith.constant 0 : index
    %38 = vector.load %arg1[%c0_38, %c2_39, %c0_40] : memref<1x456x128xf32, #tpu.memory_space<vmem>>, vector<1x432x128xf32>
    %39 = vector.shape_cast %38 : vector<1x432x128xf32> to vector<432x128xf32>
    %40 = arith.truncf %39 : vector<432x128xf32> to vector<432x128xbf16>
    %41 = vector.extract_strided_slice %40 {offsets = [0, 0], sizes = [384, 128], strides = [1, 1]} : vector<432x128xbf16> to vector<384x128xbf16>
    %c0_41 = arith.constant 0 : index
    %c2_42 = arith.constant 2 : index
    %c0_43 = arith.constant 0 : index
    %c0_44 = arith.constant 0 : index
    %42 = vector.load %arg2[%c0_41, %c2_42, %c0_43, %c0_44] : memref<3x3x128x128xbf16, #tpu.memory_space<vmem>>, vector<1x1x128x128xbf16>
    %43 = vector.shape_cast %42 : vector<1x1x128x128xbf16> to vector<128x128xbf16>
    %cst_45 = arith.constant dense<0.000000e+00> : vector<384x128xf32>
    %44 = tpu.matmul %41, %43, %cst_45 {dimension_numbers = #tpu.dot_dimension_numbers<[1], [0], [0], [1], [0, 0, 1, 1], [], []>} : vector<384x128xbf16>, vector<128x128xbf16>, vector<384x128xf32> -> vector<384x128xf32>
    %45 = vector.extract_strided_slice %40 {offsets = [24, 0], sizes = [384, 128], strides = [1, 1]} : vector<432x128xbf16> to vector<384x128xbf16>
    %c1_46 = arith.constant 1 : index
    %c2_47 = arith.constant 2 : index
    %c0_48 = arith.constant 0 : index
    %c0_49 = arith.constant 0 : index
    %46 = vector.load %arg2[%c1_46, %c2_47, %c0_48, %c0_49] : memref<3x3x128x128xbf16, #tpu.memory_space<vmem>>, vector<1x1x128x128xbf16>
    %47 = vector.shape_cast %46 : vector<1x1x128x128xbf16> to vector<128x128xbf16>
    %cst_50 = arith.constant dense<0.000000e+00> : vector<384x128xf32>
    %48 = tpu.matmul %45, %47, %cst_50 {dimension_numbers = #tpu.dot_dimension_numbers<[1], [0], [0], [1], [0, 0, 1, 1], [], []>} : vector<384x128xbf16>, vector<128x128xbf16>, vector<384x128xf32> -> vector<384x128xf32>
    %49 = arith.addf %44, %48 : vector<384x128xf32>
    %50 = vector.extract_strided_slice %40 {offsets = [48, 0], sizes = [384, 128], strides = [1, 1]} : vector<432x128xbf16> to vector<384x128xbf16>
    %c2_51 = arith.constant 2 : index
    %c2_52 = arith.constant 2 : index
    %c0_53 = arith.constant 0 : index
    %c0_54 = arith.constant 0 : index
    %51 = vector.load %arg2[%c2_51, %c2_52, %c0_53, %c0_54] : memref<3x3x128x128xbf16, #tpu.memory_space<vmem>>, vector<1x1x128x128xbf16>
    %52 = vector.shape_cast %51 : vector<1x1x128x128xbf16> to vector<128x128xbf16>
    %cst_55 = arith.constant dense<0.000000e+00> : vector<384x128xf32>
    %53 = tpu.matmul %50, %52, %cst_55 {dimension_numbers = #tpu.dot_dimension_numbers<[1], [0], [0], [1], [0, 0, 1, 1], [], []>} : vector<384x128xbf16>, vector<128x128xbf16>, vector<384x128xf32> -> vector<384x128xf32>
    %54 = arith.addf %49, %53 : vector<384x128xf32>
    %c0_56 = arith.constant 0 : index
    %c0_57 = arith.constant 0 : index
    %55 = vector.load %arg12[%c0_56, %c0_57] : memref<384x128xf32, #tpu.memory_space<vmem>>, vector<384x128xf32>
    %56 = arith.addf %55, %54 : vector<384x128xf32>
    %c0_58 = arith.constant 0 : index
    %c0_59 = arith.constant 0 : index
    %57 = vector.load %arg12[%c0_58, %c0_59] : memref<384x128xf32, #tpu.memory_space<vmem>>, vector<384x128xf32>
    tpu.vector_store %arg12[%c0_58, %c0_59], %56 {strides = array<i32>} : memref<384x128xf32, #tpu.memory_space<vmem>>, vector<384x128xf32>,
    %58 = tpu.iota {dimensions = array<i32: 0>} : vector<384x1xi32>
    %c24_i32 = arith.constant 24 : i32
    %c0_i32 = arith.constant 0 : i32
    %59 = arith.cmpi eq, %c24_i32, %c0_i32 : i32
    %c1_i32 = arith.constant 1 : i32
    %60 = arith.select %59, %c1_i32, %c24_i32 : i32
    %61 = vector.broadcast %60 : i32 to vector<384x1xi32>
    %62 = arith.remsi %58, %61 : vector<384x1xi32>
    %c0_i32_60 = arith.constant 0 : i32
    %63 = vector.broadcast %c0_i32_60 : i32 to vector<384x1xi32>
    %64 = arith.cmpi ne, %62, %63 : vector<384x1xi32>
    %c0_i32_61 = arith.constant 0 : i32
    %65 = vector.broadcast %c0_i32_61 : i32 to vector<384x1xi32>
    %66 = arith.cmpi slt, %62, %65 : vector<384x1xi32>
    %c0_i32_62 = arith.constant 0 : i32
    %67 = arith.cmpi slt, %60, %c0_i32_62 : i32
    %68 = vector.broadcast %67 : i1 to vector<384x1xi1>
    %69 = vector.broadcast %68 : vector<384x1xi1> to vector<384x1xi1>
    %70 = arith.xori %66, %69 : vector<384x1xi1>
    %71 = arith.andi %70, %64 : vector<384x1xi1>
    %72 = vector.broadcast %60 : i32 to vector<384x1xi32>
    %73 = arith.addi %62, %72 : vector<384x1xi32>
    %74 = arith.select %71, %73, %62 : vector<384x1xi1>, vector<384x1xi32>
    %c0_63 = arith.constant 0 : index
    %c0_64 = arith.constant 0 : index
    %75 = vector.load %arg12[%c0_63, %c0_64] : memref<384x128xf32, #tpu.memory_space<vmem>>, vector<384x128xf32>
    %c0_65 = arith.constant 0 : index
    %c0_66 = arith.constant 0 : index
    %76 = vector.load %arg3[%c0_65, %c0_66] : memref<1x128xf32, #tpu.memory_space<vmem>>, vector<1x128xf32>
    %77 = vector.broadcast %76 : vector<1x128xf32> to vector<384x128xf32>
    %78 = arith.mulf %75, %77 : vector<384x128xf32>
    %c0_67 = arith.constant 0 : index
    %c0_68 = arith.constant 0 : index
    %79 = vector.load %arg4[%c0_67, %c0_68] : memref<1x128xf32, #tpu.memory_space<vmem>>, vector<1x128xf32>
    %80 = vector.broadcast %79 : vector<1x128xf32> to vector<384x128xf32>
    %81 = arith.addf %78, %80 : vector<384x128xf32>
    %cst_69 = arith.constant 0.000000e+00 : f32
    %82 = vector.broadcast %cst_69 : f32 to vector<384x128xf32>
    %83 = arith.maximumf %81, %82 : vector<384x128xf32>
    %c16_i32 = arith.constant 16 : i32
    %84 = vector.broadcast %c16_i32 : i32 to vector<384x1xi32>
    %85 = arith.cmpi slt, %74, %84 : vector<384x1xi32>
    %cst_70 = arith.constant 0.000000e+00 : f32
    %86 = vector.shape_cast %85 : vector<384x1xi1> to vector<384x1xi1>
    %87 = vector.broadcast %86 : vector<384x1xi1> to vector<384x128xi1>
    %88 = vector.broadcast %cst_70 : f32 to vector<384x128xf32>
    %89 = arith.select %87, %83, %88 : vector<384x128xi1>, vector<384x128xf32>
    %cst_71 = arith.constant 0.000000e+00 : f32
    %90 = vector.broadcast %cst_71 : f32 to vector<32x128xf32>
    %c0_72 = arith.constant 0 : index
    %c0_73 = arith.constant 0 : index
    %91 = vector.load %arg13[%c0_72, %c0_73] : memref<448x128xf32, #tpu.memory_space<vmem>>, vector<32x128xf32>
    tpu.vector_store %arg13[%c0_72, %c0_73], %90 {strides = array<i32>} : memref<448x128xf32, #tpu.memory_space<vmem>>, vector<32x128xf32>,
    %cst_74 = arith.constant 0.000000e+00 : f32
    %92 = vector.broadcast %cst_74 : f32 to vector<32x128xf32>
    %c416 = arith.constant 416 : index
    %c0_75 = arith.constant 0 : index
    %93 = vector.load %arg13[%c416, %c0_75] : memref<448x128xf32, #tpu.memory_space<vmem>>, vector<32x128xf32>
    tpu.vector_store %arg13[%c416, %c0_75], %92 {strides = array<i32>} : memref<448x128xf32, #tpu.memory_space<vmem>>, vector<32x128xf32>,
    %c32 = arith.constant 32 : index
    %c0_76 = arith.constant 0 : index
    %94 = vector.load %arg13[%c32, %c0_76] : memref<448x128xf32, #tpu.memory_space<vmem>>, vector<384x128xf32>
    tpu.vector_store %arg13[%c32, %c0_76], %89 {strides = array<i32>} : memref<448x128xf32, #tpu.memory_space<vmem>>, vector<384x128xf32>,
    %c7 = arith.constant 7 : index
    %c0_77 = arith.constant 0 : index
    %95 = vector.load %arg13[%c7, %c0_77] : memref<448x128xf32, #tpu.memory_space<vmem>>, vector<432x128xf32>
    %96 = arith.truncf %95 : vector<432x128xf32> to vector<432x128xbf16>
    %97 = vector.extract_strided_slice %96 {offsets = [0, 0], sizes = [384, 128], strides = [1, 1]} : vector<432x128xbf16> to vector<384x128xbf16>
    %c0_78 = arith.constant 0 : index
    %c0_79 = arith.constant 0 : index
    %c0_80 = arith.constant 0 : index
    %c0_81 = arith.constant 0 : index
    %98 = vector.load %arg5[%c0_78, %c0_79, %c0_80, %c0_81] : memref<3x3x128x128xbf16, #tpu.memory_space<vmem>>, vector<1x1x128x128xbf16>
    %99 = vector.shape_cast %98 : vector<1x1x128x128xbf16> to vector<128x128xbf16>
    %cst_82 = arith.constant dense<0.000000e+00> : vector<384x128xf32>
    %100 = tpu.matmul %97, %99, %cst_82 {dimension_numbers = #tpu.dot_dimension_numbers<[1], [0], [0], [1], [0, 0, 1, 1], [], []>} : vector<384x128xbf16>, vector<128x128xbf16>, vector<384x128xf32> -> vector<384x128xf32>
    %101 = vector.extract_strided_slice %96 {offsets = [24, 0], sizes = [384, 128], strides = [1, 1]} : vector<432x128xbf16> to vector<384x128xbf16>
    %c1_83 = arith.constant 1 : index
    %c0_84 = arith.constant 0 : index
    %c0_85 = arith.constant 0 : index
    %c0_86 = arith.constant 0 : index
    %102 = vector.load %arg5[%c1_83, %c0_84, %c0_85, %c0_86] : memref<3x3x128x128xbf16, #tpu.memory_space<vmem>>, vector<1x1x128x128xbf16>
    %103 = vector.shape_cast %102 : vector<1x1x128x128xbf16> to vector<128x128xbf16>
    %cst_87 = arith.constant dense<0.000000e+00> : vector<384x128xf32>
    %104 = tpu.matmul %101, %103, %cst_87 {dimension_numbers = #tpu.dot_dimension_numbers<[1], [0], [0], [1], [0, 0, 1, 1], [], []>} : vector<384x128xbf16>, vector<128x128xbf16>, vector<384x128xf32> -> vector<384x128xf32>
    %105 = arith.addf %100, %104 : vector<384x128xf32>
    %106 = vector.extract_strided_slice %96 {offsets = [48, 0], sizes = [384, 128], strides = [1, 1]} : vector<432x128xbf16> to vector<384x128xbf16>
    %c2_88 = arith.constant 2 : index
    %c0_89 = arith.constant 0 : index
    %c0_90 = arith.constant 0 : index
    %c0_91 = arith.constant 0 : index
    %107 = vector.load %arg5[%c2_88, %c0_89, %c0_90, %c0_91] : memref<3x3x128x128xbf16, #tpu.memory_space<vmem>>, vector<1x1x128x128xbf16>
    %108 = vector.shape_cast %107 : vector<1x1x128x128xbf16> to vector<128x128xbf16>
    %cst_92 = arith.constant dense<0.000000e+00> : vector<384x128xf32>
    %109 = tpu.matmul %106, %108, %cst_92 {dimension_numbers = #tpu.dot_dimension_numbers<[1], [0], [0], [1], [0, 0, 1, 1], [], []>} : vector<384x128xbf16>, vector<128x128xbf16>, vector<384x128xf32> -> vector<384x128xf32>
    %110 = arith.addf %105, %109 : vector<384x128xf32>
    %c0_93 = arith.constant 0 : index
    %c0_94 = arith.constant 0 : index
    %111 = vector.load %arg12[%c0_93, %c0_94] : memref<384x128xf32, #tpu.memory_space<vmem>>, vector<384x128xf32>
    tpu.vector_store %arg12[%c0_93, %c0_94], %110 {strides = array<i32>} : memref<384x128xf32, #tpu.memory_space<vmem>>, vector<384x128xf32>,
    %c8 = arith.constant 8 : index
    %c0_95 = arith.constant 0 : index
    %112 = vector.load %arg13[%c8, %c0_95] : memref<448x128xf32, #tpu.memory_space<vmem>>, vector<432x128xf32>
    %113 = arith.truncf %112 : vector<432x128xf32> to vector<432x128xbf16>
    %114 = vector.extract_strided_slice %113 {offsets = [0, 0], sizes = [384, 128], strides = [1, 1]} : vector<432x128xbf16> to vector<384x128xbf16>
    %c0_96 = arith.constant 0 : index
    %c1_97 = arith.constant 1 : index
    %c0_98 = arith.constant 0 : index
    %c0_99 = arith.constant 0 : index
    %115 = vector.load %arg5[%c0_96, %c1_97, %c0_98, %c0_99] : memref<3x3x128x128xbf16, #tpu.memory_space<vmem>>, vector<1x1x128x128xbf16>
    %116 = vector.shape_cast %115 : vector<1x1x128x128xbf16> to vector<128x128xbf16>
    %cst_100 = arith.constant dense<0.000000e+00> : vector<384x128xf32>
    %117 = tpu.matmul %114, %116, %cst_100 {dimension_numbers = #tpu.dot_dimension_numbers<[1], [0], [0], [1], [0, 0, 1, 1], [], []>} : vector<384x128xbf16>, vector<128x128xbf16>, vector<384x128xf32> -> vector<384x128xf32>
    %118 = vector.extract_strided_slice %113 {offsets = [24, 0], sizes = [384, 128], strides = [1, 1]} : vector<432x128xbf16> to vector<384x128xbf16>
    %c1_101 = arith.constant 1 : index
    %c1_102 = arith.constant 1 : index
    %c0_103 = arith.constant 0 : index
    %c0_104 = arith.constant 0 : index
    %119 = vector.load %arg5[%c1_101, %c1_102, %c0_103, %c0_104] : memref<3x3x128x128xbf16, #tpu.memory_space<vmem>>, vector<1x1x128x128xbf16>
    %120 = vector.shape_cast %119 : vector<1x1x128x128xbf16> to vector<128x128xbf16>
    %cst_105 = arith.constant dense<0.000000e+00> : vector<384x128xf32>
    %121 = tpu.matmul %118, %120, %cst_105 {dimension_numbers = #tpu.dot_dimension_numbers<[1], [0], [0], [1], [0, 0, 1, 1], [], []>} : vector<384x128xbf16>, vector<128x128xbf16>, vector<384x128xf32> -> vector<384x128xf32>
    %122 = arith.addf %117, %121 : vector<384x128xf32>
    %123 = vector.extract_strided_slice %113 {offsets = [48, 0], sizes = [384, 128], strides = [1, 1]} : vector<432x128xbf16> to vector<384x128xbf16>
    %c2_106 = arith.constant 2 : index
    %c1_107 = arith.constant 1 : index
    %c0_108 = arith.constant 0 : index
    %c0_109 = arith.constant 0 : index
    %124 = vector.load %arg5[%c2_106, %c1_107, %c0_108, %c0_109] : memref<3x3x128x128xbf16, #tpu.memory_space<vmem>>, vector<1x1x128x128xbf16>
    %125 = vector.shape_cast %124 : vector<1x1x128x128xbf16> to vector<128x128xbf16>
    %cst_110 = arith.constant dense<0.000000e+00> : vector<384x128xf32>
    %126 = tpu.matmul %123, %125, %cst_110 {dimension_numbers = #tpu.dot_dimension_numbers<[1], [0], [0], [1], [0, 0, 1, 1], [], []>} : vector<384x128xbf16>, vector<128x128xbf16>, vector<384x128xf32> -> vector<384x128xf32>
    %127 = arith.addf %122, %126 : vector<384x128xf32>
    %c0_111 = arith.constant 0 : index
    %c0_112 = arith.constant 0 : index
    %128 = vector.load %arg12[%c0_111, %c0_112] : memref<384x128xf32, #tpu.memory_space<vmem>>, vector<384x128xf32>
    %129 = arith.addf %128, %127 : vector<384x128xf32>
    %c0_113 = arith.constant 0 : index
    %c0_114 = arith.constant 0 : index
    %130 = vector.load %arg12[%c0_113, %c0_114] : memref<384x128xf32, #tpu.memory_space<vmem>>, vector<384x128xf32>
    tpu.vector_store %arg12[%c0_113, %c0_114], %129 {strides = array<i32>} : memref<384x128xf32, #tpu.memory_space<vmem>>, vector<384x128xf32>,
    %c9 = arith.constant 9 : index
    %c0_115 = arith.constant 0 : index
    %131 = vector.load %arg13[%c9, %c0_115] : memref<448x128xf32, #tpu.memory_space<vmem>>, vector<432x128xf32>
    %132 = arith.truncf %131 : vector<432x128xf32> to vector<432x128xbf16>
    %133 = vector.extract_strided_slice %132 {offsets = [0, 0], sizes = [384, 128], strides = [1, 1]} : vector<432x128xbf16> to vector<384x128xbf16>
    %c0_116 = arith.constant 0 : index
    %c2_117 = arith.constant 2 : index
    %c0_118 = arith.constant 0 : index
    %c0_119 = arith.constant 0 : index
    %134 = vector.load %arg5[%c0_116, %c2_117, %c0_118, %c0_119] : memref<3x3x128x128xbf16, #tpu.memory_space<vmem>>, vector<1x1x128x128xbf16>
    %135 = vector.shape_cast %134 : vector<1x1x128x128xbf16> to vector<128x128xbf16>
    %cst_120 = arith.constant dense<0.000000e+00> : vector<384x128xf32>
    %136 = tpu.matmul %133, %135, %cst_120 {dimension_numbers = #tpu.dot_dimension_numbers<[1], [0], [0], [1], [0, 0, 1, 1], [], []>} : vector<384x128xbf16>, vector<128x128xbf16>, vector<384x128xf32> -> vector<384x128xf32>
    %137 = vector.extract_strided_slice %132 {offsets = [24, 0], sizes = [384, 128], strides = [1, 1]} : vector<432x128xbf16> to vector<384x128xbf16>
    %c1_121 = arith.constant 1 : index
    %c2_122 = arith.constant 2 : index
    %c0_123 = arith.constant 0 : index
    %c0_124 = arith.constant 0 : index
    %138 = vector.load %arg5[%c1_121, %c2_122, %c0_123, %c0_124] : memref<3x3x128x128xbf16, #tpu.memory_space<vmem>>, vector<1x1x128x128xbf16>
    %139 = vector.shape_cast %138 : vector<1x1x128x128xbf16> to vector<128x128xbf16>
    %cst_125 = arith.constant dense<0.000000e+00> : vector<384x128xf32>
    %140 = tpu.matmul %137, %139, %cst_125 {dimension_numbers = #tpu.dot_dimension_numbers<[1], [0], [0], [1], [0, 0, 1, 1], [], []>} : vector<384x128xbf16>, vector<128x128xbf16>, vector<384x128xf32> -> vector<384x128xf32>
    %141 = arith.addf %136, %140 : vector<384x128xf32>
    %142 = vector.extract_strided_slice %132 {offsets = [48, 0], sizes = [384, 128], strides = [1, 1]} : vector<432x128xbf16> to vector<384x128xbf16>
    %c2_126 = arith.constant 2 : index
    %c2_127 = arith.constant 2 : index
    %c0_128 = arith.constant 0 : index
    %c0_129 = arith.constant 0 : index
    %143 = vector.load %arg5[%c2_126, %c2_127, %c0_128, %c0_129] : memref<3x3x128x128xbf16, #tpu.memory_space<vmem>>, vector<1x1x128x128xbf16>
    %144 = vector.shape_cast %143 : vector<1x1x128x128xbf16> to vector<128x128xbf16>
    %cst_130 = arith.constant dense<0.000000e+00> : vector<384x128xf32>
    %145 = tpu.matmul %142, %144, %cst_130 {dimension_numbers = #tpu.dot_dimension_numbers<[1], [0], [0], [1], [0, 0, 1, 1], [], []>} : vector<384x128xbf16>, vector<128x128xbf16>, vector<384x128xf32> -> vector<384x128xf32>
    %146 = arith.addf %141, %145 : vector<384x128xf32>
    %c0_131 = arith.constant 0 : index
    %c0_132 = arith.constant 0 : index
    %147 = vector.load %arg12[%c0_131, %c0_132] : memref<384x128xf32, #tpu.memory_space<vmem>>, vector<384x128xf32>
    %148 = arith.addf %147, %146 : vector<384x128xf32>
    %c0_133 = arith.constant 0 : index
    %c0_134 = arith.constant 0 : index
    %149 = vector.load %arg12[%c0_133, %c0_134] : memref<384x128xf32, #tpu.memory_space<vmem>>, vector<384x128xf32>
    tpu.vector_store %arg12[%c0_133, %c0_134], %148 {strides = array<i32>} : memref<384x128xf32, #tpu.memory_space<vmem>>, vector<384x128xf32>,
    %c0_135 = arith.constant 0 : index
    %c0_136 = arith.constant 0 : index
    %150 = vector.load %arg12[%c0_135, %c0_136] : memref<384x128xf32, #tpu.memory_space<vmem>>, vector<384x128xf32>
    %c0_137 = arith.constant 0 : index
    %c0_138 = arith.constant 0 : index
    %151 = vector.load %arg6[%c0_137, %c0_138] : memref<1x128xf32, #tpu.memory_space<vmem>>, vector<1x128xf32>
    %152 = vector.broadcast %151 : vector<1x128xf32> to vector<384x128xf32>
    %153 = arith.mulf %150, %152 : vector<384x128xf32>
    %c0_139 = arith.constant 0 : index
    %c0_140 = arith.constant 0 : index
    %154 = vector.load %arg7[%c0_139, %c0_140] : memref<1x128xf32, #tpu.memory_space<vmem>>, vector<1x128xf32>
    %155 = vector.broadcast %154 : vector<1x128xf32> to vector<384x128xf32>
    %156 = arith.addf %153, %155 : vector<384x128xf32>
    %c0_141 = arith.constant 0 : index
    %c25 = arith.constant 25 : index
    %c0_142 = arith.constant 0 : index
    %157 = vector.load %arg1[%c0_141, %c25, %c0_142] : memref<1x456x128xf32, #tpu.memory_space<vmem>>, vector<1x384x128xf32>
    %158 = vector.shape_cast %157 : vector<1x384x128xf32> to vector<384x128xf32>
    %159 = arith.truncf %158 : vector<384x128xf32> to vector<384x128xbf16>
    %c0_143 = arith.constant 0 : index
    %c0_144 = arith.constant 0 : index
    %160 = vector.load %arg8[%c0_143, %c0_144] : memref<128x128xbf16, #tpu.memory_space<vmem>>, vector<128x128xbf16>
    %cst_145 = arith.constant dense<0.000000e+00> : vector<384x128xf32>
    %161 = tpu.matmul %159, %160, %cst_145 {dimension_numbers = #tpu.dot_dimension_numbers<[1], [0], [0], [1], [0, 0, 1, 1], [], []>} : vector<384x128xbf16>, vector<128x128xbf16>, vector<384x128xf32> -> vector<384x128xf32>
    %c0_146 = arith.constant 0 : index
    %c0_147 = arith.constant 0 : index
    %162 = vector.load %arg9[%c0_146, %c0_147] : memref<1x128xf32, #tpu.memory_space<vmem>>, vector<1x128xf32>
    %163 = vector.broadcast %162 : vector<1x128xf32> to vector<384x128xf32>
    %164 = arith.mulf %161, %163 : vector<384x128xf32>
    %c0_148 = arith.constant 0 : index
    %c0_149 = arith.constant 0 : index
    %165 = vector.load %arg10[%c0_148, %c0_149] : memref<1x128xf32, #tpu.memory_space<vmem>>, vector<1x128xf32>
    %166 = vector.broadcast %165 : vector<1x128xf32> to vector<384x128xf32>
    %167 = arith.addf %164, %166 : vector<384x128xf32>
    %168 = arith.addf %156, %167 : vector<384x128xf32>
    %cst_150 = arith.constant 0.000000e+00 : f32
    %169 = vector.broadcast %cst_150 : f32 to vector<384x128xf32>
    %170 = arith.maximumf %168, %169 : vector<384x128xf32>
    %c0_151 = arith.constant 0 : index
    %c0_152 = arith.constant 0 : index
    %c0_153 = arith.constant 0 : index
    %171 = vector.load %arg11[%c0_151, %c0_152, %c0_153] : memref<1x384x128xf32, #tpu.memory_space<vmem>>, vector<1x384x128xf32>
    %172 = vector.shape_cast %171 : vector<1x384x128xf32> to vector<384x128xf32>
    %173 = vector.shape_cast %170 : vector<384x128xf32> to vector<1x384x128xf32>
    tpu.vector_store %arg11[%c0_151, %c0_152, %c0_153], %173 {strides = array<i32>} : memref<1x384x128xf32, #tpu.memory_space<vmem>>, vector<1x384x128xf32>,
    return
  }
  func.func @transform_0(%arg0: i32) -> (i32, i32, i32) {
    %c0_i32 = arith.constant 0 : i32
    %c0_i32_0 = arith.constant 0 : i32
    %c0_i32_1 = arith.constant 0 : i32
    return %arg0, %c0_i32, %c0_i32_0 : i32, i32, i32
  }
  func.func @transform_1(%arg0: i32) -> (i32, i32, i32, i32) {
    %c0_i32 = arith.constant 0 : i32
    %c0_i32_0 = arith.constant 0 : i32
    %c0_i32_1 = arith.constant 0 : i32
    %c0_i32_2 = arith.constant 0 : i32
    %c0_i32_3 = arith.constant 0 : i32
    return %c0_i32, %c0_i32_0, %c0_i32_1, %c0_i32_2 : i32, i32, i32, i32
  }
  func.func @transform_2(%arg0: i32) -> (i32, i32) {
    %c0_i32 = arith.constant 0 : i32
    %c0_i32_0 = arith.constant 0 : i32
    %c0_i32_1 = arith.constant 0 : i32
    return %c0_i32, %c0_i32_0 : i32, i32
  }
  func.func @transform_3(%arg0: i32) -> (i32, i32) {
    %c0_i32 = arith.constant 0 : i32
    %c0_i32_0 = arith.constant 0 : i32
    %c0_i32_1 = arith.constant 0 : i32
    return %c0_i32, %c0_i32_0 : i32, i32
  }
  func.func @transform_4(%arg0: i32) -> (i32, i32, i32, i32) {
    %c0_i32 = arith.constant 0 : i32
    %c0_i32_0 = arith.constant 0 : i32
    %c0_i32_1 = arith.constant 0 : i32
    %c0_i32_2 = arith.constant 0 : i32
    %c0_i32_3 = arith.constant 0 : i32
    return %c0_i32, %c0_i32_0, %c0_i32_1, %c0_i32_2 : i32, i32, i32, i32
  }
  func.func @transform_5(%arg0: i32) -> (i32, i32) {
    %c0_i32 = arith.constant 0 : i32
    %c0_i32_0 = arith.constant 0 : i32
    %c0_i32_1 = arith.constant 0 : i32
    return %c0_i32, %c0_i32_0 : i32, i32
  }
  func.func @transform_6(%arg0: i32) -> (i32, i32) {
    %c0_i32 = arith.constant 0 : i32
    %c0_i32_0 = arith.constant 0 : i32
    %c0_i32_1 = arith.constant 0 : i32
    return %c0_i32, %c0_i32_0 : i32, i32
  }
  func.func @transform_7(%arg0: i32) -> (i32, i32) {
    %c0_i32 = arith.constant 0 : i32
    %c0_i32_0 = arith.constant 0 : i32
    %c0_i32_1 = arith.constant 0 : i32
    return %c0_i32, %c0_i32_0 : i32, i32
  }
  func.func @transform_8(%arg0: i32) -> (i32, i32) {
    %c0_i32 = arith.constant 0 : i32
    %c0_i32_0 = arith.constant 0 : i32
    %c0_i32_1 = arith.constant 0 : i32
    return %c0_i32, %c0_i32_0 : i32, i32
  }
  func.func @transform_9(%arg0: i32) -> (i32, i32) {
    %c0_i32 = arith.constant 0 : i32
    %c0_i32_0 = arith.constant 0 : i32
    %c0_i32_1 = arith.constant 0 : i32
    return %c0_i32, %c0_i32_0 : i32, i32
  }
  func.func @transform_10(%arg0: i32) -> (i32, i32, i32) {
    %c0_i32 = arith.constant 0 : i32
    %c0_i32_0 = arith.constant 0 : i32
    %c0_i32_1 = arith.constant 0 : i32
    return %arg0, %c0_i32, %c0_i32_0 : i32, i32, i32
  }
}

</mosaic_0001>

<bundles_post_ra>
// kernel: tpu_custom_call.1
= control target key start
LH: loop header
LB: loop body
LE: loop exit
PB: predicated region body
PF: predicated region fallthrough
CT: control target
= control target key end

     0   :  { %s17442_s0 = inlined_call_operand.hbm [shape: f32[2,456,128], index: 0, kind: input, shape index: {}]   ;;  %s17443_s1 = inlined_call_operand.hbm [shape: bf16[3,3,128,128], index: 1, kind: input, shape index: {}]   ;;  %s17444_s2 = inlined_call_operand.vmem [shape: f32[1,128], index: 2, kind: input, shape index: {}]   ;;  %s17445_s3 = inlined_call_operand.vmem [shape: f32[1,128], index: 3, kind: input, shape index: {}]   ;;  %s17446_s4 = inlined_call_operand.hbm [shape: bf16[3,3,128,128], index: 4, kind: input, shape index: {}]   ;;  %s17447_s5 = inlined_call_operand.vmem [shape: f32[1,128], index: 5, kind: input, shape index: {}]   ;;  %s17448_s6 = inlined_call_operand.vmem [shape: f32[1,128], index: 6, kind: input, shape index: {}]   ;;  %s17449_s7 = inlined_call_operand.hbm [shape: bf16[128,128], index: 7, kind: input, shape index: {}]   ;;  %s17450_s8 = inlined_call_operand.vmem [shape: f32[1,128], index: 8, kind: input, shape index: {}]   ;;  %s17451_s9 = inlined_call_operand.vmem [shape: f32[1,128], index: 9, kind: input, shape index: {}]   ;;  %s17452_s10 = inlined_call_operand.hbm [shape: f32[2,384,128], index: 10, kind: output, shape index: {}]  }
   0x1   :  { %17600 = sst [smem:[#allocation182_spill]] %s17443_s1 }
   0x2   :  { %17601 = sst [smem:[#allocation183_spill]] %s17446_s4 }
   0x3   :  { %17602 = sst [smem:[#allocation184_spill]] %s17449_s7 }
   0x4   :  { %15 = vsyncpa [#allocation5], 0 }
   0x5   :  { %17 = vsyncpa [#allocation5 + $0x1], 0 }
   0x6   :  { %18 = vsyncpa [#allocation8], 0 }
   0x7   :  { %19 = vsyncpa [#allocation11], 0 }
   0x8   :  { %20 = vsyncpa [#allocation6], 0 }
   0x9   :  { %22 = vsyncpa [#allocation6 + $0x1], 0  ;;  %s12470_s13 = smov 0   ;;  %s12472_s14 = smov 0  }
   0xa   :  { %s12474_s15 = smov 0   ;;  %s12476_s16 = smov 0  }
   0xb LB: > { %s12491_s17 = sadd.s32 4294967295, %s12400_s16   ;;  %s9836_s18 = sadd.s32 4294967294, %s12400_s16   ;;  %s12400_s16 = sphi %s12476_s16, %s18816_s16   ;;  %s12396_s15 = sphi %s12474_s15, %s18815_s15   ;;  %s12392_s14 = sphi %s12472_s14, %s18814_s14   ;;  %s12388_s13 = sphi %s12470_s13, %s18813_s13  }
   0xc   : > { %p48_p0 = scmp.ne.s32.totalorder %s12392_s14, %s12388_s13  ;;  %p17453_p1 = scmp.eq.s32.totalorder %s12491_s17, 0 }
   0xd   : > { %p267_p3 = scmp.eq.s32.totalorder %s9836_s18, 1  ;;  %p9837_p5 = scmp.ge.s32.totalorder %s12400_s16, 1 }
   0xe   : > { %p12500_p4 = por %p17453_p1, %p48_p0  ;;  %p274_p7 = scmp.lt.s32.totalorder %s12400_s16, 3 }
   0xf   : > { %p12505_p6 = por %p267_p3, %p48_p0  ;;  %s12402_s22 = smov [#allocation7]  }
  0x10   : > { %s17603_s19 = scalar_select %p12500_p4, 1, 0 }
  0x11   : > { %s17604_s20 = scalar_select %p12505_p6, 1, 0 }
  0x12   : > { %p12510_p8 = pnand %p9837_p5, %p274_p7  ;;  %s286_s23 = sshll.u32 %s12402_s22, 4  ;;  %s287_s23 = int_to_ptr.vmem [resolvable:$true] %s286_s23 }
  0x13   : > { %s12403_s25 = smov [#allocation9]   ;;  %s12404_s27 = smov [#allocation10]  }
  0x14   : > { %s17605_s21 = scalar_select %p12510_p8, 1, 0 }
  0x15   : > { %p11965_p9 = pneg %p12510_p8  ;;  %s305_s26 = sshll.u32 %s12403_s25, 4  ;;  %s306_s26 = int_to_ptr.vmem [resolvable:$true] %s305_s26 }
  0x16   : > { %s324_s28 = sshll.u32 %s12404_s27, 4  ;;  %s12233_s29 = scalar_lea.vmem %s287_s23, 9216  ;;  %s325_s28 = int_to_ptr.vmem [resolvable:$true] %s324_s28 }
  0x17   : > { %p12519_p11 = pnand %p11965_p9, %p17453_p1  ;;  %p12234_p13 = scmp.ne.s32.totalorder %s287_s23, %s12233_s29 }
  0x18   : > { %p12241_p5 = scmp.lt.s32.totalorder %s287_s23, %s287_s23  ;;  %p12242_p7 = scmp.lt.s32.totalorder %s12233_s29, %s12233_s29 }
  0x19   : > { %p12224_p12 = pneg %p12519_p11 }
  0x1a   : > { %p12243_p9 = por %p12242_p7, %p12241_p5 }
  0x1b   : > { %p12236_p0 = pnand %p12234_p13, %p12224_p12 }
  0x1d   : > { %p12237_p3 = pneg %p12236_p0 }
  0x1f   : > { %p12244_p10 = pnand %p12243_p9, %p12237_p3 }
  0x21   : > { %12247 = shalt.err (!%p12244_p10)
}
  0x22   : > { %s12405_s30 = smov 64   ;;  %s12406_s11 = smov 4  }
  0x23   : > { %s17607_s1 = sld [smem:[#allocation182_spill]]  ;;  %s12259_s22 = scalar_lea.vmem %s306_s26, 9216 }
  0x24   : > { %p12260_p1 = scmp.ne.s32.totalorder %s306_s26, %s12259_s22  ;;  %p12267_p2 = scmp.lt.s32.totalorder %s306_s26, %s306_s26 }
  0x25   : > { %p12268_p6 = scmp.lt.s32.totalorder %s12259_s22, %s12259_s22 }
  0x26   : > { %p12262_p13 = pnand %p12260_p1, %p12224_p12 }
  0x27   : > { %p12269_p5 = por %p12268_p6, %p12267_p2 }
  0x28   : > { %p12263_p0 = pneg %p12262_p13 }
  0x29   : > { %11968 = dma.hbm_to_vmem [thread:$0]  (!%p12519_p11), %s17607_s1, 9216, %s287_s23, [#allocation8], %s12405_s30, %s12405_s30, %s12406_s11  }
  0x2a   : > { %p12270_p3 = pnand %p12269_p5, %p12263_p0 }
  0x2c   : > { %12273 = shalt.err (!%p12270_p3)
}
  0x2d   : > { %s17608_s4 = sld [smem:[#allocation183_spill]]  ;;  %s12285_s23 = scalar_lea.vmem %s325_s28, 1024 }
  0x2e   : > { %p12286_p10 = scmp.ne.s32.totalorder %s325_s28, %s12285_s23  ;;  %p12293_p9 = scmp.lt.s32.totalorder %s325_s28, %s325_s28 }
  0x2f   : > { %p12294_p13 = scmp.lt.s32.totalorder %s12285_s23, %s12285_s23 }
  0x30   : > { %p12288_p7 = pnand %p12286_p10, %p12224_p12 }
  0x31   : > { %p12295_p4 = por %p12294_p13, %p12293_p9 }
  0x32   : > { %p12289_p1 = pneg %p12288_p7 }
  0x33   : > { %11971 = dma.hbm_to_vmem [thread:$0]  (!%p12519_p11), %s17608_s4, 9216, %s306_s26, [#allocation8], %s12405_s30, %s12405_s30, %s12406_s11  }
  0x34   : > { %p12296_p2 = pnand %p12295_p4, %p12289_p1 }
  0x36   : > { %12299 = shalt.err (!%p12296_p2)
}
  0x37   : > { %s17609_s7 = sld [smem:[#allocation184_spill]]  ;;  %s12550_s26 = sadd.s32 1, %s12400_s16  }
  0x38   : > { %s32_s18 = ssub.s32 %s12400_s16, %s12550_s26  ;;  %s35_s24 = sadd.s32 1, %s12396_s15 }
  0x39   : > { %p33_p4 = scmp.eq.s32.totalorder %s32_s18, 0  ;;  %p42_p6 = scmp.ne.s32.totalorder %s12396_s15, %s12392_s14 }
  0x3a   : > { %p43_p12 = scmp.eq.s32.totalorder %s12400_s16, 0  ;;  %p11986_p0 = scmp.lt.s32.totalorder %s12400_s16, 2 }
  0x3b   : > { %s12560_s22 = scalar_select %p33_p4, %s12396_s15, %s35_s24  }
  0x3c   : > { %p44_p5 = por %p43_p12, %p42_p6  ;;  %p17611_p3 = scmp.eq.s32.totalorder %s12491_s17, 1 }
  0x3d   : > { %11974 = dma.hbm_to_vmem [thread:$0]  (!%p12519_p11), %s17609_s7, 1024, %s325_s28, [#allocation11], %s12405_s30, %s12405_s30, %s12406_s11  }
  0x3e   : > { %17610 = sst [smem:[#allocation17_spill]] %s12560_s22  ;;  %p12564_p10 = por %p17611_p3, %p42_p6 }
  0x3f   : > { %s344_s27 = sand.u32 1, %s12396_s15   ;;  %s11849_s23 = smul.u32 7296, %s12400_s16 }
  0x40   : > { %s17612_s25 = scalar_select %p12564_p10, 1, 0 }
  0x41   : > { %s11848_s28 = smul.u32 456, %s344_s27  ;;  %s12573_s29 = scalar_lea.hbm %s17442_s0, %s11849_s23 }
  0x42   : > { %p12575_p11 = pnand %p11986_p0, %p44_p5  ;;  %s12581_s1 = scalar_lea.sflag [#allocation5], %s344_s27 }
  0x43   : > { %s348_s18 = scalar_lea.vmem [#allocation4], %s11848_s28  ;;  %s12300_s4 = scalar_lea.hbm %s12573_s29, 7296 }
  0x44   : > { %s355_s24 = sshll.u32 %s348_s18, 4  ;;  %p12301_p7 = scmp.ne.s32.totalorder %s12573_s29, %s12300_s4  ;;  %s12579_s24 = int_to_ptr.vmem [resolvable:$true] %s355_s24 }
  0x45   : > { %p12302_p1 = pneg %p12575_p11  ;;  %s12305_s11 = scalar_lea.hbm %s17442_s0, 14592 }
  0x46   : > { %p12306_p2 = scmp.lt.s32.totalorder %s12573_s29, %s17442_s0  ;;  %p12307_p4 = scmp.lt.s32.totalorder %s12305_s11, %s12300_s4 }
  0x47   : > { %p12303_p9 = pnand %p12302_p1, %p12301_p7 }
  0x48   : > { %p12308_p6 = por %p12307_p4, %p12306_p2 }
  0x49   : > { %p12304_p13 = pneg %p12303_p9 }
  0x4b   : > { %p12309_p12 = pnand %p12308_p6, %p12304_p13 }
  0x4d   : > { %12312 = shalt.err (!%p12309_p12)
}
  0x4e   : > { %s12313_s27 = scalar_lea.vmem %s12579_s24, 7296  ;;  %s12407_s28 = smov [#allocation4]  }
  0x4f   : > { %p12314_p0 = scmp.ne.s32.totalorder %s12579_s24, %s12313_s27  ;;  %s12318_s18 = sshll.u32 %s12407_s28, 4  ;;  %s12319_s18 = int_to_ptr.vmem [resolvable:$false] %s12318_s18 }
  0x50   : > { %s12320_s23 = scalar_lea.vmem %s12319_s18, 14592  ;;  %p12321_p7 = scmp.lt.s32.totalorder %s12579_s24, %s12319_s18 }
  0x51   : > { %p12316_p5 = pnand %p12314_p0, %p12302_p1  ;;  %p12322_p9 = scmp.lt.s32.totalorder %s12320_s23, %s12313_s27 }
  0x53   : > { %p12317_p3 = pneg %p12316_p5  ;;  %p12323_p10 = por %p12322_p9, %p12321_p7 }
  0x55   : > { %p12324_p8 = pnand %p12323_p10, %p12317_p3 }
  0x57   : > { %12327 = shalt.err (!%p12324_p8)
}
  0x58   : > { %s12408_s4 = smov 128   ;;  %s12409_s7 = smov 8  }
  0x59   : > { %11978 = dma.hbm_to_vmem [thread:$0]  (!%p12575_p11), %s12573_s29, 7296, %s12579_s24, %s12581_s1, %s12408_s4, %s12408_s4, %s12409_s7  }
  0x5a   : > { %p17614_p1 = scmp.ne.s32.totalorder %s17605_s21, 0 }
  0x5c   : > { %367 = sbr.rel (%p17614_p1) target bundleno = 1470 (0x5be), region = 60 }
  0x61   : > { %s12605_s22 = sand.u32 1, %s12392_s14   ;;  %p17615_p8 = scmp.ne.s32.totalorder %s17603_s19, 0 }
  0x62   : > { %s11850_s30 = smul.u32 456, %s12605_s22  ;;  %s370_s11 = scalar_lea.sflag [#allocation5], %s12605_s22 }
  0x64   : > { %s12609_s27 = scalar_lea.vmem [#allocation4], %s11850_s30 }
  0x65   : > { %12371 = dma.done.wait (%p17615_p8), %s370_s11, 7296  }
  0x66   : > { %12373 = vsyncadd (%p17615_p8), %s370_s11, 4294960000  ;;  %p17616_p10 = scmp.eq.s32.totalorder %s12491_s17, 0 }
  0x68   : > { %12375 = dma.done.wait (%p17616_p10), [#allocation8], 18432   ;;  %p17617_p11 = pmov %p17616_p10 }
  0x69   : > { %p17618_p13 = pmov %p17616_p10 }
  0x6a   : > { %12377 = vsyncadd (%p17617_p11), [#allocation8], 4294948864 }
  0x6b   : > { %12379 = dma.done.wait (%p17618_p13), [#allocation11], 1024   ;;  %p17619_p2 = pmov %p17616_p10 }
  0x6c   : > { %v12033_v0 = vld [vmem:[#allocation7 + $0xf8] sm:$0xff]   ;;  %v12034_v1 = vld [vmem:[#allocation7 + $0xf0] sm:$0xff]   ;;  %v12035_v2 = vld [vmem:[#allocation7 + $0xe8] sm:$0xff]   ;;  %vm17475_vm0 = vcmask 1043456   ;;  %s11851_s21 = smul.u32 384, %s12605_s22  ;;  %p18809_p6 = scmp.ne.s32.totalorder %s17612_s25, 0 }
  0x6d   : > { %12381 = vsyncadd (%p17619_p2), [#allocation11], 4294966272  ;;  %10616 = vmatprep.subr.bf16.mxu0 %v12033_v0  ;;  %11832 = vmatprep.subr.bf16.mxu1 %v12033_v0  ;;  %v12036_v3 = vld [vmem:[#allocation7 + $0xe0] sm:$0xff]   ;;  %v426_v5 = vld [vmem:[%s12609_s27 + $0x18] sm:$0xff]  ;;  %s11948_s12 = smul.u32 6144, %s12491_s17  ;;  %s9721_s17 = scalar_lea.sflag [#allocation6], %s12605_s22 }
  0x6e   : > { %10617 = vmatpush3.bf16.msra.mxu0 %v12033_v0  ;;  %11840 = vmatpush3.bf16.msra.mxu1 %v12033_v0  ;;  %v425_v4 = vld [vmem:[%s12609_s27 + $0x10] sm:$0xff]  ;;  %v427_v6 = vld [vmem:[%s12609_s27 + $0x20] sm:$0xff]  ;;  %v428_v7 = vld [vmem:[%s12609_s27 + $0x28] sm:$0xff]  ;;  %s17034_s29 = scalar_lea.vmem [#allocation12], %s11851_s21  ;;  %s12412_s11 = smov [#allocation12]  }
  0x6f   : > { %10618 = vmatprep.subr.bf16.mxu0 %v12034_v1  ;;  %11833 = vmatprep.subr.bf16.mxu1 %v12034_v1  ;;  %v12627_v8 = vpack.c.bf16 %v426_v5, %v425_v4  ;;  %v449_v9 = vld [vmem:[%s12609_s27 + $0xd0] sm:$0xff]  ;;  %v450_v10 = vld [vmem:[%s12609_s27 + $0xd8] sm:$0xff]  ;;  %v12631_v11 = vpack.c.bf16 %v428_v7, %v427_v6  ;;  %v451_v12 = vld [vmem:[%s12609_s27 + $0xe0] sm:$0xff]  ;;  %s9734_s18 = sshll.u32 %s17034_s29, 4  ;;  %s17395_s7 = scalar_lea.hbm %s17452_s10, %s11948_s12  ;;  %s17398_s18 = int_to_ptr.vmem [resolvable:$true] %s9734_s18 }
  0x70   : > { %v452_v13 = vld [vmem:[%s12609_s27 + $0xe8] sm:$0xff]  ;;  %v12635_v14 = vpack.c.bf16 %v450_v10, %v449_v9  ;;  %v12038_v23 = vld [vmem:[#allocation7 + $0xd0] sm:$0xff]   ;;  %v429_v24 = vld [vmem:[%s12609_s27 + $0x30] sm:$0xff]  ;;  %s12328_s30 = scalar_lea.vmem %s17398_s18, 6144 }
  0x71   : > { %v12037_v15 = vld [vmem:[#allocation7 + $0xd8] sm:$0xff]   ;;  %v563_v16 = vrot.slane %v12627_v8, 4  ;;  %v12638_v17 = vpack.c.bf16 %v452_v13, %v451_v12  ;;  %v564_v18 = vrot.slane %v12631_v11, 4  ;;  %v12039_v25 = vld [vmem:[#allocation7 + $0xc8] sm:$0xff]   ;;  %v12040_v35 = vld [vmem:[#allocation7 + $0xc0] sm:$0xff]   ;;  %p12329_p4 = scmp.ne.s32.totalorder %s17398_s18, %s12328_s30 }
  0x72   : > { %10619 = vmatpush3.bf16.msra.mxu0 %v12034_v1  ;;  %11841 = vmatpush3.bf16.msra.mxu1 %v12034_v1  ;;  %v586_v19 = vrot.slane %v12635_v14, 4  ;;  %v430_v26 = vld [vmem:[%s12609_s27 + $0x38] sm:$0xff]  ;;  %v453_v27 = vld [vmem:[%s12609_s27 + $0xf0] sm:$0xff]  ;;  %v431_v30 = vld [vmem:[%s12609_s27 + $0x40] sm:$0xff] }
  0x73   : > { %10620 = vmatprep.subr.bf16.mxu0 %v12035_v2  ;;  %11834 = vmatprep.subr.bf16.mxu1 %v12035_v2  ;;  %v588_v20 = vrot.slane %v12638_v17, 4  ;;  %v565_v21 = vsel %vm17475_vm0, %v563_v16, %v564_v18  ;;  %v454_v28 = vld [vmem:[%s12609_s27 + $0xf8] sm:$0xff]  ;;  %v12651_v29 = vpack.c.bf16 %v430_v26, %v429_v24  ;;  %v432_v31 = vld [vmem:[%s12609_s27 + $0x48] sm:$0xff]  ;;  %v455_v33 = vld [vmem:[%s12609_s27 + $0x100] sm:$0xff]  ;;  %p12330_p12 = pnand %p12329_p4, %p18809_p6 }
  0x74   : > { %10632 = vmatprep.mubr.bf16.mxu0 %v565_v21  ;;  %v12655_v32 = vpack.c.bf16 %v454_v28, %v453_v27  ;;  %v456_v34 = vld [vmem:[%s12609_s27 + $0x108] sm:$0xff]  ;;  %v12659_v36 = vpack.c.bf16 %v432_v31, %v431_v30  ;;  %v433_v41 = vld [vmem:[%s12609_s27 + $0x50] sm:$0xff]  ;;  %v434_v43 = vld [vmem:[%s12609_s27 + $0x58] sm:$0xff] }
  0x75   : > { %v589_v22 = vsel %vm17475_vm0, %v586_v19, %v588_v20  ;;  %v566_v37 = vrot.slane %v12651_v29, 4  ;;  %v12041_v38 = vld [vmem:[#allocation7 + $0x38] sm:$0xff]   ;;  %v12662_v40 = vpack.c.bf16 %v456_v34, %v455_v33  ;;  %v457_v44 = vld [vmem:[%s12609_s27 + $0x110] sm:$0xff]  ;;  %v458_v45 = vld [vmem:[%s12609_s27 + $0x118] sm:$0xff]  ;;  %v12677_v54 = vpack.c.bf16 %v434_v43, %v433_v41  ;;  %p12331_p0 = pneg %p12330_p12 }
  0x76   : > { %10621 = vmatpush3.bf16.msra.mxu0 %v12035_v2  ;;  %11842 = vmatpush3.bf16.msra.mxu1 %v12035_v2  ;;  %v12042_v39 = vld [vmem:[#allocation7 + $0x1b8] sm:$0xff]   ;;  %v590_v42 = vrot.slane %v12655_v32, 4  ;;  %v568_v48 = vrot.slane %v12659_v36, 4  ;;  %v12679_v55 = vpack.c.bf16 %v458_v45, %v457_v44  ;;  %v12043_v56 = vld [vmem:[#allocation7 + $0x30] sm:$0xff]   ;;  %v437_v61 = vld [vmem:[%s12609_s27 + $0x70] sm:$0xff] }
  0x77   : > { %10622 = vmatprep.subr.bf16.mxu0 %v12036_v3  ;;  %11835 = vmatprep.subr.bf16.mxu1 %v12036_v3  ;;  %v435_v46 = vld [vmem:[%s12609_s27 + $0x60] sm:$0xff]  ;;  %v436_v47 = vld [vmem:[%s12609_s27 + $0x68] sm:$0xff]  ;;  %v567_v50 = vsel %vm17475_vm0, %v564_v18, %v566_v37  ;;  %v592_v51 = vrot.slane %v12662_v40, 4  ;;  %v438_v62 = vld [vmem:[%s12609_s27 + $0x78] sm:$0xff] }
  0x78   : > { %10656 = vmatprep.mubr.bf16.mxu1 %v589_v22  ;;  %v459_v49 = vld [vmem:[%s12609_s27 + $0x120] sm:$0xff]  ;;  %v460_v52 = vld [vmem:[%s12609_s27 + $0x128] sm:$0xff]  ;;  %v591_v53 = vsel %vm17475_vm0, %v588_v20, %v590_v42  ;;  %v12681_v57 = vpack.c.bf16 %v436_v47, %v435_v46  ;;  %v569_v58 = vsel %vm17475_vm0, %v566_v37, %v568_v48  ;;  %v12045_v0 = vld [vmem:[#allocation7 + $0x28] sm:$0xff]   ;;  %v594_v4 = vrot.slane %v12679_v55, 4 }
  0x79   : > { %v12044_v59 = vld [vmem:[#allocation7 + $0x1b0] sm:$0xff]   ;;  %v12684_v60 = vpack.c.bf16 %v460_v52, %v459_v49  ;;  %v593_v63 = vsel %vm17475_vm0, %v590_v42, %v592_v51  ;;  %v12046_v1 = vld [vmem:[#allocation7 + $0x1a8] sm:$0xff]   ;;  %v440_v9 = vld [vmem:[%s12609_s27 + $0x88] sm:$0xff]  ;;  %v12697_v12 = vpack.c.bf16 %v438_v62, %v437_v61 }
  0x7a   : > { %10623 = vmatpush3.bf16.msra.mxu0 %v12036_v3  ;;  %11843 = vmatpush3.bf16.msra.mxu1 %v12036_v3  ;;  %v461_v2 = vld [vmem:[%s12609_s27 + $0x130] sm:$0xff]  ;;  %v570_v3 = vrot.slane %v12677_v54, 4  ;;  %v462_v5 = vld [vmem:[%s12609_s27 + $0x138] sm:$0xff]  ;;  %v439_v6 = vld [vmem:[%s12609_s27 + $0x80] sm:$0xff]  ;;  %v572_v7 = vrot.slane %v12681_v57, 4  ;;  %v595_v20 = vsel %vm17475_vm0, %v592_v51, %v594_v4 }
  0x7b   : > { %10624 = vmatprep.subr.bf16.mxu0 %v12037_v15  ;;  %11836 = vmatprep.subr.bf16.mxu1 %v12037_v15  ;;  %v596_v10 = vrot.slane %v12684_v60, 4  ;;  %v463_v13 = vld [vmem:[%s12609_s27 + $0x140] sm:$0xff]  ;;  %v12701_v16 = vpack.c.bf16 %v462_v5, %v461_v2  ;;  %v12047_v21 = vld [vmem:[#allocation7 + $0x20] sm:$0xff]   ;;  %v574_v28 = vrot.slane %v12697_v12, 4  ;;  %v442_v30 = vld [vmem:[%s12609_s27 + $0x98] sm:$0xff] }
  0x7c   : > { %v571_v18 = vsel %vm17475_vm0, %v568_v48, %v570_v3  ;;  %v12048_v22 = vld [vmem:[#allocation7 + $0x1a0] sm:$0xff]   ;;  %v573_v24 = vsel %vm17475_vm0, %v570_v3, %v572_v7  ;;  %v466_v33 = vld [vmem:[%s12609_s27 + $0x158] sm:$0xff]  ;;  %v443_v37 = vld [vmem:[%s12609_s27 + $0xa0] sm:$0xff] }
  0x7d   : > { %v441_v26 = vld [vmem:[%s12609_s27 + $0x90] sm:$0xff]  ;;  %v597_v27 = vsel %vm17475_vm0, %v594_v4, %v596_v10  ;;  %v598_v34 = vrot.slane %v12701_v16, 4  ;;  %v444_v41 = vld [vmem:[%s12609_s27 + $0xa8] sm:$0xff]  ;;  %v467_v43 = vld [vmem:[%s12609_s27 + $0x160] sm:$0xff]  ;;  %v575_v47 = vsel %vm17475_vm0, %v572_v7, %v574_v28 }
  0x7e   : > { %10625 = vmatpush3.bf16.msra.mxu0 %v12037_v15  ;;  %11844 = vmatpush3.bf16.msra.mxu1 %v12037_v15  ;;  %v464_v15 = vld [vmem:[%s12609_s27 + $0x148] sm:$0xff]  ;;  %v465_v31 = vld [vmem:[%s12609_s27 + $0x150] sm:$0xff]  ;;  %v12722_v44 = vpack.c.bf16 %v442_v30, %v441_v26  ;;  %v12729_v49 = vpack.c.bf16 %v444_v41, %v443_v37  ;;  %v12051_v52 = vld [vmem:[#allocation7 + $0x10] sm:$0xff]  }
  0x7f   : > { %10626 = vmatprep.subr.bf16.mxu0 %v12038_v23  ;;  %11837 = vmatprep.subr.bf16.mxu1 %v12038_v23  ;;  %v468_v45 = vld [vmem:[%s12609_s27 + $0x168] sm:$0xff]  ;;  %v12725_v46 = vpack.c.bf16 %v466_v33, %v465_v31  ;;  %v599_v48 = vsel %vm17475_vm0, %v596_v10, %v598_v34  ;;  %v445_v61 = vld [vmem:[%s12609_s27 + $0xb0] sm:$0xff]  ;;  %v446_v62 = vld [vmem:[%s12609_s27 + $0xb8] sm:$0xff] }
  0x80   : > { %v12053_v2 = vld [vmem:[#allocation7 + $0x8] sm:$0xff]   ;;  %v447_v4 = vld [vmem:[%s12609_s27 + $0xc0] sm:$0xff]  ;;  %v448_v5 = vld [vmem:[%s12609_s27 + $0xc8] sm:$0xff] }
  0x81   : > { %v12054_v3 = vld [vmem:[#allocation7 + $0x188] sm:$0xff]   ;;  %v471_v7 = vld [vmem:[%s12609_s27 + $0x180] sm:$0xff]  ;;  %v12055_v26 = vld [vmem:[#allocation7] sm:$0xff]  }
  0x82   : > { %10627 = vmatpush3.bf16.msra.mxu0 %v12038_v23  ;;  %11845 = vmatpush3.bf16.msra.mxu1 %v12038_v23  ;;  %v12705_v23 = vpack.c.bf16 %v440_v9, %v439_v6  ;;  %v472_v9 = vld [vmem:[%s12609_s27 + $0x188] sm:$0xff] }
  0x83   : > { %10628 = vmatprep.subr.bf16.mxu0 %v12039_v25  ;;  %11838 = vmatprep.subr.bf16.mxu1 %v12039_v25  ;;  %v12057_v37 = vld [vmem:[#allocation7 + $0x138] sm:$0xff]  }
  0x86   : > { %10629 = vmatpush3.bf16.msra.mxu0 %v12039_v25  ;;  %11846 = vmatpush3.bf16.msra.mxu1 %v12039_v25  ;;  %v12708_v25 = vpack.c.bf16 %v464_v15, %v463_v13 }
  0x87   : > { %10630 = vmatprep.subr.bf16.mxu0 %v12040_v35  ;;  %11839 = vmatprep.subr.bf16.mxu1 %v12040_v35 }
  0x88   : > { %v600_v42 = vrot.slane %v12708_v25, 4 }
  0x8a   : > { %10631 = vmatpush3.bf16.msra.mxu0 %v12040_v35  ;;  %11847 = vmatpush3.bf16.msra.mxu1 %v12040_v35  ;;  %v12049_v35 = vld [vmem:[#allocation7 + $0x18] sm:$0xff]   ;;  %v601_v51 = vsel %vm17475_vm0, %v598_v34, %v600_v42  ;;  %v473_v34 = vld [vmem:[%s12609_s27 + $0x190] sm:$0xff] }
  0x8b   : > { %10680 = vmatprep.subr.bf16.mxu1 %v12041_v38  ;;  %10744 = vmatprep.subr.bf16.mxu0 %v12042_v39 }
  0x8d   : > { %10633 = vmatmul.mubr.bf16.vlgmr.msra.gmra.mxu0 %v567_v50  ;;  %10657 = vmatmul.mubr.bf16.vlgmr.msra.gmra.mxu1 %v591_v53  ;;  %v12733_v53 = vpack.c.bf16 %v468_v45, %v467_v43 }
  0x8e   : > { %10681 = vmatpush3.bf16.msra.mxu1 %v12041_v38  ;;  %10745 = vmatpush3.bf16.msra.mxu0 %v12042_v39  ;;  %v576_v38 = vrot.slane %v12705_v23, 4  ;;  %v12050_v39 = vld [vmem:[#allocation7 + $0x198] sm:$0xff]  }
  0x8f   : > { %10682 = vmatprep.subr.bf16.mxu1 %v12043_v56  ;;  %10636 = vmatprep.mubr.bf16.mxu0 %v569_v58  ;;  %v12052_v58 = vld [vmem:[#allocation7 + $0x190] sm:$0xff]   ;;  %v604_v6 = vrot.slane %v12733_v53, 4 }
  0x90   : > { %10660 = vmatprep.mubr.bf16.mxu1 %v593_v63  ;;  %10746 = vmatprep.subr.bf16.mxu0 %v12044_v59  ;;  %v577_v50 = vsel %vm17475_vm0, %v574_v28, %v576_v38  ;;  %v469_v63 = vld [vmem:[%s12609_s27 + $0x170] sm:$0xff] }
  0x92   : > { %10683 = vmatpush3.bf16.msra.mxu1 %v12043_v56  ;;  %10747 = vmatpush3.bf16.msra.mxu0 %v12044_v59  ;;  %v578_v56 = vrot.slane %v12722_v44, 4  ;;  %v602_v59 = vrot.slane %v12725_v46, 4 }
  0x93   : > { %10684 = vmatprep.subr.bf16.mxu1 %v12045_v0  ;;  %10748 = vmatprep.subr.bf16.mxu0 %v12046_v1 }
  0x94   : > { %v579_v10 = vsel %vm17475_vm0, %v576_v38, %v578_v56  ;;  %v603_v13 = vsel %vm17475_vm0, %v600_v42, %v602_v59  ;;  %v12058_v38 = vld [vmem:[#allocation7 + $0x78] sm:$0xff]  }
  0x95   : > { %10637 = vmatmul.mubr.bf16.gmra.mxu0 %v571_v18  ;;  %10661 = vmatmul.mubr.bf16.gmra.mxu1 %v595_v20  ;;  %v12750_v18 = vpack.c.bf16 %v446_v62, %v445_v61  ;;  %v12061_v61 = vld [vmem:[#allocation7 + $0x128] sm:$0xff]  }
  0x96   : > { %10685 = vmatpush3.bf16.msra.mxu1 %v12045_v0  ;;  %10640 = vmatprep.mubr.bf16.mxu0 %v573_v24  ;;  %v470_v0 = vld [vmem:[%s12609_s27 + $0x178] sm:$0xff]  ;;  %v12757_v24 = vpack.c.bf16 %v472_v9, %v471_v7  ;;  %v1577_v9 = vld [vmem:[%s12609_s27 + $0x49] sm:$0xff] }
  0x97   : > { %10664 = vmatprep.mubr.bf16.mxu1 %v597_v27  ;;  %10749 = vmatpush3.bf16.msra.mxu0 %v12046_v1  ;;  %v580_v1 = vrot.slane %v12729_v49, 4  ;;  %v12752_v20 = vpack.c.bf16 %v470_v0, %v469_v63  ;;  %v12056_v27 = vld [vmem:[#allocation7 + $0x180] sm:$0xff]   ;;  %v582_v28 = vrot.slane %v12750_v18, 4  ;;  %v12062_v62 = vld [vmem:[#allocation7 + $0x68] sm:$0xff]   ;;  %v12067_v0 = vld [vmem:[#allocation7 + $0x110] sm:$0xff]  }
  0x98   : > { %10686 = vmatprep.subr.bf16.mxu1 %v12047_v21  ;;  %10750 = vmatprep.subr.bf16.mxu0 %v12048_v22  ;;  %v608_v33 = vrot.slane %v12757_v24, 4  ;;  %v12064_v63 = vld [vmem:[#allocation7 + $0x60] sm:$0xff]  }
  0x99   : > { %v581_v15 = vsel %vm17475_vm0, %v578_v56, %v580_v1  ;;  %v606_v30 = vrot.slane %v12752_v20, 4 }
  0x9a   : > { %10687 = vmatpush3.bf16.msra.mxu1 %v12047_v21  ;;  %v605_v21 = vsel %vm17475_vm0, %v602_v59, %v604_v6  ;;  %v12060_v59 = vld [vmem:[#allocation7 + $0x70] sm:$0xff]  }
  0x9b   : > { %10751 = vmatpush3.bf16.msra.mxu0 %v12048_v22  ;;  %10688 = vmatprep.subr.bf16.mxu1 %v12049_v35  ;;  %v12755_v22 = vpack.c.bf16 %v448_v5, %v447_v4  ;;  %v607_v41 = vsel %vm17475_vm0, %v604_v6, %v606_v30  ;;  %v609_v45 = vsel %vm17475_vm0, %v606_v30, %v608_v33  ;;  %v1575_v5 = vld [vmem:[%s12609_s27 + $0x39] sm:$0xff]  ;;  %v1576_v6 = vld [vmem:[%s12609_s27 + $0x41] sm:$0xff] }
  0x9c   : > { %10752 = vmatprep.subr.bf16.mxu0 %v12050_v39 }
  0x9d   : > { %10641 = vmatmul.mubr.bf16.gmra.mxu0 %v575_v47  ;;  %10665 = vmatmul.mubr.bf16.gmra.mxu1 %v599_v48  ;;  %v584_v31 = vrot.slane %v12755_v22, 4  ;;  %v423_v48 = vld [vmem:[%s12609_s27] sm:$0xff] }
  0x9e   : > { %10644 = vmatprep.mubr.bf16.mxu0 %v577_v50  ;;  %10668 = vmatprep.mubr.bf16.mxu1 %v601_v51  ;;  %v424_v50 = vld [vmem:[%s12609_s27 + $0x8] sm:$0xff] }
  0x9f   : > { %10689 = vmatpush3.bf16.msra.mxu1 %v12049_v35  ;;  %10753 = vmatpush3.bf16.msra.mxu0 %v12050_v39  ;;  %v474_v35 = vld [vmem:[%s12609_s27 + $0x198] sm:$0xff]  ;;  %v583_v39 = vsel %vm17475_vm0, %v580_v1, %v582_v28  ;;  %v585_v43 = vsel %vm17475_vm0, %v582_v28, %v584_v31  ;;  %v587_v51 = vsel %vm17475_vm0, %v584_v31, %v586_v19  ;;  %v12063_v19 = vld [vmem:[#allocation7 + $0x120] sm:$0xff]  }
  0xa0   : > { %10690 = vmatprep.subr.bf16.mxu1 %v12051_v52  ;;  %10754 = vmatprep.subr.bf16.mxu0 %v12052_v58  ;;  %v12767_v42 = vpack.c.bf16 %v474_v35, %v473_v34  ;;  %v477_v56 = vpack.c.bf16 %v424_v50, %v423_v48  ;;  %v12068_v1 = vld [vmem:[#allocation7 + $0x50] sm:$0xff]  }
  0xa1   : > { %v12075_v31 = vld [vmem:[#allocation7 + $0x1f0] sm:$0xff]  }
  0xa2   : > { %v610_v47 = vrot.slane %v12767_v42, 4  ;;  %v1582_v35 = vld [vmem:[%s12609_s27 + $0x71] sm:$0xff] }
  0xa3   : > { %10691 = vmatpush3.bf16.msra.mxu1 %v12051_v52  ;;  %10755 = vmatpush3.bf16.msra.mxu0 %v12052_v58  ;;  %v12059_v58 = vld [vmem:[#allocation7 + $0x130] sm:$0xff]  }
  0xa4   : > { %10692 = vmatprep.subr.bf16.mxu1 %v12053_v2  ;;  %10756 = vmatprep.subr.bf16.mxu0 %v12054_v3  ;;  %v611_v52 = vsel %vm17475_vm0, %v608_v33, %v610_v47  ;;  %v12076_v33 = vld [vmem:[#allocation7 + $0x170] sm:$0xff]  }
  0xa5   : > { %10645 = vmatmul.mubr.bf16.gmra.mxu0 %v579_v10  ;;  %10669 = vmatmul.mubr.bf16.gmra.mxu1 %v603_v13  ;;  %v12844_v13 = vpack.c.bf16 %v1577_v9, %v1576_v6  ;;  %v1595_v6 = vld [vmem:[%s12609_s27 + $0xd9] sm:$0xff]  ;;  %v1597_v9 = vld [vmem:[%s12609_s27 + $0xe9] sm:$0xff] }
  0xa6   : > { %10648 = vmatprep.mubr.bf16.mxu0 %v581_v15  ;;  %10672 = vmatprep.mubr.bf16.mxu1 %v605_v21  ;;  %v1579_v21 = vld [vmem:[%s12609_s27 + $0x59] sm:$0xff] }
  0xa7   : > { %10693 = vmatpush3.bf16.msra.mxu1 %v12053_v2  ;;  %10757 = vmatpush3.bf16.msra.mxu0 %v12054_v3  ;;  %v12071_v2 = vld [vmem:[#allocation7 + $0x100] sm:$0xff]  }
  0xa8   : > { %10694 = vmatprep.subr.bf16.mxu1 %v12055_v26  ;;  %10758 = vmatprep.subr.bf16.mxu0 %v12056_v27  ;;  %v12072_v3 = vld [vmem:[#allocation7 + $0x40] sm:$0xff]  }
  0xab   : > { %10695 = vmatpush3.bf16.msra.mxu1 %v12055_v26  ;;  %10759 = vmatpush3.bf16.msra.mxu0 %v12056_v27  ;;  %v1581_v26 = vld [vmem:[%s12609_s27 + $0x69] sm:$0xff] }
  0xac   : > { %10808 = vmatprep.subr.bf16.mxu1 %v12057_v37  ;;  %10872 = vmatprep.subr.bf16.mxu0 %v12058_v38 }
  0xad   : > { %10649 = vmatmul.mubr.bf16.gmra.mxu0 %v583_v39  ;;  %10673 = vmatmul.mubr.bf16.gmra.mxu1 %v607_v41  ;;  %v12077_v39 = vld [vmem:[#allocation7 + $0x1e8] sm:$0xff]  }
  0xae   : > { %10652 = vmatprep.mubr.bf16.mxu0 %v585_v43  ;;  %10676 = vmatprep.mubr.bf16.mxu1 %v609_v45  ;;  %v12078_v41 = vld [vmem:[#allocation7 + $0x168] sm:$0xff]  }
  0xaf   : > { %v1585_v43 = vld [vmem:[%s12609_s27 + $0x89] sm:$0xff] }
  0xb5   : > { %10653 = vmatmul.mubr.bf16.gmra.mxu0 %v587_v51  ;;  %10677 = vmatmul.mubr.bf16.gmra.mxu1 %v611_v52  ;;  %v12079_v51 = vld [vmem:[#allocation7 + $0x1e0] sm:$0xff]  }
  0xb6   : > { %10696 = vmatprep.mubr.bf16.mxu1 %v477_v56  ;;  %10760 = vmatprep.mubr.bf16.mxu0 %v12651_v29  ;;  %v12080_v52 = vld [vmem:[#allocation7 + $0x160] sm:$0xff]  }
  0xbd   : > { %10697 = vmatmul.mubr.bf16.vlgmr.msra.gmra.mxu1 %v12627_v8  ;;  %10761 = vmatmul.mubr.bf16.vlgmr.msra.gmra.mxu0 %v12659_v36  ;;  %v12065_v8 = vld [vmem:[#allocation7 + $0x118] sm:$0xff]  }
  0xbe   : > { %10809 = vmatpush3.bf16.msra.mxu1 %v12057_v37  ;;  %10873 = vmatpush3.bf16.msra.mxu0 %v12058_v38  ;;  %v1583_v38 = vld [vmem:[%s12609_s27 + $0x79] sm:$0xff] }
  0xbf   : > { %10700 = vmatprep.mubr.bf16.mxu1 %v12631_v11  ;;  %10764 = vmatprep.mubr.bf16.mxu0 %v12677_v54  ;;  %v12066_v11 = vld [vmem:[#allocation7 + $0x58] sm:$0xff]   ;;  %v12868_v47 = vpack.c.bf16 %v1583_v38, %v1582_v35 }
  0xc0   : > { %10810 = vmatprep.subr.bf16.mxu1 %v12059_v58  ;;  %10874 = vmatprep.subr.bf16.mxu0 %v12060_v59 }
  0xc1   : > { %v1719_v56 = vrot.slane %v12868_v47, 4 }
  0xc2   : > { %10811 = vmatpush3.bf16.msra.mxu1 %v12059_v58  ;;  %10875 = vmatpush3.bf16.msra.mxu0 %v12060_v59  ;;  %v1586_v59 = vld [vmem:[%s12609_s27 + $0x91] sm:$0xff] }
  0xc3   : > { %10812 = vmatprep.subr.bf16.mxu1 %v12061_v61  ;;  %10876 = vmatprep.subr.bf16.mxu0 %v12062_v62 }
  0xc5   : > { %10701 = vmatmul.mubr.bf16.gmra.mxu1 %v12651_v29  ;;  %10765 = vmatmul.mubr.bf16.gmra.mxu0 %v12681_v57  ;;  %v12069_v29 = vld [vmem:[#allocation7 + $0x108] sm:$0xff]  }
  0xc6   : > { %10704 = vmatprep.mubr.bf16.mxu1 %v12659_v36  ;;  %10768 = vmatprep.mubr.bf16.mxu0 %v12697_v12  ;;  %v12070_v36 = vld [vmem:[#allocation7 + $0x48] sm:$0xff]  }
  0xc7   : > { %10813 = vmatpush3.bf16.msra.mxu1 %v12061_v61  ;;  %10877 = vmatpush3.bf16.msra.mxu0 %v12062_v62  ;;  %v1587_v61 = vld [vmem:[%s12609_s27 + $0x99] sm:$0xff]  ;;  %v1588_v62 = vld [vmem:[%s12609_s27 + $0xa1] sm:$0xff] }
  0xc8   : > { %10814 = vmatprep.subr.bf16.mxu1 %v12063_v19  ;;  %10878 = vmatprep.subr.bf16.mxu0 %v12064_v63 }
  0xcb   : > { %10815 = vmatpush3.bf16.msra.mxu1 %v12063_v19  ;;  %10879 = vmatpush3.bf16.msra.mxu0 %v12064_v63  ;;  %v1589_v19 = vld [vmem:[%s12609_s27 + $0xa9] sm:$0xff] }
  0xcc   : > { %10816 = vmatprep.subr.bf16.mxu1 %v12065_v8  ;;  %10880 = vmatprep.subr.bf16.mxu0 %v12066_v11  ;;  %v12081_v63 = vld [vmem:[#allocation7 + $0x1d8] sm:$0xff]  }
  0xcd   : > { %10705 = vmatmul.mubr.bf16.gmra.mxu1 %v12677_v54  ;;  %10769 = vmatmul.mubr.bf16.gmra.mxu0 %v12705_v23  ;;  %v12795_v54 = vld [vmem:[#allocation7 + $0x1f8] sm:$0xff]  }
  0xce   : > { %10708 = vmatprep.mubr.bf16.mxu1 %v12681_v57  ;;  %10772 = vmatprep.mubr.bf16.mxu0 %v12722_v44  ;;  %v12797_v57 = vld [vmem:[#allocation7 + $0x178] sm:$0xff]  }
  0xcf   : > { %10817 = vmatpush3.bf16.msra.mxu1 %v12065_v8  ;;  %10881 = vmatpush3.bf16.msra.mxu0 %v12066_v11  ;;  %v12082_v8 = vld [vmem:[#allocation7 + $0x158] sm:$0xff]  }
  0xd0   : > { %10818 = vmatprep.subr.bf16.mxu1 %v12067_v0  ;;  %10882 = vmatprep.subr.bf16.mxu0 %v12068_v1 }
  0xd3   : > { %10819 = vmatpush3.bf16.msra.mxu1 %v12067_v0  ;;  %10883 = vmatpush3.bf16.msra.mxu0 %v12068_v1  ;;  %v12882_v0 = vpack.c.bf16 %v1587_v61, %v1586_v59 }
  0xd4   : > { %10820 = vmatprep.subr.bf16.mxu1 %v12069_v29  ;;  %10884 = vmatprep.subr.bf16.mxu0 %v12070_v36 }
  0xd5   : > { %10709 = vmatmul.mubr.bf16.gmra.mxu1 %v12697_v12  ;;  %10773 = vmatmul.mubr.bf16.gmra.mxu0 %v12729_v49  ;;  %v475_v12 = vld [vmem:[%s12609_s27 + $0x1a0] sm:$0xff] }
  0xd6   : > { %10712 = vmatprep.mubr.bf16.mxu1 %v12705_v23  ;;  %10776 = vmatprep.mubr.bf16.mxu0 %v12750_v18  ;;  %v1568_v23 = vld [vmem:[%s12609_s27 + $0x1] sm:$0xff] }
  0xd7   : > { %10821 = vmatpush3.bf16.msra.mxu1 %v12069_v29  ;;  %10885 = vmatpush3.bf16.msra.mxu0 %v12070_v36  ;;  %v12885_v29 = vpack.c.bf16 %v1589_v19, %v1588_v62  ;;  %v12083_v36 = vld [vmem:[#allocation7 + $0x1d0] sm:$0xff]  }
  0xd8   : > { %10822 = vmatprep.subr.bf16.mxu1 %v12071_v2  ;;  %10886 = vmatprep.subr.bf16.mxu0 %v12072_v3 }
  0xdb   : > { %10823 = vmatpush3.bf16.msra.mxu1 %v12071_v2  ;;  %10887 = vmatpush3.bf16.msra.mxu0 %v12072_v3  ;;  %v12084_v2 = vld [vmem:[#allocation7 + $0x150] sm:$0xff]   ;;  %v1723_v3 = vrot.slane %v12882_v0, 4 }
  0xdc   : > { %10936 = vmatprep.subr.bf16.mxu1 %v12795_v54  ;;  %11000 = vmatprep.subr.bf16.mxu0 %v12797_v57 }
  0xdd   : > { %10713 = vmatmul.mubr.bf16.gmra.mxu1 %v12722_v44  ;;  %10777 = vmatmul.mubr.bf16.gmra.mxu0 %v12755_v22  ;;  %v1574_v44 = vld [vmem:[%s12609_s27 + $0x31] sm:$0xff] }
  0xde   : > { %10716 = vmatprep.mubr.bf16.mxu1 %v12729_v49  ;;  %10780 = vmatprep.mubr.bf16.mxu0 %v12635_v14  ;;  %v12841_v10 = vpack.c.bf16 %v1575_v5, %v1574_v44  ;;  %v12088_v44 = vld [vmem:[#allocation7 + $0x140] sm:$0xff]  }
  0xdf   : > { %v1594_v5 = vld [vmem:[%s12609_s27 + $0xd1] sm:$0xff] }
  0xe0   : > { %v1711_v15 = vrot.slane %v12841_v10, 4 }
  0xe5   : > { %10717 = vmatmul.mubr.bf16.gmra.mxu1 %v12750_v18  ;;  %10781 = vmatmul.mubr.bf16.gmra.mxu0 %v12638_v17  ;;  %v1578_v18 = vld [vmem:[%s12609_s27 + $0x51] sm:$0xff] }
  0xe6   : > { %10720 = vmatprep.mubr.bf16.mxu1 %v12755_v22  ;;  %10784 = vmatprep.mubr.bf16.mxu0 %v12655_v32  ;;  %v1713_v22 = vrot.slane %v12844_v13, 4  ;;  %v12854_v28 = vpack.c.bf16 %v1579_v21, %v1578_v18  ;;  %v12914_v18 = vpack.c.bf16 %v1595_v6, %v1594_v5  ;;  %v1610_v5 = vld [vmem:[%s12609_s27 + $0x151] sm:$0xff]  ;;  %v1611_v6 = vld [vmem:[%s12609_s27 + $0x159] sm:$0xff] }
  0xe8   : > { %v1715_v34 = vrot.slane %v12854_v28, 4 }
  0xea   : > { %v1716_v45 = vsel %vm17475_vm0, %v1713_v22, %v1715_v34 }
  0xed   : > { %10721 = vmatmul.mubr.bf16.gmra.mxu1 %v12635_v14  ;;  %10785 = vmatmul.mubr.bf16.gmra.mxu0 %v12662_v40  ;;  %v1570_v14 = vld [vmem:[%s12609_s27 + $0x11] sm:$0xff] }
  0xee   : > { %10724 = vmatprep.mubr.bf16.mxu1 %v12638_v17  ;;  %10788 = vmatprep.mubr.bf16.mxu0 %v12679_v55  ;;  %v1571_v17 = vld [vmem:[%s12609_s27 + $0x19] sm:$0xff] }
  0xf5   : > { %10725 = vmatmul.mubr.bf16.gmra.mxu1 %v12655_v32  ;;  %10789 = vmatmul.mubr.bf16.gmra.mxu0 %v12684_v60  ;;  %v1572_v32 = vld [vmem:[%s12609_s27 + $0x21] sm:$0xff] }
  0xf6   : > { %10728 = vmatprep.mubr.bf16.mxu1 %v12662_v40  ;;  %10792 = vmatprep.mubr.bf16.mxu0 %v12701_v16  ;;  %v1573_v40 = vld [vmem:[%s12609_s27 + $0x29] sm:$0xff] }
  0xfd   : > { %10729 = vmatmul.mubr.bf16.gmra.mxu1 %v12679_v55  ;;  %10793 = vmatmul.mubr.bf16.gmra.mxu0 %v12708_v25  ;;  %v1623_v55 = vpack.c.bf16 %v1571_v17, %v1570_v14  ;;  %v1591_v14 = vld [vmem:[%s12609_s27 + $0xb9] sm:$0xff]  ;;  %v1592_v17 = vld [vmem:[%s12609_s27 + $0xc1] sm:$0xff] }
  0xfe   : > { %10732 = vmatprep.mubr.bf16.mxu1 %v12684_v60  ;;  %10796 = vmatprep.mubr.bf16.mxu0 %v12725_v46  ;;  %v1624_v60 = vpack.c.bf16 %v1573_v40, %v1572_v32  ;;  %v1593_v32 = vld [vmem:[%s12609_s27 + $0xc9] sm:$0xff] }
  0xff   : > { %v1708_v49 = vrot.slane %v1623_v55, 4  ;;  %v12085_v40 = vld [vmem:[#allocation7 + $0x1c8] sm:$0xff]  }
 0x100   : > { %v1709_v4 = vrot.slane %v1624_v60, 4 }
 0x102   : > { %v1712_v27 = vsel %vm17475_vm0, %v1709_v4, %v1711_v15 }
 0x105   : > { %10733 = vmatmul.mubr.bf16.gmra.mxu1 %v12701_v16  ;;  %10797 = vmatmul.mubr.bf16.gmra.mxu0 %v12733_v53  ;;  %v476_v16 = vld [vmem:[%s12609_s27 + $0x1a8] sm:$0xff] }
 0x106   : > { %10736 = vmatprep.mubr.bf16.mxu1 %v12708_v25  ;;  %10800 = vmatprep.mubr.bf16.mxu0 %v12752_v20  ;;  %v1569_v25 = vld [vmem:[%s12609_s27 + $0x9] sm:$0xff]  ;;  %v503_v7 = vpack.c.bf16 %v476_v16, %v475_v12 }
 0x10d   : > { %10737 = vmatmul.mubr.bf16.gmra.mxu1 %v12725_v46  ;;  %10801 = vmatmul.mubr.bf16.gmra.mxu0 %v12757_v24  ;;  %v1622_v46 = vpack.c.bf16 %v1569_v25, %v1568_v23  ;;  %v1580_v24 = vld [vmem:[%s12609_s27 + $0x61] sm:$0xff]  ;;  %v12899_v23 = vpack.c.bf16 %v1593_v32, %v1592_v17 }
 0x10e   : > { %10740 = vmatprep.mubr.bf16.mxu1 %v12733_v53  ;;  %10804 = vmatprep.mubr.bf16.mxu0 %v12767_v42  ;;  %v1710_v53 = vsel %vm17475_vm0, %v1708_v49, %v1709_v4  ;;  %v12856_v30 = vpack.c.bf16 %v1581_v26, %v1580_v24  ;;  %v1584_v42 = vld [vmem:[%s12609_s27 + $0x81] sm:$0xff]  ;;  %v1731_v24 = vrot.slane %v12914_v18, 4 }
 0x10f   : > { %v12871_v50 = vpack.c.bf16 %v1585_v43, %v1584_v42  ;;  %v12087_v25 = vld [vmem:[#allocation7 + $0x1c0] sm:$0xff]   ;;  %v1729_v4 = vrot.slane %v12899_v23, 4  ;;  %v1603_v43 = vld [vmem:[%s12609_s27 + $0x119] sm:$0xff] }
 0x110   : > { %v1717_v37 = vrot.slane %v12856_v30, 4  ;;  %v1602_v42 = vld [vmem:[%s12609_s27 + $0x111] sm:$0xff] }
 0x111   : > { %v1721_v58 = vrot.slane %v12871_v50, 4 }
 0x112   : > { %v1718_v48 = vsel %vm17475_vm0, %v1715_v34, %v1717_v37  ;;  %v1720_v11 = vsel %vm17475_vm0, %v1717_v37, %v1719_v56  ;;  %v1732_v34 = vsel %vm17475_vm0, %v1729_v4, %v1731_v24 }
 0x113   : > { %v1722_v1 = vsel %vm17475_vm0, %v1719_v56, %v1721_v58 }
 0x115   : > { %10741 = vmatmul.mubr.bf16.gmra.mxu1 %v12752_v20  ;;  %10805 = vmatmul.mubr.bf16.gmra.mxu0 %v503_v7  ;;  %v1714_v20 = vsel %vm17475_vm0, %v1711_v15, %v1713_v22  ;;  %v1596_v7 = vld [vmem:[%s12609_s27 + $0xe1] sm:$0xff] }
 0x116   : > { %10824 = vmatprep.mubr.bf16.mxu1 %v1710_v53  ;;  %10888 = vmatprep.mubr.bf16.mxu0 %v1622_v46  ;;  %v12909_v46 = vld [vmem:[#allocation7 + $0xb8] sm:$0xff]   ;;  %v12917_v22 = vpack.c.bf16 %v1597_v9, %v1596_v7 }
 0x117   : > { %v12911_v53 = vld [vmem:[#allocation7 + $0x238] sm:$0xff]  }
 0x118   : > { %v1733_v26 = vrot.slane %v12917_v22, 4  ;;  %v1612_v7 = vld [vmem:[%s12609_s27 + $0x161] sm:$0xff]  ;;  %v1613_v9 = vld [vmem:[%s12609_s27 + $0x169] sm:$0xff] }
 0x11a   : > { %v1734_v37 = vsel %vm17475_vm0, %v1731_v24, %v1733_v26 }
 0x11d   : > { %10825 = vmatmul.mubr.bf16.vlgmr.msra.gmra.mxu1 %v1712_v27  ;;  %10889 = vmatmul.mubr.bf16.vlgmr.msra.gmra.mxu0 %v1623_v55  ;;  %v12086_v55 = vld [vmem:[#allocation7 + $0x148] sm:$0xff]  }
 0x11e   : > { %10937 = vmatpush3.bf16.msra.mxu1 %v12795_v54  ;;  %11001 = vmatpush3.bf16.msra.mxu0 %v12797_v57  ;;  %v1725_v54 = vrot.slane %v12885_v29, 4  ;;  %v1590_v57 = vld [vmem:[%s12609_s27 + $0xb1] sm:$0xff] }
 0x11f   : > { %10828 = vmatprep.mubr.bf16.mxu1 %v1714_v20  ;;  %10892 = vmatprep.mubr.bf16.mxu0 %v1624_v60  ;;  %v1724_v60 = vsel %vm17475_vm0, %v1721_v58, %v1723_v3  ;;  %v12896_v12 = vpack.c.bf16 %v1591_v14, %v1590_v57  ;;  %v1598_v27 = vld [vmem:[%s12609_s27 + $0xf1] sm:$0xff]  ;;  %v1599_v20 = vld [vmem:[%s12609_s27 + $0xf9] sm:$0xff] }
 0x120   : > { %10938 = vmatprep.subr.bf16.mxu1 %v12075_v31  ;;  %11002 = vmatprep.subr.bf16.mxu0 %v12076_v33  ;;  %v1726_v16 = vsel %vm17475_vm0, %v1723_v3, %v1725_v54  ;;  %v12930_v35 = vpack.c.bf16 %v1599_v20, %v1598_v27 }
 0x121   : > { %v1727_v49 = vrot.slane %v12896_v12, 4 }
 0x122   : > { %10939 = vmatpush3.bf16.msra.mxu1 %v12075_v31  ;;  %11003 = vmatpush3.bf16.msra.mxu0 %v12076_v33  ;;  %v1600_v31 = vld [vmem:[%s12609_s27 + $0x101] sm:$0xff]  ;;  %v1601_v33 = vld [vmem:[%s12609_s27 + $0x109] sm:$0xff] }
 0x123   : > { %10940 = vmatprep.subr.bf16.mxu1 %v12077_v39  ;;  %11004 = vmatprep.subr.bf16.mxu0 %v12078_v41  ;;  %v1728_v15 = vsel %vm17475_vm0, %v1725_v54, %v1727_v49  ;;  %v1730_v21 = vsel %vm17475_vm0, %v1727_v49, %v1729_v4  ;;  %v12933_v38 = vpack.c.bf16 %v1601_v33, %v1600_v31 }
 0x124   : > { %v13007_v33 = vpack.c.bf16 %v1613_v9, %v1612_v7 }
 0x125   : > { %10829 = vmatmul.mubr.bf16.gmra.mxu1 %v1716_v45  ;;  %10893 = vmatmul.mubr.bf16.gmra.mxu0 %v12841_v10  ;;  %v1604_v45 = vld [vmem:[%s12609_s27 + $0x121] sm:$0xff] }
 0x126   : > { %10832 = vmatprep.mubr.bf16.mxu1 %v1718_v48  ;;  %10896 = vmatprep.mubr.bf16.mxu0 %v12844_v13  ;;  %v1605_v48 = vld [vmem:[%s12609_s27 + $0x129] sm:$0xff]  ;;  %17627 = vst [vmem:[#allocation25_spill] sm:$0xff] %v13007_v33 }
 0x127   : > { %10941 = vmatpush3.bf16.msra.mxu1 %v12077_v39  ;;  %11005 = vmatpush3.bf16.msra.mxu0 %v12078_v41  ;;  %v1735_v39 = vrot.slane %v12930_v35, 4  ;;  %v1737_v41 = vrot.slane %v12933_v38, 4  ;;  %v12947_v58 = vpack.c.bf16 %v1605_v48, %v1604_v45  ;;  %v1614_v45 = vld [vmem:[%s12609_s27 + $0x171] sm:$0xff]  ;;  %v1615_v48 = vld [vmem:[%s12609_s27 + $0x179] sm:$0xff] }
 0x128   : > { %10942 = vmatprep.subr.bf16.mxu1 %v12079_v51  ;;  %11006 = vmatprep.subr.bf16.mxu0 %v12080_v52 }
 0x129   : > { %v1738_v56 = vsel %vm17475_vm0, %v1735_v39, %v1737_v41 }
 0x12b   : > { %10943 = vmatpush3.bf16.msra.mxu1 %v12079_v51  ;;  %11007 = vmatpush3.bf16.msra.mxu0 %v12080_v52  ;;  %v1736_v51 = vsel %vm17475_vm0, %v1733_v26, %v1735_v39  ;;  %v12944_v52 = vpack.c.bf16 %v1603_v43, %v1602_v42  ;;  %v13000_v26 = vpack.c.bf16 %v1611_v6, %v1610_v5  ;;  %v1749_v43 = vrot.slane %v13007_v33, 4 }
 0x12c   : > { %10944 = vmatprep.subr.bf16.mxu1 %v12081_v63  ;;  %11008 = vmatprep.subr.bf16.mxu0 %v12082_v8 }
 0x12d   : > { %10833 = vmatmul.mubr.bf16.gmra.mxu1 %v1720_v11  ;;  %10897 = vmatmul.mubr.bf16.gmra.mxu0 %v12854_v28  ;;  %v1739_v62 = vrot.slane %v12944_v52, 4  ;;  %v1606_v11 = vld [vmem:[%s12609_s27 + $0x131] sm:$0xff]  ;;  %17625 = vst [vmem:[#allocation23_spill] sm:$0xff] %v13000_v26  ;;  %v1747_v39 = vrot.slane %v13000_v26, 4 }
 0x12e   : > { %10836 = vmatprep.mubr.bf16.mxu1 %v1722_v1  ;;  %10900 = vmatprep.mubr.bf16.mxu0 %v12856_v30  ;;  %v1607_v1 = vld [vmem:[%s12609_s27 + $0x139] sm:$0xff] }
 0x12f   : > { %10945 = vmatpush3.bf16.msra.mxu1 %v12081_v63  ;;  %11009 = vmatpush3.bf16.msra.mxu0 %v12082_v8  ;;  %v1741_v8 = vrot.slane %v12947_v58, 4  ;;  %v1740_v57 = vsel %vm17475_vm0, %v1737_v41, %v1739_v62  ;;  %v12970_v14 = vpack.c.bf16 %v1607_v1, %v1606_v11  ;;  %v13030_v1 = vpack.c.bf16 %v1615_v48, %v1614_v45  ;;  %v2812_v45 = vld [vmem:[%s12609_s27 + $0x1a] sm:$0xff]  ;;  %v2813_v48 = vld [vmem:[%s12609_s27 + $0x22] sm:$0xff] }
 0x130   : > { %10946 = vmatprep.subr.bf16.mxu1 %v12083_v36  ;;  %11010 = vmatprep.subr.bf16.mxu0 %v12084_v2 }
 0x131   : > { %17620 = vst [vmem:[#allocation18_spill] sm:$0xff] %v12970_v14  ;;  %17631 = vst [vmem:[#allocation29_spill] sm:$0xff] %v13030_v1 }
 0x133   : > { %10947 = vmatpush3.bf16.msra.mxu1 %v12083_v36  ;;  %11011 = vmatpush3.bf16.msra.mxu0 %v12084_v2  ;;  %v1608_v36 = vld [vmem:[%s12609_s27 + $0x141] sm:$0xff]  ;;  %v1609_v2 = vld [vmem:[%s12609_s27 + $0x149] sm:$0xff] }
 0x134   : > { %10948 = vmatprep.subr.bf16.mxu1 %v12085_v40  ;;  %11012 = vmatprep.subr.bf16.mxu0 %v12086_v55 }
 0x135   : > { %10837 = vmatmul.mubr.bf16.gmra.mxu1 %v1724_v60  ;;  %10901 = vmatmul.mubr.bf16.gmra.mxu0 %v12868_v47 }
 0x136   : > { %10840 = vmatprep.mubr.bf16.mxu1 %v1726_v16  ;;  %10904 = vmatprep.mubr.bf16.mxu0 %v12871_v50 }
 0x137   : > { %10949 = vmatpush3.bf16.msra.mxu1 %v12085_v40  ;;  %11013 = vmatpush3.bf16.msra.mxu0 %v12086_v55  ;;  %v1742_v40 = vsel %vm17475_vm0, %v1739_v62, %v1741_v8  ;;  %v12977_v55 = vpack.c.bf16 %v1609_v2, %v1608_v36 }
 0x138   : > { %10950 = vmatprep.subr.bf16.mxu1 %v12087_v25  ;;  %11014 = vmatprep.subr.bf16.mxu0 %v12088_v44 }
 0x139   : > { %17621 = vst [vmem:[#allocation19_spill] sm:$0xff] %v12977_v55  ;;  %v1745_v4 = vrot.slane %v12977_v55, 4 }
 0x13b   : > { %10951 = vmatpush3.bf16.msra.mxu1 %v12087_v25  ;;  %11015 = vmatpush3.bf16.msra.mxu0 %v12088_v44  ;;  %v1743_v25 = vrot.slane %v12970_v14, 4  ;;  %v1748_v11 = vsel %vm17475_vm0, %v1745_v4, %v1747_v39 }
 0x13c   : > { %11064 = vmatprep.subr.bf16.mxu1 %v12909_v46  ;;  %11128 = vmatprep.subr.bf16.mxu0 %v12911_v53 }
 0x13d   : > { %10841 = vmatmul.mubr.bf16.gmra.mxu1 %v1728_v15  ;;  %10905 = vmatmul.mubr.bf16.gmra.mxu0 %v12882_v0  ;;  %v1744_v24 = vsel %vm17475_vm0, %v1741_v8, %v1743_v25  ;;  %v1746_v31 = vsel %vm17475_vm0, %v1743_v25, %v1745_v4  ;;  %v1751_v4 = vrot.slane %v13030_v1, 4 }
 0x13e   : > { %10844 = vmatprep.mubr.bf16.mxu1 %v1730_v21  ;;  %10908 = vmatprep.mubr.bf16.mxu0 %v12885_v29 }
 0x145   : > { %10845 = vmatmul.mubr.bf16.gmra.mxu1 %v1732_v34  ;;  %10909 = vmatmul.mubr.bf16.gmra.mxu0 %v12896_v12 }
 0x146   : > { %10848 = vmatprep.mubr.bf16.mxu1 %v1734_v37  ;;  %10912 = vmatprep.mubr.bf16.mxu0 %v12899_v23 }
 0x14d   : > { %v12949_v59 = vpop.f32.mrf.mxu0  ;;  %v12951_v61 = vpop.f32.mrf.mxu1  ;;  %10849 = vmatmul.mubr.bf16.gmra.mxu1 %v1736_v51  ;;  %10913 = vmatmul.mubr.bf16.gmra.mxu0 %v12914_v18  ;;  %v1616_v51 = vld [vmem:[%s12609_s27 + $0x181] sm:$0xff] }
 0x14e   : > { %10852 = vmatprep.mubr.bf16.mxu1 %v1738_v56  ;;  %10916 = vmatprep.mubr.bf16.mxu0 %v12917_v22  ;;  %v1617_v56 = vld [vmem:[%s12609_s27 + $0x189] sm:$0xff] }
 0x14f   : > { %v12956_v19 = vpop.f32.mrf.mxu0  ;;  %v12958_v63 = vpop.f32.mrf.mxu1 }
 0x151   : > { %v12965_v3 = vpop.f32.mrf.mxu0  ;;  %v12967_v54 = vpop.f32.mrf.mxu1 }
 0x153   : > { %v12972_v17 = vpop.f32.mrf.mxu0  ;;  %v12974_v32 = vpop.f32.mrf.mxu1 }
 0x155   : > { %v12979_v60 = vpop.f32.mrf.mxu0  ;;  %v12981_v16 = vpop.f32.mrf.mxu1  ;;  %10853 = vmatmul.mubr.bf16.gmra.mxu1 %v1740_v57  ;;  %10917 = vmatmul.mubr.bf16.gmra.mxu0 %v12930_v35  ;;  %v1750_v57 = vsel %vm17475_vm0, %v1747_v39, %v1749_v43  ;;  %v2811_v39 = vld [vmem:[%s12609_s27 + $0x12] sm:$0xff] }
 0x156   : > { %17622 = vst [vmem:[#allocation20_spill] sm:$0xff] %v12981_v16  ;;  %10856 = vmatprep.mubr.bf16.mxu1 %v1742_v40  ;;  %10920 = vmatprep.mubr.bf16.mxu0 %v12933_v38  ;;  %v13037_v40 = vpack.c.bf16 %v1617_v56, %v1616_v51  ;;  %v2814_v51 = vld [vmem:[%s12609_s27 + $0x2a] sm:$0xff] }
 0x157   : > { %v12986_v44 = vpop.f32.mrf.mxu0  ;;  %v12988_v49 = vpop.f32.mrf.mxu1 }
 0x158   : > { %17623 = vst [vmem:[#allocation21_spill] sm:$0xff] %v12988_v49  ;;  %17633 = vst [vmem:[#allocation31_spill] sm:$0xff] %v13037_v40  ;;  %v1753_v9 = vrot.slane %v13037_v40, 4 }
 0x159   : > { %v12995_v15 = vpop.f32.mrf.mxu0  ;;  %v12997_v21 = vpop.f32.mrf.mxu1 }
 0x15a   : > { %17624 = vst [vmem:[#allocation22_spill] sm:$0xff] %v12997_v21  ;;  %v1754_v40 = vsel %vm17475_vm0, %v1751_v4, %v1753_v9 }
 0x15b   : > { %v13002_v27 = vpop.f32.mrf.mxu0  ;;  %v13004_v20 = vpop.f32.mrf.mxu1 }
 0x15c   : > { %17626 = vst [vmem:[#allocation24_spill] sm:$0xff] %v13004_v20  ;;  %v12092_v20 = vld [vmem:[#allocation7 + $0x230] sm:$0xff]  }
 0x15d   : > { %v13009_v34 = vpop.f32.mrf.mxu0  ;;  %v13011_v37 = vpop.f32.mrf.mxu1  ;;  %10857 = vmatmul.mubr.bf16.gmra.mxu1 %v1744_v24  ;;  %10921 = vmatmul.mubr.bf16.gmra.mxu0 %v12944_v52  ;;  %v1618_v24 = vld [vmem:[%s12609_s27 + $0x191] sm:$0xff] }
 0x15e   : > { %17628 = vst [vmem:[#allocation26_spill] sm:$0xff] %v13011_v37  ;;  %10860 = vmatprep.mubr.bf16.mxu1 %v1746_v31  ;;  %10924 = vmatprep.mubr.bf16.mxu0 %v12947_v58  ;;  %v1619_v31 = vld [vmem:[%s12609_s27 + $0x199] sm:$0xff] }
 0x15f   : > { %v13016_v41 = vpop.f32.mrf.mxu0  ;;  %v13018_v42 = vpop.f32.mrf.mxu1 }
 0x160   : > { %17629 = vst [vmem:[#allocation27_spill] sm:$0xff] %v13018_v42  ;;  %v13071_v42 = vpack.c.bf16 %v2814_v51, %v2813_v48  ;;  %v2816_v48 = vld [vmem:[%s12609_s27 + $0x3a] sm:$0xff] }
 0x161   : > { %v13025_v62 = vpop.f32.mrf.mxu0  ;;  %v13027_v8 = vpop.f32.mrf.mxu1 }
 0x162   : > { %17630 = vst [vmem:[#allocation28_spill] sm:$0xff] %v13027_v8  ;;  %v13069_v8 = vpack.c.bf16 %v2812_v45, %v2811_v39  ;;  %17640 = vst [vmem:[#allocation38_spill] sm:$0xff] %v13071_v42  ;;  %v2950_v39 = vrot.slane %v13071_v42, 4  ;;  %v2815_v45 = vld [vmem:[%s12609_s27 + $0x32] sm:$0xff] }
 0x163   : > { %v13032_v36 = vpop.f32.mrf.mxu0  ;;  %v13034_v2 = vpop.f32.mrf.mxu1 }
 0x164   : > { %17632 = vst [vmem:[#allocation30_spill] sm:$0xff] %v13034_v2  ;;  %17639 = vst [vmem:[#allocation37_spill] sm:$0xff] %v13069_v8 }
 0x165   : > { %v13039_v25 = vpop.f32.mrf.mxu0  ;;  %v13041_v5 = vpop.f32.mrf.mxu1  ;;  %10861 = vmatmul.mubr.bf16.gmra.mxu1 %v1748_v11  ;;  %10925 = vmatmul.mubr.bf16.gmra.mxu0 %v12970_v14 }
 0x166   : > { %17634 = vst [vmem:[#allocation32_spill] sm:$0xff] %v13041_v5  ;;  %10864 = vmatprep.mubr.bf16.mxu1 %v1750_v57  ;;  %10928 = vmatprep.mubr.bf16.mxu0 %v12977_v55  ;;  %v1752_v57 = vsel %vm17475_vm0, %v1749_v43, %v1751_v4  ;;  %v13062_v5 = vpack.c.bf16 %v1619_v31, %v1618_v24  ;;  %v2949_v31 = vrot.slane %v13069_v8, 4 }
 0x167   : > { %v13046_v6 = vpop.f32.mrf.mxu0  ;;  %v13048_v7 = vpop.f32.mrf.mxu1 }
 0x168   : > { %17635 = vst [vmem:[#allocation33_spill] sm:$0xff] %v13048_v7  ;;  %17637 = vst [vmem:[#allocation35_spill] sm:$0xff] %v13062_v5  ;;  %v1755_v43 = vrot.slane %v13062_v5, 4  ;;  %v2951_v42 = vsel %vm17475_vm0, %v2949_v31, %v2950_v39  ;;  %v2821_v31 = vld [vmem:[%s12609_s27 + $0x62] sm:$0xff] }
 0x169   : > { %v13057_v56 = vpop.f32.mrf.mxu0  ;;  %v13059_v11 = vpop.f32.mrf.mxu1 }
 0x16a   : > { %17636 = vst [vmem:[#allocation34_spill] sm:$0xff] %v13059_v11  ;;  %v1756_v5 = vsel %vm17475_vm0, %v1753_v9, %v1755_v43  ;;  %v2819_v43 = vld [vmem:[%s12609_s27 + $0x52] sm:$0xff] }
 0x16b   : > { %v13064_v2 = vpop.f32.mrf.mxu0  ;;  %v13066_v7 = vpop.f32.mrf.mxu1 }
 0x16c   : > { %17638 = vst [vmem:[#allocation36_spill] sm:$0xff] %v13066_v7  ;;  %v13095_v7 = vpack.c.bf16 %v2816_v48, %v2815_v45  ;;  %v2820_v45 = vld [vmem:[%s12609_s27 + $0x5a] sm:$0xff] }
 0x16d   : > { %v13073_v37 = vpop.f32.mrf.mxu0  ;;  %v13075_v11 = vpop.f32.mrf.mxu1  ;;  %10865 = vmatmul.mubr.bf16.gmra.mxu1 %v1752_v57  ;;  %10929 = vmatmul.mubr.bf16.gmra.mxu0 %v13000_v26 }
 0x16e   : > { %17641 = vst [vmem:[#allocation39_spill] sm:$0xff] %v13075_v11  ;;  %10868 = vmatprep.mubr.bf16.mxu1 %v1754_v40  ;;  %10932 = vmatprep.mubr.bf16.mxu0 %v13007_v33  ;;  %v2817_v40 = vld [vmem:[%s12609_s27 + $0x42] sm:$0xff]  ;;  %v2818_v11 = vld [vmem:[%s12609_s27 + $0x4a] sm:$0xff]  ;;  %17644 = vst [vmem:[#allocation42_spill] sm:$0xff] %v13095_v7  ;;  %v2952_v9 = vrot.slane %v13095_v7, 4 }
 0x16f   : > { %v13080_v24 = vpop.f32.mrf.mxu0  ;;  %v13082_v4 = vpop.f32.mrf.mxu1 }
 0x170   : > { %17642 = vst [vmem:[#allocation40_spill] sm:$0xff] %v13082_v4  ;;  %v13102_v4 = vpack.c.bf16 %v2818_v11, %v2817_v40  ;;  %v2822_v40 = vld [vmem:[%s12609_s27 + $0x6a] sm:$0xff] }
 0x171   : > { %v13088_v51 = vpop.f32.mrf.mxu0  ;;  %v13090_v57 = vpop.f32.mrf.mxu1 }
 0x172   : > { %17643 = vst [vmem:[#allocation41_spill] sm:$0xff] %v13090_v57  ;;  %17646 = vst [vmem:[#allocation44_spill] sm:$0xff] %v13102_v4  ;;  %v2954_v11 = vrot.slane %v13102_v4, 4  ;;  %v12091_v4 = vld [vmem:[#allocation7 + $0xb0] sm:$0xff]  }
 0x173   : > { %v13097_v33 = vpop.f32.mrf.mxu0  ;;  %v13099_v8 = vpop.f32.mrf.mxu1 }
 0x174   : > { %17645 = vst [vmem:[#allocation43_spill] sm:$0xff] %v13099_v8 }
 0x175   : > { %v13104_v26 = vpop.f32.mrf.mxu0  ;;  %v13106_v57 = vpop.f32.mrf.mxu1  ;;  %10869 = vmatmul.mubr.bf16.gmra.mxu1 %v1756_v5  ;;  %10933 = vmatmul.mubr.bf16.gmra.mxu0 %v13030_v1  ;;  %v13131_v1 = vpack.c.bf16 %v2822_v40, %v2821_v31 }
 0x176   : > { %17647 = vst [vmem:[#allocation45_spill] sm:$0xff] %v13106_v57  ;;  %10952 = vmatprep.mubr.bf16.mxu1 %v12841_v10  ;;  %11016 = vmatprep.mubr.bf16.mxu0 %v2951_v42  ;;  %v13124_v57 = vpack.c.bf16 %v2820_v45, %v2819_v43  ;;  %v2953_v10 = vsel %vm17475_vm0, %v2950_v39, %v2952_v9  ;;  %v2823_v45 = vld [vmem:[%s12609_s27 + $0x72] sm:$0xff] }
 0x177   : > { %v13113_v48 = vpop.f32.mrf.mxu0  ;;  %v13115_v8 = vpop.f32.mrf.mxu1  ;;  %v2958_v40 = vrot.slane %v13131_v1, 4 }
 0x178   : > { %17648 = vst [vmem:[#allocation46_spill] sm:$0xff] %v13115_v8  ;;  %17650 = vst [vmem:[#allocation48_spill] sm:$0xff] %v13124_v57  ;;  %v2955_v8 = vsel %vm17475_vm0, %v2952_v9, %v2954_v11  ;;  %v2956_v43 = vrot.slane %v13124_v57, 4 }
 0x179   : > { %v13120_v55 = vpop.f32.mrf.mxu0  ;;  %v13122_v5 = vpop.f32.mrf.mxu1 }
 0x17a   : > { %17649 = vst [vmem:[#allocation47_spill] sm:$0xff] %v13122_v5  ;;  %v2957_v14 = vsel %vm17475_vm0, %v2954_v11, %v2956_v43 }
 0x17b   : > { %v13127_v42 = vpop.f32.mrf.mxu0  ;;  %v13129_v7 = vpop.f32.mrf.mxu1 }
 0x17c   : > { %17651 = vst [vmem:[#allocation49_spill] sm:$0xff] %v13129_v7  ;;  %v12094_v7 = vld [vmem:[#allocation7 + $0x228] sm:$0xff]  }
 0x17d   : > { %v10698_v21 = vpop.f32.mrf.mxu1  ;;  %v10762_v49 = vpop.f32.mrf.mxu0  ;;  %10953 = vmatmul.mubr.bf16.vlgmr.msra.gmra.mxu1 %v12844_v13  ;;  %11017 = vmatmul.mubr.bf16.vlgmr.msra.gmra.mxu0 %v2953_v10  ;;  %v2824_v13 = vld [vmem:[%s12609_s27 + $0x7a] sm:$0xff] }
 0x17e   : > { %v1000_v39 = vadd.f32 %v10698_v21, %v12949_v59  ;;  %11065 = vmatpush3.bf16.msra.mxu1 %v12909_v46  ;;  %11129 = vmatpush3.bf16.msra.mxu0 %v12911_v53  ;;  %v12093_v10 = vld [vmem:[#allocation7 + $0xa8] sm:$0xff]   ;;  %v2825_v46 = vld [vmem:[%s12609_s27 + $0x82] sm:$0xff] }
 0x17f   : > { %v991_v9 = vpop.f32.mrf.mxu1  ;;  %v1281_v31 = vpop.f32.mrf.mxu0  ;;  %10956 = vmatprep.mubr.bf16.mxu1 %v12854_v28  ;;  %11020 = vmatprep.mubr.bf16.mxu0 %v2955_v8  ;;  %v2826_v21 = vld [vmem:[%s12609_s27 + $0x8a] sm:$0xff]  ;;  %v13152_v8 = vpack.c.bf16 %v2824_v13, %v2823_v45 }
 0x180   : > { %v13143_v57 = vadd.f32 %v10762_v49, %v1000_v39  ;;  %v992_v59 = vadd.f32 %v991_v9, %v12956_v19  ;;  %11066 = vmatprep.subr.bf16.mxu1 %v12091_v4  ;;  %11130 = vmatprep.subr.bf16.mxu0 %v12092_v20  ;;  %v2959_v19 = vsel %vm17475_vm0, %v2956_v43, %v2958_v40 }
 0x181   : > { %v10699_v53 = vpop.f32.mrf.mxu1  ;;  %v10763_v5 = vpop.f32.mrf.mxu0  ;;  %v13155_v9 = vpack.c.bf16 %v2826_v21, %v2825_v46  ;;  %v2827_v46 = vld [vmem:[%s12609_s27 + $0x92] sm:$0xff]  ;;  %v2828_v21 = vld [vmem:[%s12609_s27 + $0x9a] sm:$0xff] }
 0x182   : > { %17652 = vst [vmem:[#allocation50_spill] sm:$0xff] %v13143_v57  ;;  %v13149_v16 = vadd.f32 %v1281_v31, %v992_v59  ;;  %v1003_v28 = vadd.f32 %v10699_v53, %v12965_v3  ;;  %11067 = vmatpush3.bf16.msra.mxu1 %v12091_v4  ;;  %11131 = vmatpush3.bf16.msra.mxu0 %v12092_v20  ;;  %v12095_v31 = vld [vmem:[#allocation7 + $0xa0] sm:$0xff]  }
 0x183   : > { %v994_v49 = vpop.f32.mrf.mxu1  ;;  %v1284_v39 = vpop.f32.mrf.mxu0  ;;  %11068 = vmatprep.subr.bf16.mxu1 %v12093_v10  ;;  %11132 = vmatprep.subr.bf16.mxu0 %v12094_v7  ;;  %v12096_v3 = vld [vmem:[#allocation7 + $0x220] sm:$0xff]   ;;  %v2962_v59 = vrot.slane %v13155_v9, 4 }
 0x184   : > { %v13157_v57 = vadd.f32 %v10763_v5, %v1003_v28  ;;  %v995_v11 = vadd.f32 %v994_v49, %v12972_v17  ;;  %v2960_v5 = vrot.slane %v13152_v8, 4  ;;  %v2830_v28 = vld [vmem:[%s12609_s27 + $0xaa] sm:$0xff] }
 0x185   : > { %v10702_v4 = vpop.f32.mrf.mxu1  ;;  %v10766_v20 = vpop.f32.mrf.mxu0  ;;  %10957 = vmatmul.mubr.bf16.gmra.mxu1 %v12856_v30  ;;  %11021 = vmatmul.mubr.bf16.gmra.mxu0 %v2957_v14  ;;  %v2829_v30 = vld [vmem:[%s12609_s27 + $0xa2] sm:$0xff] }
 0x186   : > { %v13161_v43 = vadd.f32 %v1284_v39, %v995_v11  ;;  %v1016_v45 = vadd.f32 %v10702_v4, %v12979_v60  ;;  %10960 = vmatprep.mubr.bf16.mxu1 %v12868_v47  ;;  %11024 = vmatprep.mubr.bf16.mxu0 %v2959_v19  ;;  %v12097_v47 = vld [vmem:[#allocation7 + $0x98] sm:$0xff]   ;;  %v2961_v4 = vsel %vm17475_vm0, %v2958_v40, %v2960_v5  ;;  %v12100_v40 = vld [vmem:[#allocation7 + $0x210] sm:$0xff]  }
 0x187   : > { %v1007_v17 = vpop.f32.mrf.mxu1  ;;  %v1297_v13 = vpop.f32.mrf.mxu0  ;;  %11069 = vmatpush3.bf16.msra.mxu1 %v12093_v10  ;;  %11133 = vmatpush3.bf16.msra.mxu0 %v12094_v7  ;;  %v12098_v60 = vld [vmem:[#allocation7 + $0x218] sm:$0xff]   ;;  %v13178_v10 = vpack.c.bf16 %v2828_v21, %v2827_v46 }
 0x188   : > { %v13170_v14 = vadd.f32 %v10766_v20, %v1016_v45  ;;  %v1008_v53 = vadd.f32 %v1007_v17, %v12986_v44  ;;  %11070 = vmatprep.subr.bf16.mxu1 %v12095_v31  ;;  %11134 = vmatprep.subr.bf16.mxu0 %v12096_v3  ;;  %v2963_v45 = vsel %vm17475_vm0, %v2960_v5, %v2962_v59 }
 0x189   : > { %v10703_v49 = vpop.f32.mrf.mxu1  ;;  %v10767_v39 = vpop.f32.mrf.mxu0  ;;  %v13181_v44 = vpack.c.bf16 %v2830_v28, %v2829_v30  ;;  %v2832_v28 = vld [vmem:[%s12609_s27 + $0xba] sm:$0xff] }
 0x18a   : > { %17653 = vst [vmem:[#allocation51_spill] sm:$0xff] %v13170_v14  ;;  %v13174_v19 = vadd.f32 %v1297_v13, %v1008_v53  ;;  %v1019_v11 = vadd.f32 %v10703_v49, %v12995_v15  ;;  %v12099_v15 = vld [vmem:[#allocation7 + $0x90] sm:$0xff]  }
 0x18b   : > { %v1010_v7 = vpop.f32.mrf.mxu1  ;;  %v1300_v20 = vpop.f32.mrf.mxu0  ;;  %11071 = vmatpush3.bf16.msra.mxu1 %v12095_v31  ;;  %11135 = vmatpush3.bf16.msra.mxu0 %v12096_v3  ;;  %v2966_v30 = vrot.slane %v13181_v44, 4  ;;  %v2831_v53 = vld [vmem:[%s12609_s27 + $0xb2] sm:$0xff]  ;;  %v2833_v49 = vld [vmem:[%s12609_s27 + $0xc2] sm:$0xff] }
 0x18c   : > { %v13183_v17 = vadd.f32 %v10767_v39, %v1019_v11  ;;  %v1011_v14 = vadd.f32 %v1010_v7, %v13002_v27  ;;  %11072 = vmatprep.subr.bf16.mxu1 %v12097_v47  ;;  %11136 = vmatprep.subr.bf16.mxu0 %v12098_v60  ;;  %v2964_v27 = vrot.slane %v13178_v10, 4  ;;  %v2834_v39 = vld [vmem:[%s12609_s27 + $0xca] sm:$0xff] }
 0x18d   : > { %v10706_v13 = vpop.f32.mrf.mxu1  ;;  %v10770_v46 = vpop.f32.mrf.mxu0  ;;  %10961 = vmatmul.mubr.bf16.gmra.mxu1 %v12871_v50  ;;  %11025 = vmatmul.mubr.bf16.gmra.mxu0 %v2961_v4 }
 0x18e   : > { %v13187_v5 = vadd.f32 %v1300_v20, %v1011_v14  ;;  %v1032_v31 = vadd.f32 %v10706_v13, %v13009_v34  ;;  %10964 = vmatprep.mubr.bf16.mxu1 %v12882_v0  ;;  %11028 = vmatprep.mubr.bf16.mxu0 %v2963_v45  ;;  %v12101_v0 = vld [vmem:[#allocation7 + $0x88] sm:$0xff]   ;;  %v2965_v45 = vsel %vm17475_vm0, %v2962_v59, %v2964_v27  ;;  %v12104_v59 = vld [vmem:[#allocation7 + $0x200] sm:$0xff]  }
 0x18f   : > { %v1023_v3 = vpop.f32.mrf.mxu1  ;;  %v1313_v21 = vpop.f32.mrf.mxu0  ;;  %11073 = vmatpush3.bf16.msra.mxu1 %v12097_v47  ;;  %11137 = vmatpush3.bf16.msra.mxu0 %v12098_v60  ;;  %v12102_v34 = vld [vmem:[#allocation7 + $0x208] sm:$0xff]   ;;  %v13204_v13 = vpack.c.bf16 %v2832_v28, %v2831_v53 }
 0x190   : > { %v13196_v50 = vadd.f32 %v10770_v46, %v1032_v31  ;;  %v1024_v14 = vadd.f32 %v1023_v3, %v13016_v41  ;;  %11074 = vmatprep.subr.bf16.mxu1 %v12099_v15  ;;  %11138 = vmatprep.subr.bf16.mxu0 %v12100_v40  ;;  %v2967_v46 = vsel %vm17475_vm0, %v2964_v27, %v2966_v30 }
 0x191   : > { %v10707_v11 = vpop.f32.mrf.mxu1  ;;  %v10771_v4 = vpop.f32.mrf.mxu0  ;;  %v13207_v41 = vpack.c.bf16 %v2834_v39, %v2833_v49  ;;  %v2836_v39 = vld [vmem:[%s12609_s27 + $0xda] sm:$0xff] }
 0x192   : > { %v13200_v7 = vadd.f32 %v1313_v21, %v1024_v14  ;;  %v1035_v20 = vadd.f32 %v10707_v11, %v13025_v62  ;;  %v12103_v62 = vld [vmem:[#allocation7 + $0x80] sm:$0xff]  }
 0x193   : > { %v1026_v47 = vpop.f32.mrf.mxu1  ;;  %v1316_v60 = vpop.f32.mrf.mxu0  ;;  %11075 = vmatpush3.bf16.msra.mxu1 %v12099_v15  ;;  %11139 = vmatpush3.bf16.msra.mxu0 %v12100_v40  ;;  %v2970_v49 = vrot.slane %v13207_v41, 4  ;;  %v2835_v14 = vld [vmem:[%s12609_s27 + $0xd2] sm:$0xff] }
 0x194   : > { %v13209_v31 = vadd.f32 %v10771_v4, %v1035_v20  ;;  %v1027_v3 = vadd.f32 %v1026_v47, %v13032_v36  ;;  %11076 = vmatprep.subr.bf16.mxu1 %v12101_v0  ;;  %11140 = vmatprep.subr.bf16.mxu0 %v12102_v34  ;;  %v2968_v36 = vrot.slane %v13204_v13, 4  ;;  %v2837_v4 = vld [vmem:[%s12609_s27 + $0xe2] sm:$0xff]  ;;  %v2838_v20 = vld [vmem:[%s12609_s27 + $0xea] sm:$0xff] }
 0x195   : > { %v10710_v21 = vpop.f32.mrf.mxu1  ;;  %v10774_v53 = vpop.f32.mrf.mxu0  ;;  %10965 = vmatmul.mubr.bf16.gmra.mxu1 %v12885_v29  ;;  %11029 = vmatmul.mubr.bf16.gmra.mxu0 %v2965_v45 }
 0x196   : > { %v13213_v27 = vadd.f32 %v1316_v60, %v1027_v3  ;;  %v1048_v15 = vadd.f32 %v10710_v21, %v13039_v25  ;;  %10968 = vmatprep.mubr.bf16.mxu1 %v12896_v12  ;;  %11032 = vmatprep.mubr.bf16.mxu0 %v2967_v46  ;;  %v2969_v60 = vsel %vm17475_vm0, %v2966_v30, %v2968_v36 }
 0x197   : > { %v1039_v40 = vpop.f32.mrf.mxu1  ;;  %v1329_v28 = vpop.f32.mrf.mxu0  ;;  %11077 = vmatpush3.bf16.msra.mxu1 %v12101_v0  ;;  %11141 = vmatpush3.bf16.msra.mxu0 %v12102_v34  ;;  %v13230_v46 = vpack.c.bf16 %v2836_v39, %v2835_v14  ;;  %v2971_v3 = vsel %vm17475_vm0, %v2968_v36, %v2970_v49  ;;  %v13233_v21 = vpack.c.bf16 %v2838_v20, %v2837_v4  ;;  %v2840_v14 = vld [vmem:[%s12609_s27 + $0xfa] sm:$0xff]  ;;  %v2842_v4 = vld [vmem:[%s12609_s27 + $0x10a] sm:$0xff] }
 0x198   : > { %17654 = vst [vmem:[#allocation52_spill] sm:$0xff] %v13213_v27  ;;  %v13221_v29 = vadd.f32 %v10774_v53, %v1048_v15  ;;  %v1040_v11 = vadd.f32 %v1039_v40, %v13046_v6  ;;  %11078 = vmatprep.subr.bf16.mxu1 %v12103_v62  ;;  %11142 = vmatprep.subr.bf16.mxu0 %v12104_v59 }
 0x199   : > { %v10711_v12 = vpop.f32.mrf.mxu1  ;;  %v10775_v25 = vpop.f32.mrf.mxu0 }
 0x19a   : > { %17655 = vst [vmem:[#allocation53_spill] sm:$0xff] %v13221_v29  ;;  %v13226_v45 = vadd.f32 %v1329_v28, %v1040_v11  ;;  %v1051_v47 = vadd.f32 %v10711_v12, %v13057_v56  ;;  %v2839_v28 = vld [vmem:[%s12609_s27 + $0xf2] sm:$0xff]  ;;  %v2841_v11 = vld [vmem:[%s12609_s27 + $0x102] sm:$0xff] }
 0x19b   : > { %v1042_v0 = vpop.f32.mrf.mxu1  ;;  %v1332_v34 = vpop.f32.mrf.mxu0  ;;  %11079 = vmatpush3.bf16.msra.mxu1 %v12103_v62  ;;  %11143 = vmatpush3.bf16.msra.mxu0 %v12104_v59  ;;  %v2972_v62 = vrot.slane %v13230_v46, 4 }
 0x19c   : > { %17656 = vst [vmem:[#allocation54_spill] sm:$0xff] %v13226_v45  ;;  %v13235_v6 = vadd.f32 %v10775_v25, %v1051_v47  ;;  %v1043_v53 = vadd.f32 %v1042_v0, %v13064_v2  ;;  %v2974_v2 = vrot.slane %v13233_v21, 4  ;;  %v13256_v47 = vpack.c.bf16 %v2840_v14, %v2839_v28  ;;  %v2844_v28 = vld [vmem:[%s12609_s27 + $0x11a] sm:$0xff] }
 0x19d   : > { %v10714_v15 = vpop.f32.mrf.mxu1  ;;  %v10778_v56 = vpop.f32.mrf.mxu0  ;;  %10969 = vmatmul.mubr.bf16.gmra.mxu1 %v12899_v23  ;;  %11033 = vmatmul.mubr.bf16.gmra.mxu0 %v2969_v60  ;;  %v2973_v25 = vsel %vm17475_vm0, %v2970_v49, %v2972_v62 }
 0x19e   : > { %17657 = vst [vmem:[#allocation55_spill] sm:$0xff] %v13235_v6  ;;  %v13239_v30 = vadd.f32 %v1332_v34, %v1043_v53  ;;  %v1064_v36 = vadd.f32 %v10714_v15, %v13073_v37  ;;  %10972 = vmatprep.mubr.bf16.mxu1 %v12914_v18  ;;  %11036 = vmatprep.mubr.bf16.mxu0 %v2971_v3  ;;  %v12120_v6 = vld [vmem:[#allocation9 + $0xc0] sm:$0xff]  }
 0x19f   : > { %v1055_v59 = vpop.f32.mrf.mxu1  ;;  %v1345_v40 = vpop.f32.mrf.mxu0  ;;  %v2975_v34 = vsel %vm17475_vm0, %v2972_v62, %v2974_v2  ;;  %v13259_v3 = vpack.c.bf16 %v2842_v4, %v2841_v11  ;;  %v2846_v11 = vld [vmem:[%s12609_s27 + $0x12a] sm:$0xff] }
 0x1a0   : > { %17658 = vst [vmem:[#allocation56_spill] sm:$0xff] %v13239_v30  ;;  %v13247_v39 = vadd.f32 %v10778_v56, %v1064_v36  ;;  %v1056_v23 = vadd.f32 %v1055_v59, %v13080_v24  ;;  %v2976_v36 = vrot.slane %v13256_v47, 4 }
 0x1a1   : > { %v10715_v20 = vpop.f32.mrf.mxu1  ;;  %v10779_v12 = vpop.f32.mrf.mxu0 }
 0x1a2   : > { %17659 = vst [vmem:[#allocation57_spill] sm:$0xff] %v13247_v39  ;;  %v13252_v37 = vadd.f32 %v1345_v40, %v1056_v23  ;;  %v1067_v18 = vadd.f32 %v10715_v20, %v13088_v51  ;;  %v2843_v40 = vld [vmem:[%s12609_s27 + $0x112] sm:$0xff]  ;;  %v2845_v23 = vld [vmem:[%s12609_s27 + $0x122] sm:$0xff] }
 0x1a3   : > { %v1058_v60 = vpop.f32.mrf.mxu1  ;;  %v1348_v0 = vpop.f32.mrf.mxu0 }
 0x1a4   : > { %17660 = vst [vmem:[#allocation58_spill] sm:$0xff] %v13252_v37  ;;  %v13261_v24 = vadd.f32 %v10779_v12, %v1067_v18  ;;  %v1059_v53 = vadd.f32 %v1058_v60, %v13097_v33  ;;  %v2978_v33 = vrot.slane %v13259_v3, 4  ;;  %v2977_v12 = vsel %vm17475_vm0, %v2974_v2, %v2976_v36  ;;  %v2862_v37 = vld [vmem:[%s12609_s27 + $0x1aa] sm:$0xff] }
 0x1a5   : > { %v10718_v15 = vpop.f32.mrf.mxu1  ;;  %v10782_v56 = vpop.f32.mrf.mxu0  ;;  %10973 = vmatmul.mubr.bf16.gmra.mxu1 %v12917_v22  ;;  %11037 = vmatmul.mubr.bf16.gmra.mxu0 %v2973_v25  ;;  %v13282_v18 = vpack.c.bf16 %v2844_v28, %v2843_v40  ;;  %v2848_v40 = vld [vmem:[%s12609_s27 + $0x13a] sm:$0xff] }
 0x1a6   : > { %17661 = vst [vmem:[#allocation59_spill] sm:$0xff] %v13261_v24  ;;  %v13265_v51 = vadd.f32 %v1348_v0, %v1059_v53  ;;  %v1080_v49 = vadd.f32 %v10718_v15, %v13104_v26  ;;  %10976 = vmatprep.mubr.bf16.mxu1 %v12930_v35  ;;  %11040 = vmatprep.mubr.bf16.mxu0 %v2975_v34 }
 0x1a7   : > { %v1071_v62 = vpop.f32.mrf.mxu1  ;;  %v1361_v59 = vpop.f32.mrf.mxu0  ;;  %v2979_v0 = vsel %vm17475_vm0, %v2976_v36, %v2978_v33  ;;  %v13285_v34 = vpack.c.bf16 %v2846_v11, %v2845_v23  ;;  %v2850_v23 = vld [vmem:[%s12609_s27 + $0x14a] sm:$0xff] }
 0x1a8   : > { %17662 = vst [vmem:[#allocation60_spill] sm:$0xff] %v13265_v51  ;;  %v13273_v14 = vadd.f32 %v10782_v56, %v1080_v49  ;;  %v1072_v22 = vadd.f32 %v1071_v62, %v13113_v48  ;;  %v2980_v49 = vrot.slane %v13282_v18, 4 }
 0x1a9   : > { %v10719_v4 = vpop.f32.mrf.mxu1  ;;  %v10783_v20 = vpop.f32.mrf.mxu0 }
 0x1aa   : > { %17663 = vst [vmem:[#allocation61_spill] sm:$0xff] %v13273_v14  ;;  %v13278_v26 = vadd.f32 %v1361_v59, %v1072_v22  ;;  %v1083_v35 = vadd.f32 %v10719_v4, %v13120_v55  ;;  %v2847_v59 = vld [vmem:[%s12609_s27 + $0x132] sm:$0xff]  ;;  %v2849_v22 = vld [vmem:[%s12609_s27 + $0x142] sm:$0xff] }
 0x1ab   : > { %v1074_v25 = vpop.f32.mrf.mxu1  ;;  %v1364_v60 = vpop.f32.mrf.mxu0 }
 0x1ac   : > { %17664 = vst [vmem:[#allocation62_spill] sm:$0xff] %v13278_v26  ;;  %v13287_v48 = vadd.f32 %v10783_v20, %v1083_v35  ;;  %v1075_v53 = vadd.f32 %v1074_v25, %v13127_v42  ;;  %v2982_v42 = vrot.slane %v13285_v34, 4  ;;  %v2981_v20 = vsel %vm17475_vm0, %v2978_v33, %v2980_v49  ;;  %v17671_v33 = vld [vmem:[#allocation20_spill] sm:$0xff]  ;;  %v17708_v26 = vld [vmem:[#allocation43_spill] sm:$0xff] }
 0x1ad   : > { %v10722_v15 = vpop.f32.mrf.mxu1  ;;  %v10786_v56 = vpop.f32.mrf.mxu0  ;;  %10977 = vmatmul.mubr.bf16.gmra.mxu1 %v12933_v38  ;;  %11041 = vmatmul.mubr.bf16.gmra.mxu0 %v2977_v12  ;;  %v13308_v35 = vpack.c.bf16 %v2848_v40, %v2847_v59  ;;  %v2851_v40 = vld [vmem:[%s12609_s27 + $0x152] sm:$0xff] }
 0x1ae   : > { %17665 = vst [vmem:[#allocation63_spill] sm:$0xff] %v13287_v48  ;;  %v13291_v55 = vadd.f32 %v1364_v60, %v1075_v53  ;;  %v1096_v2 = vadd.f32 %v10722_v15, %v12951_v61  ;;  %10980 = vmatprep.mubr.bf16.mxu1 %v12944_v52  ;;  %11044 = vmatprep.mubr.bf16.mxu0 %v2979_v0 }
 0x1af   : > { %v1087_v36 = vpop.f32.mrf.mxu1  ;;  %v1377_v62 = vpop.f32.mrf.mxu0  ;;  %v2983_v60 = vsel %vm17475_vm0, %v2980_v49, %v2982_v42  ;;  %v13311_v0 = vpack.c.bf16 %v2850_v23, %v2849_v22  ;;  %v17672_v49 = vld [vmem:[#allocation18_spill] sm:$0xff]  ;;  %v17674_v23 = vld [vmem:[#allocation21_spill] sm:$0xff] }
 0x1b0   : > { %17666 = vst [vmem:[#allocation64_spill] sm:$0xff] %v13291_v55  ;;  %v13299_v28 = vadd.f32 %v10786_v56, %v1096_v2  ;;  %v1088_v38 = vadd.f32 %v1087_v36, %v12958_v63  ;;  %v2984_v36 = vrot.slane %v13308_v35, 4 }
 0x1b1   : > { %v10723_v11 = vpop.f32.mrf.mxu1  ;;  %v10787_v4 = vpop.f32.mrf.mxu0 }
 0x1b2   : > { %17667 = vst [vmem:[#allocation65_spill] sm:$0xff] %v13299_v28  ;;  %v13304_v61 = vadd.f32 %v1377_v62, %v1088_v38  ;;  %v1099_v52 = vadd.f32 %v10723_v11, %v12967_v54  ;;  %v2852_v38 = vld [vmem:[%s12609_s27 + $0x15a] sm:$0xff]  ;;  %v2853_v11 = vld [vmem:[%s12609_s27 + $0x162] sm:$0xff] }
 0x1b3   : > { %v1090_v12 = vpop.f32.mrf.mxu1  ;;  %v1380_v25 = vpop.f32.mrf.mxu0 }
 0x1b4   : > { %17668 = vst [vmem:[#allocation66_spill] sm:$0xff] %v13304_v61  ;;  %v13313_v63 = vadd.f32 %v10787_v4, %v1099_v52  ;;  %v1091_v53 = vadd.f32 %v1090_v12, %v12974_v32  ;;  %v2986_v32 = vrot.slane %v13311_v0, 4  ;;  %v2854_v4 = vld [vmem:[%s12609_s27 + $0x16a] sm:$0xff] }
 0x1b5   : > { %v10726_v15 = vpop.f32.mrf.mxu1  ;;  %v10790_v56 = vpop.f32.mrf.mxu0  ;;  %10981 = vmatmul.mubr.bf16.gmra.mxu1 %v12947_v58  ;;  %11045 = vmatmul.mubr.bf16.gmra.mxu0 %v2981_v20 }
 0x1b6   : > { %17669 = vst [vmem:[#allocation67_spill] sm:$0xff] %v13313_v63  ;;  %v13317_v54 = vadd.f32 %v1380_v25, %v1091_v53  ;;  %v1112_v2 = vadd.f32 %v10726_v15, %v17671_v33  ;;  %10984 = vmatprep.mubr.bf16.mxu1 %v17672_v49  ;;  %11048 = vmatprep.mubr.bf16.mxu0 %v2983_v60  ;;  %v17676_v25 = vld [vmem:[#allocation22_spill] sm:$0xff] }
 0x1b7   : > { %v1103_v62 = vpop.f32.mrf.mxu1  ;;  %v1393_v59 = vpop.f32.mrf.mxu0  ;;  %v2985_v53 = vsel %vm17475_vm0, %v2982_v42, %v2984_v36  ;;  %v13334_v15 = vpack.c.bf16 %v2852_v38, %v2851_v40  ;;  %v17681_v40 = vld [vmem:[#allocation26_spill] sm:$0xff] }
 0x1b8   : > { %17670 = vst [vmem:[#allocation68_spill] sm:$0xff] %v13317_v54  ;;  %v13325_v22 = vadd.f32 %v10790_v56, %v1112_v2  ;;  %v1104_v58 = vadd.f32 %v1103_v62, %v17674_v23  ;;  %v2987_v54 = vsel %vm17475_vm0, %v2984_v36, %v2986_v32  ;;  %v13337_v56 = vpack.c.bf16 %v2854_v4, %v2853_v11  ;;  %v17678_v62 = vld [vmem:[#allocation24_spill] sm:$0xff]  ;;  %v17682_v36 = vld [vmem:[#allocation23_spill] sm:$0xff] }
 0x1b9   : > { %v10727_v52 = vpop.f32.mrf.mxu1  ;;  %v10791_v20 = vpop.f32.mrf.mxu0  ;;  %v2988_v11 = vrot.slane %v13334_v15, 4 }
 0x1ba   : > { %17673 = vst [vmem:[#allocation20_spill] sm:$0xff] %v13325_v22  ;;  %v13330_v12 = vadd.f32 %v1393_v59, %v1104_v58  ;;  %v1115_v60 = vadd.f32 %v10727_v52, %v17676_v25  ;;  %v17679_v52 = vld [vmem:[#allocation19_spill] sm:$0xff]  ;;  %v2990_v25 = vrot.slane %v13337_v56, 4 }
 0x1bb   : > { %v1106_v33 = vpop.f32.mrf.mxu1  ;;  %v1396_v49 = vpop.f32.mrf.mxu0 }
 0x1bc   : > { %17675 = vst [vmem:[#allocation18_spill] sm:$0xff] %v13330_v12  ;;  %v13339_v2 = vadd.f32 %v10791_v20, %v1115_v60  ;;  %v1107_v23 = vadd.f32 %v1106_v33, %v17678_v62  ;;  %v2855_v60 = vld [vmem:[%s12609_s27 + $0x172] sm:$0xff]  ;;  %v2856_v33 = vld [vmem:[%s12609_s27 + $0x17a] sm:$0xff]  ;;  %v2991_v61 = vsel %vm17475_vm0, %v2988_v11, %v2990_v25 }
 0x1bd   : > { %v10730_v59 = vpop.f32.mrf.mxu1  ;;  %v10794_v58 = vpop.f32.mrf.mxu0  ;;  %10985 = vmatmul.mubr.bf16.gmra.mxu1 %v17679_v52  ;;  %11049 = vmatmul.mubr.bf16.gmra.mxu0 %v2985_v53  ;;  %v2857_v53 = vld [vmem:[%s12609_s27 + $0x182] sm:$0xff]  ;;  %v13360_v12 = vpack.c.bf16 %v2856_v33, %v2855_v60 }
 0x1be   : > { %17677 = vst [vmem:[#allocation21_spill] sm:$0xff] %v13339_v2  ;;  %v13343_v42 = vadd.f32 %v1396_v49, %v1107_v23  ;;  %v1128_v38 = vadd.f32 %v10730_v59, %v17681_v40  ;;  %10988 = vmatprep.mubr.bf16.mxu1 %v17682_v36  ;;  %11052 = vmatprep.mubr.bf16.mxu0 %v2987_v54  ;;  %v17684_v2 = vld [vmem:[#allocation27_spill] sm:$0xff]  ;;  %v17686_v40 = vld [vmem:[#allocation28_spill] sm:$0xff] }
 0x1bf   : > { %v1119_v4 = vpop.f32.mrf.mxu1  ;;  %v1409_v20 = vpop.f32.mrf.mxu0  ;;  %v2858_v49 = vld [vmem:[%s12609_s27 + $0x18a] sm:$0xff]  ;;  %v2989_v36 = vsel %vm17475_vm0, %v2986_v32, %v2988_v11  ;;  %v17691_v60 = vld [vmem:[#allocation32_spill] sm:$0xff]  ;;  %v2992_v11 = vrot.slane %v13360_v12, 4 }
 0x1c0   : > { %17680 = vst [vmem:[#allocation22_spill] sm:$0xff] %v13343_v42  ;;  %v13351_v62 = vadd.f32 %v10794_v58, %v1128_v38  ;;  %v1120_v52 = vadd.f32 %v1119_v4, %v17684_v2  ;;  %v13363_v58 = vpack.c.bf16 %v2858_v49, %v2857_v53  ;;  %v17688_v38 = vld [vmem:[#allocation30_spill] sm:$0xff] }
 0x1c1   : > { %v10731_v23 = vpop.f32.mrf.mxu1  ;;  %v10795_v42 = vpop.f32.mrf.mxu0 }
 0x1c2   : > { %17683 = vst [vmem:[#allocation24_spill] sm:$0xff] %v13351_v62  ;;  %v13356_v59 = vadd.f32 %v1409_v20, %v1120_v52  ;;  %v1131_v54 = vadd.f32 %v10731_v23, %v17686_v40  ;;  %v17692_v23 = vld [vmem:[#allocation29_spill] sm:$0xff]  ;;  %v2859_v40 = vld [vmem:[%s12609_s27 + $0x192] sm:$0xff] }
 0x1c3   : > { %v1122_v22 = vpop.f32.mrf.mxu1  ;;  %v1412_v63 = vpop.f32.mrf.mxu0 }
 0x1c4   : > { %17685 = vst [vmem:[#allocation19_spill] sm:$0xff] %v13356_v59  ;;  %v13365_v2 = vadd.f32 %v10795_v42, %v1131_v54  ;;  %v1123_v4 = vadd.f32 %v1122_v22, %v17688_v38  ;;  %v17689_v59 = vld [vmem:[#allocation25_spill] sm:$0xff]  ;;  %v2994_v42 = vrot.slane %v13363_v58, 4 }
 0x1c5   : > { %v10734_v20 = vpop.f32.mrf.mxu1  ;;  %v10798_v52 = vpop.f32.mrf.mxu0  ;;  %10989 = vmatmul.mubr.bf16.gmra.mxu1 %v17689_v59  ;;  %11053 = vmatmul.mubr.bf16.gmra.mxu0 %v2989_v36  ;;  %v2860_v22 = vld [vmem:[%s12609_s27 + $0x19a] sm:$0xff] }
 0x1c6   : > { %17687 = vst [vmem:[#allocation26_spill] sm:$0xff] %v13365_v2  ;;  %v13369_v32 = vadd.f32 %v1412_v63, %v1123_v4  ;;  %v1144_v33 = vadd.f32 %v10734_v20, %v17691_v60  ;;  %10992 = vmatprep.mubr.bf16.mxu1 %v17692_v23  ;;  %11056 = vmatprep.mubr.bf16.mxu0 %v2991_v61  ;;  %v17694_v38 = vld [vmem:[#allocation33_spill] sm:$0xff]  ;;  %v17696_v20 = vld [vmem:[#allocation34_spill] sm:$0xff] }
 0x1c7   : > { %v1135_v53 = vpop.f32.mrf.mxu1  ;;  %v1425_v49 = vpop.f32.mrf.mxu0  ;;  %v2993_v61 = vsel %vm17475_vm0, %v2990_v25, %v2992_v11  ;;  %v13384_v23 = vpack.c.bf16 %v2860_v22, %v2859_v40  ;;  %v2995_v62 = vsel %vm17475_vm0, %v2992_v11, %v2994_v42  ;;  %v17701_v25 = vld [vmem:[#allocation39_spill] sm:$0xff] }
 0x1c8   : > { %17690 = vst [vmem:[#allocation23_spill] sm:$0xff] %v13369_v32  ;;  %v13377_v54 = vadd.f32 %v10798_v52, %v1144_v33  ;;  %v1136_v59 = vadd.f32 %v1135_v53, %v17694_v38  ;;  %v17698_v33 = vld [vmem:[#allocation36_spill] sm:$0xff]  ;;  %v17702_v22 = vld [vmem:[#allocation35_spill] sm:$0xff] }
 0x1c9   : > { %v10735_v36 = vpop.f32.mrf.mxu1  ;;  %v10799_v63 = vpop.f32.mrf.mxu0  ;;  %v1621_v11 = vld [vmem:[%s12609_s27 + $0x1a9] sm:$0xff] }
 0x1ca   : > { %17693 = vst [vmem:[#allocation27_spill] sm:$0xff] %v13377_v54  ;;  %v13380_v4 = vadd.f32 %v1425_v49, %v1136_v59  ;;  %v1147_v60 = vadd.f32 %v10735_v36, %v17696_v20  ;;  %v17699_v59 = vld [vmem:[#allocation31_spill] sm:$0xff]  ;;  %v1620_v20 = vld [vmem:[%s12609_s27 + $0x1a1] sm:$0xff] }
 0x1cb   : > { %v1138_v32 = vpop.f32.mrf.mxu1  ;;  %v1428_v2 = vpop.f32.mrf.mxu0  ;;  %v17704_v54 = vld [vmem:[#allocation40_spill] sm:$0xff] }
 0x1cc   : > { %17695 = vst [vmem:[#allocation28_spill] sm:$0xff] %v13380_v4  ;;  %v13387_v52 = vadd.f32 %v10799_v63, %v1147_v60  ;;  %v1139_v53 = vadd.f32 %v1138_v32, %v17698_v33  ;;  %v2996_v63 = vrot.slane %v13384_v23, 4  ;;  %v2809_v4 = vld [vmem:[%s12609_s27 + $0x2] sm:$0xff]  ;;  %v2810_v32 = vld [vmem:[%s12609_s27 + $0xa] sm:$0xff] }
 0x1cd   : > { %v10738_v49 = vpop.f32.mrf.mxu1  ;;  %v10802_v38 = vpop.f32.mrf.mxu0  ;;  %10993 = vmatmul.mubr.bf16.gmra.mxu1 %v17699_v59  ;;  %11057 = vmatmul.mubr.bf16.gmra.mxu0 %v2993_v61 }
 0x1ce   : > { %17697 = vst [vmem:[#allocation30_spill] sm:$0xff] %v13387_v52  ;;  %v13391_v36 = vadd.f32 %v1428_v2, %v1139_v53  ;;  %v1160_v40 = vadd.f32 %v10738_v49, %v17701_v25  ;;  %10996 = vmatprep.mubr.bf16.mxu1 %v17702_v22  ;;  %11060 = vmatprep.mubr.bf16.mxu0 %v2995_v62  ;;  %v17706_v49 = vld [vmem:[#allocation41_spill] sm:$0xff] }
 0x1cf   : > { %v1151_v60 = vpop.f32.mrf.mxu1  ;;  %v1441_v52 = vpop.f32.mrf.mxu0  ;;  %v1648_v53 = vpack.c.bf16 %v1621_v11, %v1620_v20  ;;  %v2997_v62 = vsel %vm17475_vm0, %v2994_v42, %v2996_v63  ;;  %v2863_v22 = vpack.c.bf16 %v2810_v32, %v2809_v4  ;;  %v17710_v20 = vld [vmem:[#allocation45_spill] sm:$0xff]  ;;  %v17711_v11 = vld [vmem:[#allocation42_spill] sm:$0xff] }
 0x1d0   : > { %17700 = vst [vmem:[#allocation25_spill] sm:$0xff] %v13391_v36  ;;  %v13400_v33 = vadd.f32 %v10802_v38, %v1160_v40  ;;  %v1152_v59 = vadd.f32 %v1151_v60, %v17704_v54  ;;  %v17713_v63 = vld [vmem:[#allocation46_spill] sm:$0xff] }
 0x1d1   : > { %v10739_v61 = vpop.f32.mrf.mxu1  ;;  %v10803_v2 = vpop.f32.mrf.mxu0 }
 0x1d2   : > { %17703 = vst [vmem:[#allocation32_spill] sm:$0xff] %v13400_v33  ;;  %v13403_v36 = vadd.f32 %v1441_v52, %v1152_v59  ;;  %v1163_v25 = vadd.f32 %v10739_v61, %v17706_v49  ;;  %v17717_v49 = vld [vmem:[#allocation49_spill] sm:$0xff] }
 0x1d3   : > { %v1154_v28 = vpop.f32.mrf.mxu1  ;;  %v1444_v55 = vpop.f32.mrf.mxu0 }
 0x1d4   : > { %17705 = vst [vmem:[#allocation29_spill] sm:$0xff] %v13403_v36  ;;  %v13407_v48 = vadd.f32 %v10803_v2, %v1163_v25  ;;  %v1155_v14 = vadd.f32 %v1154_v28, %v17708_v26  ;;  %v17715_v28 = vld [vmem:[#allocation47_spill] sm:$0xff] }
 0x1d5   : > { %v10742_v38 = vpop.f32.mrf.mxu1  ;;  %v10806_v40 = vpop.f32.mrf.mxu0  ;;  %10997 = vmatmul.mubr.bf16.gmra.mxu1 %v1648_v53  ;;  %11061 = vmatmul.mubr.bf16.gmra.mxu0 %v2997_v62 }
 0x1d6   : > { %17707 = vst [vmem:[#allocation33_spill] sm:$0xff] %v13407_v48  ;;  %v13410_v54 = vadd.f32 %v1444_v55, %v1155_v14  ;;  %v1176_v52 = vadd.f32 %v10742_v38, %v17710_v20  ;;  %11080 = vmatprep.mubr.bf16.mxu1 %v2863_v22  ;;  %11144 = vmatprep.mubr.bf16.mxu0 %v17711_v11  ;;  %v17718_v38 = vld [vmem:[#allocation37_spill] sm:$0xff] }
 0x1d7   : > { %v1167_v60 = vpop.f32.mrf.mxu1  ;;  %v1457_v42 = vpop.f32.mrf.mxu0 }
 0x1d8   : > { %17709 = vst [vmem:[#allocation34_spill] sm:$0xff] %v13410_v54  ;;  %v13414_v4 = vadd.f32 %v10806_v40, %v1176_v52  ;;  %v1168_v32 = vadd.f32 %v1167_v60, %v17713_v63  ;;  %v17719_v40 = vld [vmem:[#allocation44_spill] sm:$0xff]  ;;  %v17721_v60 = vld [vmem:[#allocation38_spill] sm:$0xff] }
 0x1d9   : > { %v10743_v59 = vpop.f32.mrf.mxu1  ;;  %v10807_v61 = vpop.f32.mrf.mxu0 }
 0x1da   : > { %17712 = vst [vmem:[#allocation36_spill] sm:$0xff] %v13414_v4  ;;  %v13417_v26 = vadd.f32 %v1457_v42, %v1168_v32  ;;  %v1179_v2 = vadd.f32 %v10743_v59, %v17715_v28  ;;  %v17722_v42 = vld [vmem:[#allocation48_spill] sm:$0xff] }
 0x1db   : > { %v1170_v53 = vpop.f32.mrf.mxu1  ;;  %v1460_v14 = vpop.f32.mrf.mxu0 }
 0x1dc   : > { %17714 = vst [vmem:[#allocation31_spill] sm:$0xff] %v13417_v26  ;;  %v13420_v55 = vadd.f32 %v10807_v61, %v1179_v2  ;;  %v1171_v25 = vadd.f32 %v1170_v53, %v17717_v49 }
 0x1dd   : > { %v10826_v62 = vpop.f32.mrf.mxu1  ;;  %v10890_v22 = vpop.f32.mrf.mxu0  ;;  %11081 = vmatmul.mubr.bf16.vlgmr.msra.gmra.mxu1 %v17718_v38  ;;  %11145 = vmatmul.mubr.bf16.vlgmr.msra.gmra.mxu0 %v17719_v40 }
 0x1de   : > { %17716 = vst [vmem:[#allocation39_spill] sm:$0xff] %v13420_v55  ;;  %v13425_v20 = vadd.f32 %v1460_v14, %v1171_v25  ;;  %v13427_v52 = vadd.f32 %v10890_v22, %v10826_v62  ;;  %11084 = vmatprep.mubr.bf16.mxu1 %v17721_v60  ;;  %11148 = vmatprep.mubr.bf16.mxu0 %v17722_v42  ;;  %v12105_v14 = vld [vmem:[#allocation9 + $0xf8] sm:$0xff]  }
 0x1df   : > { %v1863_v63 = vpop.f32.mrf.mxu1  ;;  %v2136_v32 = vpop.f32.mrf.mxu0  ;;  %11192 = vmatprep.subr.bf16.mxu1 %v12105_v14 }
 0x1e0   : > { %17720 = vst [vmem:[#allocation35_spill] sm:$0xff] %v13425_v20  ;;  %v13431_v59 = vadd.f32 %v2136_v32, %v1863_v63  ;;  %11193 = vmatpush3.bf16.msra.mxu1 %v12105_v14 }
 0x1e1   : > { %v10827_v61 = vpop.f32.mrf.mxu1  ;;  %v10891_v28 = vpop.f32.mrf.mxu0 }
 0x1e2   : > { %v13433_v2 = vadd.f32 %v10891_v28, %v10827_v61  ;;  %v12106_v61 = vld [vmem:[#allocation9 + $0x38] sm:$0xff]  }
 0x1e3   : > { %v1866_v53 = vpop.f32.mrf.mxu1  ;;  %v2139_v49 = vpop.f32.mrf.mxu0  ;;  %11256 = vmatprep.subr.bf16.mxu0 %v12106_v61 }
 0x1e4   : > { %v13435_v38 = vadd.f32 %v2139_v49, %v1866_v53  ;;  %11257 = vmatpush3.bf16.msra.mxu0 %v12106_v61 }
 0x1e5   : > { %v10830_v25 = vpop.f32.mrf.mxu1  ;;  %v10894_v62 = vpop.f32.mrf.mxu0  ;;  %11085 = vmatmul.mubr.bf16.gmra.mxu1 %v17711_v11  ;;  %11149 = vmatmul.mubr.bf16.gmra.mxu0 %v13131_v1 }
 0x1e6   : > { %v13439_v22 = vadd.f32 %v10894_v62, %v10830_v25  ;;  %11088 = vmatprep.mubr.bf16.mxu1 %v17719_v40  ;;  %11152 = vmatprep.mubr.bf16.mxu0 %v13152_v8 }
 0x1e7   : > { %v1879_v60 = vpop.f32.mrf.mxu1  ;;  %v2152_v63 = vpop.f32.mrf.mxu0 }
 0x1e8   : > { %v13443_v32 = vadd.f32 %v2152_v63, %v1879_v60 }
 0x1e9   : > { %v10831_v28 = vpop.f32.mrf.mxu1  ;;  %v10895_v53 = vpop.f32.mrf.mxu0 }
 0x1ea   : > { %v13445_v49 = vadd.f32 %v10895_v53, %v10831_v28  ;;  %v12107_v53 = vld [vmem:[#allocation9 + $0xf0] sm:$0xff]  }
 0x1eb   : > { %v1882_v11 = vpop.f32.mrf.mxu1  ;;  %v2155_v20 = vpop.f32.mrf.mxu0  ;;  %11194 = vmatprep.subr.bf16.mxu1 %v12107_v53 }
 0x1ec   : > { %v13447_v25 = vadd.f32 %v2155_v20, %v1882_v11  ;;  %11195 = vmatpush3.bf16.msra.mxu1 %v12107_v53 }
 0x1ed   : > { %v10834_v40 = vpop.f32.mrf.mxu1  ;;  %v10898_v62 = vpop.f32.mrf.mxu0  ;;  %11089 = vmatmul.mubr.bf16.gmra.mxu1 %v17722_v42  ;;  %11153 = vmatmul.mubr.bf16.gmra.mxu0 %v13155_v9 }
 0x1ee   : > { %v13451_v60 = vadd.f32 %v10898_v62, %v10834_v40  ;;  %11092 = vmatprep.mubr.bf16.mxu1 %v13131_v1  ;;  %11156 = vmatprep.mubr.bf16.mxu0 %v13178_v10  ;;  %v12108_v40 = vld [vmem:[#allocation9 + $0x30] sm:$0xff]  }
 0x1ef   : > { %v1895_v14 = vpop.f32.mrf.mxu1  ;;  %v2168_v63 = vpop.f32.mrf.mxu0  ;;  %11258 = vmatprep.subr.bf16.mxu0 %v12108_v40 }
 0x1f0   : > { %v13455_v28 = vadd.f32 %v2168_v63, %v1895_v14  ;;  %11259 = vmatpush3.bf16.msra.mxu0 %v12108_v40 }
 0x1f1   : > { %v10835_v61 = vpop.f32.mrf.mxu1  ;;  %v10899_v20 = vpop.f32.mrf.mxu0 }
 0x1f2   : > { %v13457_v11 = vadd.f32 %v10899_v20, %v10835_v61 }
 0x1f3   : > { %v1898_v55 = vpop.f32.mrf.mxu1  ;;  %v2171_v42 = vpop.f32.mrf.mxu0 }
 0x1f4   : > { %v13459_v54 = vadd.f32 %v2171_v42, %v1898_v55 }
 0x1f5   : > { %v10838_v62 = vpop.f32.mrf.mxu1  ;;  %v10902_v1 = vpop.f32.mrf.mxu0  ;;  %11093 = vmatmul.mubr.bf16.gmra.mxu1 %v13152_v8  ;;  %11157 = vmatmul.mubr.bf16.gmra.mxu0 %v13181_v44 }
 0x1f6   : > { %v13463_v14 = vadd.f32 %v10902_v1, %v10838_v62  ;;  %11096 = vmatprep.mubr.bf16.mxu1 %v13155_v9  ;;  %11160 = vmatprep.mubr.bf16.mxu0 %v13204_v13  ;;  %v12109_v62 = vld [vmem:[#allocation9 + $0xe8] sm:$0xff]  }
 0x1f7   : > { %v1911_v63 = vpop.f32.mrf.mxu1  ;;  %v2184_v61 = vpop.f32.mrf.mxu0  ;;  %11196 = vmatprep.subr.bf16.mxu1 %v12109_v62 }
 0x1f8   : > { %17723 = vst [vmem:[#allocation40_spill] sm:$0xff] %v13463_v14  ;;  %v13467_v20 = vadd.f32 %v2184_v61, %v1911_v63  ;;  %11197 = vmatpush3.bf16.msra.mxu1 %v12109_v62 }
 0x1f9   : > { %v10839_v55 = vpop.f32.mrf.mxu1  ;;  %v10903_v53 = vpop.f32.mrf.mxu0 }
 0x1fa   : > { %17724 = vst [vmem:[#allocation41_spill] sm:$0xff] %v13467_v20  ;;  %v13469_v42 = vadd.f32 %v10903_v53, %v10839_v55 }
 0x1fb   : > { %v1914_v26 = vpop.f32.mrf.mxu1  ;;  %v2187_v8 = vpop.f32.mrf.mxu0 }
 0x1fc   : > { %17725 = vst [vmem:[#allocation43_spill] sm:$0xff] %v13469_v42  ;;  %v13471_v4 = vadd.f32 %v2187_v8, %v1914_v26  ;;  %v12110_v26 = vld [vmem:[#allocation9 + $0x28] sm:$0xff]  }
 0x1fd   : > { %v10842_v1 = vpop.f32.mrf.mxu1  ;;  %v10906_v48 = vpop.f32.mrf.mxu0  ;;  %11097 = vmatmul.mubr.bf16.gmra.mxu1 %v13178_v10  ;;  %11161 = vmatmul.mubr.bf16.gmra.mxu0 %v13207_v41 }
 0x1fe   : > { %17726 = vst [vmem:[#allocation45_spill] sm:$0xff] %v13471_v4  ;;  %v13475_v9 = vadd.f32 %v10906_v48, %v10842_v1  ;;  %11100 = vmatprep.mubr.bf16.mxu1 %v13181_v44  ;;  %11164 = vmatprep.mubr.bf16.mxu0 %v13230_v46 }
 0x1ff   : > { %v1927_v40 = vpop.f32.mrf.mxu1  ;;  %v2200_v63 = vpop.f32.mrf.mxu0  ;;  %11260 = vmatprep.subr.bf16.mxu0 %v12110_v26 }
 0x200   : > { %17727 = vst [vmem:[#allocation42_spill] sm:$0xff] %v13475_v9  ;;  %v13479_v61 = vadd.f32 %v2200_v63, %v1927_v40  ;;  %11261 = vmatpush3.bf16.msra.mxu0 %v12110_v26 }
 0x201   : > { %v10843_v55 = vpop.f32.mrf.mxu1  ;;  %v10907_v53 = vpop.f32.mrf.mxu0 }
 0x202   : > { %17728 = vst [vmem:[#allocation46_spill] sm:$0xff] %v13479_v61  ;;  %v13481_v8 = vadd.f32 %v10907_v53, %v10843_v55  ;;  %v12111_v53 = vld [vmem:[#allocation9 + $0xe0] sm:$0xff]  }
 0x203   : > { %v1930_v10 = vpop.f32.mrf.mxu1  ;;  %v2203_v36 = vpop.f32.mrf.mxu0  ;;  %11198 = vmatprep.subr.bf16.mxu1 %v12111_v53 }
 0x204   : > { %17729 = vst [vmem:[#allocation47_spill] sm:$0xff] %v13481_v8  ;;  %v13483_v48 = vadd.f32 %v2203_v36, %v1930_v10  ;;  %11199 = vmatpush3.bf16.msra.mxu1 %v12111_v53 }
 0x205   : > { %v10846_v44 = vpop.f32.mrf.mxu1  ;;  %v10910_v1 = vpop.f32.mrf.mxu0  ;;  %11101 = vmatmul.mubr.bf16.gmra.mxu1 %v13204_v13  ;;  %11165 = vmatmul.mubr.bf16.gmra.mxu0 %v13233_v21 }
 0x206   : > { %17730 = vst [vmem:[#allocation49_spill] sm:$0xff] %v13483_v48  ;;  %v13487_v40 = vadd.f32 %v10910_v1, %v10846_v44  ;;  %11104 = vmatprep.mubr.bf16.mxu1 %v13207_v41  ;;  %11168 = vmatprep.mubr.bf16.mxu0 %v13256_v47  ;;  %v12112_v44 = vld [vmem:[#allocation9 + $0x20] sm:$0xff]  }
 0x207   : > { %v1943_v62 = vpop.f32.mrf.mxu1  ;;  %v2216_v63 = vpop.f32.mrf.mxu0  ;;  %11262 = vmatprep.subr.bf16.mxu0 %v12112_v44 }
 0x208   : > { %17731 = vst [vmem:[#allocation37_spill] sm:$0xff] %v13487_v40  ;;  %v13491_v55 = vadd.f32 %v2216_v63, %v1943_v62  ;;  %11263 = vmatpush3.bf16.msra.mxu0 %v12112_v44  ;;  %v4050_v44 = vlaneseq }
 0x209   : > { %v10847_v26 = vpop.f32.mrf.mxu1  ;;  %v10911_v36 = vpop.f32.mrf.mxu0 }
 0x20a   : > { %17732 = vst [vmem:[#allocation44_spill] sm:$0xff] %v13491_v55  ;;  %v13493_v10 = vadd.f32 %v10911_v36, %v10847_v26 }
 0x20b   : > { %v1946_v33 = vpop.f32.mrf.mxu1  ;;  %v2219_v13 = vpop.f32.mrf.mxu0 }
 0x20c   : > { %17733 = vst [vmem:[#allocation38_spill] sm:$0xff] %v13493_v10  ;;  %v13495_v51 = vadd.f32 %v2219_v13, %v1946_v33 }
 0x20d   : > { %v10850_v1 = vpop.f32.mrf.mxu1  ;;  %v10914_v41 = vpop.f32.mrf.mxu0  ;;  %11105 = vmatmul.mubr.bf16.gmra.mxu1 %v13230_v46  ;;  %11169 = vmatmul.mubr.bf16.gmra.mxu0 %v13259_v3 }
 0x20e   : > { %17734 = vst [vmem:[#allocation48_spill] sm:$0xff] %v13495_v51  ;;  %v13499_v62 = vadd.f32 %v10914_v41, %v10850_v1  ;;  %11108 = vmatprep.mubr.bf16.mxu1 %v13233_v21  ;;  %11172 = vmatprep.mubr.bf16.mxu0 %v13282_v18  ;;  %v12113_v1 = vld [vmem:[#allocation9 + $0xd8] sm:$0xff]  }
 0x20f   : > { %v1959_v63 = vpop.f32.mrf.mxu1  ;;  %v2232_v26 = vpop.f32.mrf.mxu0  ;;  %11200 = vmatprep.subr.bf16.mxu1 %v12113_v1 }
 0x210   : > { %17735 = vst [vmem:[#allocation69_spill] sm:$0xff] %v13499_v62  ;;  %v13503_v36 = vadd.f32 %v2232_v26, %v1959_v63  ;;  %11201 = vmatpush3.bf16.msra.mxu1 %v12113_v1 }
 0x211   : > { %v10851_v33 = vpop.f32.mrf.mxu1  ;;  %v10915_v53 = vpop.f32.mrf.mxu0 }
 0x212   : > { %17736 = vst [vmem:[#allocation70_spill] sm:$0xff] %v13503_v36  ;;  %v13505_v13 = vadd.f32 %v10915_v53, %v10851_v33 }
 0x213   : > { %v1962_v51 = vpop.f32.mrf.mxu1  ;;  %v2235_v46 = vpop.f32.mrf.mxu0 }
 0x214   : > { %17737 = vst [vmem:[#allocation71_spill] sm:$0xff] %v13505_v13  ;;  %v13507_v10 = vadd.f32 %v2235_v46, %v1962_v51  ;;  %v12114_v51 = vld [vmem:[#allocation9 + $0x18] sm:$0xff]  }
 0x215   : > { %v10854_v41 = vpop.f32.mrf.mxu1  ;;  %v10918_v62 = vpop.f32.mrf.mxu0  ;;  %11109 = vmatmul.mubr.bf16.gmra.mxu1 %v13256_v47  ;;  %11173 = vmatmul.mubr.bf16.gmra.mxu0 %v13285_v34 }
 0x216   : > { %17738 = vst [vmem:[#allocation72_spill] sm:$0xff] %v13507_v10  ;;  %v13511_v21 = vadd.f32 %v10918_v62, %v10854_v41  ;;  %11112 = vmatprep.mubr.bf16.mxu1 %v13259_v3  ;;  %11176 = vmatprep.mubr.bf16.mxu0 %v13308_v35  ;;  %v13517_v10 = vshrl.u32 %v4050_v44, 7 }
 0x217   : > { %v1975_v63 = vpop.f32.mrf.mxu1  ;;  %v2248_v26 = vpop.f32.mrf.mxu0  ;;  %11264 = vmatprep.subr.bf16.mxu0 %v12114_v51 }
 0x218   : > { %17739 = vst [vmem:[#allocation73_spill] sm:$0xff] %v13511_v21  ;;  %v13515_v33 = vadd.f32 %v2248_v26, %v1975_v63  ;;  %11265 = vmatpush3.bf16.msra.mxu0 %v12114_v51  ;;  %v13526_v1 = vadd.s32 16, %v13517_v10  ;;  %v13572_v36 = vadd.s32 32, %v13517_v10 }
 0x219   : > { %v10855_v53 = vpop.f32.mrf.mxu1  ;;  %v10919_v46 = vpop.f32.mrf.mxu0 }
 0x21a   : > { %17740 = vst [vmem:[#allocation74_spill] sm:$0xff] %v13515_v33  ;;  %v13519_v47 = vadd.f32 %v10919_v46, %v10855_v53  ;;  %v13535_v53 = vadd.s32 24, %v13517_v10 }
 0x21b   : > { %v1978_v62 = vpop.f32.mrf.mxu1  ;;  %v2251_v41 = vpop.f32.mrf.mxu0 }
 0x21c   : > { %17741 = vst [vmem:[#allocation75_spill] sm:$0xff] %v13519_v47  ;;  %v13521_v3 = vadd.f32 %v2251_v41, %v1978_v62  ;;  %v13538_v62 = vmul.u32.u64.low 2863311531, %v13526_v1  ;;  %v13539_v41 = vmul.u32.u64.high 2863311531, %v13526_v1, %v13538_v62  ;;  %v13559_v47 = vadd.s32 48, %v13517_v10 }
 0x21d   : > { %v10858_v21 = vpop.f32.mrf.mxu1  ;;  %v10922_v13 = vpop.f32.mrf.mxu0  ;;  %11113 = vmatmul.mubr.bf16.gmra.mxu1 %v13282_v18  ;;  %11177 = vmatmul.mubr.bf16.gmra.mxu0 %v13311_v0 }
 0x21e   : > { %17742 = vst [vmem:[#allocation76_spill] sm:$0xff] %v13521_v3  ;;  %v13528_v63 = vadd.f32 %v10922_v13, %v10858_v21  ;;  %11116 = vmatprep.mubr.bf16.mxu1 %v13285_v34  ;;  %11180 = vmatprep.mubr.bf16.mxu0 %v13334_v15  ;;  %v13544_v13 = vmul.u32.u64.low 2863311531, %v13517_v10  ;;  %v13545_v34 = vmul.u32.u64.high 2863311531, %v13517_v10, %v13544_v13 }
 0x21f   : > { %v1991_v44 = vpop.f32.mrf.mxu1  ;;  %v2264_v26 = vpop.f32.mrf.mxu0 }
 0x220   : > { %17743 = vst [vmem:[#allocation77_spill] sm:$0xff] %v13528_v63  ;;  %v13532_v51 = vadd.f32 %v2264_v26, %v1991_v44  ;;  %v13552_v44 = vadd.s32 8, %v13517_v10  ;;  %v4105_v24 = vshrl.u32 %v13545_v34, 4 }
 0x221   : > { %v10859_v46 = vpop.f32.mrf.mxu1  ;;  %v10923_v18 = vpop.f32.mrf.mxu0 }
 0x222   : > { %17744 = vst [vmem:[#allocation78_spill] sm:$0xff] %v13532_v51  ;;  %v13541_v3 = vadd.f32 %v10923_v18, %v10859_v46  ;;  %v13555_v26 = vmul.u32.u64.low 2863311531, %v13535_v53  ;;  %v13556_v51 = vmul.u32.u64.high 2863311531, %v13535_v53, %v13555_v26  ;;  %v4106_v61 = vmul.u32 24, %v4105_v24 }
 0x223   : > { %v13547_v21 = vpop.f32.mrf.mxu1  ;;  %v13549_v63 = vpop.f32.mrf.mxu0  ;;  %v13568_v33 = vmul.u32.u64.low 2863311531, %v13552_v44  ;;  %v13569_v26 = vmul.u32.u64.high 2863311531, %v13552_v44, %v13568_v33 }
 0x224   : > { %17745 = vst [vmem:[#allocation79_spill] sm:$0xff] %v13541_v3 }
 0x225   : > { %v10862_v46 = vpop.f32.mrf.mxu1  ;;  %v10926_v18 = vpop.f32.mrf.mxu0  ;;  %11117 = vmatmul.mubr.bf16.gmra.mxu1 %v13308_v35  ;;  %11181 = vmatmul.mubr.bf16.gmra.mxu0 %v13337_v56  ;;  %v13577_v35 = vmul.u32.u64.low 2863311531, %v13559_v47  ;;  %v13578_v40 = vmul.u32.u64.high 2863311531, %v13559_v47, %v13577_v35 }
 0x226   : > { %v13563_v62 = vadd.f32 %v10926_v18, %v10862_v46  ;;  %11120 = vmatprep.mubr.bf16.mxu1 %v13311_v0  ;;  %11184 = vmatprep.mubr.bf16.mxu0 %v13360_v12  ;;  %v4127_v0 = vshrl.u32 %v13539_v41, 4 }
 0x227   : > { %v2007_v13 = vpop.f32.mrf.mxu1  ;;  %v2280_v3 = vpop.f32.mrf.mxu0 }
 0x228   : > { %17746 = vst [vmem:[#allocation80_spill] sm:$0xff] %v13563_v62  ;;  %v13574_v55 = vadd.f32 %v2280_v3, %v2007_v13  ;;  %v12116_v62 = vld [vmem:[#allocation9 + $0x10] sm:$0xff]   ;;  %v13589_v13 = vmul.u32.u64.low 2863311531, %v13572_v36  ;;  %v13590_v35 = vmul.u32.u64.high 2863311531, %v13572_v36, %v13589_v13  ;;  %v4128_v34 = vmul.u32 24, %v4127_v0 }
 0x229   : > { %v10863_v46 = vpop.f32.mrf.mxu1  ;;  %v10927_v18 = vpop.f32.mrf.mxu0  ;;  %v12115_v3 = vld [vmem:[#allocation9 + $0xd0] sm:$0xff]   ;;  %11266 = vmatprep.subr.bf16.mxu0 %v12116_v62  ;;  %v12118_v13 = vld [vmem:[#allocation9 + $0x8] sm:$0xff]  }
 0x22a   : > { %17747 = vst [vmem:[#allocation81_spill] sm:$0xff] %v13574_v55  ;;  %v13581_v48 = vadd.f32 %v10927_v18, %v10863_v46  ;;  %v4138_v55 = vshrl.u32 %v13556_v51, 4  ;;  %11267 = vmatpush3.bf16.msra.mxu0 %v12116_v62  ;;  %11202 = vmatprep.subr.bf16.mxu1 %v12115_v3  ;;  %v4116_v62 = vshrl.u32 %v13569_v26, 4 }
 0x22b   : > { %v13584_v33 = vpop.f32.mrf.mxu1  ;;  %v13586_v8 = vpop.f32.mrf.mxu0  ;;  %11203 = vmatpush3.bf16.msra.mxu1 %v12115_v3  ;;  %11268 = vmatprep.subr.bf16.mxu0 %v12118_v13  ;;  %v12119_v3 = vld [vmem:[#allocation9] sm:$0xff]  }
 0x22c   : > { %17748 = vst [vmem:[#allocation82_spill] sm:$0xff] %v13581_v48  ;;  %v2861_v48 = vld [vmem:[%s12609_s27 + $0x1a2] sm:$0xff]  ;;  %v4139_v0 = vmul.u32 24, %v4138_v55 }
 0x22d   : > { %v10866_v41 = vpop.f32.mrf.mxu1  ;;  %v10930_v46 = vpop.f32.mrf.mxu0  ;;  %11121 = vmatmul.mubr.bf16.gmra.mxu1 %v13334_v15  ;;  %11185 = vmatmul.mubr.bf16.gmra.mxu0 %v13363_v58  ;;  %v13603_v15 = vadd.s32 56, %v13517_v10 }
 0x22e   : > { %v13595_v18 = vadd.f32 %v10930_v46, %v10866_v41  ;;  %11124 = vmatprep.mubr.bf16.mxu1 %v13337_v56  ;;  %11188 = vmatprep.mubr.bf16.mxu0 %v13384_v23  ;;  %v4171_v56 = vshrl.u32 %v13578_v40, 4  ;;  %v13609_v23 = vadd.s32 40, %v13517_v10  ;;  %v2889_v46 = vpack.c.bf16 %v2862_v37, %v2861_v48 }
 0x22f   : > { %v2023_v39 = vpop.f32.mrf.mxu1  ;;  %v2296_v51 = vpop.f32.mrf.mxu0  ;;  %11269 = vmatpush3.bf16.msra.mxu0 %v12118_v13  ;;  %v13625_v9 = vmul.u32.u64.low 2863311531, %v13603_v15  ;;  %v13626_v37 = vmul.u32.u64.high 2863311531, %v13603_v15, %v13625_v9  ;;  %v13629_v48 = vsub.s32 %v13535_v53, %v4139_v0 }
 0x230   : > { %17749 = vst [vmem:[#allocation83_spill] sm:$0xff] %v13595_v18  ;;  %v13605_v58 = vadd.f32 %v2296_v51, %v2023_v39  ;;  %v13612_v18 = vsub.s32 %v13526_v1, %v4128_v34  ;;  %v13617_v39 = vsub.s32 %v13517_v10, %v4106_v61  ;;  %v4117_v51 = vmul.u32 24, %v4116_v62  ;;  %11270 = vmatprep.subr.bf16.mxu0 %v12119_v3 }
 0x231   : > { %v10867_v24 = vpop.f32.mrf.mxu1  ;;  %v10931_v41 = vpop.f32.mrf.mxu0  ;;  %v4172_v1 = vmul.u32 24, %v4171_v56  ;;  %v13632_v34 = vmul.u32.u64.low 2863311531, %v13609_v23  ;;  %v13633_v61 = vmul.u32.u64.high 2863311531, %v13609_v23, %v13632_v34  ;;  %vm4630_vm5 = vcmp.ne.s32.totalorder %v13629_v48, 0 }
 0x232   : > { %17750 = vst [vmem:[#allocation84_spill] sm:$0xff] %v13605_v58  ;;  %17751 = vst [vmem:[#allocation85_spill] sm:$0xff] %v13612_v18  ;;  %v13614_v26 = vadd.f32 %v10931_v41, %v10867_v24  ;;  %v4149_v58 = vshrl.u32 %v13590_v35, 4  ;;  %vm4629_vm1 = vcmp.ne.s32.totalorder %v13612_v18, 0  ;;  %v13638_v35 = vadd.s32 80, %v13517_v10 }
 0x233   : > { %v13619_v55 = vpop.f32.mrf.mxu1  ;;  %v13621_v40 = vpop.f32.mrf.mxu0  ;;  %vm4677_vm2 = vcmp.lt.s32.totalorder %v13612_v18, 0  ;;  %v13644_v53 = vadd.s32 24, %v13612_v18  ;;  %vm4627_vm3 = vcmp.ne.s32.totalorder %v13617_v39, 0  ;;  %11271 = vmatpush3.bf16.msra.mxu0 %v12119_v3  ;;  %vm4675_vm4 = vcmp.lt.s32.totalorder %v13617_v39, 0  ;;  %v12117_v3 = vld [vmem:[#allocation9 + $0xc8] sm:$0xff]  }
 0x234   : > { %17752 = vst [vmem:[#allocation86_spill] sm:$0xff] %v13614_v26  ;;  %v13652_v56 = vsub.s32 %v13552_v44, %v4117_v51  ;;  %v4150_v41 = vmul.u32 24, %v4149_v58  ;;  %vm4678_vm6 = vcmp.lt.s32.totalorder %v13629_v48, 0  ;;  %v13659_v34 = vsub.s32 %v13559_v47, %v4172_v1  ;;  %11204 = vmatprep.subr.bf16.mxu1 %v12117_v3  ;;  %vm13703_vm10 = vmand %vm4677_vm2, %vm4629_vm1 }
 0x235   : > { %v10870_v13 = vpop.f32.mrf.mxu1  ;;  %v10934_v24 = vpop.f32.mrf.mxu0  ;;  %11125 = vmatmul.mubr.bf16.gmra.mxu1 %v13360_v12  ;;  %11189 = vmatmul.mubr.bf16.gmra.mxu0 %v2889_v46  ;;  %v13649_v12 = vadd.s32 24, %v13617_v39  ;;  %v13666_v44 = vadd.s32 64, %v13517_v10  ;;  %v13669_v58 = vadd.s32 88, %v13517_v10  ;;  %v13677_v47 = vadd.s32 72, %v13517_v10  ;;  %vm13720_vm11 = vmand %vm4675_vm4, %vm4627_vm3 }
 0x236   : > { %v13640_v9 = vadd.f32 %v10934_v24, %v10870_v13  ;;  %17754 = vst [vmem:[#allocation88_spill] sm:$0xff] %v13652_v56  ;;  %vm4628_vm7 = vcmp.ne.s32.totalorder %v13652_v56, 0  ;;  %vm4676_vm8 = vcmp.lt.s32.totalorder %v13652_v56, 0  ;;  %11205 = vmatpush3.bf16.msra.mxu1 %v12117_v3  ;;  %vm4633_vm9 = vcmp.ne.s32.totalorder %v13659_v34, 0  ;;  %vm13735_vm13 = vmand %vm4678_vm6, %vm4630_vm5 }
 0x237   : > { %v2039_v62 = vpop.f32.mrf.mxu1  ;;  %v2312_v0 = vpop.f32.mrf.mxu0  ;;  %vm4681_vm12 = vcmp.lt.s32.totalorder %v13659_v34, 0  ;;  %11206 = vmatprep.subr.bf16.mxu1 %v12120_v6  ;;  %vm13752_vm1 = vmand %vm4676_vm8, %vm4628_vm7 }
 0x238   : > { %17753 = vst [vmem:[#allocation87_spill] sm:$0xff] %v13640_v9  ;;  %v13654_v46 = vadd.f32 %v2312_v0, %v2039_v62  ;;  %v13662_v9 = vmul.u32.u64.low 2863311531, %v13638_v35  ;;  %v13663_v26 = vmul.u32.u64.high 2863311531, %v13638_v35, %v13662_v9  ;;  %v13674_v62 = vadd.s32 24, %v13629_v48  ;;  %vm13774_vm2 = vmand %vm4681_vm12, %vm4633_vm9 }
 0x239   : > { %v10871_v13 = vpop.f32.mrf.mxu1  ;;  %v10935_v24 = vpop.f32.mrf.mxu0  ;;  %v13686_v9 = vsub.s32 %v13572_v36, %v4150_v41  ;;  %v4160_v36 = vshrl.u32 %v13633_v61, 4  ;;  %v13695_v41 = vadd.s32 112, %v13517_v10 }
 0x23a   : > { %17755 = vst [vmem:[#allocation89_spill] sm:$0xff] %v13654_v46  ;;  %v13671_v51 = vadd.f32 %v10935_v24, %v10871_v13  ;;  %v4182_v13 = vshrl.u32 %v13626_v37, 4  ;;  %v12410_v24 = vmov 0.0   ;;  %11207 = vmatpush3.bf16.msra.mxu1 %v12120_v6 }
 0x23b   : > { %v13679_v1 = vpop.f32.mrf.mxu1  ;;  %v13681_v0 = vpop.f32.mrf.mxu0  ;;  %17759 = vst [vmem:[#allocation93_spill] sm:$0xff] %v13686_v9  ;;  %5265 = vst [vmem:[#allocation3] sm:$0xff] %v12410_v24  ;;  %v13712_v61 = vmul.u32.u64.low 2863311531, %v13669_v58  ;;  %v13713_v4 = vmul.u32.u64.high 2863311531, %v13669_v58, %v13712_v61  ;;  %vm4631_vm14 = vcmp.ne.s32.totalorder %v13686_v9, 0  ;;  %vm4679_vm15 = vcmp.lt.s32.totalorder %v13686_v9, 0 }
 0x23c   : > { %17756 = vst [vmem:[#allocation90_spill] sm:$0xff] %v13671_v51  ;;  %17757 = vst [vmem:[#allocation91_spill] sm:$0xff] %v13679_v1  ;;  %v13690_v51 = vadd.s32 24, %v13652_v56  ;;  %v4183_v61 = vmul.u32 24, %v4182_v13  ;;  %v13757_v14 = vmul.u32.u64.low 2863311531, %v13695_v41  ;;  %v13758_v27 = vmul.u32.u64.high 2863311531, %v13695_v41, %v13757_v14 }
 0x23d   : > { %17758 = vst [vmem:[#allocation92_spill] sm:$0xff] %v13681_v0  ;;  %5266 = vst [vmem:[#allocation3 + $0x8] sm:$0xff] %v12410_v24  ;;  %v10954_v37 = vpop.f32.mrf.mxu1  ;;  %v13697_v3 = vpop.f32.mrf.mxu0  ;;  %v13762_v13 = vadd.f32 %v13549_v63, %v13547_v21  ;;  %v4161_v6 = vmul.u32 24, %v4160_v36  ;;  %v4215_v14 = vshrl.u32 %v13663_v26, 4 }
 0x23e   : > { %5267 = vst [vmem:[#allocation3 + $0x10] sm:$0xff] %v12410_v24  ;;  %5268 = vst [vmem:[#allocation3 + $0x18] sm:$0xff] %v12410_v24  ;;  %v2619_v42 = vadd.f32 %v10954_v37, %v13427_v52  ;;  %v13740_v37 = vadd.s32 24, %v13659_v34 }
 0x23f   : > { %5269 = vst [vmem:[#allocation3 + $0x1a0] sm:$0xff] %v12410_v24  ;;  %5270 = vst [vmem:[#allocation3 + $0x1a8] sm:$0xff] %v12410_v24  ;;  %v2426_v20 = vpop.f32.mrf.mxu1  ;;  %v13729_v29 = vpop.f32.mrf.mxu0 }
 0x240   : > { %5271 = vst [vmem:[#allocation3 + $0x1b0] sm:$0xff] %v12410_v24  ;;  %5272 = vst [vmem:[#allocation3 + $0x1b8] sm:$0xff] %v12410_v24  ;;  %v13708_v24 = vmul.u32.u64.low 2863311531, %v13666_v44  ;;  %v13709_v30 = vmul.u32.u64.high 2863311531, %v13666_v44, %v13708_v24 }
 0x241   : > { %17760 = vst [vmem:[#allocation94_spill] sm:$0xff] %v13690_v51  ;;  %17761 = vst [vmem:[#allocation95_spill] sm:$0xff] %v13697_v3  ;;  %v13726_v45 = vmul.u32.u64.low 2863311531, %v13677_v47  ;;  %v13727_v24 = vmul.u32.u64.high 2863311531, %v13677_v47, %v13726_v45 }
 0x242   : > { %17766 = vst [vmem:[#allocation96_spill] sm:$0xff] %v13729_v29  ;;  %v17769_v45 = vld [vmem:[#allocation50_spill] sm:$0xff]  ;;  %v2617_v29 = vadd.f32 %v2426_v20, %v13431_v59  ;;  %vm13808_vm3 = vmand %vm4679_vm15, %vm4631_vm14 }
 0x243   : > { %v13745_v0 = vadd.f32 %v2619_v42, %v17769_v45  ;;  %v10955_v42 = vpop.f32.mrf.mxu1  ;;  %v13764_v45 = vpop.f32.mrf.mxu0 }
 0x244   : > { %17773 = vst [vmem:[#allocation97_spill] sm:$0xff] %v13764_v45  ;;  %v13780_v63 = vadd.f32 %v2617_v29, %v13149_v16  ;;  %v2620_v21 = vadd.f32 %v10955_v42, %v13433_v2  ;;  %v13788_v45 = vadd.s32 24, %v13686_v9  ;;  %v17777_v2 = vmov 0  ;;  %v5321_v16 = vld [vmem:[#allocation3 + $0x7] sm:$0xff] }
 0x245   : > { %17770 = vst [vmem:[#allocation50_spill] sm:$0xff] %v13745_v0  ;;  %v13792_v0 = vadd.f32 %v13586_v8, %v13584_v33  ;;  %v2429_v36 = vpop.f32.mrf.mxu1  ;;  %v13794_v18 = vpop.f32.mrf.mxu0  ;;  %v17778_v2 = vsel %vm13808_vm3, 4294967295, %v17777_v2  ;;  %v13813_v8 = vsub.s32 %v13603_v15, %v4183_v61  ;;  %v13817_v33 = vadd.f32 %v13621_v40, %v13619_v55  ;;  %v5322_v59 = vld [vmem:[#allocation3 + $0xf] sm:$0xff] }
 0x246   : > { %17776 = vst [vmem:[#allocation98_spill] sm:$0xff] %v13788_v45  ;;  %17779 = vst [vmem:[#allocation99_spill] sm:$0xff] %v17778_v2  ;;  %v13820_v26 = vadd.f32 %v2620_v21, %v13157_v57  ;;  %v2618_v42 = vadd.f32 %v2429_v36, %v13435_v38  ;;  %v13830_v15 = vsub.s32 %v13609_v23, %v4161_v6  ;;  %v4216_v55 = vmul.u32 24, %v4215_v14  ;;  %v17833_v45 = vld [vmem:[#allocation53_spill] sm:$0xff] }
 0x247   : > { %17780 = vst [vmem:[#allocation100_spill] sm:$0xff] %v13813_v8  ;;  %v10958_v56 = vpop.f32.mrf.mxu1  ;;  %v13827_v51 = vpop.f32.mrf.mxu0  ;;  %v4193_v40 = vshrl.u32 %v13709_v30, 4  ;;  %v4226_v57 = vshrl.u32 %v13713_v4, 4  ;;  %v4204_v36 = vshrl.u32 %v13727_v24, 4  ;;  %vm4634_vm4 = vcmp.ne.s32.totalorder %v13813_v8, 0  ;;  %v17781_v4 = vld [vmem:[#allocation51_spill] sm:$0xff] }
 0x248   : > { %v13835_v38 = vadd.f32 %v2618_v42, %v13161_v43  ;;  %v2623_v61 = vadd.f32 %v10958_v56, %v13439_v22  ;;  %vm4682_vm5 = vcmp.lt.s32.totalorder %v13813_v8, 0  ;;  %v5375_v30 = vpack.c.bf16 %v5322_v59, %v5321_v16 }
 0x249   : > { %v2442_v29 = vpop.f32.mrf.mxu1  ;;  %v13843_v23 = vpop.f32.mrf.mxu0  ;;  %v13848_v43 = vadd.s32 96, %v13517_v10  ;;  %v13855_v6 = vadd.s32 24, %v13813_v8  ;;  %v4259_v24 = vshrl.u32 %v13758_v27, 4  ;;  %vm4632_vm6 = vcmp.ne.s32.totalorder %v13830_v15, 0  ;;  %vm13934_vm12 = vmand %vm4682_vm5, %vm4634_vm4 }
 0x24a   : > { %v13851_v22 = vadd.f32 %v2623_v61, %v17781_v4  ;;  %v2621_v56 = vadd.f32 %v2442_v29, %v13443_v32  ;;  %v13862_v59 = vsub.s32 %v13638_v35, %v4216_v55  ;;  %v4194_v16 = vmul.u32 24, %v4193_v40  ;;  %11272 = vmatprep.mubr.bf16.mxu0 %v5375_v30 }
 0x24b   : > { %17783 = vst [vmem:[#allocation101_spill] sm:$0xff] %v13855_v6  ;;  %v10959_v14 = vpop.f32.mrf.mxu1  ;;  %v13858_v42 = vpop.f32.mrf.mxu0  ;;  %v4227_v21 = vmul.u32 24, %v4226_v57  ;;  %vm4680_vm7 = vcmp.lt.s32.totalorder %v13830_v15, 0  ;;  %v4205_v29 = vmul.u32 24, %v4204_v36  ;;  %v13876_v35 = vadd.s32 120, %v13517_v10 }
 0x24c   : > { %17782 = vst [vmem:[#allocation51_spill] sm:$0xff] %v13851_v22  ;;  %17784 = vst [vmem:[#allocation102_spill] sm:$0xff] %v13858_v42  ;;  %v13865_v61 = vadd.f32 %v2621_v56, %v13174_v19  ;;  %v2624_v32 = vadd.f32 %v10959_v14, %v13445_v49  ;;  %v13872_v42 = vmul.u32.u64.low 2863311531, %v13848_v43  ;;  %v13873_v22 = vmul.u32.u64.high 2863311531, %v13848_v43, %v13872_v42 }
 0x24d   : > { %v2445_v27 = vpop.f32.mrf.mxu1  ;;  %v13869_v4 = vpop.f32.mrf.mxu0  ;;  %v13879_v55 = vadd.s32 104, %v13517_v10  ;;  %v13886_v40 = vadd.s32 24, %v13830_v15  ;;  %v4260_v57 = vmul.u32 24, %v4259_v24  ;;  %vm4637_vm8 = vcmp.ne.s32.totalorder %v13862_v59, 0  ;;  %vm13952_vm4 = vmand %vm4680_vm7, %vm4632_vm6 }
 0x24e   : > { %17785 = vst [vmem:[#allocation103_spill] sm:$0xff] %v13865_v61  ;;  %17786 = vst [vmem:[#allocation104_spill] sm:$0xff] %v13869_v4  ;;  %v13882_v19 = vadd.f32 %v2624_v32, %v13183_v17  ;;  %v2622_v49 = vadd.f32 %v2445_v27, %v13447_v25  ;;  %vm4685_vm9 = vcmp.lt.s32.totalorder %v13862_v59, 0  ;;  %v13893_v56 = vsub.s32 %v13666_v44, %v4194_v16  ;;  %v17831_v4 = vld [vmem:[#allocation91_spill] sm:$0xff] }
 0x24f   : > { %v10962_v36 = vpop.f32.mrf.mxu1  ;;  %v13888_v30 = vpop.f32.mrf.mxu0  ;;  %v13896_v14 = vsub.s32 %v13669_v58, %v4227_v21  ;;  %v13903_v24 = vsub.s32 %v13677_v47, %v4205_v29  ;;  %v13906_v42 = vadd.s32 144, %v13517_v10  ;;  %v13923_v47 = vadd.s32 24, %v13862_v59  ;;  %vm13964_vm15 = vmand %vm4685_vm9, %vm4637_vm8 }
 0x250   : > { %17787 = vst [vmem:[#allocation105_spill] sm:$0xff] %v13882_v19  ;;  %17788 = vst [vmem:[#allocation106_spill] sm:$0xff] %v13888_v30  ;;  %v13899_v17 = vadd.f32 %v2622_v49, %v13187_v5  ;;  %v2627_v25 = vadd.f32 %v10962_v36, %v13451_v60  ;;  %v13911_v44 = vmul.u32.u64.low 2863311531, %v13876_v35  ;;  %v13912_v16 = vmul.u32.u64.high 2863311531, %v13876_v35, %v13911_v44  ;;  %v12121_v49 = vld [vmem:[#allocation9 + $0x1b8] sm:$0xff]  }
 0x251   : > { %17789 = vst [vmem:[#allocation107_spill] sm:$0xff] %v13893_v56  ;;  %17790 = vst [vmem:[#allocation108_spill] sm:$0xff] %v13896_v14  ;;  %v2458_v32 = vpop.f32.mrf.mxu1  ;;  %v13908_v27 = vpop.f32.mrf.mxu0  ;;  %v13915_v58 = vmul.u32.u64.low 2863311531, %v13879_v55  ;;  %v13916_v21 = vmul.u32.u64.high 2863311531, %v13879_v55, %v13915_v58  ;;  %v13926_v29 = vsub.s32 %v13695_v41, %v4260_v57  ;;  %v17797_v44 = vmov 0  ;;  %11320 = vmatprep.subr.bf16.mxu1 %v12121_v49 }
 0x252   : > { %17791 = vst [vmem:[#allocation109_spill] sm:$0xff] %v13899_v17  ;;  %17792 = vst [vmem:[#allocation110_spill] sm:$0xff] %v13903_v24  ;;  %v13919_v5 = vadd.f32 %v2627_v25, %v13196_v50  ;;  %v2625_v60 = vadd.f32 %v2458_v32, %v13455_v28  ;;  %v17798_v44 = vsel %vm13934_vm12, 4294967295, %v17797_v44  ;;  %vm4635_vm14 = vcmp.ne.s32.totalorder %v13893_v56, 0 }
 0x253   : > { %17793 = vst [vmem:[#allocation111_spill] sm:$0xff] %v13908_v27  ;;  %17795 = vst [vmem:[#allocation113_spill] sm:$0xff] %v13926_v29  ;;  %v10963_v36 = vpop.f32.mrf.mxu1  ;;  %v13928_v27 = vpop.f32.mrf.mxu0  ;;  %v13942_v50 = vadd.s32 128, %v13517_v10  ;;  %vm4686_vm5 = vcmp.lt.s32.totalorder %v13896_v14, 0  ;;  %vm17807_vm7 = vcmp.lt.s32.totalorder %v13893_v56, 0  ;;  %vm4641_vm9 = vcmp.ne.s32.totalorder %v13926_v29, 0 }
 0x254   : > { %17794 = vst [vmem:[#allocation112_spill] sm:$0xff] %v13919_v5  ;;  %17796 = vst [vmem:[#allocation114_spill] sm:$0xff] %v13928_v27  ;;  %v13945_v28 = vadd.f32 %v2625_v60, %v13200_v7  ;;  %v2628_v41 = vadd.f32 %v10963_v36, %v13457_v11  ;;  %v17804_v7 = vmov 0  ;;  %v4237_v11 = vshrl.u32 %v13873_v22, 4  ;;  %v12122_v22 = vld [vmem:[#allocation9 + $0x138] sm:$0xff]   ;;  %v17817_v27 = vld [vmem:[#allocation52_spill] sm:$0xff] }
 0x255   : > { %17799 = vst [vmem:[#allocation115_spill] sm:$0xff] %v17798_v44  ;;  %v2461_v25 = vpop.f32.mrf.mxu1  ;;  %v13958_v32 = vpop.f32.mrf.mxu0  ;;  %v17805_v7 = vsel %vm13964_vm15, 4294967295, %v17804_v7  ;;  %v13971_v58 = vmul.u32.u64.low 2863311531, %v13906_v42  ;;  %v13972_v60 = vmul.u32.u64.high 2863311531, %v13906_v42, %v13971_v58  ;;  %vm13982_vm8 = vmand %vm17807_vm7, %vm4635_vm14  ;;  %vm4689_vm6 = vcmp.lt.s32.totalorder %v13926_v29, 0  ;;  %v17819_v5 = vld [vmem:[#allocation40_spill] sm:$0xff]  ;;  %11384 = vmatprep.subr.bf16.mxu0 %v12122_v22 }
 0x256   : > { %17800 = vst [vmem:[#allocation116_spill] sm:$0xff] %v13945_v28  ;;  %17803 = vst [vmem:[#allocation117_spill] sm:$0xff] %v13958_v32  ;;  %v13975_v49 = vadd.f32 %v2628_v41, %v13209_v31  ;;  %v2626_v36 = vadd.f32 %v2461_v25, %v13459_v54  ;;  %v17808_v32 = vmov 0  ;;  %v13991_v31 = vadd.s32 24, %v13893_v56  ;;  %v17976_v56 = vld [vmem:[#allocation24_spill] sm:$0xff] }
 0x257   : > { %v17809_v32 = vsel %vm13982_vm8, 4294967295, %v17808_v32  ;;  %v10966_v28 = vpop.f32.mrf.mxu1  ;;  %v13988_v58 = vpop.f32.mrf.mxu0  ;;  %vm17812_vm0 = vcmp.ne.s32.totalorder %v13896_v14, 0  ;;  %v17813_v54 = vmov 0  ;;  %v14002_v41 = vadd.s32 24, %v13896_v14 }
 0x258   : > { %17806 = vst [vmem:[#allocation118_spill] sm:$0xff] %v13975_v49  ;;  %17810 = vst [vmem:[#allocation119_spill] sm:$0xff] %v13988_v58  ;;  %v14005_v25 = vmul.u32.u64.low 2863311531, %v13942_v50  ;;  %v14006_v49 = vmul.u32.u64.high 2863311531, %v13942_v50, %v14005_v25  ;;  %v14009_v58 = vadd.f32 %v2626_v36, %v17817_v27  ;;  %v2631_v17 = vadd.f32 %v10966_v28, %v17819_v5  ;;  %v17835_v5 = vld [vmem:[#allocation41_spill] sm:$0xff] }
 0x259   : > { %17811 = vst [vmem:[#allocation120_spill] sm:$0xff] %v13991_v31  ;;  %vm13997_vm3 = vmand %vm4686_vm5, %vm17812_vm0  ;;  %vm17820_vm14 = vcmp.ne.s32.totalorder %v13903_v24, 0  ;;  %vm17821_vm7 = vcmp.lt.s32.totalorder %v13903_v24, 0  ;;  %v17822_v19 = vmov 0  ;;  %v14021_v30 = vadd.s32 24, %v13903_v24  ;;  %v2474_v25 = vpop.f32.mrf.mxu1  ;;  %v14026_v27 = vpop.f32.mrf.mxu0 }
 0x25a   : > { %v17814_v54 = vsel %vm13997_vm3, 4294967295, %v17813_v54  ;;  %17816 = vst [vmem:[#allocation122_spill] sm:$0xff] %v14002_v41  ;;  %17818 = vst [vmem:[#allocation52_spill] sm:$0xff] %v14009_v58  ;;  %v14024_v61 = vadd.s32 24, %v13926_v29  ;;  %v17828_v28 = vmov 0  ;;  %v4238_v36 = vmul.u32 24, %v4237_v11 }
 0x25b   : > { %17815 = vst [vmem:[#allocation121_spill] sm:$0xff] %v17814_v54  ;;  %vm14016_vm0 = vmand %vm17821_vm7, %vm17820_vm14  ;;  %v4270_v58 = vshrl.u32 %v13912_v16, 4  ;;  %v4248_v22 = vshrl.u32 %v13916_v21, 4  ;;  %v14047_v44 = vadd.f32 %v2631_v17, %v17833_v45  ;;  %v2629_v8 = vadd.f32 %v2474_v25, %v17835_v5  ;;  %v10967_v2 = vpop.f32.mrf.mxu1  ;;  %v14054_v11 = vpop.f32.mrf.mxu0  ;;  %v17837_v21 = vld [vmem:[#allocation54_spill] sm:$0xff] }
 0x25c   : > { %v17823_v19 = vsel %vm14016_vm0, 4294967295, %v17822_v19  ;;  %17825 = vst [vmem:[#allocation123_spill] sm:$0xff] %v14021_v30  ;;  %17826 = vst [vmem:[#allocation124_spill] sm:$0xff] %v14024_v61  ;;  %v14069_v17 = vadd.s32 152, %v13517_v10  ;;  %v14094_v24 = vadd.s32 136, %v13517_v10  ;;  %v14097_v45 = vadd.s32 176, %v13517_v10 }
 0x25d   : > { %17824 = vst [vmem:[#allocation40_spill] sm:$0xff] %v17823_v19  ;;  %17827 = vst [vmem:[#allocation125_spill] sm:$0xff] %v14026_v27  ;;  %v17832_v27 = vld [vmem:[#allocation92_spill] sm:$0xff]  ;;  %v14072_v25 = vadd.f32 %v2629_v8, %v17837_v21  ;;  %v2477_v6 = vpop.f32.mrf.mxu1  ;;  %v4271_v8 = vmul.u32 24, %v4270_v58  ;;  %v4249_v21 = vmul.u32 24, %v4248_v22  ;;  %v17887_v41 = vmov 0 }
 0x25e   : > { %vm14036_vm5 = vmand %vm4689_vm6, %vm4641_vm9  ;;  %v14044_v9 = vadd.f32 %v17832_v27, %v17831_v4  ;;  %17834 = vst [vmem:[#allocation91_spill] sm:$0xff] %v14047_v44  ;;  %v17839_v27 = vld [vmem:[#allocation43_spill] sm:$0xff]  ;;  %v14083_v4 = vpop.f32.mrf.mxu0  ;;  %v14086_v44 = vsub.s32 %v13848_v43, %v4238_v36  ;;  %v4281_v43 = vshrl.u32 %v14006_v49, 4  ;;  %v17846_v22 = vld [vmem:[#allocation56_spill] sm:$0xff] }
 0x25f   : > { %v17829_v28 = vsel %vm14036_vm5, 4294967295, %v17828_v28  ;;  %17836 = vst [vmem:[#allocation92_spill] sm:$0xff] %v14054_v11  ;;  %17838 = vst [vmem:[#allocation53_spill] sm:$0xff] %v14072_v25  ;;  %v2632_v5 = vadd.f32 %v10967_v2, %v17839_v27  ;;  %v4303_v2 = vshrl.u32 %v13972_v60, 4  ;;  %v17842_v27 = vld [vmem:[#allocation55_spill] sm:$0xff]  ;;  %v17844_v11 = vld [vmem:[#allocation45_spill] sm:$0xff]  ;;  %v10970_v29 = vpop.f32.mrf.mxu1  ;;  %v14126_v61 = vsub.s32 %v13879_v55, %v4249_v21 }
 0x260   : > { %17830 = vst [vmem:[#allocation126_spill] sm:$0xff] %v17829_v28  ;;  %17840 = vst [vmem:[#allocation41_spill] sm:$0xff] %v14083_v4  ;;  %v2630_v16 = vadd.f32 %v2477_v6, %v17844_v11  ;;  %v14099_v4 = vpop.f32.mrf.mxu0  ;;  %v14103_v58 = vmul.u32.u64.low 2863311531, %v14069_v17  ;;  %v14104_v36 = vmul.u32.u64.high 2863311531, %v14069_v17, %v14103_v58  ;;  %v14107_v60 = vadd.s32 160, %v13517_v10  ;;  %v17848_v11 = vld [vmem:[#allocation42_spill] sm:$0xff] }
 0x261   : > { %17841 = vst [vmem:[#allocation54_spill] sm:$0xff] %v14086_v44  ;;  %v14090_v25 = vadd.f32 %v2632_v5, %v17842_v27  ;;  %17845 = vst [vmem:[#allocation55_spill] sm:$0xff] %v14099_v4  ;;  %v2635_v5 = vadd.f32 %v10970_v29, %v17848_v11  ;;  %v14114_v27 = vadd.s32 184, %v13517_v10  ;;  %v2490_v4 = vpop.f32.mrf.mxu1  ;;  %vm4639_vm6 = vcmp.ne.s32.totalorder %v14086_v44, 0  ;;  %v17854_v11 = vld [vmem:[#allocation46_spill] sm:$0xff] }
 0x262   : > { %v14110_v6 = vadd.f32 %v2630_v16, %v17846_v22  ;;  %v14119_v49 = vpop.f32.mrf.mxu0  ;;  %v14123_v58 = vsub.s32 %v13876_v35, %v4271_v8  ;;  %17851 = vst [vmem:[#allocation127_spill] sm:$0xff] %v14126_v61  ;;  %v4304_v16 = vmul.u32 24, %v4303_v2  ;;  %v17852_v22 = vld [vmem:[#allocation57_spill] sm:$0xff]  ;;  %v4282_v14 = vmul.u32 24, %v4281_v43  ;;  %v17856_v21 = vld [vmem:[#allocation58_spill] sm:$0xff] }
 0x263   : > { %17843 = vst [vmem:[#allocation43_spill] sm:$0xff] %v14090_v25  ;;  %v14117_v25 = vadd.s32 168, %v13517_v10  ;;  %17849 = vst [vmem:[#allocation56_spill] sm:$0xff] %v14119_v49  ;;  %v14129_v29 = vadd.f32 %v2635_v5, %v17852_v22  ;;  %v14133_v28 = vmul.u32.u64.low 2863311531, %v14094_v24  ;;  %v14134_v30 = vmul.u32.u64.high 2863311531, %v14094_v24, %v14133_v28  ;;  %v10971_v19 = vpop.f32.mrf.mxu1  ;;  %v17858_v5 = vld [vmem:[#allocation47_spill] sm:$0xff] }
 0x264   : > { %17847 = vst [vmem:[#allocation45_spill] sm:$0xff] %v14110_v6  ;;  %17850 = vst [vmem:[#allocation42_spill] sm:$0xff] %v14123_v58  ;;  %v2633_v6 = vadd.f32 %v2490_v4, %v17854_v11  ;;  %v14136_v49 = vpop.f32.mrf.mxu0  ;;  %v4314_v35 = vshrl.u32 %v14104_v36, 4  ;;  %v14140_v8 = vmul.u32.u64.low 2863311531, %v14097_v45  ;;  %v14141_v55 = vmul.u32.u64.high 2863311531, %v14097_v45, %v14140_v8 }
 0x265   : > { %17853 = vst [vmem:[#allocation57_spill] sm:$0xff] %v14129_v29  ;;  %17855 = vst [vmem:[#allocation46_spill] sm:$0xff] %v14136_v49  ;;  %v2636_v22 = vadd.f32 %v10971_v19, %v17858_v5  ;;  %v14149_v4 = vadd.s32 24, %v14086_v44  ;;  %v2493_v28 = vpop.f32.mrf.mxu1  ;;  %v14156_v43 = vsub.s32 %v13906_v42, %v4304_v16  ;;  %v14159_v36 = vadd.s32 208, %v13517_v10  ;;  %v17864_v8 = vld [vmem:[#allocation49_spill] sm:$0xff]  ;;  %v17867_v29 = vld [vmem:[#allocation60_spill] sm:$0xff] }
 0x266   : > { %v14144_v2 = vadd.f32 %v2633_v6, %v17856_v21  ;;  %v14151_v11 = vpop.f32.mrf.mxu0  ;;  %v17862_v6 = vld [vmem:[#allocation59_spill] sm:$0xff]  ;;  %v2634_v21 = vadd.f32 %v2493_v28, %v17864_v8  ;;  %v4315_v5 = vmul.u32 24, %v4314_v35  ;;  %v14170_v49 = vsub.s32 %v13942_v50, %v4282_v14 }
 0x267   : > { %17859 = vst [vmem:[#allocation47_spill] sm:$0xff] %v14149_v4  ;;  %17860 = vst [vmem:[#allocation128_spill] sm:$0xff] %v14151_v11  ;;  %v14162_v19 = vadd.f32 %v2636_v22, %v17862_v6  ;;  %v14173_v42 = vmul.u32.u64.low 2863311531, %v14107_v60  ;;  %v14174_v16 = vmul.u32.u64.high 2863311531, %v14107_v60, %v14173_v42  ;;  %v17869_v6 = vld [vmem:[#allocation37_spill] sm:$0xff]  ;;  %vm17870_vm9 = vcmp.lt.s32.totalorder %v14086_v44, 0 }
 0x268   : > { %17857 = vst [vmem:[#allocation58_spill] sm:$0xff] %v14144_v2  ;;  %17861 = vst [vmem:[#allocation129_spill] sm:$0xff] %v14156_v43  ;;  %v10974_v2 = vpop.f32.mrf.mxu1  ;;  %v14166_v11 = vpop.f32.mrf.mxu0  ;;  %v14177_v22 = vadd.f32 %v2634_v21, %v17867_v29  ;;  %v17871_v35 = vmov 0  ;;  %v14189_v14 = vadd.s32 24, %v14123_v58  ;;  %v14192_v50 = vadd.s32 24, %v14126_v61 }
 0x269   : > { %17863 = vst [vmem:[#allocation59_spill] sm:$0xff] %v14162_v19  ;;  %17865 = vst [vmem:[#allocation49_spill] sm:$0xff] %v14166_v11  ;;  %v2639_v28 = vadd.f32 %v10974_v2, %v17869_v6  ;;  %vm17877_vm14 = vcmp.ne.s32.totalorder %v14123_v58, 0  ;;  %vm17878_vm5 = vcmp.lt.s32.totalorder %v14123_v58, 0  ;;  %v17879_v29 = vmov 0  ;;  %v17912_v58 = vld [vmem:[#allocation69_spill] sm:$0xff] }
 0x26a   : > { %17866 = vst [vmem:[#allocation130_spill] sm:$0xff] %v14170_v49  ;;  %17868 = vst [vmem:[#allocation60_spill] sm:$0xff] %v14177_v22  ;;  %v2506_v8 = vpop.f32.mrf.mxu1  ;;  %v14194_v42 = vpop.f32.mrf.mxu0  ;;  %v4292_v2 = vshrl.u32 %v14134_v30, 4  ;;  %v14207_v21 = vmul.u32.u64.low 2863311531, %v14114_v27  ;;  %v14208_v6 = vmul.u32.u64.high 2863311531, %v14114_v27, %v14207_v21  ;;  %v17882_v22 = vld [vmem:[#allocation61_spill] sm:$0xff]  ;;  %v14224_v30 = vsub.s32 %v14069_v17, %v4315_v5 }
 0x26b   : > { %vm14184_vm7 = vmand %vm17870_vm9, %vm4639_vm6  ;;  %17874 = vst [vmem:[#allocation131_spill] sm:$0xff] %v14189_v14  ;;  %v14211_v11 = vadd.f32 %v2639_v28, %v17882_v22  ;;  %vm17885_vm9 = vcmp.ne.s32.totalorder %v14126_v61, 0  ;;  %vm4693_vm6 = vcmp.lt.s32.totalorder %v14156_v43, 0  ;;  %vm4643_vm3 = vcmp.ne.s32.totalorder %v14170_v49, 0  ;;  %v17902_v5 = vld [vmem:[#allocation63_spill] sm:$0xff] }
 0x26c   : > { %v17872_v35 = vsel %vm14184_vm7, 4294967295, %v17871_v35  ;;  %17875 = vst [vmem:[#allocation132_spill] sm:$0xff] %v14192_v50  ;;  %17876 = vst [vmem:[#allocation133_spill] sm:$0xff] %v14194_v42  ;;  %v17884_v42 = vld [vmem:[#allocation44_spill] sm:$0xff]  ;;  %v10975_v54 = vpop.f32.mrf.mxu1  ;;  %v14226_v21 = vpop.f32.mrf.mxu0  ;;  %v4347_v28 = vshrl.u32 %v14141_v55, 4  ;;  %v14296_v4 = vadd.s32 216, %v13517_v10 }
 0x26d   : > { %17873 = vst [vmem:[#allocation37_spill] sm:$0xff] %v17872_v35  ;;  %vm14200_vm0 = vmand %vm17878_vm5, %vm17877_vm14  ;;  %v2637_v19 = vadd.f32 %v2506_v8, %v17884_v42  ;;  %vm17886_vm5 = vcmp.lt.s32.totalorder %v14126_v61, 0  ;;  %v17892_v8 = vld [vmem:[#allocation62_spill] sm:$0xff]  ;;  %v17906_v61 = vmov 0  ;;  %v17955_v35 = vmov 0 }
 0x26e   : > { %v17880_v29 = vsel %vm14200_vm0, 4294967295, %v17879_v29  ;;  %17883 = vst [vmem:[#allocation61_spill] sm:$0xff] %v14211_v11  ;;  %vm14218_vm14 = vmand %vm17886_vm5, %vm17885_vm9  ;;  %v17894_v11 = vld [vmem:[#allocation38_spill] sm:$0xff]  ;;  %v2509_v22 = vpop.f32.mrf.mxu1  ;;  %v14246_v44 = vpop.f32.mrf.mxu0  ;;  %vm17897_vm5 = vcmp.ne.s32.totalorder %v14156_v43, 0  ;;  %vm4694_vm0 = vcmp.lt.s32.totalorder %v14224_v30, 0 }
 0x26f   : > { %17881 = vst [vmem:[#allocation134_spill] sm:$0xff] %v17880_v29  ;;  %v17888_v41 = vsel %vm14218_vm14, 4294967295, %v17887_v41  ;;  %17890 = vst [vmem:[#allocation135_spill] sm:$0xff] %v14224_v30  ;;  %v14236_v42 = vadd.f32 %v2637_v19, %v17892_v8  ;;  %v2640_v17 = vadd.f32 %v10975_v54, %v17894_v11  ;;  %v17898_v54 = vmov 0  ;;  %v17918_v29 = vld [vmem:[#allocation70_spill] sm:$0xff] }
 0x270   : > { %17889 = vst [vmem:[#allocation44_spill] sm:$0xff] %v17888_v41  ;;  %17891 = vst [vmem:[#allocation136_spill] sm:$0xff] %v14226_v21  ;;  %v14244_v21 = vadd.s32 24, %v14156_v43  ;;  %v14261_v11 = vadd.s32 24, %v14170_v49  ;;  %v4293_v19 = vmul.u32 24, %v4292_v2  ;;  %v14264_v8 = vadd.s32 192, %v13517_v10  ;;  %v10978_v2 = vpop.f32.mrf.mxu1  ;;  %v14280_v50 = vpop.f32.mrf.mxu0 }
 0x271   : > { %17893 = vst [vmem:[#allocation62_spill] sm:$0xff] %v14236_v42  ;;  %17896 = vst [vmem:[#allocation137_spill] sm:$0xff] %v14246_v44  ;;  %v14267_v44 = vadd.f32 %v2640_v17, %v17902_v5  ;;  %v17904_v42 = vld [vmem:[#allocation48_spill] sm:$0xff]  ;;  %vm17905_vm14 = vcmp.lt.s32.totalorder %v14170_v49, 0  ;;  %v4348_v41 = vmul.u32 24, %v4347_v28  ;;  %v4325_v17 = vshrl.u32 %v14174_v16, 4 }
 0x272   : > { %17895 = vst [vmem:[#allocation38_spill] sm:$0xff] %v14244_v21  ;;  %vm14256_vm9 = vmand %vm4693_vm6, %vm17897_vm5  ;;  %v2638_v55 = vadd.f32 %v2509_v22, %v17904_v42  ;;  %vm4646_vm5 = vcmp.ne.s32.totalorder %v14224_v30, 0  ;;  %v14284_v22 = vmul.u32.u64.low 2863311531, %v14117_v25  ;;  %v14285_v42 = vmul.u32.u64.high 2863311531, %v14117_v25, %v14284_v22  ;;  %v17910_v5 = vld [vmem:[#allocation64_spill] sm:$0xff]  ;;  %v2522_v28 = vpop.f32.mrf.mxu1 }
 0x273   : > { %v17899_v54 = vsel %vm14256_vm9, 4294967295, %v17898_v54  ;;  %17901 = vst [vmem:[#allocation139_spill] sm:$0xff] %v14261_v11  ;;  %17903 = vst [vmem:[#allocation63_spill] sm:$0xff] %v14267_v44  ;;  %v2643_v14 = vadd.f32 %v10978_v2, %v17912_v58  ;;  %v14308_v58 = vsub.s32 %v14094_v24, %v4293_v19  ;;  %v4358_v2 = vshrl.u32 %v14208_v6, 4  ;;  %v17916_v22 = vld [vmem:[#allocation65_spill] sm:$0xff]  ;;  %v17926_v11 = vld [vmem:[#allocation71_spill] sm:$0xff] }
 0x274   : > { %17900 = vst [vmem:[#allocation138_spill] sm:$0xff] %v17899_v54  ;;  %vm14274_vm6 = vmand %vm17905_vm14, %vm4643_vm3  ;;  %v14288_v44 = vadd.f32 %v2638_v55, %v17910_v5  ;;  %v14305_v55 = vadd.s32 24, %v14224_v30  ;;  %v14324_v16 = vmul.u32.u64.low 2863311531, %v14159_v36  ;;  %v14325_v49 = vmul.u32.u64.high 2863311531, %v14159_v36, %v14324_v16  ;;  %v10979_v24 = vpop.f32.mrf.mxu1 }
 0x275   : > { %v17907_v61 = vsel %vm14274_vm6, 4294967295, %v17906_v61  ;;  %17909 = vst [vmem:[#allocation140_spill] sm:$0xff] %v14280_v50  ;;  %v14298_v50 = vpop.f32.mrf.mxu0  ;;  %17915 = vst [vmem:[#allocation142_spill] sm:$0xff] %v14308_v58  ;;  %v14312_v5 = vadd.f32 %v2643_v14, %v17916_v22  ;;  %v14330_v14 = vsub.s32 %v14097_v45, %v4348_v41  ;;  %v4326_v6 = vmul.u32 24, %v4325_v17  ;;  %v17924_v22 = vld [vmem:[#allocation66_spill] sm:$0xff] }
 0x276   : > { %17908 = vst [vmem:[#allocation48_spill] sm:$0xff] %v17907_v61  ;;  %17911 = vst [vmem:[#allocation64_spill] sm:$0xff] %v14288_v44  ;;  %v2641_v44 = vadd.f32 %v2522_v28, %v17918_v29  ;;  %v14333_v29 = vadd.s32 200, %v13517_v10  ;;  %v14336_v28 = vadd.s32 240, %v13517_v10  ;;  %v2644_v61 = vadd.f32 %v10979_v24, %v17926_v11  ;;  %v2525_v41 = vpop.f32.mrf.mxu1  ;;  %v17928_v11 = vld [vmem:[#allocation67_spill] sm:$0xff] }
 0x277   : > { %17913 = vst [vmem:[#allocation69_spill] sm:$0xff] %v14298_v50  ;;  %17914 = vst [vmem:[#allocation141_spill] sm:$0xff] %v14305_v55  ;;  %v17919_v50 = vmov 0  ;;  %v14327_v19 = vpop.f32.mrf.mxu0  ;;  %v14343_v16 = vadd.s32 224, %v13517_v10  ;;  %v4359_v43 = vmul.u32 24, %v4358_v2  ;;  %v14371_v2 = vsub.s32 %v14107_v60, %v4326_v6 }
 0x278   : > { %17917 = vst [vmem:[#allocation65_spill] sm:$0xff] %v14312_v5  ;;  %vm14319_vm3 = vmand %vm4694_vm0, %vm4646_vm5  ;;  %v14339_v5 = vadd.f32 %v2641_v44, %v17924_v22  ;;  %v14355_v44 = vmul.u32.u64.low 2863311531, %v14264_v8  ;;  %v14356_v22 = vmul.u32.u64.high 2863311531, %v14264_v8, %v14355_v44  ;;  %v14359_v24 = vadd.f32 %v2644_v61, %v17928_v11 }
 0x279   : > { %v17920_v50 = vsel %vm14319_vm3, 4294967295, %v17919_v50  ;;  %17922 = vst [vmem:[#allocation143_spill] sm:$0xff] %v14327_v19  ;;  %17923 = vst [vmem:[#allocation144_spill] sm:$0xff] %v14330_v14  ;;  %v14346_v19 = vadd.s32 248, %v13517_v10  ;;  %v14348_v45 = vpop.f32.mrf.mxu0  ;;  %vm4644_vm0 = vcmp.ne.s32.totalorder %v14308_v58, 0  ;;  %v4336_v61 = vshrl.u32 %v14285_v42, 4 }
 0x27a   : > { %17921 = vst [vmem:[#allocation70_spill] sm:$0xff] %v17920_v50  ;;  %17925 = vst [vmem:[#allocation66_spill] sm:$0xff] %v14339_v5  ;;  %v17930_v5 = vld [vmem:[#allocation72_spill] sm:$0xff]  ;;  %v14367_v50 = vadd.s32 24, %v14308_v58  ;;  %v14386_v55 = vsub.s32 %v14114_v27, %v4359_v43  ;;  %v4391_v60 = vshrl.u32 %v14325_v49, 4  ;;  %v4369_v42 = vshrl.u32 %v14356_v22, 4 }
 0x27b   : > { %17927 = vst [vmem:[#allocation71_spill] sm:$0xff] %v14348_v45  ;;  %17929 = vst [vmem:[#allocation67_spill] sm:$0xff] %v14359_v24  ;;  %v2642_v21 = vadd.f32 %v2525_v41, %v17930_v5  ;;  %v10982_v45 = vpop.f32.mrf.mxu1  ;;  %v14364_v54 = vpop.f32.mrf.mxu0  ;;  %v17934_v44 = vld [vmem:[#allocation68_spill] sm:$0xff]  ;;  %v17936_v5 = vld [vmem:[#allocation73_spill] sm:$0xff]  ;;  %v14379_v17 = vmul.u32.u64.low 2863311531, %v14296_v4  ;;  %v14380_v24 = vmul.u32.u64.high 2863311531, %v14296_v4, %v14379_v17 }
 0x27c   : > { %17931 = vst [vmem:[#allocation72_spill] sm:$0xff] %v14364_v54  ;;  %17932 = vst [vmem:[#allocation145_spill] sm:$0xff] %v14367_v50  ;;  %v2647_v41 = vadd.f32 %v10982_v45, %v17936_v5  ;;  %v17941_v45 = vld [vmem:[#allocation74_spill] sm:$0xff]  ;;  %v14395_v5 = vmul.u32.u64.low 2863311531, %v14333_v29  ;;  %v14396_v17 = vmul.u32.u64.high 2863311531, %v14333_v29, %v14395_v5  ;;  %vm17943_vm14 = vcmp.lt.s32.totalorder %v14308_v58, 0 }
 0x27d   : > { %17933 = vst [vmem:[#allocation146_spill] sm:$0xff] %v14371_v2  ;;  %v14375_v11 = vadd.f32 %v2642_v21, %v17934_v44  ;;  %v2538_v54 = vpop.f32.mrf.mxu1  ;;  %v14382_v30 = vpop.f32.mrf.mxu0  ;;  %17938 = vst [vmem:[#allocation147_spill] sm:$0xff] %v14386_v55  ;;  %v17939_v21 = vld [vmem:[#allocation20_spill] sm:$0xff]  ;;  %v17944_v27 = vmov 0  ;;  %v14409_v49 = vadd.s32 24, %v14330_v14  ;;  %v4337_v43 = vmul.u32 24, %v4336_v61 }
 0x27e   : > { %17937 = vst [vmem:[#allocation73_spill] sm:$0xff] %v14382_v30  ;;  %v14391_v6 = vadd.f32 %v2647_v41, %v17939_v21  ;;  %v2645_v44 = vadd.f32 %v2538_v54, %v17941_v45  ;;  %vm14404_vm5 = vmand %vm17943_vm14, %vm4644_vm0  ;;  %v17948_v54 = vld [vmem:[#allocation18_spill] sm:$0xff]  ;;  %v17950_v41 = vld [vmem:[#allocation75_spill] sm:$0xff]  ;;  %v14418_v45 = vadd.s32 24, %v14371_v2  ;;  %v4402_v5 = vshrl.u32 %v14380_v24, 4 }
 0x27f   : > { %17935 = vst [vmem:[#allocation68_spill] sm:$0xff] %v14375_v11  ;;  %v10983_v11 = vpop.f32.mrf.mxu1  ;;  %v14398_v30 = vpop.f32.mrf.mxu0  ;;  %v17945_v27 = vsel %vm14404_vm5, 4294967295, %v17944_v27  ;;  %17947 = vst [vmem:[#allocation149_spill] sm:$0xff] %v14409_v49  ;;  %vm17953_vm0 = vcmp.ne.s32.totalorder %v14330_v14, 0  ;;  %vm17954_vm14 = vcmp.lt.s32.totalorder %v14330_v14, 0  ;;  %vm4650_vm6 = vcmp.ne.s32.totalorder %v14386_v55, 0 }
 0x280   : > { %17940 = vst [vmem:[#allocation20_spill] sm:$0xff] %v14391_v6  ;;  %17942 = vst [vmem:[#allocation74_spill] sm:$0xff] %v14398_v30  ;;  %v14414_v22 = vadd.f32 %v2645_v44, %v17948_v54  ;;  %v2648_v21 = vadd.f32 %v10983_v11, %v17950_v41  ;;  %vm4698_vm9 = vcmp.lt.s32.totalorder %v14386_v55, 0  ;;  %v4392_v61 = vmul.u32 24, %v4391_v60  ;;  %v17958_v44 = vld [vmem:[#allocation21_spill] sm:$0xff]  ;;  %v17960_v24 = vld [vmem:[#allocation76_spill] sm:$0xff] }
 0x281   : > { %17946 = vst [vmem:[#allocation148_spill] sm:$0xff] %v17945_v27  ;;  %17951 = vst [vmem:[#allocation75_spill] sm:$0xff] %v14418_v45  ;;  %v2541_v30 = vpop.f32.mrf.mxu1  ;;  %v14421_v6 = vpop.f32.mrf.mxu0  ;;  %v4370_v11 = vmul.u32 24, %v4369_v42  ;;  %v14450_v60 = vadd.s32 232, %v13517_v10  ;;  %v17970_v50 = vld [vmem:[#allocation77_spill] sm:$0xff] }
 0x282   : > { %17949 = vst [vmem:[#allocation18_spill] sm:$0xff] %v14414_v22  ;;  %17952 = vst [vmem:[#allocation150_spill] sm:$0xff] %v14421_v6  ;;  %v14434_v54 = vadd.f32 %v2648_v21, %v17958_v44  ;;  %v2646_v41 = vadd.f32 %v2541_v30, %v17960_v24  ;;  %v17963_v22 = vmov 0  ;;  %v14455_v30 = vadd.s32 24, %v14386_v55 }
 0x283   : > { %vm14427_vm3 = vmand %vm17954_vm14, %vm17953_vm0  ;;  %vm17961_vm0 = vcmp.ne.s32.totalorder %v14371_v2, 0  ;;  %vm17962_vm14 = vcmp.lt.s32.totalorder %v14371_v2, 0  ;;  %v10986_v42 = vpop.f32.mrf.mxu1  ;;  %v14452_v21 = vpop.f32.mrf.mxu0  ;;  %v14458_v44 = vsub.s32 %v14117_v25, %v4337_v43  ;;  %v4403_v24 = vmul.u32 24, %v4402_v5 }
 0x284   : > { %v17956_v35 = vsel %vm14427_vm3, 4294967295, %v17955_v35  ;;  %17959 = vst [vmem:[#allocation21_spill] sm:$0xff] %v14434_v54  ;;  %vm14445_vm7 = vmand %vm17962_vm14, %vm17961_vm0  ;;  %v4380_v6 = vshrl.u32 %v14396_v17, 4  ;;  %v17968_v54 = vld [vmem:[#allocation22_spill] sm:$0xff]  ;;  %v2651_v27 = vadd.f32 %v10986_v42, %v17970_v50  ;;  %v17971_v25 = vmov 0 }
 0x285   : > { %17957 = vst [vmem:[#allocation151_spill] sm:$0xff] %v17956_v35  ;;  %v17964_v22 = vsel %vm14445_vm7, 4294967295, %v17963_v22  ;;  %17966 = vst [vmem:[#allocation152_spill] sm:$0xff] %v14452_v21  ;;  %v14462_v58 = vadd.f32 %v2646_v41, %v17968_v54  ;;  %v14478_v17 = vadd.s32 272, %v13517_v10  ;;  %v2554_v43 = vpop.f32.mrf.mxu1  ;;  %v14480_v5 = vpop.f32.mrf.mxu0  ;;  %v14487_v54 = vsub.s32 %v14159_v36, %v4392_v61  ;;  %v17978_v21 = vld [vmem:[#allocation78_spill] sm:$0xff] }
 0x286   : > { %17965 = vst [vmem:[#allocation76_spill] sm:$0xff] %v17964_v22  ;;  %17967 = vst [vmem:[#allocation153_spill] sm:$0xff] %v14455_v30  ;;  %v14490_v41 = vsub.s32 %v14264_v8, %v4370_v11  ;;  %v4381_v42 = vmul.u32 24, %v4380_v6  ;;  %v2649_v14 = vadd.f32 %v2554_v43, %v17978_v21  ;;  %v14508_v8 = vsub.s32 %v14296_v4, %v4403_v24  ;;  %v17981_v6 = vld [vmem:[#allocation19_spill] sm:$0xff] }
 0x287   : > { %17969 = vst [vmem:[#allocation22_spill] sm:$0xff] %v14462_v58  ;;  %vm14473_vm0 = vmand %vm4698_vm9, %vm4650_vm6  ;;  %v14493_v58 = vadd.f32 %v2651_v27, %v17976_v56  ;;  %v10987_v35 = vpop.f32.mrf.mxu1  ;;  %v14500_v31 = vpop.f32.mrf.mxu0  ;;  %v14511_v56 = vadd.s32 256, %v13517_v10  ;;  %v14519_v11 = vadd.s32 24, %v14458_v44  ;;  %vm17992_vm9 = vcmp.ne.s32.totalorder %v14458_v44, 0 }
 0x288   : > { %v17972_v25 = vsel %vm14473_vm0, 4294967295, %v17971_v25  ;;  %17974 = vst [vmem:[#allocation154_spill] sm:$0xff] %v14480_v5  ;;  %17975 = vst [vmem:[#allocation155_spill] sm:$0xff] %v14487_v54  ;;  %v14497_v49 = vmul.u32.u64.low 2863311531, %v14336_v28  ;;  %v14498_v5 = vmul.u32.u64.high 2863311531, %v14336_v28, %v14497_v49  ;;  %v14514_v27 = vadd.f32 %v2649_v14, %v17981_v6  ;;  %v17985_v14 = vld [vmem:[#allocation26_spill] sm:$0xff] }
 0x289   : > { %17973 = vst [vmem:[#allocation77_spill] sm:$0xff] %v17972_v25  ;;  %17977 = vst [vmem:[#allocation24_spill] sm:$0xff] %v14493_v58  ;;  %v17983_v49 = vld [vmem:[#allocation79_spill] sm:$0xff]  ;;  %v2557_v21 = vpop.f32.mrf.mxu1  ;;  %v14521_v43 = vpop.f32.mrf.mxu0  ;;  %v14526_v4 = vmul.u32.u64.low 2863311531, %v14343_v16  ;;  %v14527_v24 = vmul.u32.u64.high 2863311531, %v14343_v16, %v14526_v4  ;;  %vm17993_vm6 = vcmp.lt.s32.totalorder %v14458_v44, 0 }
 0x28a   : > { %17979 = vst [vmem:[#allocation78_spill] sm:$0xff] %v14500_v31  ;;  %17980 = vst [vmem:[#allocation156_spill] sm:$0xff] %v14508_v8  ;;  %v2652_v61 = vadd.f32 %v10987_v35, %v17983_v49  ;;  %v14533_v35 = vadd.s32 24, %v14487_v54  ;;  %v14537_v49 = vsub.s32 %v14333_v29, %v4381_v42  ;;  %v17990_v4 = vld [vmem:[#allocation80_spill] sm:$0xff]  ;;  %v2650_v42 = vadd.f32 %v2557_v21, %v13762_v13  ;;  %v17999_v13 = vld [vmem:[#allocation81_spill] sm:$0xff] }
 0x28b   : > { %17982 = vst [vmem:[#allocation19_spill] sm:$0xff] %v14514_v27  ;;  %17984 = vst [vmem:[#allocation79_spill] sm:$0xff] %v14521_v43  ;;  %v10990_v36 = vpop.f32.mrf.mxu1  ;;  %v14539_v50 = vpop.f32.mrf.mxu0  ;;  %v14543_v43 = vadd.s32 24, %v14490_v41  ;;  %vm18000_vm0 = vcmp.ne.s32.totalorder %v14487_v54, 0  ;;  %vm18001_vm7 = vcmp.lt.s32.totalorder %v14487_v54, 0  ;;  %vm18006_vm5 = vcmp.ne.s32.totalorder %v14490_v41, 0 }
 0x28c   : > { %v14530_v6 = vadd.f32 %v2652_v61, %v17985_v14  ;;  %17987 = vst [vmem:[#allocation157_spill] sm:$0xff] %v14533_v35  ;;  %17988 = vst [vmem:[#allocation158_spill] sm:$0xff] %v14537_v49  ;;  %v4435_v61 = vshrl.u32 %v14498_v5, 4  ;;  %v2655_v14 = vadd.f32 %v10990_v36, %v17990_v4  ;;  %v14565_v5 = vadd.s32 24, %v14508_v8  ;;  %v12129_v31 = vld [vmem:[#allocation9 + $0x198] sm:$0xff]  }
 0x28d   : > { %17989 = vst [vmem:[#allocation159_spill] sm:$0xff] %v14539_v50  ;;  %v2570_v50 = vpop.f32.mrf.mxu1  ;;  %v14554_v27 = vpop.f32.mrf.mxu0  ;;  %vm14560_vm14 = vmand %vm17993_vm6, %vm17992_vm9  ;;  %v4413_v4 = vshrl.u32 %v14527_v24, 4  ;;  %vm4652_vm9 = vcmp.ne.s32.totalorder %v14537_v49, 0  ;;  %vm4700_vm6 = vcmp.lt.s32.totalorder %v14537_v49, 0  ;;  %vm18007_vm8 = vcmp.lt.s32.totalorder %v14490_v41, 0 }
 0x28e   : > { %17986 = vst [vmem:[#allocation26_spill] sm:$0xff] %v14530_v6  ;;  %v14550_v6 = vmul.u32.u64.low 2863311531, %v14346_v19  ;;  %v14551_v29 = vmul.u32.u64.high 2863311531, %v14346_v19, %v14550_v6  ;;  %17991 = vst [vmem:[#allocation80_spill] sm:$0xff] %v14554_v27  ;;  %v4436_v36 = vmul.u32 24, %v4435_v61  ;;  %v2653_v21 = vadd.f32 %v2570_v50, %v17999_v13 }
 0x28f   : > { %17996 = vst [vmem:[#allocation160_spill] sm:$0xff] %v14565_v5  ;;  %v17997_v6 = vld [vmem:[#allocation27_spill] sm:$0xff]  ;;  %vm14576_vm3 = vmand %vm18001_vm7, %vm18000_vm0  ;;  %v18002_v27 = vmov 0  ;;  %v10991_v61 = vpop.f32.mrf.mxu1  ;;  %v14582_v55 = vpop.f32.mrf.mxu0  ;;  %v18008_v50 = vmov 0  ;;  %v14593_v24 = vadd.s32 24, %v14537_v49  ;;  %vm18014_vm7 = vcmp.ne.s32.totalorder %v14508_v8, 0 }
 0x290   : > { %v14569_v58 = vadd.f32 %v2655_v14, %v17997_v6  ;;  %v18003_v27 = vsel %vm14576_vm3, 4294967295, %v18002_v27  ;;  %18005 = vst [vmem:[#allocation161_spill] sm:$0xff] %v14582_v55  ;;  %vm14588_vm15 = vmand %vm18007_vm8, %vm18006_vm5  ;;  %v4414_v14 = vmul.u32 24, %v4413_v4  ;;  %v18013_v55 = vld [vmem:[#allocation82_spill] sm:$0xff]  ;;  %vm18015_vm8 = vcmp.lt.s32.totalorder %v14508_v8, 0 }
 0x291   : > { %18004 = vst [vmem:[#allocation81_spill] sm:$0xff] %v18003_v27  ;;  %v18009_v50 = vsel %vm14588_vm15, 4294967295, %v18008_v50  ;;  %18010 = vst [vmem:[#allocation162_spill] sm:$0xff] %v14593_v24  ;;  %v14596_v6 = vmul.u32.u64.low 2863311531, %v14450_v60  ;;  %v14597_v13 = vmul.u32.u64.high 2863311531, %v14450_v60, %v14596_v6  ;;  %v2656_v25 = vadd.f32 %v10991_v61, %v18013_v55  ;;  %v2573_v22 = vpop.f32.mrf.mxu1 }
 0x292   : > { %17998 = vst [vmem:[#allocation27_spill] sm:$0xff] %v14569_v58  ;;  %v18011_v58 = vld [vmem:[#allocation28_spill] sm:$0xff]  ;;  %vm14607_vm5 = vmand %vm18015_vm8, %vm18014_vm7  ;;  %v18016_v2 = vmov 0  ;;  %v14612_v45 = vsub.s32 %v14336_v28, %v4436_v36  ;;  %v4446_v4 = vshrl.u32 %v14551_v29, 4  ;;  %v14615_v6 = vpop.f32.mrf.mxu0  ;;  %v18019_v28 = vmov 0 }
 0x293   : > { %v14600_v30 = vadd.f32 %v2653_v21, %v18011_v58  ;;  %v18017_v2 = vsel %vm14607_vm5, 4294967295, %v18016_v2  ;;  %18018 = vst [vmem:[#allocation82_spill] sm:$0xff] %v14615_v6  ;;  %vm14629_vm0 = vmand %vm4700_vm6, %vm4652_vm9  ;;  %v14634_v29 = vadd.s32 280, %v13517_v10  ;;  %v14637_v36 = vadd.s32 264, %v13517_v10  ;;  %v18022_v21 = vld [vmem:[#allocation30_spill] sm:$0xff]  ;;  %v10994_v35 = vpop.f32.mrf.mxu1 }
 0x294   : > { %v18020_v28 = vsel %vm14629_vm0, 4294967295, %v18019_v28  ;;  %v14640_v61 = vadd.f32 %v2656_v25, %v18022_v21  ;;  %v14647_v55 = vsub.s32 %v14343_v16, %v4414_v14  ;;  %v4447_v6 = vmul.u32 24, %v4446_v4  ;;  %v14652_v27 = vpop.f32.mrf.mxu0  ;;  %v18029_v16 = vld [vmem:[#allocation83_spill] sm:$0xff] }
 0x295   : > { %18012 = vst [vmem:[#allocation28_spill] sm:$0xff] %v14600_v30  ;;  %18021 = vst [vmem:[#allocation163_spill] sm:$0xff] %v18020_v28  ;;  %v18025_v30 = vld [vmem:[#allocation23_spill] sm:$0xff]  ;;  %v14659_v21 = vadd.s32 304, %v13517_v10  ;;  %v14662_v58 = vadd.s32 288, %v13517_v10  ;;  %v2659_v14 = vadd.f32 %v10994_v35, %v18029_v16  ;;  %vm4657_vm9 = vcmp.ne.s32.totalorder %v14612_v45, 0 }
 0x296   : > { %18023 = vst [vmem:[#allocation30_spill] sm:$0xff] %v14640_v61  ;;  %18024 = vst [vmem:[#allocation164_spill] sm:$0xff] %v14647_v55  ;;  %v14650_v54 = vadd.f32 %v2650_v42, %v18025_v30  ;;  %vm4705_vm6 = vcmp.lt.s32.totalorder %v14612_v45, 0  ;;  %v2586_v42 = vpop.f32.mrf.mxu1  ;;  %v14671_v4 = vpop.f32.mrf.mxu0  ;;  %v14674_v25 = vsub.s32 %v14346_v19, %v4447_v6  ;;  %v18032_v16 = vld [vmem:[#allocation32_spill] sm:$0xff]  ;;  %vm4703_vm8 = vcmp.lt.s32.totalorder %v14647_v55, 0 }
 0x297   : > { %18027 = vst [vmem:[#allocation165_spill] sm:$0xff] %v14652_v27  ;;  %18028 = vst [vmem:[#allocation166_spill] sm:$0xff] %v14662_v58  ;;  %v4424_v27 = vshrl.u32 %v14597_v13, 4  ;;  %v14678_v61 = vmul.u32.u64.low 2863311531, %v14478_v17  ;;  %v14679_v35 = vmul.u32.u64.high 2863311531, %v14478_v17, %v14678_v61  ;;  %v18034_v30 = vld [vmem:[#allocation84_spill] sm:$0xff] }
 0x298   : > { %18026 = vst [vmem:[#allocation23_spill] sm:$0xff] %v14650_v54  ;;  %18030 = vst [vmem:[#allocation83_spill] sm:$0xff] %v14671_v4  ;;  %v14682_v54 = vadd.f32 %v2659_v14, %v18032_v16  ;;  %v2657_v49 = vadd.f32 %v2586_v42, %v18034_v30  ;;  %v2654_v4 = vadd.f32 %v2573_v22, %v13792_v0  ;;  %v10995_v24 = vpop.f32.mrf.mxu1  ;;  %v14688_v19 = vpop.f32.mrf.mxu0  ;;  %v14691_v13 = vadd.s32 24, %v14612_v45  ;;  %v18037_v14 = vld [vmem:[#allocation29_spill] sm:$0xff]  ;;  %v18039_v30 = vld [vmem:[#allocation86_spill] sm:$0xff] }
 0x299   : > { %18031 = vst [vmem:[#allocation167_spill] sm:$0xff] %v14674_v25  ;;  %18035 = vst [vmem:[#allocation84_spill] sm:$0xff] %v14688_v19  ;;  %v14694_v6 = vadd.s32 24, %v14647_v55  ;;  %v4425_v61 = vmul.u32 24, %v4424_v27  ;;  %v2660_v42 = vadd.f32 %v10995_v24, %v18039_v30  ;;  %v18040_v0 = vmov 0 }
 0x29a   : > { %18033 = vst [vmem:[#allocation32_spill] sm:$0xff] %v14682_v54  ;;  %v14697_v16 = vadd.f32 %v2657_v49, %v18037_v14  ;;  %vm14704_vm7 = vmand %vm4705_vm6, %vm4657_vm9  ;;  %v14709_v22 = vmul.u32.u64.low 2863311531, %v14511_v56  ;;  %v14710_v19 = vmul.u32.u64.high 2863311531, %v14511_v56, %v14709_v22  ;;  %v2589_v54 = vpop.f32.mrf.mxu1  ;;  %v14712_v28 = vpop.f32.mrf.mxu0  ;;  %vm18043_vm0 = vcmp.ne.s32.totalorder %v14647_v55, 0  ;;  %v18048_v14 = vld [vmem:[#allocation33_spill] sm:$0xff] }
 0x29b   : > { %18036 = vst [vmem:[#allocation168_spill] sm:$0xff] %v14694_v6  ;;  %v18041_v0 = vsel %vm14704_vm7, 4294967295, %v18040_v0  ;;  %18042 = vst [vmem:[#allocation86_spill] sm:$0xff] %v14712_v28  ;;  %v18044_v27 = vmov 0  ;;  %vm4658_vm15 = vcmp.ne.s32.totalorder %v14674_v25, 0  ;;  %vm4706_vm9 = vcmp.lt.s32.totalorder %v14674_v25, 0 }
 0x29c   : > { %18038 = vst [vmem:[#allocation29_spill] sm:$0xff] %v14697_v16  ;;  %vm14716_vm5 = vmand %vm4703_vm8, %vm18043_vm0  ;;  %v4479_v49 = vshrl.u32 %v14679_v35, 4  ;;  %v14724_v24 = vadd.s32 312, %v13517_v10  ;;  %v14727_v30 = vadd.f32 %v2660_v42, %v18048_v14  ;;  %v14730_v22 = vadd.s32 296, %v13517_v10  ;;  %v10998_v8 = vpop.f32.mrf.mxu1  ;;  %v14738_v5 = vpop.f32.mrf.mxu0  ;;  %v18064_v55 = vld [vmem:[#allocation89_spill] sm:$0xff] }
 0x29d   : > { %v18045_v27 = vsel %vm14716_vm5, 4294967295, %v18044_v27  ;;  %v14733_v28 = vadd.s32 336, %v13517_v10  ;;  %v14736_v16 = vadd.s32 320, %v13517_v10  ;;  %18053 = vst [vmem:[#allocation174_spill] sm:$0xff] %v14738_v5  ;;  %v14745_v42 = vadd.s32 24, %v14674_v25  ;;  %vm14762_vm0 = vmand %vm4706_vm9, %vm4658_vm15  ;;  %v18062_v5 = vld [vmem:[#allocation36_spill] sm:$0xff] }
 0x29e   : > { %18046 = vst [vmem:[#allocation169_spill] sm:$0xff] %v18045_v27  ;;  %18047 = vst [vmem:[#allocation170_spill] sm:$0xff] %v14724_v24  ;;  %v14748_v14 = vsub.s32 %v14450_v60, %v4425_v61  ;;  %v18057_v24 = vld [vmem:[#allocation87_spill] sm:$0xff]  ;;  %v18058_v35 = vmov 0  ;;  %v4457_v60 = vshrl.u32 %v14710_v19, 4  ;;  %v2602_v61 = vpop.f32.mrf.mxu1 }
 0x29f   : > { %18049 = vst [vmem:[#allocation33_spill] sm:$0xff] %v14727_v30  ;;  %18050 = vst [vmem:[#allocation171_spill] sm:$0xff] %v14730_v22  ;;  %v4480_v30 = vmul.u32 24, %v4479_v49  ;;  %v18055_v22 = vld [vmem:[#allocation25_spill] sm:$0xff]  ;;  %v18059_v35 = vsel %vm14762_vm0, 4294967295, %v18058_v35  ;;  %v14768_v49 = vpop.f32.mrf.mxu0  ;;  %v2661_v6 = vadd.f32 %v2602_v61, %v18064_v55  ;;  %v18067_v55 = vld [vmem:[#allocation31_spill] sm:$0xff] }
 0x2a0   : > { %18051 = vst [vmem:[#allocation172_spill] sm:$0xff] %v14733_v28  ;;  %18052 = vst [vmem:[#allocation173_spill] sm:$0xff] %v14736_v16  ;;  %v14751_v28 = vadd.f32 %v2654_v4, %v18055_v22  ;;  %v2663_v16 = vadd.f32 %v10998_v8, %v18057_v24  ;;  %v2658_v4 = vadd.f32 %v2589_v54, %v13817_v33  ;;  %v14775_v22 = vadd.s32 344, %v13517_v10  ;;  %v10999_v33 = vpop.f32.mrf.mxu1 }
 0x2a1   : > { %18054 = vst [vmem:[#allocation175_spill] sm:$0xff] %v14748_v14  ;;  %18060 = vst [vmem:[#allocation87_spill] sm:$0xff] %v14768_v49  ;;  %v14771_v8 = vmul.u32.u64.low 2863311531, %v14634_v29  ;;  %v14772_v24 = vmul.u32.u64.high 2863311531, %v14634_v29, %v14771_v8  ;;  %v14782_v27 = vsub.s32 %v14478_v17, %v4480_v30  ;;  %v4458_v19 = vmul.u32 24, %v4457_v60  ;;  %v14784_v54 = vpop.f32.mrf.mxu0  ;;  %v18069_v17 = vld [vmem:[#allocation90_spill] sm:$0xff] }
 0x2a2   : > { %18056 = vst [vmem:[#allocation25_spill] sm:$0xff] %v14751_v28  ;;  %18061 = vst [vmem:[#allocation176_spill] sm:$0xff] %v14775_v22  ;;  %v14778_v28 = vadd.f32 %v2663_v16, %v18062_v5  ;;  %vm4656_vm15 = vcmp.ne.s32.totalorder %v14748_v14, 0  ;;  %vm4704_vm6 = vcmp.lt.s32.totalorder %v14748_v14, 0  ;;  %v14793_v5 = vadd.s32 328, %v13517_v10  ;;  %v18123_v22 = vld [vmem:[#allocation102_spill] sm:$0xff] }
 0x2a3   : > { %18065 = vst [vmem:[#allocation89_spill] sm:$0xff] %v14784_v54  ;;  %v14796_v16 = vadd.f32 %v2661_v6, %v18067_v55  ;;  %v2664_v30 = vadd.f32 %v10999_v33, %v18069_v17  ;;  %v14800_v60 = vsub.s32 %v14511_v56, %v4458_v19  ;;  %v14803_v61 = vadd.s32 368, %v13517_v10  ;;  %v2605_v54 = vpop.f32.mrf.mxu1  ;;  %v14805_v8 = vpop.f32.mrf.mxu0  ;;  %v18073_v55 = vld [vmem:[#allocation34_spill] sm:$0xff]  ;;  %v18075_v56 = vld [vmem:[#allocation39_spill] sm:$0xff]  ;;  %vm14823_vm8 = vmand %vm4704_vm6, %vm4656_vm15 }
 0x2a4   : > { %18063 = vst [vmem:[#allocation36_spill] sm:$0xff] %v14778_v28  ;;  %18066 = vst [vmem:[#allocation177_spill] sm:$0xff] %v14793_v5  ;;  %v14808_v49 = vadd.s32 24, %v14748_v14  ;;  %v4490_v28 = vshrl.u32 %v14772_v24, 4  ;;  %v14812_v5 = vmul.u32.u64.low 2863311531, %v14637_v36  ;;  %v14813_v6 = vmul.u32.u64.high 2863311531, %v14637_v36, %v14812_v5 }
 0x2a5   : > { %18068 = vst [vmem:[#allocation31_spill] sm:$0xff] %v14796_v16  ;;  %18070 = vst [vmem:[#allocation90_spill] sm:$0xff] %v14803_v61  ;;  %v14816_v33 = vadd.f32 %v2658_v4, %v18073_v55  ;;  %v14819_v19 = vadd.f32 %v2664_v30, %v18075_v56  ;;  %v18077_v17 = vmov 0  ;;  %vm4661_vm9 = vcmp.ne.s32.totalorder %v14782_v27, 0  ;;  %v11082_v24 = vpop.f32.mrf.mxu1  ;;  %v18081_v30 = vld [vmem:[#allocation95_spill] sm:$0xff] }
 0x2a6   : > { %18071 = vst [vmem:[#allocation178_spill] sm:$0xff] %v14805_v8  ;;  %18072 = vst [vmem:[#allocation179_spill] sm:$0xff] %v14808_v49  ;;  %v18078_v17 = vsel %vm14823_vm8, 4294967295, %v18077_v17  ;;  %vm4709_vm0 = vcmp.lt.s32.totalorder %v14782_v27, 0  ;;  %v11146_v8 = vpop.f32.mrf.mxu0  ;;  %vm4659_vm5 = vcmp.ne.s32.totalorder %v14800_v60, 0  ;;  %vm4707_vm7 = vcmp.lt.s32.totalorder %v14800_v60, 0 }
 0x2a7   : > { %18074 = vst [vmem:[#allocation34_spill] sm:$0xff] %v14816_v33  ;;  %18076 = vst [vmem:[#allocation39_spill] sm:$0xff] %v14819_v19  ;;  %v4491_v4 = vmul.u32 24, %v4490_v28  ;;  %v14832_v5 = vadd.s32 352, %v13517_v10  ;;  %v3386_v55 = vadd.f32 %v11082_v24, %v18081_v30  ;;  %v14836_v56 = vadd.s32 24, %v14782_v27  ;;  %v18082_v33 = vld [vmem:[#allocation85_spill] sm:$0xff]  ;;  %v3377_v28 = vpop.f32.mrf.mxu1 }
 0x2a8   : > { %18079 = vst [vmem:[#allocation180_spill] sm:$0xff] %v18078_v17  ;;  %v14839_v19 = vmul.u32.u64.low 2863311531, %v14659_v21  ;;  %v14840_v16 = vmul.u32.u64.high 2863311531, %v14659_v21, %v14839_v19  ;;  %v18083_v61 = vsel %vm13703_vm10, %v13644_v53, %v18082_v33  ;;  %vm14859_vm6 = vmand %vm4709_vm0, %vm4661_vm9  ;;  %v14864_v53 = vadd.s32 24, %v14800_v60  ;;  %v18088_v30 = vld [vmem:[#allocation96_spill] sm:$0xff] }
 0x2a9   : > { %18080 = vst [vmem:[#allocation181_spill] sm:$0xff] %v14832_v5  ;;  %vm14847_vm15 = vcmp.lt.s32.totalorder %v18083_v61, 16  ;;  %v3667_v5 = vpop.f32.mrf.mxu0  ;;  %v14867_v61 = vsub.s32 %v14634_v29, %v4491_v4  ;;  %v4468_v33 = vshrl.u32 %v14813_v6, 4  ;;  %v3860_v19 = vadd.f32 %v11146_v8, %v3386_v55  ;;  %vm14875_vm10 = vmand %vm4707_vm7, %vm4659_vm5  ;;  %v14888_v29 = vld [vmem:[%s17444_s2] ss:$0 sm:$0xff]  ;;  %v11083_v4 = vpop.f32.mrf.mxu1 }
 0x2aa   : > { %v3378_v17 = vadd.f32 %v3377_v28, %v18088_v30  ;;  %v18089_v24 = vmov 0  ;;  %v14880_v14 = vadd.s32 376, %v13517_v10  ;;  %v14883_v49 = vadd.s32 360, %v13517_v10  ;;  %v18097_v30 = vld [vmem:[#allocation50_spill] sm:$0xff] }
 0x2ab   : > { %v18090_v24 = vsel %vm14875_vm10, 4294967295, %v18089_v24  ;;  %v18094_v8 = vsel %vm13720_vm11, %v13649_v12, %v13617_v39  ;;  %v11147_v55 = vpop.f32.mrf.mxu0  ;;  %vm4662_vm7 = vcmp.ne.s32.totalorder %v14867_v61, 0  ;;  %vm4710_vm0 = vcmp.lt.s32.totalorder %v14867_v61, 0  ;;  %v18106_v39 = vld [vmem:[#allocation88_spill] sm:$0xff] }
 0x2ac   : > { %18091 = vst [vmem:[#allocation95_spill] sm:$0xff] %v18090_v24  ;;  %18092 = vst [vmem:[#allocation85_spill] sm:$0xff] %v14880_v14  ;;  %vm14895_vm5 = vcmp.lt.s32.totalorder %v18094_v8, 16  ;;  %v14902_v10 = vadd.s32 24, %v14867_v61  ;;  %v4469_v28 = vmul.u32 24, %v4468_v33  ;;  %v3858_v3 = vadd.f32 %v3667_v5, %v3378_v17  ;;  %v18098_v14 = vld [vmem:[#allocation97_spill] sm:$0xff]  ;;  %v3380_v5 = vpop.f32.mrf.mxu1 }
 0x2ad   : > { %18093 = vst [vmem:[#allocation96_spill] sm:$0xff] %v14883_v49  ;;  %v3956_v49 = vadd.f32 %v3860_v19, %v18097_v30  ;;  %v3389_v25 = vadd.f32 %v11083_v4, %v18098_v14  ;;  %vm14910_vm11 = vmand %vm4710_vm0, %vm4662_vm7  ;;  %v14915_v8 = vadd.f32 %v2605_v54, %v14044_v9  ;;  %v14920_v33 = vld [vmem:[%s17445_s3] ss:$0 sm:$0xff]  ;;  %v18102_v14 = vsel %vm13735_vm13, %v13674_v62, %v13629_v48  ;;  %v3670_v19 = vpop.f32.mrf.mxu0 }
 0x2ae   : > { %vm14927_vm9 = vcmp.lt.s32.totalorder %v18102_v14, 16  ;;  %v14936_v54 = vsub.s32 %v14637_v36, %v4469_v28  ;;  %v4523_v4 = vshrl.u32 %v14840_v16, 4  ;;  %v3954_v48 = vadd.f32 %v3858_v3, %v13780_v63  ;;  %v18105_v14 = vld [vmem:[#allocation94_spill] sm:$0xff]  ;;  %v11086_v36 = vpop.f32.mrf.mxu1 }
 0x2af   : > { %18101 = vst [vmem:[#allocation50_spill] sm:$0xff] %v14915_v8  ;;  %v4924_v52 = vmul.f32 %v14888_v29, %v3956_v49  ;;  %v3861_v62 = vadd.f32 %v11147_v55, %v3389_v25  ;;  %v3381_v30 = vadd.f32 %v3380_v5, %v13794_v18  ;;  %v18107_v8 = vsel %vm13752_vm1, %v18105_v14, %v18106_v39  ;;  %v11150_v28 = vpop.f32.mrf.mxu0 }
 0x2b0   : > { %vm14947_vm13 = vcmp.lt.s32.totalorder %v18107_v8, 16  ;;  %vm4660_vm7 = vcmp.ne.s32.totalorder %v14936_v54, 0  ;;  %vm4708_vm0 = vcmp.lt.s32.totalorder %v14936_v54, 0  ;;  %v14958_v18 = vadd.s32 24, %v14936_v54  ;;  %v3393_v39 = vpop.f32.mrf.mxu1 }
 0x2b1   : > { %v4979_v1 = vadd.f32 %v14920_v33, %v4924_v52  ;;  %v4922_v63 = vmul.f32 %v14888_v29, %v3954_v48  ;;  %v3957_v25 = vadd.f32 %v3861_v62, %v13820_v26  ;;  %v3859_v16 = vadd.f32 %v3670_v19, %v3381_v30  ;;  %vm14963_vm1 = vmand %vm4708_vm0, %vm4660_vm7  ;;  %v3683_v8 = vpop.f32.mrf.mxu0 }
 0x2b2   : > { %v18110_v55 = vmov 0  ;;  %v3402_v3 = vadd.f32 %v11086_v36, %v13827_v51  ;;  %v4524_v5 = vmul.u32 24, %v4523_v4  ;;  %v18112_v19 = vsel %vm13774_vm2, %v13740_v37, %v13659_v34  ;;  %v11087_v30 = vpop.f32.mrf.mxu1  ;;  %v18212_v51 = vld [vmem:[#allocation129_spill] sm:$0xff] }
 0x2b3   : > { %v18111_v55 = vsel %vm14963_vm1, 4294967295, %v18110_v55  ;;  %v14969_v14 = vmul.u32.u64.low 2863311531, %v14662_v58  ;;  %v14970_v49 = vmul.u32.u64.high 2863311531, %v14662_v58, %v14969_v14  ;;  %v5027_v9 = vmax.f32 %v4979_v1, 0.0  ;;  %v11151_v36 = vpop.f32.mrf.mxu0  ;;  %v18229_v58 = vld [vmem:[#allocation70_spill] sm:$0xff] }
 0x2b4   : > { %v4977_v52 = vadd.f32 %v14920_v33, %v4922_v63  ;;  %v4925_v48 = vmul.f32 %v14888_v29, %v3957_v25  ;;  %v3955_v26 = vadd.f32 %v3859_v16, %v13835_v38  ;;  %vm14980_vm7 = vcmp.lt.s32.totalorder %v18112_v19, 16  ;;  %v18115_v63 = vld [vmem:[#allocation99_spill] sm:$0xff]  ;;  %v18118_v25 = vld [vmem:[#allocation93_spill] sm:$0xff]  ;;  %v3396_v14 = vpop.f32.mrf.mxu1 }
 0x2b5   : > { %v3864_v4 = vadd.f32 %v11150_v28, %v3402_v3  ;;  %v3394_v62 = vadd.f32 %v3393_v39, %v13843_v23  ;;  %v14990_v38 = vsub.s32 %v14659_v21, %v4524_v5  ;;  %v5219_v34 = vsel %vm14847_vm15, %v5027_v9, 0.0  ;;  %v18117_v23 = vld [vmem:[#allocation98_spill] sm:$0xff]  ;;  %v18122_v21 = vld [vmem:[#allocation51_spill] sm:$0xff] }
 0x2b6   : > { %v5025_v37 = vmax.f32 %v4977_v52, 0.0  ;;  %v4980_v20 = vadd.f32 %v14920_v33, %v4925_v48  ;;  %v4923_v28 = vmul.f32 %v14888_v29, %v3955_v26  ;;  %vm18116_vm2 = vnez %v18115_v63  ;;  %5275 = vst [vmem:[#allocation3 + $0x30] sm:$0xff] %v5219_v34  ;;  %v3686_v52 = vpop.f32.mrf.mxu0  ;;  %v18167_v3 = vld [vmem:[#allocation110_spill] sm:$0xff] }
 0x2b7   : > { %v18119_v16 = vsel %vm18116_vm2, %v18117_v23, %v18118_v25  ;;  %v3960_v39 = vadd.f32 %v3864_v4, %v18122_v21  ;;  %v3862_v5 = vadd.f32 %v3683_v8, %v3394_v62  ;;  %v3405_v9 = vadd.f32 %v11087_v30, %v18123_v22  ;;  %v18125_v23 = vld [vmem:[#allocation101_spill] sm:$0xff]  ;;  %v18126_v25 = vld [vmem:[#allocation100_spill] sm:$0xff]  ;;  %v11090_v21 = vpop.f32.mrf.mxu1 }
 0x2b8   : > { %vm15001_vm0 = vcmp.lt.s32.totalorder %v18119_v16, 16  ;;  %vm4665_vm15 = vcmp.ne.s32.totalorder %v14990_v38, 0  ;;  %v5217_v48 = vsel %vm14895_vm5, %v5025_v37, 0.0  ;;  %v5028_v26 = vmax.f32 %v4980_v20, 0.0  ;;  %v18130_v8 = vld [vmem:[#allocation104_spill] sm:$0xff]  ;;  %v18131_v16 = vld [vmem:[#allocation103_spill] sm:$0xff]  ;;  %v11154_v22 = vpop.f32.mrf.mxu0 }
 0x2b9   : > { %v4978_v19 = vadd.f32 %v14920_v33, %v4923_v28  ;;  %v18127_v34 = vsel %vm13934_vm12, %v18125_v23, %v18126_v25  ;;  %v3397_v62 = vadd.f32 %v3396_v14, %v18130_v8  ;;  %5273 = vst [vmem:[#allocation3 + $0x20] sm:$0xff] %v5217_v48  ;;  %v4928_v30 = vmul.f32 %v14888_v29, %v3960_v39  ;;  %v3409_v17 = vpop.f32.mrf.mxu1  ;;  %v18141_v25 = vld [vmem:[#allocation109_spill] sm:$0xff]  ;;  %v18174_v4 = vld [vmem:[#allocation124_spill] sm:$0xff] }
 0x2ba   : > { %vm15016_vm2 = vcmp.lt.s32.totalorder %v18127_v34, 16  ;;  %v3958_v6 = vadd.f32 %v3862_v5, %v18131_v16  ;;  %v3865_v37 = vadd.f32 %v11151_v36, %v3405_v9  ;;  %v18132_v20 = vsel %vm13952_vm4, %v13886_v40, %v13830_v15  ;;  %v18135_v5 = vld [vmem:[#allocation106_spill] sm:$0xff]  ;;  %v18136_v40 = vld [vmem:[#allocation105_spill] sm:$0xff]  ;;  %v18147_v16 = vld [vmem:[#allocation120_spill] sm:$0xff] }
 0x2bb   : > { %vm15028_vm5 = vcmp.lt.s32.totalorder %v18132_v20, 16  ;;  %v5220_v14 = vsel %vm14927_vm9, %v5028_v26, 0.0  ;;  %v5026_v39 = vmax.f32 %v4978_v19, 0.0  ;;  %v3863_v48 = vadd.f32 %v3686_v52, %v3397_v62  ;;  %v3699_v52 = vpop.f32.mrf.mxu0  ;;  %v18142_v62 = vld [vmem:[#allocation111_spill] sm:$0xff]  ;;  %v18179_v28 = vld [vmem:[#allocation52_spill] sm:$0xff] }
 0x2bc   : > { %v3418_v36 = vadd.f32 %v11090_v21, %v18135_v5  ;;  %5276 = vst [vmem:[#allocation3 + $0x38] sm:$0xff] %v5220_v14  ;;  %v4983_v57 = vadd.f32 %v14920_v33, %v4928_v30  ;;  %v4926_v15 = vmul.f32 %v14888_v29, %v3958_v6  ;;  %v3961_v9 = vadd.f32 %v3865_v37, %v18136_v40  ;;  %v18148_v6 = vld [vmem:[#allocation107_spill] sm:$0xff]  ;;  %v11091_v21 = vpop.f32.mrf.mxu1  ;;  %v18163_v14 = vld [vmem:[#allocation118_spill] sm:$0xff]  ;;  %v18255_v20 = vld [vmem:[#allocation60_spill] sm:$0xff] }
 0x2bd   : > { %vm18137_vm4 = vnez %v17805_v7  ;;  %v15049_v26 = vadd.s32 24, %v14990_v38  ;;  %v5218_v19 = vsel %vm14947_vm13, %v5026_v39, 0.0  ;;  %v3959_v34 = vadd.f32 %v3863_v48, %v18141_v25  ;;  %v18152_v48 = vld [vmem:[#allocation112_spill] sm:$0xff]  ;;  %v5323_v40 = vld [vmem:[#allocation3 + $0x17] sm:$0xff] }
 0x2be   : > { %v18138_v63 = vsel %vm18137_vm4, %v13923_v47, %v13862_v59  ;;  %v3868_v8 = vadd.f32 %v11154_v22, %v3418_v36  ;;  %v3410_v7 = vadd.f32 %v3409_v17, %v18142_v62  ;;  %vm18143_vm9 = vcmp.lt.s32.totalorder %v14990_v38, 0  ;;  %5274 = vst [vmem:[#allocation3 + $0x28] sm:$0xff] %v5218_v19  ;;  %v11155_v22 = vpop.f32.mrf.mxu0  ;;  %v18154_v17 = vld [vmem:[#allocation121_spill] sm:$0xff]  ;;  %v18156_v19 = vld [vmem:[#allocation122_spill] sm:$0xff]  ;;  %v18157_v25 = vld [vmem:[#allocation108_spill] sm:$0xff] }
 0x2bf   : > { %vm15044_vm12 = vcmp.lt.s32.totalorder %v18138_v63, 16  ;;  %vm15059_vm4 = vmand %vm18143_vm9, %vm4665_vm15  ;;  %v5031_v47 = vmax.f32 %v4983_v57, 0.0  ;;  %v4981_v30 = vadd.f32 %v14920_v33, %v4926_v15  ;;  %v4929_v24 = vmul.f32 %v14888_v29, %v3961_v9  ;;  %v18153_v57 = vld [vmem:[#allocation114_spill] sm:$0xff] }
 0x2c0   : > { %vm18146_vm13 = vnez %v17809_v32  ;;  %v4927_v39 = vmul.f32 %v14888_v29, %v3959_v34  ;;  %v3964_v5 = vadd.f32 %v3868_v8, %v18152_v48  ;;  %v3866_v36 = vadd.f32 %v3699_v52, %v3410_v7  ;;  %v3412_v34 = vpop.f32.mrf.mxu1  ;;  %v3702_v52 = vpop.f32.mrf.mxu0  ;;  %v18162_v48 = vld [vmem:[#allocation117_spill] sm:$0xff] }
 0x2c1   : > { %v18149_v37 = vsel %vm18146_vm13, %v18147_v16, %v18148_v6  ;;  %v3421_v15 = vadd.f32 %v11091_v21, %v18153_v57  ;;  %v5223_v32 = vsel %vm14980_vm7, %v5031_v47, 0.0  ;;  %v5029_v9 = vmax.f32 %v4981_v30, 0.0  ;;  %v18161_v47 = vld [vmem:[#allocation116_spill] sm:$0xff] }
 0x2c2   : > { %vm15070_vm1 = vcmp.lt.s32.totalorder %v18149_v37, 16  ;;  %v4984_v63 = vadd.f32 %v14920_v33, %v4929_v24  ;;  %vm18155_vm15 = vnez %v18154_v17  ;;  %5279 = vst [vmem:[#allocation3 + $0x50] sm:$0xff] %v5223_v32  ;;  %v4982_v8 = vadd.f32 %v14920_v33, %v4927_v39  ;;  %v5324_v6 = vld [vmem:[#allocation3 + $0x1f] sm:$0xff]  ;;  %v11094_v17 = vpop.f32.mrf.mxu1 }
 0x2c3   : > { %v18158_v62 = vsel %vm18155_vm15, %v18156_v19, %v18157_v25  ;;  %v4932_v7 = vmul.f32 %v14888_v29, %v3964_v5  ;;  %v3962_v30 = vadd.f32 %v3866_v36, %v18161_v47  ;;  %v3869_v24 = vadd.f32 %v11155_v22, %v3421_v15  ;;  %v11158_v19 = vpop.f32.mrf.mxu0  ;;  %v18164_v22 = vld [vmem:[#allocation40_spill] sm:$0xff]  ;;  %v18166_v15 = vld [vmem:[#allocation123_spill] sm:$0xff] }
 0x2c4   : > { %vm15086_vm9 = vcmp.lt.s32.totalorder %v18158_v62, 16  ;;  %v5221_v37 = vsel %vm15001_vm0, %v5029_v9, 0.0  ;;  %v5032_v21 = vmax.f32 %v4984_v63, 0.0  ;;  %v3413_v57 = vadd.f32 %v3412_v34, %v18162_v48  ;;  %v12124_v62 = vld [vmem:[#allocation9 + $0x130] sm:$0xff]   ;;  %v12130_v63 = vld [vmem:[#allocation9 + $0x118] sm:$0xff]  }
 0x2c5   : > { %v5376_v25 = vpack.c.bf16 %v5324_v6, %v5323_v40  ;;  %5277 = vst [vmem:[#allocation3 + $0x40] sm:$0xff] %v5221_v37  ;;  %v5030_v32 = vmax.f32 %v4982_v8, 0.0  ;;  %v4987_v39 = vadd.f32 %v14920_v33, %v4932_v7  ;;  %v4930_v5 = vmul.f32 %v14888_v29, %v3962_v30  ;;  %v18171_v8 = vld [vmem:[#allocation119_spill] sm:$0xff]  ;;  %v3425_v7 = vpop.f32.mrf.mxu1  ;;  %v3715_v6 = vpop.f32.mrf.mxu0 }
 0x2c6   : > { %v3965_v36 = vadd.f32 %v3869_v24, %v18163_v14  ;;  %vm18165_vm7 = vnez %v18164_v22  ;;  %v5224_v40 = vsel %vm15016_vm2, %v5032_v21, 0.0  ;;  %v3867_v34 = vadd.f32 %v3702_v52, %v3413_v57  ;;  %v18172_v22 = vld [vmem:[#allocation126_spill] sm:$0xff]  ;;  %v18175_v21 = vld [vmem:[#allocation113_spill] sm:$0xff] }
 0x2c7   : > { %v18168_v9 = vsel %vm18165_vm7, %v18166_v15, %v18167_v3  ;;  %v3434_v47 = vadd.f32 %v11094_v17, %v18171_v8  ;;  %11273 = vmatmul.mubr.bf16.vlgmr.msra.gmra.mxu0 %v5376_v25  ;;  %v5460_v30 = vrot.slane %v5376_v25, 4  ;;  %5280 = vst [vmem:[#allocation3 + $0x58] sm:$0xff] %v5224_v40  ;;  %v5222_v14 = vsel %vm15028_vm5, %v5030_v32, 0.0  ;;  %v5325_v17 = vld [vmem:[#allocation3 + $0x27] sm:$0xff]  ;;  %v5326_v25 = vld [vmem:[#allocation3 + $0x2f] sm:$0xff]  ;;  %v12126_v8 = vld [vmem:[#allocation9 + $0x128] sm:$0xff]  }
 0x2c8   : > { %vm15108_vm0 = vcmp.lt.s32.totalorder %v18168_v9, 16  ;;  %v5035_v24 = vmax.f32 %v4987_v39, 0.0  ;;  %v4985_v37 = vadd.f32 %v14920_v33, %v4930_v5  ;;  %v4933_v48 = vmul.f32 %v14888_v29, %v3965_v36  ;;  %v12185_v15 = vld [vmem:[#allocation9 + $0x138] sm:$0xff]   ;;  %5278 = vst [vmem:[#allocation3 + $0x48] sm:$0xff] %v5222_v14  ;;  %v11095_v36 = vpop.f32.mrf.mxu1  ;;  %v11159_v9 = vpop.f32.mrf.mxu0  ;;  %v18183_v14 = vld [vmem:[#allocation47_spill] sm:$0xff] }
 0x2c9   : > { %vm18173_vm13 = vnez %v18172_v22  ;;  %11385 = vmatpush3.bf16.msra.mxu0 %v12185_v15  ;;  %v3963_v32 = vadd.f32 %v3867_v34, %v18179_v28  ;;  %v3872_v39 = vadd.f32 %v11158_v19, %v3434_v47  ;;  %v18180_v5 = vld [vmem:[#allocation125_spill] sm:$0xff]  ;;  %v15130_v40 = vpack.c.bf16 %v5326_v25, %v5325_v17  ;;  %v18184_v15 = vld [vmem:[#allocation54_spill] sm:$0xff]  ;;  %v18188_v47 = vld [vmem:[#allocation92_spill] sm:$0xff] }
 0x2ca   : > { %v18176_v52 = vsel %vm18173_vm13, %v18174_v4, %v18175_v21  ;;  %v3426_v3 = vadd.f32 %v3425_v7, %v18180_v5  ;;  %11386 = vmatprep.subr.bf16.mxu0 %v12124_v62  ;;  %v5227_v22 = vsel %vm15044_vm12, %v5035_v24, 0.0  ;;  %v5033_v4 = vmax.f32 %v4985_v37, 0.0  ;;  %v18189_v25 = vld [vmem:[#allocation91_spill] sm:$0xff]  ;;  %v18190_v37 = vld [vmem:[#allocation134_spill] sm:$0xff]  ;;  %v18231_v57 = vld [vmem:[#allocation141_spill] sm:$0xff] }
 0x2cb   : > { %vm15124_vm2 = vcmp.lt.s32.totalorder %v18176_v52, 16  ;;  %v4988_v21 = vadd.f32 %v14920_v33, %v4933_v48  ;;  %v18181_v52 = vld [vmem:[#allocation37_spill] sm:$0xff]  ;;  %v3437_v7 = vadd.f32 %v11095_v36, %v18188_v47  ;;  %5283 = vst [vmem:[#allocation3 + $0x70] sm:$0xff] %v5227_v22  ;;  %v4931_v17 = vmul.f32 %v14888_v29, %v3963_v32  ;;  %v18192_v48 = vld [vmem:[#allocation131_spill] sm:$0xff]  ;;  %v18193_v28 = vld [vmem:[#allocation42_spill] sm:$0xff]  ;;  %11276 = vmatprep.mubr.bf16.mxu0 %v15130_v40 }
 0x2cc   : > { %vm18182_vm5 = vnez %v18181_v52  ;;  %v3968_v23 = vadd.f32 %v3872_v39, %v18189_v25  ;;  %v3870_v24 = vadd.f32 %v3715_v6, %v3426_v3  ;;  %vm18191_vm12 = vnez %v18190_v37  ;;  %v18197_v3 = vld [vmem:[#allocation41_spill] sm:$0xff] }
 0x2cd   : > { %v18185_v34 = vsel %vm18182_vm5, %v18183_v14, %v18184_v15  ;;  %v18194_v5 = vsel %vm18191_vm12, %v18192_v48, %v18193_v28  ;;  %v3428_v14 = vpop.f32.mrf.mxu1  ;;  %v3718_v15 = vpop.f32.mrf.mxu0  ;;  %v5225_v32 = vsel %vm15070_vm1, %v5033_v4, 0.0  ;;  %v5036_v39 = vmax.f32 %v4988_v21, 0.0  ;;  %11387 = vmatpush3.bf16.msra.mxu0 %v12124_v62  ;;  %v18198_v25 = vld [vmem:[#allocation53_spill] sm:$0xff]  ;;  %v18199_v48 = vld [vmem:[#allocation44_spill] sm:$0xff] }
 0x2ce   : > { %vm15140_vm15 = vcmp.lt.s32.totalorder %v18185_v34, 16  ;;  %vm15152_vm7 = vcmp.lt.s32.totalorder %v18194_v5, 16  ;;  %v5461_v34 = vrot.slane %v15130_v40, 4  ;;  %v3873_v6 = vadd.f32 %v11159_v9, %v3437_v7  ;;  %5281 = vst [vmem:[#allocation3 + $0x60] sm:$0xff] %v5225_v32  ;;  %v18201_v28 = vld [vmem:[#allocation132_spill] sm:$0xff]  ;;  %v18202_v5 = vld [vmem:[#allocation127_spill] sm:$0xff]  ;;  %11388 = vmatprep.subr.bf16.mxu0 %v12126_v8 }
 0x2cf   : > { %v3429_v36 = vadd.f32 %v3428_v14, %v18197_v3  ;;  %v4986_v22 = vadd.f32 %v14920_v33, %v4931_v17  ;;  %v4936_v47 = vmul.f32 %v14888_v29, %v3968_v23  ;;  %v3966_v37 = vadd.f32 %v3870_v24, %v18198_v25  ;;  %v11098_v9 = vpop.f32.mrf.mxu1  ;;  %v11162_v4 = vpop.f32.mrf.mxu0  ;;  %v5328_v21 = vld [vmem:[#allocation3 + $0x3f] sm:$0xff]  ;;  %v12128_v7 = vld [vmem:[#allocation9 + $0x120] sm:$0xff]  }
 0x2d0   : > { %vm18200_vm13 = vnez %v18199_v48  ;;  %vm18206_vm1 = vcmask 1043456   ;;  %v5228_v17 = vsel %vm15086_vm9, %v5036_v39, 0.0  ;;  %v18207_v23 = vld [vmem:[#allocation43_spill] sm:$0xff]  ;;  %v18352_v46 = vsel %vm14875_vm10, %v14864_v53, %v14800_v60  ;;  %v18355_v53 = vld [vmem:[#allocation24_spill] sm:$0xff] }
 0x2d1   : > { %v18203_v40 = vsel %vm18200_vm13, %v18201_v28, %v18202_v5  ;;  %v5462_v62 = vsel %vm18206_vm1, %v5460_v30, %v5461_v34  ;;  %v3969_v24 = vadd.f32 %v3873_v6, %v18207_v23  ;;  %v3871_v14 = vadd.f32 %v3718_v15, %v3429_v36  ;;  %v18208_v32 = vld [vmem:[#allocation55_spill] sm:$0xff]  ;;  %5284 = vst [vmem:[#allocation3 + $0x78] sm:$0xff] %v5228_v17  ;;  %v18209_v30 = vld [vmem:[#allocation138_spill] sm:$0xff]  ;;  %v3441_v15 = vpop.f32.mrf.mxu1  ;;  %v3731_v39 = vpop.f32.mrf.mxu0  ;;  %v18218_v23 = vld [vmem:[#allocation48_spill] sm:$0xff] }
 0x2d2   : > { %vm15169_vm5 = vcmp.lt.s32.totalorder %v18203_v40, 16  ;;  %v3450_v3 = vadd.f32 %v11098_v9, %v18208_v32  ;;  %11208 = vmatprep.mubr.bf16.mxu1 %v5462_v62  ;;  %v5327_v25 = vld [vmem:[#allocation3 + $0x37] sm:$0xff]  ;;  %v5034_v48 = vmax.f32 %v4986_v22, 0.0  ;;  %v4991_v28 = vadd.f32 %v14920_v33, %v4936_v47  ;;  %v18216_v22 = vld [vmem:[#allocation45_spill] sm:$0xff]  ;;  %v18217_v62 = vld [vmem:[#allocation56_spill] sm:$0xff]  ;;  %11389 = vmatpush3.bf16.msra.mxu0 %v12126_v8 }
 0x2d3   : > { %v4934_v5 = vmul.f32 %v14888_v29, %v3966_v37  ;;  %vm18210_vm12 = vnez %v18209_v30  ;;  %v18211_v40 = vld [vmem:[#allocation38_spill] sm:$0xff]  ;;  %v15189_v6 = vpack.c.bf16 %v5328_v21, %v5327_v25  ;;  %v4937_v36 = vmul.f32 %v14888_v29, %v3969_v24  ;;  %v18220_v32 = vld [vmem:[#allocation139_spill] sm:$0xff]  ;;  %v11099_v8 = vpop.f32.mrf.mxu1  ;;  %v11163_v24 = vpop.f32.mrf.mxu0  ;;  %11390 = vmatprep.subr.bf16.mxu0 %v12128_v7 }
 0x2d4   : > { %v18213_v1 = vsel %vm18210_vm12, %v18211_v40, %v18212_v51  ;;  %v3967_v9 = vadd.f32 %v3871_v14, %v18216_v22  ;;  %v3876_v47 = vadd.f32 %v11162_v4, %v3450_v3  ;;  %v3442_v37 = vadd.f32 %v3441_v15, %v18217_v62  ;;  %v18221_v30 = vld [vmem:[#allocation130_spill] sm:$0xff]  ;;  %v5329_v40 = vld [vmem:[#allocation3 + $0x47] sm:$0xff] }
 0x2d5   : > { %vm15185_vm13 = vcmp.lt.s32.totalorder %v18213_v1, 16  ;;  %v5226_v17 = vsel %vm15108_vm0, %v5034_v48, 0.0  ;;  %v5039_v51 = vmax.f32 %v4991_v28, 0.0  ;;  %v4989_v1 = vadd.f32 %v14920_v33, %v4934_v5  ;;  %11277 = vmatmul.mubr.bf16.gmra.mxu0 %v15189_v6  ;;  %v18225_v48 = vld [vmem:[#allocation57_spill] sm:$0xff]  ;;  %v12123_v22 = vld [vmem:[#allocation9 + $0x1b0] sm:$0xff]  }
 0x2d6   : > { %vm18219_vm9 = vnez %v18218_v23  ;;  %v5463_v4 = vrot.slane %v15189_v6, 4  ;;  %5282 = vst [vmem:[#allocation3 + $0x68] sm:$0xff] %v5226_v17  ;;  %v4992_v14 = vadd.f32 %v14920_v33, %v4937_v36  ;;  %v4935_v3 = vmul.f32 %v14888_v29, %v3967_v9  ;;  %v5330_v15 = vld [vmem:[#allocation3 + $0x4f] sm:$0xff]  ;;  %v3734_v36 = vpop.f32.mrf.mxu0  ;;  %11391 = vmatpush3.bf16.msra.mxu0 %v12128_v7 }
 0x2d7   : > { %v18222_v21 = vsel %vm18219_vm9, %v18220_v32, %v18221_v30  ;;  %v3972_v28 = vadd.f32 %v3876_v47, %v18225_v48  ;;  %v3874_v5 = vadd.f32 %v3731_v39, %v3442_v37  ;;  %v5231_v62 = vsel %vm15124_vm2, %v5039_v51, 0.0  ;;  %v18226_v32 = vld [vmem:[#allocation46_spill] sm:$0xff]  ;;  %v18232_v51 = vld [vmem:[#allocation135_spill] sm:$0xff]  ;;  %11392 = vmatprep.subr.bf16.mxu0 %v12130_v63 }
 0x2d8   : > { %vm15202_vm1 = vcmp.lt.s32.totalorder %v18222_v21, 16  ;;  %v5037_v23 = vmax.f32 %v4989_v1, 0.0  ;;  %v3453_v30 = vadd.f32 %v11099_v8, %v18226_v32  ;;  %vm18227_vm0 = vcmask 1043456   ;;  %v3444_v21 = vpop.f32.mrf.mxu1  ;;  %5287 = vst [vmem:[#allocation3 + $0x90] sm:$0xff] %v5231_v62  ;;  %v18228_v37 = vld [vmem:[#allocation58_spill] sm:$0xff]  ;;  %v11166_v32 = vpop.f32.mrf.mxu0 }
 0x2d9   : > { %v5464_v17 = vsel %vm18227_vm0, %v5461_v34, %v5463_v4  ;;  %v5040_v9 = vmax.f32 %v4992_v14, 0.0  ;;  %v4990_v47 = vadd.f32 %v14920_v33, %v4935_v3  ;;  %v4940_v39 = vmul.f32 %v14888_v29, %v3972_v28  ;;  %v18236_v3 = vld [vmem:[#allocation128_spill] sm:$0xff] }
 0x2da   : > { %v3970_v48 = vadd.f32 %v3874_v5, %v18228_v37  ;;  %vm18230_vm12 = vnez %v18229_v58  ;;  %11209 = vmatmul.mubr.bf16.vlgmr.msra.gmra.mxu1 %v5464_v17  ;;  %v5229_v34 = vsel %vm15140_vm15, %v5037_v23, 0.0  ;;  %v3877_v14 = vadd.f32 %v11163_v24, %v3453_v30  ;;  %v12186_v5 = vld [vmem:[#allocation9 + $0x1b8] sm:$0xff]   ;;  %v11102_v58 = vpop.f32.mrf.mxu1  ;;  %v18238_v23 = vld [vmem:[#allocation148_spill] sm:$0xff]  ;;  %v18241_v30 = vld [vmem:[#allocation142_spill] sm:$0xff]  ;;  %11393 = vmatpush3.bf16.msra.mxu0 %v12130_v63 }
 0x2db   : > { %v18233_v1 = vsel %vm18230_vm12, %v18231_v57, %v18232_v51  ;;  %v3445_v62 = vadd.f32 %v3444_v21, %v18236_v3  ;;  %v15232_v28 = vpack.c.bf16 %v5330_v15, %v5329_v40  ;;  %11321 = vmatpush3.bf16.msra.mxu1 %v12186_v5  ;;  %5285 = vst [vmem:[#allocation3 + $0x80] sm:$0xff] %v5229_v34  ;;  %v5232_v37 = vsel %vm15152_vm7, %v5040_v9, 0.0  ;;  %v18240_v24 = vld [vmem:[#allocation145_spill] sm:$0xff]  ;;  %v12125_v17 = vld [vmem:[#allocation9 + $0x1a8] sm:$0xff]   ;;  %v12132_v3 = vld [vmem:[#allocation9 + $0x110] sm:$0xff]  }
 0x2dc   : > { %vm15225_vm2 = vcmp.lt.s32.totalorder %v18233_v1, 16  ;;  %v5038_v57 = vmax.f32 %v4990_v47, 0.0  ;;  %v4995_v7 = vadd.f32 %v14920_v33, %v4940_v39  ;;  %v4938_v19 = vmul.f32 %v14888_v29, %v3970_v48  ;;  %11322 = vmatprep.subr.bf16.mxu1 %v12123_v22  ;;  %5288 = vst [vmem:[#allocation3 + $0x98] sm:$0xff] %v5232_v37  ;;  %v18245_v21 = vld [vmem:[#allocation59_spill] sm:$0xff]  ;;  %v18246_v47 = vld [vmem:[#allocation49_spill] sm:$0xff]  ;;  %v3457_v51 = vpop.f32.mrf.mxu1  ;;  %v3747_v1 = vpop.f32.mrf.mxu0  ;;  %11394 = vmatprep.subr.bf16.mxu0 %v12132_v3 }
 0x2dd   : > { %18237 = vst [vmem:[#allocation97_spill] sm:$0xff] %v15232_v28  ;;  %vm18239_vm15 = vnez %v18238_v23  ;;  %v3973_v52 = vadd.f32 %v3877_v14, %v18245_v21  ;;  %v3875_v9 = vadd.f32 %v3734_v36, %v3445_v62  ;;  %11280 = vmatprep.mubr.bf16.mxu0 %v15232_v28  ;;  %v3466_v39 = vadd.f32 %v11102_v58, %v18246_v47  ;;  %v5332_v34 = vld [vmem:[#allocation3 + $0x5f] sm:$0xff]  ;;  %v18249_v14 = vld [vmem:[#allocation149_spill] sm:$0xff]  ;;  %v5331_v63 = vld [vmem:[#allocation3 + $0x57] sm:$0xff] }
 0x2de   : > { %v18242_v40 = vsel %vm18239_vm15, %v18240_v24, %v18241_v30  ;;  %v5465_v48 = vrot.slane %v15232_v28, 4  ;;  %v5230_v5 = vsel %vm15169_vm5, %v5038_v57, 0.0  ;;  %v5043_v23 = vmax.f32 %v4995_v7, 0.0  ;;  %v18247_v37 = vld [vmem:[#allocation151_spill] sm:$0xff]  ;;  %v18250_v36 = vld [vmem:[#allocation144_spill] sm:$0xff]  ;;  %v18254_v58 = vld [vmem:[#allocation133_spill] sm:$0xff]  ;;  %11395 = vmatpush3.bf16.msra.mxu0 %v12132_v3 }
 0x2df   : > { %vm15243_vm9 = vcmp.lt.s32.totalorder %v18242_v40, 16  ;;  %v4993_v24 = vadd.f32 %v14920_v33, %v4938_v19  ;;  %vm18248_vm7 = vnez %v18247_v37  ;;  %v3458_v40 = vadd.f32 %v3457_v51, %v18254_v58  ;;  %5286 = vst [vmem:[#allocation3 + $0x88] sm:$0xff] %v5230_v5  ;;  %v18257_v47 = vld [vmem:[#allocation76_spill] sm:$0xff]  ;;  %v18259_v37 = vld [vmem:[#allocation75_spill] sm:$0xff]  ;;  %v11103_v51 = vpop.f32.mrf.mxu1  ;;  %v11167_v5 = vpop.f32.mrf.mxu0  ;;  %11323 = vmatpush3.bf16.msra.mxu1 %v12123_v22 }
 0x2e0   : > { %v18251_v62 = vsel %vm18248_vm7, %v18249_v14, %v18250_v36  ;;  %v4941_v21 = vmul.f32 %v14888_v29, %v3973_v52  ;;  %v3971_v57 = vadd.f32 %v3875_v9, %v18255_v20  ;;  %v3880_v7 = vadd.f32 %v11166_v32, %v3466_v39  ;;  %v18260_v14 = vld [vmem:[#allocation146_spill] sm:$0xff]  ;;  %11324 = vmatprep.subr.bf16.mxu1 %v12125_v17  ;;  %v5333_v16 = vld [vmem:[#allocation3 + $0x67] sm:$0xff] }
 0x2e1   : > { %vm15259_vm0 = vcmp.lt.s32.totalorder %v18251_v62, 16  ;;  %vm18256_vm5 = vcmask 1043456   ;;  %vm18258_vm12 = vnez %v18257_v47  ;;  %v5235_v32 = vsel %vm15185_vm13, %v5043_v23, 0.0  ;;  %v12127_v39 = vld [vmem:[#allocation9 + $0x1a0] sm:$0xff]   ;;  %v18264_v47 = vld [vmem:[#allocation61_spill] sm:$0xff]  ;;  %v3460_v22 = vpop.f32.mrf.mxu1  ;;  %v3750_v28 = vpop.f32.mrf.mxu0 }
 0x2e2   : > { %v5466_v19 = vsel %vm18256_vm5, %v5463_v4, %v5465_v48  ;;  %v18261_v36 = vsel %vm18258_vm12, %v18259_v37, %v18260_v14  ;;  %v5041_v52 = vmax.f32 %v4993_v24, 0.0  ;;  %v3878_v9 = vadd.f32 %v3747_v1, %v3458_v40  ;;  %5291 = vst [vmem:[#allocation3 + $0xb0] sm:$0xff] %v5235_v32  ;;  %v18265_v14 = vld [vmem:[#allocation136_spill] sm:$0xff]  ;;  %v5334_v23 = vld [vmem:[#allocation3 + $0x6f] sm:$0xff]  ;;  %v12134_v24 = vld [vmem:[#allocation9 + $0x108] sm:$0xff]  }
 0x2e3   : > { %vm15274_vm15 = vcmp.lt.s32.totalorder %v18261_v36, 16  ;;  %11212 = vmatprep.mubr.bf16.mxu1 %v5466_v19  ;;  %v15280_v4 = vpack.c.bf16 %v5332_v34, %v5331_v63  ;;  %v4996_v58 = vadd.f32 %v14920_v33, %v4941_v21  ;;  %v4939_v20 = vmul.f32 %v14888_v29, %v3971_v57  ;;  %v18266_v34 = vld [vmem:[#allocation62_spill] sm:$0xff]  ;;  %v18267_v21 = vld [vmem:[#allocation77_spill] sm:$0xff]  ;;  %v18270_v19 = vld [vmem:[#allocation147_spill] sm:$0xff]  ;;  %11325 = vmatpush3.bf16.msra.mxu1 %v12125_v17 }
 0x2e4   : > { %v3976_v37 = vadd.f32 %v3880_v7, %v18264_v47  ;;  %v3469_v36 = vadd.f32 %v11103_v51, %v18265_v14  ;;  %v5233_v1 = vsel %vm15202_vm1, %v5041_v52, 0.0  ;;  %v3974_v40 = vadd.f32 %v3878_v9, %v18266_v34  ;;  %v18269_v57 = vld [vmem:[#allocation153_spill] sm:$0xff]  ;;  %11326 = vmatprep.subr.bf16.mxu1 %v12127_v39  ;;  %11396 = vmatprep.subr.bf16.mxu0 %v12134_v24  ;;  %v18312_v63 = vld [vmem:[#allocation72_spill] sm:$0xff] }
 0x2e5   : > { %11281 = vmatmul.mubr.bf16.gmra.mxu0 %v15280_v4  ;;  %vm18268_vm13 = vnez %v18267_v21  ;;  %v5467_v51 = vrot.slane %v15280_v4, 4  ;;  %v18274_v32 = vld [vmem:[#allocation137_spill] sm:$0xff]  ;;  %5289 = vst [vmem:[#allocation3 + $0xa0] sm:$0xff] %v5233_v1  ;;  %v5044_v25 = vmax.f32 %v4996_v58, 0.0  ;;  %v4994_v52 = vadd.f32 %v14920_v33, %v4939_v20  ;;  %v18278_v1 = vld [vmem:[#allocation63_spill] sm:$0xff] }
 0x2e6   : > { %v18271_v7 = vsel %vm18268_vm13, %v18269_v57, %v18270_v19  ;;  %v3461_v47 = vadd.f32 %v3460_v22, %v18274_v32  ;;  %v4944_v9 = vmul.f32 %v14888_v29, %v3976_v37  ;;  %v3881_v14 = vadd.f32 %v11167_v5, %v3469_v36  ;;  %v11106_v57 = vpop.f32.mrf.mxu1  ;;  %v11170_v19 = vpop.f32.mrf.mxu0  ;;  %v15316_v5 = vld [vmem:[#allocation9 + $0x100] sm:$0xff]   ;;  %v5336_v32 = vld [vmem:[#allocation3 + $0x7f] sm:$0xff]  ;;  %11397 = vmatpush3.bf16.msra.mxu0 %v12134_v24 }
 0x2e7   : > { %vm15295_vm7 = vcmp.lt.s32.totalorder %v18271_v7, 16  ;;  %v18275_v34 = vsel %vm14560_vm14, %v14519_v11, %v14458_v44  ;;  %v4942_v58 = vmul.f32 %v14888_v29, %v3974_v40  ;;  %v5468_v20 = vsel %vm18256_vm5, %v5465_v48, %v5467_v51  ;;  %v18279_v48 = vld [vmem:[#allocation64_spill] sm:$0xff]  ;;  %11327 = vmatpush3.bf16.msra.mxu1 %v12127_v39  ;;  %11398 = vmatprep.subr.bf16.mxu0 %v15316_v5 }
 0x2e8   : > { %vm15308_vm1 = vcmp.lt.s32.totalorder %v18275_v34, 16  ;;  %v3879_v22 = vadd.f32 %v3750_v28, %v3461_v47  ;;  %v15314_v37 = vpack.c.bf16 %v5334_v23, %v5333_v16  ;;  %v5236_v44 = vsel %vm15225_vm2, %v5044_v25, 0.0  ;;  %11213 = vmatmul.mubr.bf16.gmra.mxu1 %v5468_v20  ;;  %v3473_v3 = vpop.f32.mrf.mxu1  ;;  %v3763_v40 = vpop.f32.mrf.mxu0  ;;  %v18280_v23 = vld [vmem:[#allocation140_spill] sm:$0xff]  ;;  %v18283_v34 = vld [vmem:[#allocation155_spill] sm:$0xff]  ;;  %vm18288_vm2 = vmmov %vm18256_vm5  ;;  %11328 = vmatprep.subr.bf16.mxu1 %v12129_v31 }
 0x2e9   : > { %v5042_v11 = vmax.f32 %v4994_v52, 0.0  ;;  %v4999_v36 = vadd.f32 %v14920_v33, %v4944_v9  ;;  %v3977_v17 = vadd.f32 %v3881_v14, %v18278_v1  ;;  %5292 = vst [vmem:[#allocation3 + $0xb8] sm:$0xff] %v5236_v44  ;;  %v4997_v28 = vadd.f32 %v14920_v33, %v4942_v58  ;;  %v18282_v14 = vld [vmem:[#allocation157_spill] sm:$0xff]  ;;  %v12131_v39 = vld [vmem:[#allocation9 + $0x190] sm:$0xff]   ;;  %vm18310_vm5 = vmmov %vm18288_vm2 }
 0x2ea   : > { %v3975_v16 = vadd.f32 %v3879_v22, %v18279_v48  ;;  %11284 = vmatprep.mubr.bf16.mxu0 %v15314_v37  ;;  %v3482_v7 = vadd.f32 %v11106_v57, %v18280_v23  ;;  %v5469_v8 = vrot.slane %v15314_v37, 4  ;;  %v18284_v58 = vsel %vm14576_vm3, %v18282_v14, %v18283_v34  ;;  %v18287_v22 = vld [vmem:[#allocation69_spill] sm:$0xff]  ;;  %v11107_v44 = vpop.f32.mrf.mxu1  ;;  %v11171_v1 = vpop.f32.mrf.mxu0  ;;  %11399 = vmatpush3.bf16.msra.mxu0 %v15316_v5  ;;  %v18331_v20 = vld [vmem:[#allocation167_spill] sm:$0xff] }
 0x2eb   : > { %v5234_v47 = vsel %vm15243_vm9, %v5042_v11, 0.0  ;;  %v5047_v25 = vmax.f32 %v4999_v36, 0.0  ;;  %v4945_v52 = vmul.f32 %v14888_v29, %v3977_v17  ;;  %vm15335_vm14 = vcmp.lt.s32.totalorder %v18284_v58, 16  ;;  %v18293_v14 = vld [vmem:[#allocation65_spill] sm:$0xff]  ;;  %v18297_v58 = vld [vmem:[#allocation160_spill] sm:$0xff]  ;;  %11329 = vmatpush3.bf16.msra.mxu1 %v12129_v31 }
 0x2ec   : > { %v3474_v57 = vadd.f32 %v3473_v3, %v18287_v22  ;;  %5290 = vst [vmem:[#allocation3 + $0xa8] sm:$0xff] %v5234_v47  ;;  %v5045_v15 = vmax.f32 %v4997_v28, 0.0  ;;  %v4943_v11 = vmul.f32 %v14888_v29, %v3975_v16  ;;  %v3884_v36 = vadd.f32 %v11170_v19, %v3482_v7  ;;  %v5335_v3 = vld [vmem:[#allocation3 + $0x77] sm:$0xff]  ;;  %v3476_v28 = vpop.f32.mrf.mxu1  ;;  %v5338_v16 = vld [vmem:[#allocation3 + $0x8f] sm:$0xff]  ;;  %v18298_v22 = vld [vmem:[#allocation156_spill] sm:$0xff]  ;;  %11330 = vmatprep.subr.bf16.mxu1 %v12131_v39 }
 0x2ed   : > { %v5470_v17 = vsel %vm18288_vm2, %v5467_v51, %v5469_v8  ;;  %vm18289_vm9 = vnez %v18009_v50  ;;  %v5239_v24 = vsel %vm15259_vm0, %v5047_v25, 0.0  ;;  %v5000_v19 = vadd.f32 %v14920_v33, %v4945_v52  ;;  %v12138_v7 = vld [vmem:[#allocation9 + $0x1f8] sm:$0xff]   ;;  %v18294_v25 = vld [vmem:[#allocation143_spill] sm:$0xff] }
 0x2ee   : > { %v18290_v48 = vsel %vm18289_vm9, %v14543_v43, %v14490_v41  ;;  %11216 = vmatprep.mubr.bf16.mxu1 %v5470_v17  ;;  %v3882_v51 = vadd.f32 %v3763_v40, %v3474_v57  ;;  %v15355_v50 = vpack.c.bf16 %v5336_v32, %v5335_v3  ;;  %v3766_v41 = vpop.f32.mrf.mxu0  ;;  %v5337_v43 = vld [vmem:[#allocation3 + $0x87] sm:$0xff]  ;;  %5295 = vst [vmem:[#allocation3 + $0xd0] sm:$0xff] %v5239_v24  ;;  %v5237_v47 = vsel %vm15274_vm15, %v5045_v15, 0.0  ;;  %v18295_v40 = vld [vmem:[#allocation66_spill] sm:$0xff] }
 0x2ef   : > { %vm15347_vm3 = vcmp.lt.s32.totalorder %v18290_v48, 16  ;;  %v4998_v9 = vadd.f32 %v14920_v33, %v4943_v11  ;;  %v3980_v30 = vadd.f32 %v3884_v36, %v18293_v14  ;;  %v3485_v34 = vadd.f32 %v11107_v44, %v18294_v25  ;;  %5293 = vst [vmem:[#allocation3 + $0xc0] sm:$0xff] %v5237_v47  ;;  %v18302_v11 = vld [vmem:[#allocation71_spill] sm:$0xff]  ;;  %v11110_v44 = vpop.f32.mrf.mxu1  ;;  %11512 = vmatprep.subr.bf16.mxu0 %v12138_v7 }
 0x2f0   : > { %v5048_v52 = vmax.f32 %v5000_v19, 0.0  ;;  %v3978_v32 = vadd.f32 %v3882_v51, %v18295_v40  ;;  %11285 = vmatmul.mubr.bf16.gmra.mxu0 %v15355_v50  ;;  %vm18296_vm0 = vnez %v18017_v2  ;;  %v5471_v15 = vrot.slane %v15355_v50, 4  ;;  %v11174_v17 = vpop.f32.mrf.mxu0  ;;  %v18303_v19 = vld [vmem:[#allocation163_spill] sm:$0xff]  ;;  %v18305_v2 = vld [vmem:[#allocation162_spill] sm:$0xff]  ;;  %11331 = vmatpush3.bf16.msra.mxu1 %v12131_v39 }
 0x2f1   : > { %v18299_v57 = vsel %vm18296_vm0, %v18297_v58, %v18298_v22  ;;  %v3477_v36 = vadd.f32 %v3476_v28, %v18302_v11  ;;  %v5046_v48 = vmax.f32 %v4998_v9, 0.0  ;;  %v4948_v3 = vmul.f32 %v14888_v29, %v3980_v30  ;;  %v18306_v51 = vld [vmem:[#allocation158_spill] sm:$0xff]  ;;  %v12133_v28 = vld [vmem:[#allocation9 + $0x188] sm:$0xff]   ;;  %v18318_v11 = vld [vmem:[#allocation73_spill] sm:$0xff] }
 0x2f2   : > { %vm15369_vm12 = vcmp.lt.s32.totalorder %v18299_v57, 16  ;;  %v3885_v24 = vadd.f32 %v11171_v1, %v3485_v34  ;;  %vm18304_vm15 = vnez %v18303_v19  ;;  %v15385_v25 = vpack.c.bf16 %v5338_v16, %v5337_v43  ;;  %v3489_v34 = vpop.f32.mrf.mxu1  ;;  %v3779_v40 = vpop.f32.mrf.mxu0  ;;  %v5340_v58 = vld [vmem:[#allocation3 + $0x9f] sm:$0xff]  ;;  %11332 = vmatprep.subr.bf16.mxu1 %v12133_v28  ;;  %vm18326_vm0 = vmmov %vm18310_vm5 }
 0x2f3   : > { %v18307_v47 = vsel %vm18304_vm15, %v18305_v2, %v18306_v51  ;;  %v5240_v31 = vsel %vm15295_vm7, %v5048_v52, 0.0  ;;  %v4946_v1 = vmul.f32 %v14888_v29, %v3978_v32  ;;  %v5472_v9 = vsel %vm18310_vm5, %v5469_v8, %v5471_v15  ;;  %v18311_v22 = vld [vmem:[#allocation67_spill] sm:$0xff]  ;;  %v18321_v51 = vld [vmem:[#allocation168_spill] sm:$0xff]  ;;  %vm18362_vm10 = vmmov %vm18326_vm0 }
 0x2f4   : > { %vm15381_vm13 = vcmp.lt.s32.totalorder %v18307_v47, 16  ;;  %v3883_v30 = vadd.f32 %v3766_v41, %v3477_v36  ;;  %5296 = vst [vmem:[#allocation3 + $0xd8] sm:$0xff] %v5240_v31  ;;  %v5238_v43 = vsel %vm15308_vm1, %v5046_v48, 0.0  ;;  %v5003_v16 = vadd.f32 %v14920_v33, %v4948_v3  ;;  %11217 = vmatmul.mubr.bf16.gmra.mxu1 %v5472_v9  ;;  %11288 = vmatprep.mubr.bf16.mxu0 %v15385_v25  ;;  %v18313_v41 = vld [vmem:[#allocation68_spill] sm:$0xff]  ;;  %v5339_v48 = vld [vmem:[#allocation3 + $0x97] sm:$0xff]  ;;  %v11175_v3 = vpop.f32.mrf.mxu0 }
 0x2f5   : > { %v3981_v5 = vadd.f32 %v3885_v24, %v18311_v22  ;;  %v3498_v52 = vadd.f32 %v11110_v44, %v18312_v63  ;;  %5294 = vst [vmem:[#allocation3 + $0xc8] sm:$0xff] %v5238_v43  ;;  %v5001_v8 = vadd.f32 %v14920_v33, %v4946_v1  ;;  %vm18314_vm7 = vnez %v18041_v0  ;;  %v11111_v44 = vpop.f32.mrf.mxu1  ;;  %v18319_v0 = vld [vmem:[#allocation169_spill] sm:$0xff]  ;;  %v12136_v1 = vld [vmem:[#allocation9 + $0x180] sm:$0xff]  }
 0x2f6   : > { %v3979_v32 = vadd.f32 %v3883_v30, %v18313_v41  ;;  %v18315_v21 = vsel %vm18314_vm7, %v14691_v13, %v14612_v45  ;;  %v5473_v57 = vrot.slane %v15385_v25, 4  ;;  %v3490_v36 = vadd.f32 %v3489_v34, %v18318_v11  ;;  %v18322_v45 = vld [vmem:[#allocation164_spill] sm:$0xff]  ;;  %v3782_v43 = vpop.f32.mrf.mxu0  ;;  %11333 = vmatpush3.bf16.msra.mxu1 %v12133_v28 }
 0x2f7   : > { %vm15405_vm1 = vcmp.lt.s32.totalorder %v18315_v21, 16  ;;  %v5051_v24 = vmax.f32 %v5003_v16, 0.0  ;;  %v4949_v19 = vmul.f32 %v14888_v29, %v3981_v5  ;;  %v3888_v2 = vadd.f32 %v11174_v17, %v3498_v52  ;;  %v3492_v17 = vpop.f32.mrf.mxu1  ;;  %v18327_v5 = vld [vmem:[#allocation20_spill] sm:$0xff]  ;;  %v5342_v21 = vld [vmem:[#allocation3 + $0xaf] sm:$0xff]  ;;  %11334 = vmatprep.subr.bf16.mxu1 %v12136_v1 }
 0x2f8   : > { %vm18320_vm2 = vnez %v18319_v0  ;;  %v15421_v31 = vpack.c.bf16 %v5340_v58, %v5339_v48  ;;  %v5049_v9 = vmax.f32 %v5001_v8, 0.0  ;;  %v4947_v39 = vmul.f32 %v14888_v29, %v3979_v32  ;;  %v18328_v58 = vld [vmem:[#allocation74_spill] sm:$0xff]  ;;  %v5341_v41 = vld [vmem:[#allocation3 + $0xa7] sm:$0xff]  ;;  %v11178_v23 = vpop.f32.mrf.mxu0 }
 0x2f9   : > { %v18323_v13 = vsel %vm18320_vm2, %v18321_v51, %v18322_v45  ;;  %v5474_v30 = vsel %vm18326_vm0, %v5471_v15, %v5473_v57  ;;  %v3886_v34 = vadd.f32 %v3779_v40, %v3490_v36  ;;  %v5243_v16 = vsel %vm15335_vm14, %v5051_v24, 0.0  ;;  %v18329_v40 = vld [vmem:[#allocation18_spill] sm:$0xff]  ;;  %v18368_v36 = vld [vmem:[#allocation159_spill] sm:$0xff]  ;;  %vm18374_vm2 = vmmov %vm18326_vm0 }
 0x2fa   : > { %vm15417_vm9 = vcmp.lt.s32.totalorder %v18323_v13, 16  ;;  %v5004_v22 = vadd.f32 %v14920_v33, %v4949_v19  ;;  %v3984_v63 = vadd.f32 %v3888_v2, %v18327_v5  ;;  %11220 = vmatprep.mubr.bf16.mxu1 %v5474_v30  ;;  %v3501_v52 = vadd.f32 %v11111_v44, %v18328_v58  ;;  %5299 = vst [vmem:[#allocation3 + $0xf0] sm:$0xff] %v5243_v16  ;;  %v11114_v44 = vpop.f32.mrf.mxu1  ;;  %v18335_v0 = vld [vmem:[#allocation150_spill] sm:$0xff]  ;;  %v18339_v30 = vld [vmem:[#allocation175_spill] sm:$0xff]  ;;  %v3795_v16 = vpop.f32.mrf.mxu0 }
 0x2fb   : > { %v5241_v8 = vsel %vm15347_vm3, %v5049_v9, 0.0  ;;  %v5002_v15 = vadd.f32 %v14920_v33, %v4947_v39  ;;  %v3982_v32 = vadd.f32 %v3886_v34, %v18329_v40  ;;  %11289 = vmatmul.mubr.bf16.gmra.mxu0 %v15421_v31  ;;  %vm18330_vm14 = vnez %v18059_v35  ;;  %v15447_v35 = vld [vmem:[#allocation9 + $0x78] sm:$0xff]   ;;  %vm18336_vm3 = vmmov %vm18326_vm0  ;;  %v18338_v39 = vld [vmem:[#allocation179_spill] sm:$0xff]  ;;  %11335 = vmatpush3.bf16.msra.mxu1 %v12136_v1 }
 0x2fc   : > { %v18332_v11 = vsel %vm18330_vm14, %v14745_v42, %v18331_v20  ;;  %v5475_v48 = vrot.slane %v15421_v31, 4  ;;  %5297 = vst [vmem:[#allocation3 + $0xe0] sm:$0xff] %v5241_v8  ;;  %v5052_v24 = vmax.f32 %v5004_v22, 0.0  ;;  %v4952_v19 = vmul.f32 %v14888_v29, %v3984_v63  ;;  %v18343_v63 = vld [vmem:[#allocation21_spill] sm:$0xff]  ;;  %11448 = vmatprep.subr.bf16.mxu1 %v15447_v35  ;;  %v18373_v34 = vld [vmem:[#allocation80_spill] sm:$0xff] }
 0x2fd   : > { %vm15440_vm15 = vcmp.lt.s32.totalorder %v18332_v11, 16  ;;  %v3889_v2 = vadd.f32 %v11175_v3, %v3501_v52  ;;  %v3493_v51 = vadd.f32 %v3492_v17, %v18335_v0  ;;  %v5050_v42 = vmax.f32 %v5002_v15, 0.0  ;;  %v3505_v17 = vpop.f32.mrf.mxu1  ;;  %v5344_v52 = vld [vmem:[#allocation3 + $0xbf] sm:$0xff]  ;;  %v18345_v11 = vld [vmem:[#allocation22_spill] sm:$0xff] }
 0x2fe   : > { %v4950_v45 = vmul.f32 %v14888_v29, %v3982_v32  ;;  %v5476_v13 = vsel %vm18336_vm3, %v5473_v57, %v5475_v48  ;;  %v18340_v28 = vsel %vm14823_vm8, %v18338_v39, %v18339_v30  ;;  %v15460_v3 = vpack.c.bf16 %v5342_v21, %v5341_v41  ;;  %v18344_v41 = vld [vmem:[#allocation152_spill] sm:$0xff]  ;;  %v11179_v32 = vpop.f32.mrf.mxu0  ;;  %v5343_v0 = vld [vmem:[#allocation3 + $0xb7] sm:$0xff]  ;;  %vm18392_vm3 = vmmov %vm18374_vm2 }
 0x2ff   : > { %vm15456_vm5 = vcmp.lt.s32.totalorder %v18340_v28, 16  ;;  %v5244_v22 = vsel %vm15369_vm12, %v5052_v24, 0.0  ;;  %v5007_v5 = vadd.f32 %v14920_v33, %v4952_v19  ;;  %v3985_v57 = vadd.f32 %v3889_v2, %v18343_v63  ;;  %11221 = vmatmul.mubr.bf16.gmra.mxu1 %v5476_v13  ;;  %v11115_v40 = vpop.f32.mrf.mxu1  ;;  %vm18350_vm12 = vmmov %vm18326_vm0  ;;  %v5345_v28 = vld [vmem:[#allocation3 + $0xc7] sm:$0xff] }
 0x300   : > { %v3887_v58 = vadd.f32 %v3782_v43, %v3493_v51  ;;  %5300 = vst [vmem:[#allocation3 + $0xf8] sm:$0xff] %v5244_v22  ;;  %v5242_v8 = vsel %vm15381_vm13, %v5050_v42, 0.0  ;;  %v5005_v15 = vadd.f32 %v14920_v33, %v4950_v45  ;;  %11292 = vmatprep.mubr.bf16.mxu0 %v15460_v3  ;;  %v3514_v21 = vadd.f32 %v11114_v44, %v18344_v41  ;;  %v18349_v44 = vld [vmem:[#allocation154_spill] sm:$0xff]  ;;  %v3798_v9 = vpop.f32.mrf.mxu0  ;;  %v15550_v45 = vld [vmem:[%s17445_s3] ss:$0 sm:$0xff] }
 0x301   : > { %v5477_v62 = vrot.slane %v15460_v3, 4  ;;  %5298 = vst [vmem:[#allocation3 + $0xe8] sm:$0xff] %v5242_v8  ;;  %v5055_v20 = vmax.f32 %v5007_v5, 0.0  ;;  %v4953_v43 = vmul.f32 %v14888_v29, %v3985_v57  ;;  %v18346_v14 = vsel %vm14859_vm6, %v14836_v56, %v14782_v27  ;;  %v3508_v13 = vpop.f32.mrf.mxu1  ;;  %v18356_v5 = vld [vmem:[#allocation78_spill] sm:$0xff]  ;;  %v18357_v8 = vld [vmem:[#allocation19_spill] sm:$0xff] }
 0x302   : > { %v3983_v24 = vadd.f32 %v3887_v58, %v18345_v11  ;;  %vm15479_vm8 = vcmp.lt.s32.totalorder %v18346_v14, 16  ;;  %v3506_v2 = vadd.f32 %v3505_v17, %v18349_v44  ;;  %v5053_v1 = vmax.f32 %v5005_v15, 0.0  ;;  %v5346_v17 = vld [vmem:[#allocation3 + $0xcf] sm:$0xff]  ;;  %v11182_v58 = vpop.f32.mrf.mxu0 }
 0x303   : > { %v3892_v51 = vadd.f32 %v11178_v23, %v3514_v21  ;;  %v5478_v42 = vsel %vm18350_vm12, %v5475_v48, %v5477_v62  ;;  %vm15491_vm13 = vcmp.lt.s32.totalorder %v18352_v46, 16  ;;  %v15495_v56 = vpack.c.bf16 %v5344_v52, %v5343_v0  ;;  %v11118_v57 = vpop.f32.mrf.mxu1  ;;  %v18361_v21 = vld [vmem:[#allocation79_spill] sm:$0xff] }
 0x304   : > { %v5247_v39 = vsel %vm15405_vm1, %v5055_v20, 0.0  ;;  %v5008_v23 = vadd.f32 %v14920_v33, %v4953_v43  ;;  %v4951_v48 = vmul.f32 %v14888_v29, %v3983_v24  ;;  %11224 = vmatprep.mubr.bf16.mxu1 %v5478_v42  ;;  %v3890_v30 = vadd.f32 %v3795_v16, %v3506_v2 }
 0x305   : > { %5303 = vst [vmem:[#allocation3 + $0x110] sm:$0xff] %v5247_v39  ;;  %v5245_v60 = vsel %vm15417_vm9, %v5053_v1, 0.0  ;;  %v3988_v22 = vadd.f32 %v3892_v51, %v18355_v53  ;;  %11293 = vmatmul.mubr.bf16.gmra.mxu0 %v15495_v56  ;;  %v3517_v63 = vadd.f32 %v11115_v40, %v18356_v5  ;;  %v5479_v7 = vrot.slane %v15495_v56, 4 }
 0x306   : > { %5301 = vst [vmem:[#allocation3 + $0x100] sm:$0xff] %v5245_v60  ;;  %v5056_v52 = vmax.f32 %v5008_v23, 0.0  ;;  %v5006_v16 = vadd.f32 %v14920_v33, %v4951_v48  ;;  %v3986_v15 = vadd.f32 %v3890_v30, %v18357_v8  ;;  %v18358_v47 = vsel %vm14910_vm11, %v14902_v10, %v14867_v61  ;;  %v3521_v10 = vpop.f32.mrf.mxu1  ;;  %v5348_v48 = vld [vmem:[#allocation3 + $0xdf] sm:$0xff] }
 0x307   : > { %vm15514_vm6 = vcmp.lt.s32.totalorder %v18358_v47, 16  ;;  %v3509_v40 = vadd.f32 %v3508_v13, %v18361_v21  ;;  %v4956_v20 = vmul.f32 %v14888_v29, %v3988_v22  ;;  %v3893_v43 = vadd.f32 %v11179_v32, %v3517_v63  ;;  %v15537_v29 = vld [vmem:[%s17444_s2] ss:$0 sm:$0xff]  ;;  %v18367_v32 = vld [vmem:[#allocation26_spill] sm:$0xff]  ;;  %v18376_v8 = vld [vmem:[#allocation27_spill] sm:$0xff] }
 0x308   : > { %v5480_v11 = vsel %vm18362_vm10, %v5477_v62, %v5479_v7  ;;  %vm18363_vm7 = vnez %v18111_v55  ;;  %v15530_v61 = vpack.c.bf16 %v5346_v17, %v5345_v28  ;;  %v5248_v14 = vsel %vm15440_vm15, %v5056_v52, 0.0  ;;  %v11119_v51 = vpop.f32.mrf.mxu1  ;;  %v5347_v63 = vld [vmem:[#allocation3 + $0xd7] sm:$0xff]  ;;  %v18377_v21 = vld [vmem:[#allocation28_spill] sm:$0xff]  ;;  %vm18384_vm15 = vmmov %vm18374_vm2 }
 0x309   : > { %v18364_v24 = vsel %vm18363_vm7, %v14958_v18, %v14936_v54  ;;  %v5054_v44 = vmax.f32 %v5006_v16, 0.0  ;;  %v4954_v55 = vmul.f32 %v15537_v29, %v3986_v15  ;;  %11225 = vmatmul.mubr.bf16.gmra.mxu1 %v5480_v11  ;;  %v3891_v54 = vadd.f32 %v3798_v9, %v3509_v40  ;;  %v3811_v18 = vpop.f32.mrf.mxu0  ;;  %5304 = vst [vmem:[#allocation3 + $0x118] sm:$0xff] %v5248_v14  ;;  %v18378_v40 = vld [vmem:[#allocation166_spill] sm:$0xff]  ;;  %v18379_v11 = vld [vmem:[#allocation161_spill] sm:$0xff] }
 0x30a   : > { %vm15526_vm1 = vcmp.lt.s32.totalorder %v18364_v24, 16  ;;  %v5011_v62 = vadd.f32 %v14920_v33, %v4956_v20  ;;  %v3989_v2 = vadd.f32 %v3893_v43, %v18367_v32  ;;  %11296 = vmatprep.mubr.bf16.mxu0 %v15530_v61  ;;  %v3530_v0 = vadd.f32 %v11118_v57, %v18368_v36  ;;  %v18369_v33 = vld [vmem:[#allocation23_spill] sm:$0xff]  ;;  %v3524_v53 = vpop.f32.mrf.mxu1 }
 0x30b   : > { %v5481_v1 = vrot.slane %v15530_v61, 4  ;;  %v5246_v42 = vsel %vm15456_vm5, %v5054_v44, 0.0  ;;  %v5009_v46 = vadd.f32 %v15550_v45, %v4954_v55  ;;  %v3987_v13 = vadd.f32 %v3891_v54, %v18369_v33  ;;  %v11183_v57 = vpop.f32.mrf.mxu0  ;;  %v5350_v33 = vld [vmem:[#allocation3 + $0xef] sm:$0xff] }
 0x30c   : > { %v18370_v9 = vsel %vm15059_vm4, %v15049_v26, %v14990_v38  ;;  %v3522_v23 = vadd.f32 %v3521_v10, %v18373_v34  ;;  %5302 = vst [vmem:[#allocation3 + $0x108] sm:$0xff] %v5246_v42  ;;  %v5059_v30 = vmax.f32 %v5011_v62, 0.0  ;;  %v4957_v28 = vmul.f32 %v15537_v29, %v3989_v2  ;;  %v11122_v14 = vpop.f32.mrf.mxu1  ;;  %v18383_v34 = vld [vmem:[#allocation30_spill] sm:$0xff] }
 0x30d   : > { %vm15559_vm11 = vcmp.lt.s32.totalorder %v18370_v9, 16  ;;  %v3896_v17 = vadd.f32 %v11182_v58, %v3530_v0  ;;  %v5482_v60 = vsel %vm18374_vm2, %v5479_v7, %v5481_v1  ;;  %v5057_v22 = vmax.f32 %v5009_v46, 0.0  ;;  %v3814_v55 = vpop.f32.mrf.mxu0  ;;  %v18380_v0 = vld [vmem:[#allocation170_spill] sm:$0xff]  ;;  %v5349_v46 = vld [vmem:[#allocation3 + $0xe7] sm:$0xff] }
 0x30e   : > { %v4955_v59 = vmul.f32 %v15537_v29, %v3987_v13  ;;  %11228 = vmatprep.mubr.bf16.mxu1 %v5482_v60  ;;  %v3894_v38 = vadd.f32 %v3811_v18, %v3522_v23  ;;  %v18375_v26 = vshrl.u32 %v14970_v49, 4  ;;  %v5251_v52 = vsel %vm15479_vm8, %v5059_v30, 0.0  ;;  %v18385_v30 = vld [vmem:[#allocation82_spill] sm:$0xff] }
 0x30f   : > { %v5012_v16 = vadd.f32 %v15550_v45, %v4957_v28  ;;  %v3992_v58 = vadd.f32 %v3896_v17, %v18376_v8  ;;  %v15573_v15 = vpack.c.bf16 %v5348_v48, %v5347_v63  ;;  %5307 = vst [vmem:[#allocation3 + $0x130] sm:$0xff] %v5251_v52  ;;  %v5249_v7 = vsel %vm15491_vm13, %v5057_v22, 0.0  ;;  %v3537_v48 = vpop.f32.mrf.mxu1  ;;  %v18386_v17 = vld [vmem:[#allocation171_spill] sm:$0xff]  ;;  %v18387_v52 = vld [vmem:[#allocation165_spill] sm:$0xff] }
 0x310   : > { %v4502_v5 = vmul.u32 24, %v18375_v26  ;;  %v5010_v47 = vadd.f32 %v15550_v45, %v4955_v59  ;;  %v3990_v49 = vadd.f32 %v3894_v38, %v18377_v21  ;;  %5305 = vst [vmem:[#allocation3 + $0x120] sm:$0xff] %v5249_v7  ;;  %v3533_v24 = vadd.f32 %v11119_v51, %v18379_v11  ;;  %v11186_v59 = vpop.f32.mrf.mxu0 }
 0x311   : > { %v5060_v43 = vmax.f32 %v5012_v16, 0.0  ;;  %v4960_v19 = vmul.f32 %v15537_v29, %v3992_v58  ;;  %11297 = vmatmul.mubr.bf16.gmra.mxu0 %v15573_v15  ;;  %v5483_v10 = vrot.slane %v15573_v15, 4  ;;  %v3525_v28 = vadd.f32 %v3524_v53, %v18385_v30  ;;  %v18388_v16 = vld [vmem:[#allocation83_spill] sm:$0xff] }
 0x312   : > { %v4503_v20 = vsub.s32 %v18378_v40, %v4502_v5  ;;  %v5058_v44 = vmax.f32 %v5010_v47, 0.0  ;;  %v4958_v62 = vmul.f32 %v15537_v29, %v3990_v49  ;;  %v3897_v32 = vadd.f32 %v11183_v57, %v3533_v24  ;;  %v5352_v58 = vld [vmem:[#allocation3 + $0xff] sm:$0xff]  ;;  %v3827_v24 = vpop.f32.mrf.mxu0 }
 0x313   : > { %v5252_v54 = vsel %vm15514_vm6, %v5060_v43, 0.0  ;;  %v5015_v18 = vadd.f32 %v15550_v45, %v4960_v19  ;;  %v15591_v51 = vmul.u32.u64.low 2863311531, %v18380_v0  ;;  %v15592_v42 = vmul.u32.u64.high 2863311531, %v18380_v0, %v15591_v51  ;;  %v18389_v47 = vld [vmem:[#allocation172_spill] sm:$0xff] }
 0x314   : > { %vm4663_vm4 = vcmp.ne.s32.totalorder %v4503_v20, 0  ;;  %vm4711_vm9 = vcmp.lt.s32.totalorder %v4503_v20, 0  ;;  %v4807_v27 = vadd.s32 24, %v4503_v20  ;;  %5308 = vst [vmem:[#allocation3 + $0x138] sm:$0xff] %v5252_v54  ;;  %v5250_v2 = vsel %vm15526_vm1, %v5058_v44, 0.0  ;;  %v11123_v44 = vpop.f32.mrf.mxu1 }
 0x315   : > { %vm4759_vm0 = vmand %vm4711_vm9, %vm4663_vm4  ;;  %5306 = vst [vmem:[#allocation3 + $0x128] sm:$0xff] %v5250_v2  ;;  %v5063_v41 = vmax.f32 %v5015_v18, 0.0  ;;  %v5013_v13 = vadd.f32 %v15550_v45, %v4958_v62  ;;  %v3993_v23 = vadd.f32 %v3897_v32, %v18383_v34  ;;  %v5484_v12 = vsel %vm18384_vm15, %v5481_v1, %v5483_v10 }
 0x316   : > { %v4855_v36 = vsel %vm4759_vm0, %v4807_v27, %v4503_v20  ;;  %v15605_v60 = vmul.u32.u64.low 2863311531, %v18386_v17  ;;  %v15606_v22 = vmul.u32.u64.high 2863311531, %v18386_v17, %v15605_v60  ;;  %11229 = vmatmul.mubr.bf16.gmra.mxu1 %v5484_v12  ;;  %v15611_v63 = vpack.c.bf16 %v5350_v33, %v5349_v46  ;;  %v18390_v20 = vld [vmem:[#allocation25_spill] sm:$0xff]  ;;  %vm18402_vm0 = vmmov %vm18392_vm3 }
 0x317   : > { %vm15595_vm14 = vcmp.lt.s32.totalorder %v4855_v36, 16  ;;  %v5255_v38 = vsel %vm15559_vm11, %v5063_v41, 0.0  ;;  %v5061_v26 = vmax.f32 %v5013_v13, 0.0  ;;  %v4961_v5 = vmul.f32 %v15537_v29, %v3993_v23  ;;  %v18391_v36 = vld [vmem:[#allocation32_spill] sm:$0xff]  ;;  %v18393_v33 = vld [vmem:[#allocation29_spill] sm:$0xff] }
 0x318   : > { %5311 = vst [vmem:[#allocation3 + $0x150] sm:$0xff] %v5255_v38  ;;  %v4534_v57 = vshrl.u32 %v15592_v42, 4  ;;  %v3895_v1 = vadd.f32 %v3814_v55, %v3525_v28  ;;  %v3546_v53 = vadd.f32 %v11122_v14, %v18387_v52  ;;  %v3538_v8 = vadd.f32 %v3537_v48, %v18388_v16  ;;  %11300 = vmatprep.mubr.bf16.mxu0 %v15611_v63  ;;  %v5351_v14 = vld [vmem:[#allocation3 + $0xf7] sm:$0xff]  ;;  %v18394_v13 = vld [vmem:[#allocation84_spill] sm:$0xff]  ;;  %v3540_v52 = vpop.f32.mrf.mxu1 }
 0x319   : > { %v5253_v7 = vsel %vm15595_vm14, %v5061_v26, 0.0  ;;  %v5016_v39 = vadd.f32 %v15550_v45, %v4961_v5  ;;  %v15621_v21 = vmul.u32.u64.low 2863311531, %v18389_v47  ;;  %v15622_v49 = vmul.u32.u64.high 2863311531, %v18389_v47, %v15621_v21  ;;  %v18395_v26 = vld [vmem:[#allocation173_spill] sm:$0xff]  ;;  %vm18409_vm14 = vmmov %vm18402_vm0 }
 0x31a   : > { %5309 = vst [vmem:[#allocation3 + $0x140] sm:$0xff] %v5253_v7  ;;  %v4535_v40 = vmul.u32 24, %v4534_v57  ;;  %v3991_v43 = vadd.f32 %v3895_v1, %v18390_v20  ;;  %v4512_v19 = vshrl.u32 %v15606_v22, 4  ;;  %v3900_v11 = vadd.f32 %v11186_v59, %v3546_v53  ;;  %v11187_v1 = vpop.f32.mrf.mxu0  ;;  %v5354_v21 = vld [vmem:[#allocation3 + $0x10f] sm:$0xff] }
 0x31b   : > { %v5064_v27 = vmax.f32 %v5016_v39, 0.0  ;;  %v5485_v55 = vrot.slane %v15611_v63, 4  ;;  %v3898_v54 = vadd.f32 %v3827_v24, %v3538_v8  ;;  %v15627_v18 = vpack.c.bf16 %v5352_v58, %v5351_v14 }
 0x31c   : > { %v4536_v62 = vsub.s32 %v18380_v0, %v4535_v40  ;;  %v4513_v32 = vmul.u32 24, %v4512_v19  ;;  %v4959_v2 = vmul.f32 %v15537_v29, %v3991_v43  ;;  %v3996_v51 = vadd.f32 %v3900_v11, %v18391_v36  ;;  %v18398_v40 = vld [vmem:[#allocation176_spill] sm:$0xff]  ;;  %v18403_v36 = vld [vmem:[#allocation86_spill] sm:$0xff] }
 0x31d   : > { %v4567_v42 = vshrl.u32 %v15622_v49, 4  ;;  %v5486_v46 = vsel %vm18392_vm3, %v5483_v10, %v5485_v55  ;;  %v3994_v41 = vadd.f32 %v3898_v54, %v18393_v33  ;;  %11301 = vmatmul.mubr.bf16.gmra.mxu0 %v15627_v18  ;;  %v3549_v9 = vadd.f32 %v11123_v44, %v18394_v13  ;;  %v18401_v44 = vld [vmem:[#allocation33_spill] sm:$0xff]  ;;  %v3830_v54 = vpop.f32.mrf.mxu0 }
 0x31e   : > { %vm4666_vm5 = vcmp.ne.s32.totalorder %v4536_v62, 0  ;;  %vm4714_vm8 = vcmp.lt.s32.totalorder %v4536_v62, 0  ;;  %v4810_v0 = vadd.s32 24, %v4536_v62  ;;  %v4514_v34 = vsub.s32 %v18386_v17, %v4513_v32  ;;  %11232 = vmatprep.mubr.bf16.mxu1 %v5486_v46 }
 0x31f   : > { %vm4762_vm12 = vmand %vm4714_vm8, %vm4666_vm5  ;;  %v15641_v23 = vadd.f32 %v15550_v45, %v4959_v2  ;;  %v4568_v48 = vmul.u32 24, %v4567_v42  ;;  %v4964_v12 = vmul.f32 %v15537_v29, %v3996_v51  ;;  %v4962_v10 = vmul.f32 %v15537_v29, %v3994_v41  ;;  %v18404_v41 = vld [vmem:[#allocation177_spill] sm:$0xff] }
 0x320   : > { %v4858_v30 = vsel %vm4762_vm12, %v4810_v0, %v4536_v62  ;;  %vm4664_vm13 = vcmp.ne.s32.totalorder %v4514_v34, 0  ;;  %vm4712_vm6 = vcmp.lt.s32.totalorder %v4514_v34, 0  ;;  %v4808_v28 = vadd.s32 24, %v4514_v34  ;;  %v11126_v62 = vpop.f32.mrf.mxu1 }
 0x321   : > { %vm5112_vm10 = vcmp.lt.s32.totalorder %v4858_v30, 16  ;;  %vm4760_vm7 = vmand %vm4712_vm6, %vm4664_vm13  ;;  %v17579_v60 = vmax.f32 %v15641_v23, 0.0  ;;  %v4569_v17 = vsub.s32 %v18389_v47, %v4568_v48  ;;  %v15648_v22 = vadd.f32 %v15550_v45, %v4964_v12  ;;  %v5353_v47 = vld [vmem:[#allocation3 + $0x107] sm:$0xff] }
 0x322   : > { %v5256_v59 = vsel %vm5112_vm10, %v5064_v27, 0.0  ;;  %v4856_v38 = vsel %vm4760_vm7, %v4808_v28, %v4514_v34  ;;  %v15651_v5 = vmul.u32.u64.low 2863311531, %v18395_v26  ;;  %v15652_v57 = vmul.u32.u64.high 2863311531, %v18395_v26, %v15651_v5  ;;  %v11190_v28 = vpop.f32.mrf.mxu0 }
 0x323   : > { %5312 = vst [vmem:[#allocation3 + $0x158] sm:$0xff] %v5256_v59  ;;  %vm15654_vm1 = vcmp.lt.s32.totalorder %v4856_v38, 16  ;;  %vm4669_vm11 = vcmp.ne.s32.totalorder %v4569_v17, 0  ;;  %vm4717_vm2 = vcmp.lt.s32.totalorder %v4569_v17, 0  ;;  %v4813_v16 = vadd.s32 24, %v4569_v17  ;;  %v3553_v5 = vpop.f32.mrf.mxu1 }
 0x324   : > { %v15662_v8 = vsel %vm15654_vm1, %v17579_v60, 0.0  ;;  %vm4765_vm4 = vmand %vm4717_vm2, %vm4669_vm11  ;;  %v17576_v58 = vmax.f32 %v15648_v22, 0.0  ;;  %v15666_v7 = vadd.f32 %v15550_v45, %v4962_v10  ;;  %v3901_v39 = vadd.f32 %v11187_v1, %v3549_v9  ;;  %v18408_v1 = vld [vmem:[#allocation34_spill] sm:$0xff] }
 0x325   : > { %5310 = vst [vmem:[#allocation3 + $0x148] sm:$0xff] %v15662_v8  ;;  %v4861_v49 = vsel %vm4765_vm4, %v4813_v16, %v4569_v17  ;;  %v15670_v20 = vmul.u32.u64.low 2863311531, %v18398_v40  ;;  %v15671_v43 = vmul.u32.u64.high 2863311531, %v18398_v40, %v15670_v20  ;;  %v5487_v19 = vrot.slane %v15627_v18, 4  ;;  %v18407_v17 = vld [vmem:[#allocation90_spill] sm:$0xff] }
 0x326   : > { %vm15674_vm9 = vcmp.lt.s32.totalorder %v4861_v49, 16  ;;  %v4545_v24 = vshrl.u32 %v15652_v57, 4  ;;  %v17578_v14 = vmax.f32 %v15666_v7, 0.0  ;;  %v3997_v27 = vadd.f32 %v3901_v39, %v18401_v44 }
 0x327   : > { %v15685_v32 = vsel %vm15674_vm9, %v17576_v58, 0.0  ;;  %v5488_v2 = vsel %vm18402_vm0, %v5485_v55, %v5487_v19  ;;  %v3541_v51 = vadd.f32 %v3540_v52, %v18403_v36  ;;  %v15689_v42 = vpack.c.bf16 %v5354_v21, %v5353_v47  ;;  %v18405_v55 = vld [vmem:[#allocation174_spill] sm:$0xff]  ;;  %v5356_v47 = vld [vmem:[#allocation3 + $0x11f] sm:$0xff]  ;;  %v3843_v36 = vpop.f32.mrf.mxu0 }
 0x328   : > { %5315 = vst [vmem:[#allocation3 + $0x170] sm:$0xff] %v15685_v32  ;;  %v4546_v46 = vmul.u32 24, %v4545_v24  ;;  %v4965_v33 = vmul.f32 %v15537_v29, %v3997_v27  ;;  %11233 = vmatmul.mubr.bf16.gmra.mxu1 %v5488_v2  ;;  %v15694_v13 = vmul.u32.u64.low 2863311531, %v18404_v41  ;;  %v15695_v9 = vmul.u32.u64.high 2863311531, %v18404_v41, %v15694_v13  ;;  %v18410_v24 = vld [vmem:[#allocation36_spill] sm:$0xff]  ;;  %v5355_v27 = vld [vmem:[#allocation3 + $0x117] sm:$0xff] }
 0x329   : > { %v4578_v0 = vshrl.u32 %v15671_v43, 4  ;;  %v3899_v34 = vadd.f32 %v3830_v54, %v3541_v51  ;;  %11304 = vmatprep.mubr.bf16.mxu0 %v15689_v42  ;;  %v3562_v48 = vadd.f32 %v11126_v62, %v18405_v55  ;;  %v5489_v12 = vrot.slane %v15689_v42, 4  ;;  %v18411_v62 = vld [vmem:[#allocation87_spill] sm:$0xff] }
 0x32a   : > { %v4547_v10 = vsub.s32 %v18395_v26, %v4546_v46  ;;  %v15703_v30 = vadd.f32 %v15550_v45, %v4965_v33  ;;  %v15706_v59 = vmul.u32.u64.low 2863311531, %v18407_v17  ;;  %v15707_v38 = vmul.u32.u64.high 2863311531, %v18407_v17, %v15706_v59  ;;  %v11127_v46 = vpop.f32.mrf.mxu1 }
 0x32b   : > { %v4579_v57 = vmul.u32 24, %v4578_v0  ;;  %v3995_v52 = vadd.f32 %v3899_v34, %v18408_v1  ;;  %v3904_v16 = vadd.f32 %v11190_v28, %v3562_v48  ;;  %v5490_v39 = vsel %vm18409_vm14, %v5487_v19, %v5489_v12  ;;  %v18414_v28 = vld [vmem:[#allocation89_spill] sm:$0xff] }
 0x32c   : > { %18406 = vst [vmem:[#allocation94_spill] sm:$0xff] %v15703_v30  ;;  %vm4667_vm15 = vcmp.ne.s32.totalorder %v4547_v10, 0  ;;  %vm4715_vm3 = vcmp.lt.s32.totalorder %v4547_v10, 0  ;;  %v4811_v26 = vadd.s32 24, %v4547_v10  ;;  %v17575_v21 = vmax.f32 %v15703_v30, 0.0  ;;  %11236 = vmatprep.mubr.bf16.mxu1 %v5490_v39 }
 0x32d   : > { %vm4763_vm5 = vmand %vm4715_vm3, %vm4667_vm15  ;;  %v4580_v49 = vsub.s32 %v18398_v40, %v4579_v57  ;;  %v4556_v20 = vshrl.u32 %v15695_v9, 4  ;;  %v4963_v43 = vmul.f32 %v15537_v29, %v3995_v52  ;;  %v4000_v44 = vadd.f32 %v3904_v16, %v18410_v24  ;;  %v11191_v52 = vpop.f32.mrf.mxu0 }
 0x32e   : > { %v4859_v54 = vsel %vm4763_vm5, %v4811_v26, %v4547_v10  ;;  %v4611_v19 = vshrl.u32 %v15707_v38, 4  ;;  %v3554_v2 = vadd.f32 %v3553_v5, %v18411_v62  ;;  %v15720_v51 = vpack.c.bf16 %v5356_v47, %v5355_v27  ;;  %v18418_v47 = vld [vmem:[#allocation31_spill] sm:$0xff]  ;;  %v12176_v38 = vld [vmem:[#allocation10 + $0x20] sm:$0xff]  }
 0x32f   : > { %vm15722_vm8 = vcmp.lt.s32.totalorder %v4859_v54, 16  ;;  %vm4670_vm12 = vcmp.ne.s32.totalorder %v4580_v49, 0  ;;  %vm4718_vm13 = vcmp.lt.s32.totalorder %v4580_v49, 0  ;;  %v4814_v40 = vadd.s32 24, %v4580_v49 }
 0x330   : > { %v15730_v13 = vsel %vm15722_vm8, %v17578_v14, 0.0  ;;  %vm4766_vm6 = vmand %vm4718_vm13, %vm4670_vm12  ;;  %v4557_v9 = vmul.u32 24, %v4556_v20  ;;  %v15733_v0 = vadd.f32 %v15550_v45, %v4963_v43  ;;  %v4612_v34 = vmul.u32 24, %v4611_v19  ;;  %11305 = vmatmul.mubr.bf16.gmra.mxu0 %v15720_v51  ;;  %v18420_v19 = vld [vmem:[#allocation39_spill] sm:$0xff] }
 0x331   : > { %5313 = vst [vmem:[#allocation3 + $0x160] sm:$0xff] %v15730_v13  ;;  %v4862_v55 = vsel %vm4766_vm6, %v4814_v40, %v4580_v49  ;;  %v4968_v48 = vmul.f32 %v15537_v29, %v4000_v44  ;;  %v3902_v10 = vadd.f32 %v3843_v36, %v3554_v2  ;;  %v3565_v59 = vadd.f32 %v11127_v46, %v18414_v28  ;;  %v18419_v44 = vld [vmem:[#allocation181_spill] sm:$0xff]  ;;  %v7712_v2 = vld [vmem:[#allocation3 + $0x39] sm:$0xff] }
 0x332   : > { %vm15739_vm10 = vcmp.lt.s32.totalorder %v4862_v55, 16  ;;  %v4558_v5 = vsub.s32 %v18404_v41, %v4557_v9  ;;  %v17577_v57 = vmax.f32 %v15733_v0, 0.0  ;;  %v4613_v1 = vsub.s32 %v18407_v17, %v4612_v34  ;;  %v3556_v9 = vpop.f32.mrf.mxu1  ;;  %v5357_v34 = vld [vmem:[#allocation3 + $0x127] sm:$0xff]  ;;  %v5358_v55 = vld [vmem:[#allocation3 + $0x12f] sm:$0xff] }
 0x333   : > { %v15750_v16 = vsel %vm15739_vm10, %v17575_v21, 0.0  ;;  %v15753_v39 = vadd.f32 %v15550_v45, %v4968_v48  ;;  %v3998_v26 = vadd.f32 %v3902_v10, %v18418_v47  ;;  %v3905_v49 = vadd.f32 %v11191_v52, %v3565_v59  ;;  %v5360_v48 = vld [vmem:[#allocation3 + $0x13f] sm:$0xff]  ;;  %v18427_v59 = vld [vmem:[#allocation85_spill] sm:$0xff]  ;;  %v18432_v21 = vld [vmem:[#allocation50_spill] sm:$0xff] }
 0x334   : > { %5316 = vst [vmem:[#allocation3 + $0x178] sm:$0xff] %v15750_v16  ;;  %vm4668_vm7 = vcmp.ne.s32.totalorder %v4558_v5, 0  ;;  %vm4716_vm11 = vcmp.lt.s32.totalorder %v4558_v5, 0  ;;  %v4812_v41 = vadd.s32 24, %v4558_v5  ;;  %vm4673_vm2 = vcmp.ne.s32.totalorder %v4613_v1, 0  ;;  %v5361_v52 = vld [vmem:[#allocation3 + $0x147] sm:$0xff] }
 0x335   : > { %18417 = vst [vmem:[#allocation88_spill] sm:$0xff] %v15753_v39  ;;  %vm4764_vm4 = vmand %vm4716_vm11, %vm4668_vm7  ;;  %vm4721_vm0 = vcmp.lt.s32.totalorder %v4613_v1, 0  ;;  %v4817_v17 = vadd.s32 24, %v4613_v1  ;;  %v17574_v20 = vmax.f32 %v15753_v39, 0.0  ;;  %v4966_v43 = vmul.f32 %v15537_v29, %v3998_v26  ;;  %v5362_v47 = vld [vmem:[#allocation3 + $0x14f] sm:$0xff] }
 0x336   : > { %v4860_v24 = vsel %vm4764_vm4, %v4812_v41, %v4558_v5  ;;  %vm4769_vm14 = vmand %vm4721_vm0, %vm4673_vm2  ;;  %v15760_v27 = vmul.u32.u64.low 2863311531, %v18419_v44  ;;  %v15761_v54 = vmul.u32.u64.high 2863311531, %v18419_v44, %v15760_v27  ;;  %v4001_v62 = vadd.f32 %v3905_v49, %v18420_v19 }
 0x337   : > { %vm15764_vm15 = vcmp.lt.s32.totalorder %v4860_v24, 16  ;;  %v4865_v36 = vsel %vm4769_vm14, %v4817_v17, %v4613_v1  ;;  %v15769_v46 = vadd.f32 %v15550_v45, %v4966_v43  ;;  %v5491_v40 = vrot.slane %v15720_v51, 4  ;;  %v18429_v43 = vld [vmem:[#allocation178_spill] sm:$0xff]  ;;  %v18430_v27 = vld [vmem:[#allocation96_spill] sm:$0xff] }
 0x338   : > { %v15776_v10 = vsel %vm15764_vm15, %v17577_v57, 0.0  ;;  %vm15778_vm3 = vcmp.lt.s32.totalorder %v4865_v36, 16  ;;  %v18424_v28 = vmov 0  ;;  %v4969_v49 = vmul.f32 %v15537_v29, %v4001_v62  ;;  %v3846_v62 = vpop.f32.mrf.mxu0 }
 0x339   : > { %18423 = vst [vmem:[#allocation99_spill] sm:$0xff] %v15769_v46  ;;  %v18425_v28 = vsel %vm15778_vm3, 4294967295, %v18424_v28  ;;  %v15783_v5 = vmul.u32.u64.low 2863311531, %v18427_v59  ;;  %v15784_v1 = vmul.u32.u64.high 2863311531, %v18427_v59, %v15783_v5  ;;  %5314 = vst [vmem:[#allocation3 + $0x168] sm:$0xff] %v15776_v10  ;;  %v15791_v26 = vsel %vm15778_vm3, %v17574_v20, 0.0 }
 0x33a   : > { %18426 = vst [vmem:[#allocation98_spill] sm:$0xff] %v18425_v28  ;;  %vm18428_vm5 = vcmask 1043456   ;;  %5319 = vst [vmem:[#allocation3 + $0x190] sm:$0xff] %v15791_v26  ;;  %v4589_v17 = vshrl.u32 %v15761_v54, 4  ;;  %v3557_v24 = vadd.f32 %v3556_v9, %v18429_v43  ;;  %v5359_v5 = vld [vmem:[#allocation3 + $0x137] sm:$0xff]  ;;  %v15806_v57 = vpack.c.bf16 %v5358_v55, %v5357_v34  ;;  %v5364_v43 = vld [vmem:[#allocation3 + $0x15f] sm:$0xff] }
 0x33b   : > { %v5492_v41 = vsel %vm18428_vm5, %v5489_v12, %v5491_v40  ;;  %v15801_v19 = vmul.u32.u64.low 2863311531, %v18430_v27  ;;  %v15802_v36 = vmul.u32.u64.high 2863311531, %v18430_v27, %v15801_v19  ;;  %v18431_v20 = vld [vmem:[#allocation35_spill] sm:$0xff]  ;;  %v15808_v14 = vpack.c.bf16 %v5360_v48, %v5359_v5  ;;  %vm18434_vm12 = vmmov %vm18428_vm5 }
 0x33c   : > { %11237 = vmatmul.mubr.bf16.gmra.mxu1 %v5492_v41  ;;  %v2758_v58 = vadd.f32 %v18432_v21, %v18431_v20  ;;  %v15810_v12 = vpack.c.bf16 %v5362_v47, %v5361_v52  ;;  %v4590_v60 = vmul.u32 24, %v4589_v17  ;;  %v17582_v54 = vmax.f32 %v15769_v46, 0.0  ;;  %11308 = vmatprep.mubr.bf16.mxu0 %v15806_v57  ;;  %vm18435_vm13 = vmmov %vm18428_vm5 }
 0x33d   : > { %v4622_v9 = vshrl.u32 %v15784_v1, 4  ;;  %v3903_v41 = vadd.f32 %v3846_v62, %v3557_v24  ;;  %v15815_v19 = vadd.f32 %v15550_v45, %v4969_v49  ;;  %v5493_v21 = vrot.slane %v15806_v57, 4  ;;  %11309 = vmatmul.mubr.bf16.gmra.mxu0 %v15808_v14  ;;  %v5363_v1 = vld [vmem:[#allocation3 + $0x157] sm:$0xff]  ;;  %vm18436_vm6 = vmmov %vm18428_vm5 }
 0x33e   : > { %v5495_v20 = vrot.slane %v15808_v14, 4  ;;  %v5497_v34 = vrot.slane %v15810_v12, 4  ;;  %v4591_v55 = vsub.s32 %v18419_v44, %v4590_v60  ;;  %v4600_v47 = vshrl.u32 %v15802_v36, 4  ;;  %11312 = vmatprep.mubr.bf16.mxu0 %v15810_v12 }
 0x33f   : > { %18433 = vst [vmem:[#allocation93_spill] sm:$0xff] %v15815_v19  ;;  %v4623_v48 = vmul.u32 24, %v4622_v9  ;;  %v3999_v52 = vadd.f32 %v3903_v41, %v2758_v58  ;;  %v5494_v49 = vsel %vm18434_vm12, %v5491_v40, %v5493_v21  ;;  %v15828_v5 = vpack.c.bf16 %v5364_v43, %v5363_v1  ;;  %v6469_v1 = vld [vmem:[#allocation3 + $0x28] sm:$0xff] }
 0x340   : > { %v5496_v17 = vsel %vm18435_vm13, %v5493_v21, %v5495_v20  ;;  %v5498_v24 = vsel %vm18436_vm6, %v5495_v20, %v5497_v34  ;;  %vm4671_vm7 = vcmp.ne.s32.totalorder %v4591_v55, 0  ;;  %vm4719_vm11 = vcmp.lt.s32.totalorder %v4591_v55, 0  ;;  %11240 = vmatprep.mubr.bf16.mxu1 %v5494_v49  ;;  %v5365_v44 = vld [vmem:[#allocation3 + $0x167] sm:$0xff]  ;;  %v5366_v36 = vld [vmem:[#allocation3 + $0x16f] sm:$0xff] }
 0x341   : > { %v4815_v60 = vadd.s32 24, %v4591_v55  ;;  %v4624_v58 = vsub.s32 %v18427_v59, %v4623_v48  ;;  %vm4767_vm2 = vmand %vm4719_vm11, %vm4671_vm7  ;;  %v17580_v62 = vmax.f32 %v15815_v19, 0.0  ;;  %v4601_v40 = vmul.u32 24, %v4600_v47 }
 0x342   : > { %v4967_v9 = vmul.f32 %v15537_v29, %v3999_v52  ;;  %v15833_v41 = vpack.c.bf16 %v5366_v36, %v5365_v44  ;;  %v18437_v20 = vmov 0  ;;  %v5499_v29 = vrot.slane %v15828_v5, 4 }
 0x343   : > { %v4863_v21 = vsel %vm4767_vm2, %v4815_v60, %v4591_v55  ;;  %vm4674_vm4 = vcmp.ne.s32.totalorder %v4624_v58, 0  ;;  %vm4722_vm0 = vcmp.lt.s32.totalorder %v4624_v58, 0  ;;  %v4818_v43 = vadd.s32 24, %v4624_v58  ;;  %v6470_v60 = vld [vmem:[#allocation3 + $0x30] sm:$0xff] }
 0x344   : > { %11241 = vmatmul.mubr.bf16.gmra.mxu1 %v5496_v17  ;;  %vm15835_vm14 = vcmp.lt.s32.totalorder %v4863_v21, 16  ;;  %vm4770_vm5 = vmand %vm4722_vm0, %vm4674_vm4  ;;  %v4602_v59 = vsub.s32 %v18430_v27, %v4601_v40  ;;  %v15841_v48 = vadd.f32 %v15550_v45, %v4967_v9  ;;  %v5501_v47 = vrot.slane %v15833_v41, 4 }
 0x345   : > { %v18438_v20 = vsel %vm15835_vm14, 4294967295, %v18437_v20  ;;  %11244 = vmatprep.mubr.bf16.mxu1 %v5498_v24  ;;  %v15848_v55 = vsel %vm15835_vm14, %v17582_v54, 0.0  ;;  %v4866_v52 = vsel %vm4770_vm5, %v4818_v43, %v4624_v58  ;;  %v18441_v27 = vmov 0  ;;  %11313 = vmatmul.mubr.bf16.gmra.mxu0 %v15828_v5  ;;  %v6468_v24 = vld [vmem:[#allocation3 + $0x20] sm:$0xff]  ;;  %v6474_v54 = vld [vmem:[#allocation3 + $0x50] sm:$0xff] }
 0x346   : > { %18439 = vst [vmem:[#allocation51_spill] sm:$0xff] %v18438_v20  ;;  %18440 = vst [vmem:[#allocation102_spill] sm:$0xff] %v15841_v48  ;;  %vm15852_vm12 = vcmp.lt.s32.totalorder %v4866_v52, 16  ;;  %vm4672_vm13 = vcmp.ne.s32.totalorder %v4602_v59, 0  ;;  %vm4720_vm6 = vcmp.lt.s32.totalorder %v4602_v59, 0  ;;  %v4816_v45 = vadd.s32 24, %v4602_v59  ;;  %11316 = vmatprep.mubr.bf16.mxu0 %v15833_v41 }
 0x347   : > { %5317 = vst [vmem:[#allocation3 + $0x180] sm:$0xff] %v15848_v55  ;;  %v18442_v27 = vsel %vm15852_vm12, 4294967295, %v18441_v27  ;;  %v15860_v49 = vsel %vm15852_vm12, %v17580_v62, 0.0  ;;  %vm4768_vm7 = vmand %vm4720_vm6, %vm4672_vm13  ;;  %v17581_v17 = vmax.f32 %v15841_v48, 0.0  ;;  %vm18444_vm11 = vcmask 1043456   ;;  %v15880_v43 = vld [vmem:[#allocation3] sm:$0xff] }
 0x348   : > { %18443 = vst [vmem:[#allocation115_spill] sm:$0xff] %v18442_v27  ;;  %5320 = vst [vmem:[#allocation3 + $0x198] sm:$0xff] %v15860_v49  ;;  %v4864_v58 = vsel %vm4768_vm7, %v4816_v45, %v4602_v59  ;;  %v5500_v44 = vsel %vm18444_vm11, %v5497_v34, %v5499_v29  ;;  %v15867_v36 = vpack.c.bf16 %v6470_v60, %v6469_v1  ;;  %v18445_v40 = vmov 0  ;;  %v6472_v52 = vld [vmem:[#allocation3 + $0x40] sm:$0xff]  ;;  %v5367_v1 = vld [vmem:[#allocation3 + $0x177] sm:$0xff] }
 0x349   : > { %vm15869_vm2 = vcmp.lt.s32.totalorder %v4864_v58, 16  ;;  %vm18448_vm4 = vmmov %vm18444_vm11  ;;  %v15883_v34 = vpack.c.bf16 %v6468_v24, %v15880_v43  ;;  %v6473_v45 = vld [vmem:[#allocation3 + $0x48] sm:$0xff]  ;;  %v6471_v62 = vld [vmem:[#allocation3 + $0x38] sm:$0xff]  ;;  %v18483_v53 = vmax.f32 %v15666_v7, 0.0 }
 0x34a   : > { %v18446_v40 = vsel %vm15869_vm2, 4294967295, %v18445_v40  ;;  %v5502_v9 = vsel %vm18448_vm4, %v5499_v29, %v5501_v47  ;;  %v15878_v21 = vsel %vm15869_vm2, %v17581_v17, 0.0  ;;  %v6606_v59 = vrot.slane %v15867_v36, 4  ;;  %vm18449_vm0 = vmmov %vm18448_vm4  ;;  %v12190_v20 = vld [vmem:[#allocation9 + $0x1f8] sm:$0xff]  }
 0x34b   : > { %18447 = vst [vmem:[#allocation101_spill] sm:$0xff] %v18446_v40  ;;  %5318 = vst [vmem:[#allocation3 + $0x188] sm:$0xff] %v15878_v21  ;;  %v6605_v58 = vrot.slane %v15883_v34, 4  ;;  %v15890_v17 = vpack.c.bf16 %v6472_v52, %v6471_v62  ;;  %v12140_v40 = vld [vmem:[#allocation9 + $0x1f0] sm:$0xff]  }
 0x34c   : > { %11245 = vmatmul.mubr.bf16.gmra.mxu1 %v5500_v44  ;;  %vm18450_vm5 = vmmov %vm18449_vm0 }
 0x34d   : > { %11248 = vmatprep.mubr.bf16.mxu1 %v5502_v9  ;;  %v6607_v24 = vsel %vm18449_vm0, %v6605_v58, %v6606_v59  ;;  %v15895_v9 = vpack.c.bf16 %v6474_v54, %v6473_v45  ;;  %v6608_v62 = vrot.slane %v15890_v17, 4  ;;  %v6476_v58 = vld [vmem:[#allocation3 + $0x60] sm:$0xff]  ;;  %v6477_v45 = vld [vmem:[#allocation3 + $0x68] sm:$0xff]  ;;  %vm18451_vm13 = vmmov %vm18449_vm0 }
 0x34e   : > { %v5368_v29 = vld [vmem:[#allocation3 + $0x17f] sm:$0xff]  ;;  %vm18452_vm6 = vmmov %vm18449_vm0 }
 0x34f   : > { %v15887_v60 = vpack.c.bf16 %v5368_v29, %v5367_v1  ;;  %v5371_v19 = vld [vmem:[#allocation3 + $0x197] sm:$0xff]  ;;  %v5372_v27 = vld [vmem:[#allocation3 + $0x19f] sm:$0xff]  ;;  %v6610_v52 = vrot.slane %v15895_v9, 4  ;;  %vm18453_vm7 = vmmov %vm18449_vm0 }
 0x350   : > { %v15902_v28 = vpack.c.bf16 %v5372_v27, %v5371_v19  ;;  %vm18454_vm11 = vmmov %vm18449_vm0 }
 0x351   : > { %11317 = vmatmul.mubr.bf16.gmra.mxu0 %v15887_v60  ;;  %v5503_v44 = vrot.slane %v15887_v60, 4  ;;  %vm18455_vm4 = vmmov %vm18449_vm0 }
 0x352   : > { %11400 = vmatprep.mubr.bf16.mxu0 %v6607_v24  ;;  %v5369_v29 = vld [vmem:[#allocation3 + $0x187] sm:$0xff]  ;;  %v5370_v39 = vld [vmem:[#allocation3 + $0x18f] sm:$0xff]  ;;  %v6475_v24 = vld [vmem:[#allocation3 + $0x58] sm:$0xff]  ;;  %v5507_v19 = vrot.slane %v15902_v28, 4 }
 0x353   : > { %v5504_v1 = vsel %vm18450_vm5, %v5501_v47, %v5503_v44  ;;  %v15898_v48 = vpack.c.bf16 %v5370_v39, %v5369_v29  ;;  %v6609_v47 = vsel %vm18452_vm6, %v6606_v59, %v6608_v62  ;;  %v15907_v30 = vpack.c.bf16 %v6476_v58, %v6475_v24  ;;  %v6478_v39 = vld [vmem:[#allocation3 + $0x70] sm:$0xff]  ;;  %v6480_v24 = vld [vmem:[#allocation3 + $0x80] sm:$0xff]  ;;  %v12146_v59 = vld [vmem:[#allocation9 + $0x1d8] sm:$0xff]  }
 0x354   : > { %11249 = vmatmul.mubr.bf16.gmra.mxu1 %v5504_v1  ;;  %v6611_v1 = vsel %vm18453_vm7, %v6608_v62, %v6610_v52  ;;  %v15911_v27 = vpack.c.bf16 %v6478_v39, %v6477_v45  ;;  %v12144_v39 = vld [vmem:[#allocation9 + $0x1e0] sm:$0xff]   ;;  %v18456_v29 = vld [vmem:[#allocation97_spill] sm:$0xff]  ;;  %vm18457_vm5 = vmmov %vm18449_vm0 }
 0x355   : > { %v5505_v54 = vrot.slane %v15898_v48, 4  ;;  %v6612_v58 = vrot.slane %v15907_v30, 4  ;;  %vm18459_vm6 = vmmov %vm18449_vm0 }
 0x356   : > { %v6614_v45 = vrot.slane %v15911_v27, 4  ;;  %vm18460_vm7 = vmmov %vm18449_vm0 }
 0x357   : > { %v5506_v46 = vsel %vm18451_vm13, %v5503_v44, %v5505_v54  ;;  %v5508_v44 = vsel %vm18454_vm11, %v5505_v54, %v5507_v19  ;;  %v6613_v54 = vsel %vm18455_vm4, %v6610_v52, %v6612_v58  ;;  %v6482_v19 = vld [vmem:[#allocation3 + $0x90] sm:$0xff]  ;;  %vm18458_vm13 = vmmov %vm18449_vm0 }
 0x358   : > { %11252 = vmatprep.mubr.bf16.mxu1 %v5506_v46  ;;  %v12142_v46 = vld [vmem:[#allocation9 + $0x1e8] sm:$0xff]   ;;  %vm18461_vm11 = vmmov %vm18449_vm0 }
 0x359   : > { %11401 = vmatmul.mubr.bf16.vlgmr.msra.gmra.mxu0 %v6609_v47  ;;  %v6481_v47 = vld [vmem:[#allocation3 + $0x88] sm:$0xff]  ;;  %vm18462_vm4 = vmmov %vm18449_vm0 }
 0x35a   : > { %11404 = vmatprep.mubr.bf16.mxu0 %v6611_v1  ;;  %11513 = vmatpush3.bf16.msra.mxu0 %v12190_v20  ;;  %v6479_v20 = vld [vmem:[#allocation3 + $0x78] sm:$0xff]  ;;  %v15927_v62 = vpack.c.bf16 %v6482_v19, %v6481_v47  ;;  %v12148_v19 = vld [vmem:[#allocation9 + $0x1d0] sm:$0xff]  }
 0x35b   : > { %11514 = vmatprep.subr.bf16.mxu0 %v12140_v40  ;;  %v15924_v1 = vpack.c.bf16 %v6480_v24, %v6479_v20  ;;  %v6484_v24 = vld [vmem:[#allocation3 + $0xa0] sm:$0xff]  ;;  %v12141_v47 = vld [vmem:[#allocation9 + $0x68] sm:$0xff]  }
 0x35c   : > { %11253 = vmatmul.mubr.bf16.gmra.mxu1 %v5508_v44  ;;  %v6615_v44 = vsel %vm18449_vm0, %v6612_v58, %v6614_v45  ;;  %v6618_v52 = vrot.slane %v15927_v62, 4  ;;  %v6485_v58 = vld [vmem:[#allocation3 + $0xa8] sm:$0xff]  ;;  %v6483_v20 = vld [vmem:[#allocation3 + $0x98] sm:$0xff] }
 0x35d   : > { %11336 = vmatprep.mubr.bf16.mxu1 %v15189_v6  ;;  %v12139_v6 = vld [vmem:[#allocation9 + $0x70] sm:$0xff]  }
 0x35e   : > { %11515 = vmatpush3.bf16.msra.mxu0 %v12140_v40  ;;  %v6616_v40 = vrot.slane %v15924_v1, 4 }
 0x35f   : > { %11516 = vmatprep.subr.bf16.mxu0 %v12142_v46 }
 0x361   : > { %11405 = vmatmul.mubr.bf16.gmra.mxu0 %v6613_v54  ;;  %v15935_v54 = vpack.c.bf16 %v6484_v24, %v6483_v20  ;;  %v6488_v20 = vld [vmem:[#allocation3 + $0xc0] sm:$0xff] }
 0x362   : > { %11408 = vmatprep.mubr.bf16.mxu0 %v6615_v44  ;;  %11517 = vmatpush3.bf16.msra.mxu0 %v12142_v46  ;;  %v6617_v46 = vsel %vm18457_vm5, %v6614_v45, %v6616_v40  ;;  %v12143_v44 = vld [vmem:[#allocation9 + $0x60] sm:$0xff]   ;;  %v12150_v45 = vld [vmem:[#allocation9 + $0x1c8] sm:$0xff]   ;;  %vm18463_vm5 = vmmov %vm18449_vm0 }
 0x363   : > { %11518 = vmatprep.subr.bf16.mxu0 %v12144_v39 }
 0x364   : > { %11337 = vmatmul.mubr.bf16.vlgmr.msra.gmra.mxu1 %v18456_v29  ;;  %v6486_v29 = vld [vmem:[#allocation3 + $0xb0] sm:$0xff] }
 0x365   : > { %11340 = vmatprep.mubr.bf16.mxu1 %v15280_v4  ;;  %11449 = vmatpush3.bf16.msra.mxu1 %v15447_v35  ;;  %v6619_v4 = vsel %vm18458_vm13, %v6616_v40, %v6618_v52  ;;  %v15938_v35 = vpack.c.bf16 %v6486_v29, %v6485_v58  ;;  %v6489_v40 = vld [vmem:[#allocation3 + $0xc8] sm:$0xff]  ;;  %v6487_v58 = vld [vmem:[#allocation3 + $0xb8] sm:$0xff]  ;;  %v12151_v29 = vld [vmem:[#allocation9 + $0x1c0] sm:$0xff]  }
 0x366   : > { %11450 = vmatprep.subr.bf16.mxu1 %v12139_v6  ;;  %11519 = vmatpush3.bf16.msra.mxu0 %v12144_v39  ;;  %v6620_v39 = vrot.slane %v15935_v54, 4  ;;  %vm18464_vm13 = vmmov %vm18449_vm0 }
 0x367   : > { %11520 = vmatprep.subr.bf16.mxu0 %v12146_v59  ;;  %v6622_v24 = vrot.slane %v15938_v35, 4 }
 0x369   : > { %11409 = vmatmul.mubr.bf16.gmra.mxu0 %v6617_v46  ;;  %11451 = vmatpush3.bf16.msra.mxu1 %v12139_v6  ;;  %v12145_v6 = vld [vmem:[#allocation9 + $0x58] sm:$0xff]   ;;  %v6621_v46 = vsel %vm18459_vm6, %v6618_v52, %v6620_v39  ;;  %vm18465_vm6 = vmmov %vm18449_vm0 }
 0x36a   : > { %11412 = vmatprep.mubr.bf16.mxu0 %v6619_v4  ;;  %11452 = vmatprep.subr.bf16.mxu1 %v12141_v47  ;;  %v6623_v4 = vsel %vm18460_vm7, %v6620_v39, %v6622_v24  ;;  %v15952_v52 = vld [vmem:[#allocation9 + $0xb8] sm:$0xff]   ;;  %vm18466_vm7 = vmmov %vm18449_vm0 }
 0x36b   : > { %11521 = vmatpush3.bf16.msra.mxu0 %v12146_v59  ;;  %v15945_v59 = vpack.c.bf16 %v6488_v20, %v6487_v58  ;;  %v6492_v58 = vld [vmem:[#allocation3 + $0xe0] sm:$0xff]  ;;  %v6493_v39 = vld [vmem:[#allocation3 + $0xe8] sm:$0xff] }
 0x36c   : > { %11341 = vmatmul.mubr.bf16.gmra.mxu1 %v15314_v37  ;;  %11522 = vmatprep.subr.bf16.mxu0 %v12148_v19  ;;  %v6490_v37 = vld [vmem:[#allocation3 + $0xd0] sm:$0xff] }
 0x36d   : > { %11344 = vmatprep.mubr.bf16.mxu1 %v15355_v50  ;;  %11453 = vmatpush3.bf16.msra.mxu1 %v12141_v47  ;;  %v15948_v50 = vpack.c.bf16 %v6490_v37, %v6489_v40  ;;  %v12147_v47 = vld [vmem:[#allocation9 + $0x50] sm:$0xff]   ;;  %v6491_v40 = vld [vmem:[#allocation3 + $0xd8] sm:$0xff] }
 0x36e   : > { %11454 = vmatprep.subr.bf16.mxu1 %v12143_v44 }
 0x36f   : > { %11523 = vmatpush3.bf16.msra.mxu0 %v12148_v19  ;;  %v6624_v19 = vrot.slane %v15945_v59, 4  ;;  %v6626_v20 = vrot.slane %v15948_v50, 4 }
 0x370   : > { %11524 = vmatprep.subr.bf16.mxu0 %v12150_v45 }
 0x371   : > { %11413 = vmatmul.mubr.bf16.gmra.mxu0 %v6621_v46  ;;  %11455 = vmatpush3.bf16.msra.mxu1 %v12143_v44  ;;  %v12149_v44 = vld [vmem:[#allocation9 + $0x48] sm:$0xff]   ;;  %v15957_v46 = vpack.c.bf16 %v6492_v58, %v6491_v40  ;;  %v6627_v37 = vsel %vm18462_vm4, %v6624_v19, %v6626_v20  ;;  %v6497_v58 = vld [vmem:[#allocation3 + $0x108] sm:$0xff]  ;;  %vm18468_vm4 = vmmov %vm18449_vm0 }
 0x372   : > { %11416 = vmatprep.mubr.bf16.mxu0 %v6623_v4  ;;  %11456 = vmatprep.subr.bf16.mxu1 %v12145_v6  ;;  %v6496_v4 = vld [vmem:[#allocation3 + $0x100] sm:$0xff]  ;;  %v15967_v40 = vld [vmem:[#allocation9 + $0x178] sm:$0xff]  }
 0x373   : > { %11525 = vmatpush3.bf16.msra.mxu0 %v12150_v45  ;;  %v6625_v45 = vsel %vm18461_vm11, %v6622_v24, %v6624_v19  ;;  %v6495_v19 = vld [vmem:[#allocation3 + $0xf8] sm:$0xff]  ;;  %vm18467_vm11 = vmmov %vm18449_vm0 }
 0x374   : > { %11345 = vmatmul.mubr.bf16.gmra.mxu1 %v15385_v25  ;;  %11526 = vmatprep.subr.bf16.mxu0 %v12151_v29  ;;  %v6494_v25 = vld [vmem:[#allocation3 + $0xf0] sm:$0xff] }
 0x375   : > { %11348 = vmatprep.mubr.bf16.mxu1 %v15421_v31  ;;  %11457 = vmatpush3.bf16.msra.mxu1 %v12145_v6  ;;  %v15961_v31 = vpack.c.bf16 %v6494_v25, %v6493_v39  ;;  %v12152_v6 = vld [vmem:[#allocation9 + $0x40] sm:$0xff]   ;;  %v15970_v39 = vpack.c.bf16 %v6496_v4, %v6495_v19  ;;  %v6499_v4 = vld [vmem:[#allocation3 + $0x118] sm:$0xff] }
 0x376   : > { %11458 = vmatprep.subr.bf16.mxu1 %v12147_v47 }
 0x377   : > { %11527 = vmatpush3.bf16.msra.mxu0 %v12151_v29  ;;  %v6628_v29 = vrot.slane %v15957_v46, 4  ;;  %v6630_v24 = vrot.slane %v15961_v31, 4 }
 0x378   : > { %11640 = vmatprep.subr.bf16.mxu0 %v15952_v52 }
 0x379   : > { %11417 = vmatmul.mubr.bf16.gmra.mxu0 %v6625_v45  ;;  %11459 = vmatpush3.bf16.msra.mxu1 %v12147_v47  ;;  %v6629_v47 = vsel %vm18449_vm0, %v6626_v20, %v6628_v29  ;;  %v6498_v45 = vld [vmem:[#allocation3 + $0x110] sm:$0xff] }
 0x37a   : > { %11420 = vmatprep.mubr.bf16.mxu0 %v6627_v37  ;;  %11460 = vmatprep.subr.bf16.mxu1 %v12149_v44  ;;  %v15973_v25 = vpack.c.bf16 %v6498_v45, %v6497_v58  ;;  %v6501_v37 = vld [vmem:[#allocation3 + $0x128] sm:$0xff]  ;;  %v6502_v58 = vld [vmem:[#allocation3 + $0x130] sm:$0xff]  ;;  %v6504_v45 = vld [vmem:[#allocation3 + $0x140] sm:$0xff] }
 0x37c   : > { %11349 = vmatmul.mubr.bf16.gmra.mxu1 %v15460_v3  ;;  %v6631_v3 = vsel %vm18463_vm5, %v6628_v29, %v6630_v24  ;;  %v6634_v20 = vrot.slane %v15973_v25, 4  ;;  %vm18470_vm5 = vmmov %vm18449_vm0 }
 0x37d   : > { %11352 = vmatprep.mubr.bf16.mxu1 %v15495_v56  ;;  %11461 = vmatpush3.bf16.msra.mxu1 %v12149_v44  ;;  %v6632_v56 = vrot.slane %v15970_v39, 4  ;;  %v6500_v44 = vld [vmem:[#allocation3 + $0x120] sm:$0xff] }
 0x37e   : > { %11462 = vmatprep.subr.bf16.mxu1 %v12152_v6  ;;  %v15981_v29 = vpack.c.bf16 %v6500_v44, %v6499_v4  ;;  %v15993_v4 = vld [vmem:[#allocation3 + $0x150] sm:$0xff] }
 0x37f   : > { %v6633_v19 = vsel %vm18464_vm13, %v6630_v24, %v6632_v56  ;;  %vm18471_vm13 = vmmov %vm18449_vm0 }
 0x381   : > { %11421 = vmatmul.mubr.bf16.gmra.mxu0 %v6629_v47  ;;  %11463 = vmatpush3.bf16.msra.mxu1 %v12152_v6  ;;  %v6635_v6 = vsel %vm18465_vm6, %v6632_v56, %v6634_v20  ;;  %v15984_v47 = vpack.c.bf16 %v6502_v58, %v6501_v37  ;;  %v16001_v37 = vld [vmem:[#allocation3 + $0x158] sm:$0xff]  ;;  %vm18474_vm6 = vmmov %vm18449_vm0 }
 0x382   : > { %11424 = vmatprep.mubr.bf16.mxu0 %v6631_v3  ;;  %11576 = vmatprep.subr.bf16.mxu1 %v15967_v40  ;;  %v6503_v3 = vld [vmem:[#allocation3 + $0x138] sm:$0xff]  ;;  %v6540_v58 = vpack.c.bf16 %v15730_v13, %v16001_v37 }
 0x383   : > { %v15991_v44 = vpack.c.bf16 %v6504_v45, %v6503_v3 }
 0x384   : > { %11353 = vmatmul.mubr.bf16.gmra.mxu1 %v15530_v61  ;;  %v6636_v61 = vrot.slane %v15981_v29, 4 }
 0x385   : > { %11356 = vmatprep.mubr.bf16.mxu1 %v15573_v15  ;;  %v6638_v15 = vrot.slane %v15984_v47, 4 }
 0x386   : > { %v6637_v24 = vsel %vm18466_vm7, %v6634_v20, %v6636_v61  ;;  %vm18475_vm7 = vmmov %vm18449_vm0 }
 0x387   : > { %v6639_v56 = vsel %vm18467_vm11, %v6636_v61, %v6638_v15  ;;  %v11274_v61 = vpop.f32.mrf.mxu0  ;;  %vm18476_vm11 = vmmov %vm18449_vm0 }
 0x389   : > { %11425 = vmatmul.mubr.bf16.gmra.mxu0 %v6633_v19  ;;  %v5888_v45 = vpop.f32.mrf.mxu0 }
 0x38a   : > { %11428 = vmatprep.mubr.bf16.mxu0 %v6635_v6 }
 0x38b   : > { %v11275_v3 = vpop.f32.mrf.mxu0 }
 0x38c   : > { %11357 = vmatmul.mubr.bf16.gmra.mxu1 %v15611_v63  ;;  %v6539_v63 = vpack.c.bf16 %v15993_v4, %v15662_v8  ;;  %v6644_v8 = vrot.slane %v6540_v58, 4 }
 0x38d   : > { %11360 = vmatprep.mubr.bf16.mxu1 %v15627_v18  ;;  %v6640_v18 = vrot.slane %v15991_v44, 4 }
 0x38e   : > { %v6642_v20 = vrot.slane %v6539_v63, 4 }
 0x38f   : > { %v6641_v19 = vsel %vm18468_vm4, %v6638_v15, %v6640_v18  ;;  %vm12411_vm4 = vmmov 1  }
 0x390   : > { %v6643_v6 = vsel %vm18449_vm0, %v6640_v18, %v6642_v20  ;;  %v6645_v15 = vsel %vm18470_vm5, %v6642_v20, %v6644_v8  ;;  %vm16134_vm0 = vmpackc.low %vm12411_vm4, %vm15654_vm1 }
 0x391   : > { %11429 = vmatmul.mubr.bf16.gmra.mxu0 %v6637_v24  ;;  %v5891_v24 = vpop.f32.mrf.mxu0  ;;  %vm16146_vm5 = vmpackc.low %vm15722_vm8, %vm12411_vm4 }
 0x392   : > { %11432 = vmatprep.mubr.bf16.mxu0 %v6639_v56  ;;  %vm12198_vm1 = vmpackc.low %vm15674_vm9, %vm15764_vm15 }
 0x393   : > { %vm12201_vm8 = vmpackc.low %vm15835_vm14, %vm15739_vm10 }
 0x394   : > { %11361 = vmatmul.mubr.bf16.gmra.mxu1 %v15689_v42  ;;  %v18469_v42 = vpack.c.bf16 %v15685_v32, %v15776_v10  ;;  %vm18508_vm9 = vmmov %vm18475_vm7 }
 0x395   : > { %11364 = vmatprep.mubr.bf16.mxu1 %v15720_v51  ;;  %v11278_v10 = vpop.f32.mrf.mxu0  ;;  %vm18513_vm10 = vmmov %vm18475_vm7 }
 0x396   : > { %v6646_v51 = vrot.slane %v18469_v42, 4  ;;  %vm18514_vm15 = vmmov %vm18475_vm7 }
 0x397   : > { %v5904_v63 = vpop.f32.mrf.mxu0 }
 0x398   : > { %v6647_v13 = vsel %vm18471_vm13, %v6644_v8, %v6646_v51  ;;  %vm12204_vm13 = vmpackc.low %vm15778_vm3, %vm15869_vm2 }
 0x399   : > { %11433 = vmatmul.mubr.bf16.gmra.mxu0 %v6641_v19  ;;  %vm18521_vm3 = vmmov %vm18475_vm7 }
 0x39a   : > { %11436 = vmatprep.mubr.bf16.mxu0 %v6643_v6  ;;  %v11210_v20 = vpop.f32.mrf.mxu1  ;;  %vm18522_vm14 = vmmov %vm18521_vm3 }
 0x39b   : > { %v16024_v58 = vadd.f32 %v11274_v61, %v11210_v20  ;;  %vm18529_vm2 = vmmov %vm18521_vm3 }
 0x39c   : > { %11365 = vmatmul.mubr.bf16.gmra.mxu1 %v15806_v57  ;;  %v18472_v57 = vpack.c.bf16 %v15848_v55, %v15750_v16  ;;  %v6544_v16 = vpack.c.bf16 %v15880_v43, %v15860_v49 }
 0x39d   : > { %11368 = vmatprep.mubr.bf16.mxu1 %v15808_v14  ;;  %v18473_v14 = vpack.c.bf16 %v15791_v26, %v15878_v21 }
 0x39e   : > { %v6648_v56 = vrot.slane %v18472_v57, 4  ;;  %v6652_v8 = vrot.slane %v6544_v16, 4  ;;  %v12158_v16 = vld [vmem:[#allocation9 + $0xa8] sm:$0xff]  }
 0x39f   : > { %v6650_v32 = vrot.slane %v18473_v14, 4 }
 0x3a0   : > { %v6649_v18 = vsel %vm18474_vm6, %v6646_v51, %v6648_v56  ;;  %vm12207_vm6 = vmpackc.low %vm12411_vm4, %vm15852_vm12 }
 0x3a1   : > { %11437 = vmatmul.mubr.bf16.gmra.mxu0 %v6645_v15  ;;  %v6651_v19 = vsel %vm18475_vm7, %v6648_v56, %v6650_v32  ;;  %v6653_v51 = vsel %vm18476_vm11, %v6650_v32, %v6652_v8  ;;  %v12156_v32 = vld [vmem:[#allocation9 + $0xb0] sm:$0xff]   ;;  %vm18528_vm12 = vmmov %vm18521_vm3 }
 0x3a2   : > { %11440 = vmatprep.mubr.bf16.mxu0 %v6647_v13  ;;  %vm18535_vm7 = vmmov %vm18529_vm2 }
 0x3a3   : > { %vm18536_vm11 = vmmov %vm18529_vm2 }
 0x3a4   : > { %11369 = vmatmul.mubr.bf16.gmra.mxu1 %v15810_v12  ;;  %v11279_v12 = vpop.f32.mrf.mxu0  ;;  %vm18543_vm4 = vmmov %vm18529_vm2 }
 0x3a5   : > { %11372 = vmatprep.mubr.bf16.mxu1 %v15828_v5  ;;  %v5615_v5 = vpop.f32.mrf.mxu1 }
 0x3a6   : > { %v16028_v55 = vadd.f32 %v5888_v45, %v5615_v5  ;;  %v5907_v26 = vpop.f32.mrf.mxu0 }
 0x3a7   : > { %v11211_v21 = vpop.f32.mrf.mxu1 }
 0x3a8   : > { %v16032_v6 = vadd.f32 %v11275_v3, %v11211_v21  ;;  %v11282_v15 = vpop.f32.mrf.mxu0  ;;  %v5374_v3 = vld [vmem:[#allocation3 + $0x1af] sm:$0xff] }
 0x3a9   : > { %11441 = vmatmul.mubr.bf16.gmra.mxu0 %v6649_v18  ;;  %v5618_v42 = vpop.f32.mrf.mxu1 }
 0x3aa   : > { %11444 = vmatprep.mubr.bf16.mxu0 %v6651_v19  ;;  %v16034_v61 = vadd.f32 %v5891_v24, %v5618_v42  ;;  %v5920_v49 = vpop.f32.mrf.mxu0 }
 0x3ab   : > { %v11214_v45 = vpop.f32.mrf.mxu1 }
 0x3ac   : > { %11373 = vmatmul.mubr.bf16.gmra.mxu1 %v15833_v41  ;;  %v16039_v41 = vadd.f32 %v11278_v10, %v11214_v45  ;;  %v11283_v13 = vpop.f32.mrf.mxu0  ;;  %v12160_v45 = vld [vmem:[#allocation9 + $0xa0] sm:$0xff]  }
 0x3ad   : > { %11376 = vmatprep.mubr.bf16.mxu1 %v15887_v60  ;;  %v5373_v60 = vld [vmem:[#allocation3 + $0x1a7] sm:$0xff]  ;;  %v5631_v57 = vpop.f32.mrf.mxu1 }
 0x3ae   : > { %v16042_v24 = vadd.f32 %v5904_v63, %v5631_v57  ;;  %v5923_v56 = vpop.f32.mrf.mxu0  ;;  %v5401_v18 = vpack.c.bf16 %v5374_v3, %v5373_v60  ;;  %v12155_v3 = vld [vmem:[#allocation9 + $0x170] sm:$0xff]  }
 0x3af   : > { %v11215_v14 = vpop.f32.mrf.mxu1 }
 0x3b0   : > { %v16044_v20 = vadd.f32 %v11279_v12, %v11215_v14  ;;  %v11286_v10 = vpop.f32.mrf.mxu0 }
 0x3b1   : > { %11445 = vmatmul.mubr.bf16.gmra.mxu0 %v6653_v51  ;;  %v5634_v19 = vpop.f32.mrf.mxu1 }
 0x3b2   : > { %11528 = vmatprep.mubr.bf16.mxu0 %v15890_v17  ;;  %v5936_v63 = vpop.f32.mrf.mxu0 }
 0x3b4   : > { %11377 = vmatmul.mubr.bf16.gmra.mxu1 %v15898_v48  ;;  %v16049_v48 = vpack.c.bf16 %v15880_v43, %v15880_v43  ;;  %v11218_v12 = vpop.f32.mrf.mxu1  ;;  %v11287_v21 = vpop.f32.mrf.mxu0 }
 0x3b5   : > { %11380 = vmatprep.mubr.bf16.mxu1 %v15902_v28  ;;  %v16053_v28 = vadd.f32 %v5907_v26, %v5634_v19  ;;  %v16056_v5 = vadd.f32 %v11282_v15, %v11218_v12  ;;  %v12157_v19 = vld [vmem:[#allocation9 + $0x168] sm:$0xff]  }
 0x3b6   : > { %v5647_v8 = vpop.f32.mrf.mxu1  ;;  %v5939_v51 = vpop.f32.mrf.mxu0 }
 0x3b7   : > { %v16058_v42 = vadd.f32 %v5920_v49, %v5647_v8  ;;  %v12162_v49 = vld [vmem:[#allocation9 + $0x98] sm:$0xff]  }
 0x3b9   : > { %11529 = vmatmul.mubr.bf16.vlgmr.msra.gmra.mxu0 %v15895_v9 }
 0x3ba   : > { %11532 = vmatprep.mubr.bf16.mxu0 %v15907_v30  ;;  %11641 = vmatpush3.bf16.msra.mxu0 %v15952_v52  ;;  %v11219_v52 = vpop.f32.mrf.mxu1 }
 0x3bb   : > { %11642 = vmatprep.subr.bf16.mxu0 %v12156_v32  ;;  %v16061_v26 = vadd.f32 %v11283_v13, %v11219_v52  ;;  %v11290_v60 = vpop.f32.mrf.mxu0  ;;  %v12164_v52 = vld [vmem:[#allocation9 + $0x90] sm:$0xff]  }
 0x3bc   : > { %11381 = vmatmul.mubr.bf16.gmra.mxu1 %v5401_v18  ;;  %v5650_v57 = vpop.f32.mrf.mxu1 }
 0x3bd   : > { %11464 = vmatprep.mubr.bf16.mxu1 %v16049_v48  ;;  %v16064_v15 = vadd.f32 %v5923_v56, %v5650_v57  ;;  %v5952_v14 = vpop.f32.mrf.mxu0 }
 0x3be   : > { %11643 = vmatpush3.bf16.msra.mxu0 %v12156_v32 }
 0x3bf   : > { %11644 = vmatprep.subr.bf16.mxu0 %v12158_v16  ;;  %v11222_v32 = vpop.f32.mrf.mxu1  ;;  %v11291_v18 = vpop.f32.mrf.mxu0 }
 0x3c0   : > { %v16069_v13 = vadd.f32 %v11286_v10, %v11222_v32  ;;  %v12159_v10 = vld [vmem:[#allocation9 + $0x160] sm:$0xff]   ;;  %v12166_v32 = vld [vmem:[#allocation9 + $0x88] sm:$0xff]  }
 0x3c1   : > { %11533 = vmatmul.mubr.bf16.gmra.mxu0 %v15911_v27  ;;  %v5663_v12 = vpop.f32.mrf.mxu1  ;;  %v5955_v56 = vpop.f32.mrf.mxu0 }
 0x3c2   : > { %11536 = vmatprep.mubr.bf16.mxu0 %v15924_v1  ;;  %11645 = vmatpush3.bf16.msra.mxu0 %v12158_v16  ;;  %v16071_v16 = vadd.f32 %v5936_v63, %v5663_v12 }
 0x3c3   : > { %11646 = vmatprep.subr.bf16.mxu0 %v12160_v45  ;;  %v11223_v8 = vpop.f32.mrf.mxu1 }
 0x3c4   : > { %11465 = vmatmul.mubr.bf16.vlgmr.msra.gmra.mxu1 %v15883_v34  ;;  %v16074_v34 = vadd.f32 %v11287_v21, %v11223_v8  ;;  %v12161_v8 = vld [vmem:[#allocation9 + $0x158] sm:$0xff]  }
 0x3c5   : > { %11468 = vmatprep.mubr.bf16.mxu1 %v15867_v36  ;;  %11577 = vmatpush3.bf16.msra.mxu1 %v15967_v40  ;;  %v11294_v36 = vpop.f32.mrf.mxu0  ;;  %v5666_v40 = vpop.f32.mrf.mxu1 }
 0x3c6   : > { %11578 = vmatprep.subr.bf16.mxu1 %v12155_v3  ;;  %11647 = vmatpush3.bf16.msra.mxu0 %v12160_v45  ;;  %18477 = vst [vmem:[#allocation100_spill] sm:$0xff] %v16074_v34  ;;  %v16077_v57 = vadd.f32 %v5939_v51, %v5666_v40 }
 0x3c7   : > { %11648 = vmatprep.subr.bf16.mxu0 %v12162_v49  ;;  %v5968_v45 = vpop.f32.mrf.mxu0 }
 0x3c9   : > { %11537 = vmatmul.mubr.bf16.gmra.mxu0 %v15927_v62  ;;  %11579 = vmatpush3.bf16.msra.mxu1 %v12155_v3  ;;  %v11226_v63 = vpop.f32.mrf.mxu1  ;;  %v11295_v3 = vpop.f32.mrf.mxu0 }
 0x3ca   : > { %11540 = vmatprep.mubr.bf16.mxu0 %v15935_v54  ;;  %11580 = vmatprep.subr.bf16.mxu1 %v12157_v19  ;;  %v16081_v21 = vadd.f32 %v11290_v60, %v11226_v63  ;;  %v12163_v60 = vld [vmem:[#allocation9 + $0x150] sm:$0xff]  }
 0x3cb   : > { %11649 = vmatpush3.bf16.msra.mxu0 %v12162_v49  ;;  %v5679_v12 = vpop.f32.mrf.mxu1  ;;  %v5971_v51 = vpop.f32.mrf.mxu0  ;;  %v12167_v49 = vld [vmem:[#allocation9 + $0x80] sm:$0xff]  }
 0x3cc   : > { %11469 = vmatmul.mubr.bf16.gmra.mxu1 %v15890_v17  ;;  %11650 = vmatprep.subr.bf16.mxu0 %v12164_v52  ;;  %v16083_v34 = vadd.f32 %v5952_v14, %v5679_v12  ;;  %v16092_v14 = vld [vmem:[#allocation10 + $0x38] sm:$0xff]  }
 0x3cd   : > { %11472 = vmatprep.mubr.bf16.mxu1 %v15895_v9  ;;  %11581 = vmatpush3.bf16.msra.mxu1 %v12157_v19  ;;  %v11227_v40 = vpop.f32.mrf.mxu1 }
 0x3ce   : > { %11582 = vmatprep.subr.bf16.mxu1 %v12159_v10  ;;  %v16086_v17 = vadd.f32 %v11291_v18, %v11227_v40 }
 0x3cf   : > { %11651 = vmatpush3.bf16.msra.mxu0 %v12164_v52  ;;  %v5682_v9 = vpop.f32.mrf.mxu1  ;;  %v12165_v52 = vld [vmem:[#allocation9 + $0x148] sm:$0xff]  }
 0x3d0   : > { %11652 = vmatprep.subr.bf16.mxu0 %v12166_v32  ;;  %v16089_v63 = vadd.f32 %v5955_v56, %v5682_v9  ;;  %v16106_v9 = vld [vmem:[#allocation9 + $0x238] sm:$0xff]  }
 0x3d1   : > { %11541 = vmatmul.mubr.bf16.gmra.mxu0 %v15938_v35  ;;  %11583 = vmatpush3.bf16.msra.mxu1 %v12159_v10  ;;  %v11298_v19 = vpop.f32.mrf.mxu0 }
 0x3d2   : > { %11544 = vmatprep.mubr.bf16.mxu0 %v15945_v59  ;;  %11584 = vmatprep.subr.bf16.mxu1 %v12161_v8 }
 0x3d3   : > { %11653 = vmatpush3.bf16.msra.mxu0 %v12166_v32  ;;  %v5984_v18 = vpop.f32.mrf.mxu0  ;;  %v12168_v32 = vld [vmem:[#allocation9 + $0x140] sm:$0xff]  }
 0x3d4   : > { %11473 = vmatmul.mubr.bf16.gmra.mxu1 %v15907_v30  ;;  %11654 = vmatprep.subr.bf16.mxu0 %v12167_v49 }
 0x3d5   : > { %11476 = vmatprep.mubr.bf16.mxu1 %v15911_v27  ;;  %11585 = vmatpush3.bf16.msra.mxu1 %v12161_v8  ;;  %v11299_v30 = vpop.f32.mrf.mxu0 }
 0x3d6   : > { %11586 = vmatprep.subr.bf16.mxu1 %v12163_v60  ;;  %v11230_v10 = vpop.f32.mrf.mxu1 }
 0x3d7   : > { %11655 = vmatpush3.bf16.msra.mxu0 %v12167_v49  ;;  %v16098_v56 = vadd.f32 %v11294_v36, %v11230_v10  ;;  %v5987_v40 = vpop.f32.mrf.mxu0 }
 0x3d8   : > { %11768 = vmatprep.subr.bf16.mxu0 %v16092_v14  ;;  %v5695_v12 = vpop.f32.mrf.mxu1 }
 0x3d9   : > { %11545 = vmatmul.mubr.bf16.gmra.mxu0 %v15948_v50  ;;  %11587 = vmatpush3.bf16.msra.mxu1 %v12163_v60  ;;  %v16101_v27 = vadd.f32 %v5968_v45, %v5695_v12 }
 0x3da   : > { %11548 = vmatprep.mubr.bf16.mxu0 %v15957_v46  ;;  %11588 = vmatprep.subr.bf16.mxu1 %v12165_v52  ;;  %v11231_v8 = vpop.f32.mrf.mxu1 }
 0x3db   : > { %v16104_v49 = vadd.f32 %v11295_v3, %v11231_v8 }
 0x3dc   : > { %11477 = vmatmul.mubr.bf16.gmra.mxu1 %v15924_v1  ;;  %v5698_v36 = vpop.f32.mrf.mxu1 }
 0x3dd   : > { %11480 = vmatprep.mubr.bf16.mxu1 %v15927_v62  ;;  %11589 = vmatpush3.bf16.msra.mxu1 %v12165_v52  ;;  %v16108_v60 = vadd.f32 %v5971_v51, %v5698_v36  ;;  %v11302_v1 = vpop.f32.mrf.mxu0 }
 0x3de   : > { %11590 = vmatprep.subr.bf16.mxu1 %v12168_v32 }
 0x3df   : > { %v6000_v62 = vpop.f32.mrf.mxu0 }
 0x3e1   : > { %11549 = vmatmul.mubr.bf16.gmra.mxu0 %v15961_v31  ;;  %11591 = vmatpush3.bf16.msra.mxu1 %v12168_v32  ;;  %v11303_v3 = vpop.f32.mrf.mxu0 }
 0x3e2   : > { %11552 = vmatprep.mubr.bf16.mxu0 %v15970_v39  ;;  %11704 = vmatprep.subr.bf16.mxu1 %v16106_v9 }
 0x3e3   : > { %v6003_v32 = vpop.f32.mrf.mxu0 }
 0x3e4   : > { %11481 = vmatmul.mubr.bf16.gmra.mxu1 %v15935_v54 }
 0x3e5   : > { %11484 = vmatprep.mubr.bf16.mxu1 %v15938_v35 }
 0x3e8   : > { %v11234_v45 = vpop.f32.mrf.mxu1 }
 0x3e9   : > { %11553 = vmatmul.mubr.bf16.gmra.mxu0 %v15973_v25  ;;  %v16117_v51 = vadd.f32 %v11298_v19, %v11234_v45 }
 0x3ea   : > { %11556 = vmatprep.mubr.bf16.mxu0 %v15981_v29  ;;  %v5711_v52 = vpop.f32.mrf.mxu1 }
 0x3eb   : > { %v16121_v10 = vadd.f32 %v5984_v18, %v5711_v52  ;;  %v7708_v18 = vld [vmem:[#allocation3 + $0x19] sm:$0xff] }
 0x3ec   : > { %11485 = vmatmul.mubr.bf16.gmra.mxu1 %v15945_v59  ;;  %v11235_v54 = vpop.f32.mrf.mxu1 }
 0x3ed   : > { %11488 = vmatprep.mubr.bf16.mxu1 %v15948_v50  ;;  %v16123_v12 = vadd.f32 %v11299_v30, %v11235_v54  ;;  %v18480_v30 = vmax.f32 %v15641_v23, 0.0 }
 0x3ee   : > { %v5714_v35 = vpop.f32.mrf.mxu1 }
 0x3ef   : > { %v16126_v8 = vadd.f32 %v5987_v40, %v5714_v35  ;;  %v12193_v40 = vpack.c.bf16 %v15993_v4, %v18480_v30  ;;  %v18491_v30 = vld [vmem:[#allocation99_spill] sm:$0xff] }
 0x3f0   : > { %v11306_v19 = vpop.f32.mrf.mxu0 }
 0x3f1   : > { %11557 = vmatmul.mubr.bf16.gmra.mxu0 %v15984_v47 }
 0x3f2   : > { %11560 = vmatprep.mubr.bf16.mxu0 %v15991_v44  ;;  %v6016_v59 = vpop.f32.mrf.mxu0 }
 0x3f4   : > { %11489 = vmatmul.mubr.bf16.gmra.mxu1 %v15957_v46  ;;  %v11307_v50 = vpop.f32.mrf.mxu0 }
 0x3f5   : > { %11492 = vmatprep.mubr.bf16.mxu1 %v15961_v31  ;;  %v16153_v31 = vpack.c.bf16 %v18483_v53, %v16001_v37  ;;  %v18486_v37 = vmax.f32 %v15733_v0, 0.0  ;;  %v18492_v53 = vmax.f32 %v18491_v30, 0.0 }
 0x3f6   : > { %v6019_v4 = vpop.f32.mrf.mxu0 }
 0x3f9   : > { %12194 = vmatmul.mubr.msk.bf16.gmra.mxu0 %vm16134_vm0, %v12193_v40 }
 0x3fa   : > { %12197 = vmatprep.mubr.msk.bf16.mxu0 %vm16146_vm5, %v16153_v31 }
 0x3fc   : > { %v11238_v23 = vpop.f32.mrf.mxu1  ;;  %11493 = vmatmul.mubr.bf16.gmra.mxu1 %v15970_v39  ;;  %v18487_v39 = vmax.f32 %v15648_v22, 0.0 }
 0x3fd   : > { %v16159_v36 = vadd.f32 %v11302_v1, %v11238_v23  ;;  %11496 = vmatprep.mubr.bf16.mxu1 %v15973_v25  ;;  %v11310_v54 = vpop.f32.mrf.mxu0 }
 0x3fe   : > { %v5727_v33 = vpop.f32.mrf.mxu1  ;;  %v12199_v1 = vpack.c.bf16 %v18487_v39, %v18486_v37 }
 0x3ff   : > { %v16162_v45 = vadd.f32 %v6000_v62, %v5727_v33  ;;  %v6032_v22 = vpop.f32.mrf.mxu0 }
 0x400   : > { %v11239_v52 = vpop.f32.mrf.mxu1 }
 0x401   : > { %18484 = vst [vmem:[#allocation104_spill] sm:$0xff] %v16162_v45  ;;  %v16164_v7 = vadd.f32 %v11303_v3, %v11239_v52  ;;  %12200 = vmatmul.mubr.msk.bf16.gmra.mxu0 %vm12198_vm1, %v12199_v1  ;;  %v18489_v3 = vld [vmem:[#allocation94_spill] sm:$0xff]  ;;  %v11311_v52 = vpop.f32.mrf.mxu0 }
 0x402   : > { %v5730_v25 = vpop.f32.mrf.mxu1  ;;  %v18490_v35 = vmax.f32 %v18489_v3, 0.0 }
 0x403   : > { %18485 = vst [vmem:[#allocation103_spill] sm:$0xff] %v16164_v7  ;;  %v16195_v23 = vadd.f32 %v6003_v32, %v5730_v25  ;;  %v6035_v3 = vpop.f32.mrf.mxu0  ;;  %v18498_v25 = vld [vmem:[#allocation102_spill] sm:$0xff] }
 0x404   : > { %v16187_v0 = vpack.c.bf16 %v18492_v53, %v18490_v35  ;;  %v11242_v33 = vpop.f32.mrf.mxu1  ;;  %11497 = vmatmul.mubr.bf16.gmra.mxu1 %v15981_v29  ;;  %v18499_v29 = vmax.f32 %v18498_v25, 0.0  ;;  %v7706_v32 = vld [vmem:[#allocation3 + $0x9] sm:$0xff] }
 0x405   : > { %18493 = vst [vmem:[#allocation106_spill] sm:$0xff] %v16195_v23  ;;  %v16198_v37 = vadd.f32 %v11306_v19, %v11242_v33  ;;  %11500 = vmatprep.mubr.bf16.mxu1 %v15984_v47  ;;  %v11314_v53 = vpop.f32.mrf.mxu0  ;;  %v18500_v23 = vld [vmem:[#allocation88_spill] sm:$0xff] }
 0x406   : > { %12203 = vmatprep.mubr.msk.bf16.mxu0 %vm12201_vm8, %v16187_v0  ;;  %v5743_v39 = vpop.f32.mrf.mxu1  ;;  %v18501_v19 = vmax.f32 %v18500_v23, 0.0 }
 0x407   : > { %18494 = vst [vmem:[#allocation105_spill] sm:$0xff] %v16198_v37  ;;  %v16201_v35 = vadd.f32 %v6016_v59, %v5743_v39  ;;  %v18503_v59 = vld [vmem:[#allocation93_spill] sm:$0xff]  ;;  %v6048_v45 = vpop.f32.mrf.mxu0 }
 0x408   : > { %v11243_v30 = vpop.f32.mrf.mxu1  ;;  %v12205_v33 = vpack.c.bf16 %v18501_v19, %v18499_v29  ;;  %v18504_v39 = vmax.f32 %v18503_v59, 0.0 }
 0x409   : > { %v16203_v7 = vadd.f32 %v11307_v50, %v11243_v30  ;;  %v11315_v23 = vpop.f32.mrf.mxu0 }
 0x40a   : > { %12206 = vmatmul.mubr.msk.bf16.gmra.mxu0 %vm12204_vm13, %v12205_v33  ;;  %v5746_v47 = vpop.f32.mrf.mxu1  ;;  %v12208_v50 = vpack.c.bf16 %v15880_v43, %v18504_v39 }
 0x40b   : > { %18495 = vst [vmem:[#allocation109_spill] sm:$0xff] %v16203_v7  ;;  %v16219_v30 = vadd.f32 %v6019_v4, %v5746_v47  ;;  %v7707_v7 = vld [vmem:[#allocation3 + $0x11] sm:$0xff]  ;;  %v6051_v19 = vpop.f32.mrf.mxu0  ;;  %v7709_v47 = vld [vmem:[#allocation3 + $0x21] sm:$0xff] }
 0x40c   : > { %12209 = vmatprep.mubr.msk.bf16.mxu0 %vm12207_vm6, %v12208_v50  ;;  %v11246_v25 = vpop.f32.mrf.mxu1  ;;  %11501 = vmatmul.mubr.bf16.gmra.mxu1 %v15991_v44  ;;  %v7760_v33 = vpack.c.bf16 %v7707_v7, %v7706_v32  ;;  %v7710_v50 = vld [vmem:[#allocation3 + $0x29] sm:$0xff]  ;;  %v7761_v7 = vpack.c.bf16 %v7709_v47, %v7708_v18  ;;  %v7715_v18 = vld [vmem:[#allocation3 + $0x51] sm:$0xff] }
 0x40d   : > { %v16222_v29 = vadd.f32 %v11310_v54, %v11246_v25  ;;  %12212 = vmatprep.mubr.msk.bf16.mxu1 %vm16134_vm0, %v12193_v40  ;;  %v7711_v40 = vld [vmem:[#allocation3 + $0x31] sm:$0xff]  ;;  %vm18544_vm0 = vmmov %vm18529_vm2 }
 0x40e   : > { %v5759_v37 = vpop.f32.mrf.mxu1  ;;  %v7846_v46 = vrot.slane %v7761_v7, 4  ;;  %vm18560_vm13 = vmmov %vm18544_vm0 }
 0x40f   : > { %18505 = vst [vmem:[#allocation111_spill] sm:$0xff] %v16222_v29  ;;  %v16226_v59 = vadd.f32 %v6032_v22, %v5759_v37  ;;  %v7762_v22 = vpack.c.bf16 %v7711_v40, %v7710_v50  ;;  %v12174_v40 = vld [vmem:[#allocation10 + $0x28] sm:$0xff]   ;;  %vm18568_vm6 = vmmov %vm18544_vm0 }
 0x410   : > { %v11247_v43 = vpop.f32.mrf.mxu1 }
 0x411   : > { %v16228_v39 = vadd.f32 %v11311_v52, %v11247_v43  ;;  %v11318_v4 = vpop.f32.mrf.mxu0 }
 0x412   : > { %11573 = vmatmul.mubr.bf16.gmra.mxu0 %v16049_v48  ;;  %v5762_v44 = vpop.f32.mrf.mxu1 }
 0x413   : > { %11656 = vmatprep.mubr.bf16.mxu0 %v7760_v33  ;;  %v16231_v54 = vadd.f32 %v6035_v3, %v5762_v44  ;;  %v6064_v25 = vpop.f32.mrf.mxu0  ;;  %v12172_v33 = vld [vmem:[#allocation10 + $0x30] sm:$0xff]   ;;  %v7847_v44 = vrot.slane %v7762_v22, 4 }
 0x414   : > { %v11250_v29 = vpop.f32.mrf.mxu1  ;;  %12215 = vmatmul.mubr.msk.bf16.gmra.mxu1 %vm16146_vm5, %v16153_v31  ;;  %v7713_v31 = vld [vmem:[#allocation3 + $0x41] sm:$0xff]  ;;  %vm18551_vm5 = vmmov %vm18544_vm0 }
 0x415   : > { %v16236_v52 = vadd.f32 %v11314_v53, %v11250_v29  ;;  %v11319_v32 = vpop.f32.mrf.mxu0  ;;  %12218 = vmatprep.mubr.msk.bf16.mxu1 %vm12198_vm1, %v12199_v1  ;;  %v7714_v29 = vld [vmem:[#allocation3 + $0x49] sm:$0xff]  ;;  %v16254_v50 = vpack.c.bf16 %v7713_v31, %v7712_v2  ;;  %vm18552_vm1 = vmmov %vm18544_vm0 }
 0x416   : > { %v5775_v48 = vpop.f32.mrf.mxu1  ;;  %v7718_v2 = vld [vmem:[#allocation3 + $0x69] sm:$0xff] }
 0x417   : > { %v16243_v3 = vadd.f32 %v6048_v45, %v5775_v48  ;;  %v6067_v37 = vpop.f32.mrf.mxu0  ;;  %v7849_v62 = vrot.slane %v16254_v50, 4 }
 0x418   : > { %v11251_v43 = vpop.f32.mrf.mxu1 }
 0x419   : > { %v16245_v47 = vadd.f32 %v11315_v23, %v11251_v43  ;;  %v16247_v53 = vpop.f32.mrf.mxu0 }
 0x41a   : > { %18506 = vst [vmem:[#allocation120_spill] sm:$0xff] %v16247_v53  ;;  %11657 = vmatmul.mubr.bf16.vlgmr.msra.gmra.mxu0 %v7761_v7  ;;  %v5778_v11 = vpop.f32.mrf.mxu1  ;;  %v7848_v7 = vsel %vm18508_vm9, %v7846_v46, %v7847_v44  ;;  %vm18570_vm9 = vmmov %vm18544_vm0 }
 0x41b   : > { %11660 = vmatprep.mubr.bf16.mxu0 %v7762_v22  ;;  %11769 = vmatpush3.bf16.msra.mxu0 %v16092_v14  ;;  %v16250_v1 = vadd.f32 %v6051_v19, %v5778_v11  ;;  %v16252_v45 = vpop.f32.mrf.mxu0  ;;  %v16263_v14 = vpack.c.bf16 %v7715_v18, %v7714_v29  ;;  %v7717_v29 = vld [vmem:[#allocation3 + $0x61] sm:$0xff] }
 0x41c   : > { %18507 = vst [vmem:[#allocation107_spill] sm:$0xff] %v16252_v45  ;;  %11770 = vmatprep.subr.bf16.mxu0 %v12172_v33  ;;  %v11254_v23 = vpop.f32.mrf.mxu1  ;;  %12221 = vmatmul.mubr.msk.bf16.gmra.mxu1 %vm12201_vm8, %v16187_v0  ;;  %v12171_v18 = vld [vmem:[#allocation9 + $0x230] sm:$0xff]   ;;  %vm18559_vm8 = vmmov %vm18544_vm0 }
 0x41d   : > { %v16265_v19 = vadd.f32 %v11318_v4, %v11254_v23  ;;  %v16267_v22 = vpop.f32.mrf.mxu0  ;;  %11592 = vmatprep.mubr.bf16.mxu1 %v7848_v7  ;;  %v7851_v46 = vrot.slane %v16263_v14, 4 }
 0x41e   : > { %18509 = vst [vmem:[#allocation112_spill] sm:$0xff] %v16267_v22  ;;  %v5791_v48 = vpop.f32.mrf.mxu1 }
 0x41f   : > { %11771 = vmatpush3.bf16.msra.mxu0 %v12172_v33  ;;  %v16269_v43 = vadd.f32 %v6064_v25, %v5791_v48  ;;  %v16271_v31 = vpop.f32.mrf.mxu0  ;;  %v7716_v25 = vld [vmem:[#allocation3 + $0x59] sm:$0xff]  ;;  %v7850_v48 = vsel %vm18513_vm10, %v7847_v44, %v7849_v62  ;;  %v7852_v22 = vsel %vm18514_vm15, %v7849_v62, %v7851_v46  ;;  %vm18583_vm10 = vmmov %vm18544_vm0 }
 0x420   : > { %18510 = vst [vmem:[#allocation114_spill] sm:$0xff] %v16271_v31  ;;  %11772 = vmatprep.subr.bf16.mxu0 %v12174_v40  ;;  %v11255_v0 = vpop.f32.mrf.mxu1  ;;  %v16286_v31 = vpack.c.bf16 %v7717_v29, %v7716_v25  ;;  %v12180_v25 = vld [vmem:[#allocation10 + $0x10] sm:$0xff]   ;;  %vm18584_vm15 = vmmov %vm18544_vm0 }
 0x421   : > { %v16275_v11 = vadd.f32 %v11319_v32, %v11255_v0  ;;  %v16277_v4 = vpop.f32.mrf.mxu0  ;;  %v7719_v32 = vld [vmem:[#allocation3 + $0x71] sm:$0xff]  ;;  %v12178_v0 = vld [vmem:[#allocation10 + $0x18] sm:$0xff]  }
 0x422   : > { %18511 = vst [vmem:[#allocation121_spill] sm:$0xff] %v16277_v4  ;;  %11661 = vmatmul.mubr.bf16.gmra.mxu0 %v16254_v50  ;;  %v5794_v33 = vpop.f32.mrf.mxu1  ;;  %v16289_v45 = vpack.c.bf16 %v7719_v32, %v7718_v2  ;;  %v7853_v62 = vrot.slane %v16286_v31, 4  ;;  %v12175_v32 = vld [vmem:[#allocation9 + $0x220] sm:$0xff]  }
 0x423   : > { %11664 = vmatprep.mubr.bf16.mxu0 %v16263_v14  ;;  %11773 = vmatpush3.bf16.msra.mxu0 %v12174_v40  ;;  %v16281_v23 = vadd.f32 %v6067_v37, %v5794_v33  ;;  %v16283_v7 = vpop.f32.mrf.mxu0  ;;  %v12173_v40 = vld [vmem:[#allocation9 + $0x228] sm:$0xff]  }
 0x424   : > { %18512 = vst [vmem:[#allocation122_spill] sm:$0xff] %v16283_v7  ;;  %11774 = vmatprep.subr.bf16.mxu0 %v12176_v38  ;;  %v11338_v4 = vpop.f32.mrf.mxu1  ;;  %11593 = vmatmul.mubr.bf16.vlgmr.msra.gmra.mxu1 %v7850_v48  ;;  %18515 = vst [vmem:[#allocation108_spill] sm:$0xff] %v16289_v45  ;;  %v7720_v48 = vld [vmem:[#allocation3 + $0x79] sm:$0xff] }
 0x425   : > { %v16292_v53 = vadd.f32 %v11338_v4, %v16024_v58  ;;  %v16294_v37 = vpop.f32.mrf.mxu0  ;;  %11596 = vmatprep.mubr.bf16.mxu1 %v7852_v22  ;;  %11705 = vmatpush3.bf16.msra.mxu1 %v16106_v9  ;;  %v7855_v58 = vrot.slane %v16289_v45, 4  ;;  %v7721_v4 = vld [vmem:[#allocation3 + $0x81] sm:$0xff] }
 0x426   : > { %18516 = vst [vmem:[#allocation116_spill] sm:$0xff] %v16294_v37  ;;  %v6178_v44 = vpop.f32.mrf.mxu1  ;;  %11706 = vmatprep.subr.bf16.mxu1 %v12171_v18 }
 0x427   : > { %11775 = vmatpush3.bf16.msra.mxu0 %v12176_v38  ;;  %v16298_v29 = vadd.f32 %v6178_v44, %v16028_v55  ;;  %v16300_v33 = vpop.f32.mrf.mxu0  ;;  %v7722_v55 = vld [vmem:[#allocation3 + $0x89] sm:$0xff] }
 0x428   : > { %18517 = vst [vmem:[#allocation117_spill] sm:$0xff] %v16300_v33  ;;  %11776 = vmatprep.subr.bf16.mxu0 %v12178_v0  ;;  %v11339_v2 = vpop.f32.mrf.mxu1 }
 0x429   : > { %v16305_v22 = vadd.f32 %v11339_v2, %v16032_v6  ;;  %v16307_v9 = vpop.f32.mrf.mxu0  ;;  %11707 = vmatpush3.bf16.msra.mxu1 %v12171_v18  ;;  %v7854_v6 = vsel %vm18521_vm3, %v7851_v46, %v7853_v62  ;;  %v16317_v2 = vpack.c.bf16 %v7721_v4, %v7720_v48  ;;  %v7856_v18 = vsel %vm18522_vm14, %v7853_v62, %v7855_v58  ;;  %v12177_v4 = vld [vmem:[#allocation9 + $0x218] sm:$0xff]   ;;  %vm18595_vm3 = vmmov %vm18544_vm0 }
 0x42a   : > { %18519 = vst [vmem:[#allocation40_spill] sm:$0xff] %v16307_v9  ;;  %11665 = vmatmul.mubr.bf16.gmra.mxu0 %v16286_v31  ;;  %v6181_v38 = vpop.f32.mrf.mxu1  ;;  %11708 = vmatprep.subr.bf16.mxu1 %v12173_v40  ;;  %v7723_v9 = vld [vmem:[#allocation3 + $0x91] sm:$0xff]  ;;  %vm18596_vm14 = vmmov %vm18544_vm0 }
 0x42b   : > { %18518 = vst [vmem:[#allocation118_spill] sm:$0xff] %v16305_v22  ;;  %11668 = vmatprep.mubr.bf16.mxu0 %v16289_v45  ;;  %v16312_v44 = vadd.f32 %v6181_v38, %v16034_v61  ;;  %v16314_v33 = vpop.f32.mrf.mxu0  ;;  %11777 = vmatpush3.bf16.msra.mxu0 %v12178_v0  ;;  %v16320_v7 = vpack.c.bf16 %v7723_v9, %v7722_v55  ;;  %v12182_v22 = vld [vmem:[#allocation10 + $0x8] sm:$0xff]   ;;  %v7857_v62 = vrot.slane %v16317_v2, 4 }
 0x42c   : > { %18520 = vst [vmem:[#allocation123_spill] sm:$0xff] %v16314_v33  ;;  %v11342_v37 = vpop.f32.mrf.mxu1  ;;  %11597 = vmatmul.mubr.bf16.gmra.mxu1 %v7854_v6  ;;  %11778 = vmatprep.subr.bf16.mxu0 %v12180_v25 }
 0x42d   : > { %v16323_v45 = vadd.f32 %v11342_v37, %v16039_v41  ;;  %v16325_v61 = vpop.f32.mrf.mxu0  ;;  %11600 = vmatprep.mubr.bf16.mxu1 %v7856_v18  ;;  %11709 = vmatpush3.bf16.msra.mxu1 %v12173_v40  ;;  %v7859_v55 = vrot.slane %v16320_v7, 4  ;;  %v7725_v41 = vld [vmem:[#allocation3 + $0xa1] sm:$0xff]  ;;  %v12184_v37 = vld [vmem:[#allocation10] sm:$0xff]   ;;  %v7724_v18 = vld [vmem:[#allocation3 + $0x99] sm:$0xff] }
 0x42e   : > { %18523 = vst [vmem:[#allocation110_spill] sm:$0xff] %v16325_v61  ;;  %v6194_v46 = vpop.f32.mrf.mxu1  ;;  %11710 = vmatprep.subr.bf16.mxu1 %v12175_v32 }
 0x42f   : > { %v16328_v0 = vadd.f32 %v6194_v46, %v16042_v24  ;;  %v16330_v38 = vpop.f32.mrf.mxu0  ;;  %11779 = vmatpush3.bf16.msra.mxu0 %v12180_v25  ;;  %v7726_v24 = vld [vmem:[#allocation3 + $0xa9] sm:$0xff]  ;;  %v12179_v25 = vld [vmem:[#allocation9 + $0x210] sm:$0xff]  }
 0x430   : > { %18524 = vst [vmem:[#allocation119_spill] sm:$0xff] %v16330_v38  ;;  %v11343_v9 = vpop.f32.mrf.mxu1  ;;  %11780 = vmatprep.subr.bf16.mxu0 %v12182_v22 }
 0x431   : > { %v16335_v48 = vadd.f32 %v11343_v9, %v16044_v20  ;;  %v16337_v40 = vpop.f32.mrf.mxu0  ;;  %11711 = vmatpush3.bf16.msra.mxu1 %v12175_v32  ;;  %v7858_v20 = vsel %vm18528_vm12, %v7855_v58, %v7857_v62  ;;  %v16347_v9 = vpack.c.bf16 %v7725_v41, %v7724_v18  ;;  %v7860_v32 = vsel %vm18529_vm2, %v7857_v62, %v7859_v55  ;;  %v12181_v58 = vld [vmem:[#allocation9 + $0x208] sm:$0xff]   ;;  %vm18604_vm12 = vmmov %vm18544_vm0 }
 0x432   : > { %18526 = vst [vmem:[#allocation124_spill] sm:$0xff] %v16337_v40  ;;  %11669 = vmatmul.mubr.bf16.gmra.mxu0 %v16317_v2  ;;  %v6197_v6 = vpop.f32.mrf.mxu1  ;;  %11712 = vmatprep.subr.bf16.mxu1 %v12177_v4  ;;  %v7727_v40 = vld [vmem:[#allocation3 + $0xb1] sm:$0xff]  ;;  %vm18605_vm2 = vmmov %vm18544_vm0 }
 0x433   : > { %18525 = vst [vmem:[#allocation126_spill] sm:$0xff] %v16335_v48  ;;  %11672 = vmatprep.mubr.bf16.mxu0 %v16320_v7  ;;  %v16342_v46 = vadd.f32 %v6197_v6, %v16053_v28  ;;  %v16344_v38 = vpop.f32.mrf.mxu0  ;;  %11781 = vmatpush3.bf16.msra.mxu0 %v12182_v22  ;;  %v16350_v33 = vpack.c.bf16 %v7727_v40, %v7726_v24  ;;  %v7861_v62 = vrot.slane %v16347_v9, 4 }
 0x434   : > { %18527 = vst [vmem:[#allocation113_spill] sm:$0xff] %v16344_v38  ;;  %v11346_v61 = vpop.f32.mrf.mxu1  ;;  %11601 = vmatmul.mubr.bf16.gmra.mxu1 %v7858_v20  ;;  %11782 = vmatprep.subr.bf16.mxu0 %v12184_v37  ;;  %v7728_v20 = vld [vmem:[#allocation3 + $0xb9] sm:$0xff] }
 0x435   : > { %v16353_v48 = vadd.f32 %v11346_v61, %v16056_v5  ;;  %v16355_v28 = vpop.f32.mrf.mxu0  ;;  %11604 = vmatprep.mubr.bf16.mxu1 %v7860_v32  ;;  %11713 = vmatpush3.bf16.msra.mxu1 %v12177_v4  ;;  %v7863_v24 = vrot.slane %v16350_v33, 4  ;;  %v7729_v5 = vld [vmem:[#allocation3 + $0xc1] sm:$0xff]  ;;  %v7730_v4 = vld [vmem:[#allocation3 + $0xc9] sm:$0xff] }
 0x436   : > { %18530 = vst [vmem:[#allocation52_spill] sm:$0xff] %v16355_v28  ;;  %v6210_v6 = vpop.f32.mrf.mxu1  ;;  %11714 = vmatprep.subr.bf16.mxu1 %v12179_v25  ;;  %v12183_v32 = vld [vmem:[#allocation9 + $0x200] sm:$0xff]  }
 0x437   : > { %v16358_v41 = vadd.f32 %v6210_v6, %v16058_v42  ;;  %v16360_v22 = vpop.f32.mrf.mxu0  ;;  %11783 = vmatpush3.bf16.msra.mxu0 %v12184_v37 }
 0x438   : > { %18531 = vst [vmem:[#allocation125_spill] sm:$0xff] %v16360_v22  ;;  %v11347_v40 = vpop.f32.mrf.mxu1 }
 0x439   : > { %v16365_v61 = vadd.f32 %v11347_v40, %v16061_v26  ;;  %v16367_v18 = vpop.f32.mrf.mxu0  ;;  %11715 = vmatpush3.bf16.msra.mxu1 %v12179_v25  ;;  %v7862_v26 = vsel %vm18535_vm7, %v7859_v55, %v7861_v62  ;;  %v16377_v40 = vpack.c.bf16 %v7729_v5, %v7728_v20  ;;  %v7864_v25 = vsel %vm18536_vm11, %v7861_v62, %v7863_v24  ;;  %vm18611_vm7 = vmmov %vm18544_vm0 }
 0x43a   : > { %18533 = vst [vmem:[#allocation47_spill] sm:$0xff] %v16367_v18  ;;  %11673 = vmatmul.mubr.bf16.gmra.mxu0 %v16347_v9  ;;  %v6213_v42 = vpop.f32.mrf.mxu1  ;;  %11716 = vmatprep.subr.bf16.mxu1 %v12181_v58  ;;  %v7731_v18 = vld [vmem:[#allocation3 + $0xd1] sm:$0xff] }
 0x43b   : > { %18532 = vst [vmem:[#allocation37_spill] sm:$0xff] %v16365_v61  ;;  %11676 = vmatprep.mubr.bf16.mxu0 %v16350_v33  ;;  %v16372_v37 = vadd.f32 %v6213_v42, %v16064_v15  ;;  %v16374_v6 = vpop.f32.mrf.mxu0  ;;  %v16380_v28 = vpack.c.bf16 %v7731_v18, %v7730_v4  ;;  %v7865_v42 = vrot.slane %v16377_v40, 4  ;;  %v7733_v18 = vld [vmem:[#allocation3 + $0xe1] sm:$0xff] }
 0x43c   : > { %18534 = vst [vmem:[#allocation54_spill] sm:$0xff] %v16374_v6  ;;  %v11350_v22 = vpop.f32.mrf.mxu1  ;;  %11605 = vmatmul.mubr.bf16.gmra.mxu1 %v7862_v26  ;;  %v18539_v4 = vld [vmem:[#allocation100_spill] sm:$0xff] }
 0x43d   : > { %v16383_v38 = vadd.f32 %v11350_v22, %v16069_v13  ;;  %v16385_v61 = vpop.f32.mrf.mxu0  ;;  %11608 = vmatprep.mubr.bf16.mxu1 %v7864_v25  ;;  %11717 = vmatpush3.bf16.msra.mxu1 %v12181_v58  ;;  %v7867_v62 = vrot.slane %v16380_v28, 4  ;;  %v7734_v58 = vld [vmem:[#allocation3 + $0xe9] sm:$0xff] }
 0x43e   : > { %18537 = vst [vmem:[#allocation92_spill] sm:$0xff] %v16385_v61  ;;  %v6226_v15 = vpop.f32.mrf.mxu1  ;;  %11718 = vmatprep.subr.bf16.mxu1 %v12183_v32 }
 0x43f   : > { %v16388_v55 = vadd.f32 %v6226_v15, %v16071_v16  ;;  %v16390_v5 = vpop.f32.mrf.mxu0  ;;  %v7732_v16 = vld [vmem:[#allocation3 + $0xd9] sm:$0xff] }
 0x440   : > { %18538 = vst [vmem:[#allocation91_spill] sm:$0xff] %v16390_v5  ;;  %v11351_v20 = vpop.f32.mrf.mxu1  ;;  %v7866_v5 = vsel %vm18543_vm4, %v7863_v24, %v7865_v42  ;;  %v16407_v61 = vpack.c.bf16 %v7733_v18, %v7732_v16 }
 0x441   : > { %v16395_v13 = vadd.f32 %v11351_v20, %v18539_v4  ;;  %v16397_v22 = vpop.f32.mrf.mxu0  ;;  %11719 = vmatpush3.bf16.msra.mxu1 %v12183_v32  ;;  %v7735_v20 = vld [vmem:[#allocation3 + $0xf1] sm:$0xff] }
 0x442   : > { %18541 = vst [vmem:[#allocation131_spill] sm:$0xff] %v16397_v22  ;;  %11677 = vmatmul.mubr.bf16.gmra.mxu0 %v16377_v40  ;;  %v6229_v26 = vpop.f32.mrf.mxu1  ;;  %v7868_v22 = vsel %vm18544_vm0, %v7865_v42, %v7867_v62  ;;  %v16410_v6 = vpack.c.bf16 %v7735_v20, %v7734_v58  ;;  %v7869_v18 = vrot.slane %v16407_v61, 4  ;;  %v7737_v42 = vld [vmem:[#allocation3 + $0x101] sm:$0xff] }
 0x443   : > { %18540 = vst [vmem:[#allocation134_spill] sm:$0xff] %v16395_v13  ;;  %11680 = vmatprep.mubr.bf16.mxu0 %v16380_v28  ;;  %v16402_v25 = vadd.f32 %v6229_v26, %v16077_v57  ;;  %v16404_v15 = vpop.f32.mrf.mxu0 }
 0x444   : > { %18542 = vst [vmem:[#allocation42_spill] sm:$0xff] %v16404_v15  ;;  %v11354_v4 = vpop.f32.mrf.mxu1  ;;  %11609 = vmatmul.mubr.bf16.gmra.mxu1 %v7866_v5  ;;  %18545 = vst [vmem:[#allocation41_spill] sm:$0xff] %v16410_v6  ;;  %v7871_v5 = vrot.slane %v16410_v6, 4 }
 0x445   : > { %v16413_v32 = vadd.f32 %v11354_v4, %v16081_v21  ;;  %v16415_v13 = vpop.f32.mrf.mxu0  ;;  %11612 = vmatprep.mubr.bf16.mxu1 %v7868_v22  ;;  %v7738_v22 = vld [vmem:[#allocation3 + $0x109] sm:$0xff] }
 0x446   : > { %18546 = vst [vmem:[#allocation53_spill] sm:$0xff] %v16415_v13  ;;  %v6242_v57 = vpop.f32.mrf.mxu1 }
 0x447   : > { %v16418_v26 = vadd.f32 %v6242_v57, %v16083_v34  ;;  %v16420_v24 = vpop.f32.mrf.mxu0  ;;  %v7736_v34 = vld [vmem:[#allocation3 + $0xf9] sm:$0xff] }
 0x448   : > { %18547 = vst [vmem:[#allocation44_spill] sm:$0xff] %v16420_v24  ;;  %v11355_v16 = vpop.f32.mrf.mxu1  ;;  %v7870_v24 = vsel %vm18551_vm5, %v7867_v62, %v7869_v18  ;;  %v16437_v13 = vpack.c.bf16 %v7737_v42, %v7736_v34 }
 0x449   : > { %v16425_v58 = vadd.f32 %v11355_v16, %v16086_v17  ;;  %v16427_v21 = vpop.f32.mrf.mxu0  ;;  %v7739_v17 = vld [vmem:[#allocation3 + $0x111] sm:$0xff] }
 0x44a   : > { %18549 = vst [vmem:[#allocation127_spill] sm:$0xff] %v16427_v21  ;;  %11681 = vmatmul.mubr.bf16.gmra.mxu0 %v16407_v61  ;;  %v6245_v20 = vpop.f32.mrf.mxu1  ;;  %v7872_v21 = vsel %vm18552_vm1, %v7869_v18, %v7871_v5  ;;  %v16440_v15 = vpack.c.bf16 %v7739_v17, %v7738_v22  ;;  %v7873_v42 = vrot.slane %v16437_v13, 4  ;;  %v7741_v18 = vld [vmem:[#allocation3 + $0x121] sm:$0xff] }
 0x44b   : > { %18548 = vst [vmem:[#allocation132_spill] sm:$0xff] %v16425_v58  ;;  %11684 = vmatprep.mubr.bf16.mxu0 %v16410_v6  ;;  %v16432_v4 = vadd.f32 %v6245_v20, %v16089_v63  ;;  %v16434_v57 = vpop.f32.mrf.mxu0 }
 0x44c   : > { %18550 = vst [vmem:[#allocation43_spill] sm:$0xff] %v16434_v57  ;;  %v11358_v16 = vpop.f32.mrf.mxu1  ;;  %11613 = vmatmul.mubr.bf16.gmra.mxu1 %v7870_v24  ;;  %18553 = vst [vmem:[#allocation55_spill] sm:$0xff] %v16440_v15  ;;  %v7875_v24 = vrot.slane %v16440_v15, 4 }
 0x44d   : > { %v16443_v58 = vadd.f32 %v11358_v16, %v16098_v56  ;;  %v16445_v6 = vpop.f32.mrf.mxu0  ;;  %11616 = vmatprep.mubr.bf16.mxu1 %v7872_v21  ;;  %v7742_v21 = vld [vmem:[#allocation3 + $0x129] sm:$0xff] }
 0x44e   : > { %18554 = vst [vmem:[#allocation138_spill] sm:$0xff] %v16445_v6  ;;  %v6258_v63 = vpop.f32.mrf.mxu1 }
 0x44f   : > { %v16448_v20 = vadd.f32 %v6258_v63, %v16101_v27  ;;  %v16450_v62 = vpop.f32.mrf.mxu0  ;;  %v7740_v27 = vld [vmem:[#allocation3 + $0x119] sm:$0xff] }
 0x450   : > { %18555 = vst [vmem:[#allocation38_spill] sm:$0xff] %v16450_v62  ;;  %v11359_v34 = vpop.f32.mrf.mxu1  ;;  %v7874_v62 = vsel %vm18559_vm8, %v7871_v5, %v7873_v42  ;;  %v16467_v6 = vpack.c.bf16 %v7741_v18, %v7740_v27 }
 0x451   : > { %v16455_v22 = vadd.f32 %v11359_v34, %v16104_v49  ;;  %v16457_v56 = vpop.f32.mrf.mxu0  ;;  %v7743_v49 = vld [vmem:[#allocation3 + $0x131] sm:$0xff] }
 0x452   : > { %18557 = vst [vmem:[#allocation45_spill] sm:$0xff] %v16457_v56  ;;  %11685 = vmatmul.mubr.bf16.gmra.mxu0 %v16437_v13  ;;  %v6261_v17 = vpop.f32.mrf.mxu1  ;;  %v7876_v56 = vsel %vm18560_vm13, %v7873_v42, %v7875_v24  ;;  %v16470_v57 = vpack.c.bf16 %v7743_v49, %v7742_v21  ;;  %v7877_v18 = vrot.slane %v16467_v6, 4  ;;  %v7745_v42 = vld [vmem:[#allocation3 + $0x141] sm:$0xff] }
 0x453   : > { %18556 = vst [vmem:[#allocation129_spill] sm:$0xff] %v16455_v22  ;;  %11688 = vmatprep.mubr.bf16.mxu0 %v16440_v15  ;;  %v16462_v16 = vadd.f32 %v6261_v17, %v16108_v60  ;;  %v16464_v63 = vpop.f32.mrf.mxu0 }
 0x454   : > { %18558 = vst [vmem:[#allocation56_spill] sm:$0xff] %v16464_v63  ;;  %v11362_v34 = vpop.f32.mrf.mxu1  ;;  %11617 = vmatmul.mubr.bf16.gmra.mxu1 %v7874_v62  ;;  %18561 = vst [vmem:[#allocation48_spill] sm:$0xff] %v16470_v57  ;;  %v7879_v62 = vrot.slane %v16470_v57, 4 }
 0x455   : > { %v16473_v22 = vadd.f32 %v11362_v34, %v16117_v51  ;;  %v16475_v15 = vpop.f32.mrf.mxu0  ;;  %11620 = vmatprep.mubr.bf16.mxu1 %v7876_v56  ;;  %v7746_v56 = vld [vmem:[#allocation3 + $0x149] sm:$0xff] }
 0x456   : > { %18562 = vst [vmem:[#allocation139_spill] sm:$0xff] %v16475_v15  ;;  %v6274_v60 = vpop.f32.mrf.mxu1 }
 0x457   : > { %v16478_v17 = vadd.f32 %v6274_v60, %v16121_v10  ;;  %v16480_v5 = vpop.f32.mrf.mxu0  ;;  %v7744_v10 = vld [vmem:[#allocation3 + $0x139] sm:$0xff] }
 0x458   : > { %18563 = vst [vmem:[#allocation130_spill] sm:$0xff] %v16480_v5  ;;  %v11363_v27 = vpop.f32.mrf.mxu1  ;;  %v7878_v5 = vsel %vm18568_vm6, %v7875_v24, %v7877_v18  ;;  %v16497_v15 = vpack.c.bf16 %v7745_v42, %v7744_v10 }
 0x459   : > { %v16485_v21 = vadd.f32 %v11363_v27, %v16123_v12  ;;  %v16487_v51 = vpop.f32.mrf.mxu0  ;;  %v7747_v12 = vld [vmem:[#allocation3 + $0x151] sm:$0xff] }
 0x45a   : > { %18565 = vst [vmem:[#allocation46_spill] sm:$0xff] %v16487_v51  ;;  %11689 = vmatmul.mubr.bf16.gmra.mxu0 %v16467_v6  ;;  %v6277_v49 = vpop.f32.mrf.mxu1  ;;  %18569 = vst [vmem:[#allocation141_spill] sm:$0xff] %v16497_v15  ;;  %v7880_v51 = vsel %vm18570_vm9, %v7877_v18, %v7879_v62  ;;  %v16500_v63 = vpack.c.bf16 %v7747_v12, %v7746_v56  ;;  %v7881_v42 = vrot.slane %v16497_v15, 4  ;;  %v7749_v18 = vld [vmem:[#allocation3 + $0x161] sm:$0xff]  ;;  %v18577_v56 = vld [vmem:[#allocation103_spill] sm:$0xff] }
 0x45b   : > { %18564 = vst [vmem:[#allocation57_spill] sm:$0xff] %v16485_v21  ;;  %11692 = vmatprep.mubr.bf16.mxu0 %v16470_v57  ;;  %v16492_v34 = vadd.f32 %v6277_v49, %v16126_v8  ;;  %v16494_v60 = vpop.f32.mrf.mxu0  ;;  %v18574_v49 = vld [vmem:[#allocation104_spill] sm:$0xff] }
 0x45c   : > { %18567 = vst [vmem:[#allocation70_spill] sm:$0xff] %v16494_v60  ;;  %v11366_v27 = vpop.f32.mrf.mxu1  ;;  %11621 = vmatmul.mubr.bf16.gmra.mxu1 %v7878_v5  ;;  %18571 = vst [vmem:[#allocation135_spill] sm:$0xff] %v16500_v63  ;;  %v7883_v5 = vrot.slane %v16500_v63, 4 }
 0x45d   : > { %18566 = vst [vmem:[#allocation58_spill] sm:$0xff] %v16492_v34  ;;  %v16503_v21 = vadd.f32 %v11366_v27, %v16159_v36  ;;  %v16505_v57 = vpop.f32.mrf.mxu0  ;;  %11624 = vmatprep.mubr.bf16.mxu1 %v7880_v51  ;;  %v7750_v51 = vld [vmem:[#allocation3 + $0x169] sm:$0xff] }
 0x45e   : > { %18573 = vst [vmem:[#allocation148_spill] sm:$0xff] %v16505_v57  ;;  %v6290_v8 = vpop.f32.mrf.mxu1  ;;  %v18586_v34 = vld [vmem:[#allocation105_spill] sm:$0xff] }
 0x45f   : > { %18572 = vst [vmem:[#allocation128_spill] sm:$0xff] %v16503_v21  ;;  %v16508_v60 = vadd.f32 %v6290_v8, %v18574_v49  ;;  %v16510_v24 = vpop.f32.mrf.mxu0  ;;  %v7748_v8 = vld [vmem:[#allocation3 + $0x159] sm:$0xff]  ;;  %v18580_v49 = vld [vmem:[#allocation106_spill] sm:$0xff] }
 0x460   : > { %18576 = vst [vmem:[#allocation142_spill] sm:$0xff] %v16510_v24  ;;  %v11367_v10 = vpop.f32.mrf.mxu1  ;;  %v16527_v21 = vpack.c.bf16 %v7749_v18, %v7748_v8  ;;  %v18591_v8 = vld [vmem:[#allocation109_spill] sm:$0xff] }
 0x461   : > { %18575 = vst [vmem:[#allocation145_spill] sm:$0xff] %v16508_v60  ;;  %v16515_v12 = vadd.f32 %v11367_v10, %v18577_v56  ;;  %v16517_v36 = vpop.f32.mrf.mxu0  ;;  %v7882_v60 = vsel %vm18583_vm10, %v7879_v62, %v7881_v42  ;;  %v7751_v10 = vld [vmem:[#allocation3 + $0x171] sm:$0xff] }
 0x462   : > { %18579 = vst [vmem:[#allocation49_spill] sm:$0xff] %v16517_v36  ;;  %11693 = vmatmul.mubr.bf16.gmra.mxu0 %v16497_v15  ;;  %v6293_v27 = vpop.f32.mrf.mxu1  ;;  %v7884_v36 = vsel %vm18584_vm15, %v7881_v42, %v7883_v5  ;;  %v7885_v18 = vrot.slane %v16527_v21, 4 }
 0x463   : > { %18578 = vst [vmem:[#allocation59_spill] sm:$0xff] %v16515_v12  ;;  %11696 = vmatprep.mubr.bf16.mxu0 %v16500_v63  ;;  %v16522_v24 = vadd.f32 %v6293_v27, %v18580_v49  ;;  %v16524_v57 = vpop.f32.mrf.mxu0  ;;  %v16530_v12 = vpack.c.bf16 %v7751_v10, %v7750_v51  ;;  %v7753_v51 = vld [vmem:[#allocation3 + $0x181] sm:$0xff] }
 0x464   : > { %18582 = vst [vmem:[#allocation149_spill] sm:$0xff] %v16524_v57  ;;  %v11370_v56 = vpop.f32.mrf.mxu1  ;;  %11625 = vmatmul.mubr.bf16.gmra.mxu1 %v7882_v60 }
 0x465   : > { %18581 = vst [vmem:[#allocation151_spill] sm:$0xff] %v16522_v24  ;;  %18585 = vst [vmem:[#allocation144_spill] sm:$0xff] %v16530_v12  ;;  %v16533_v15 = vadd.f32 %v11370_v56, %v18586_v34  ;;  %v16535_v63 = vpop.f32.mrf.mxu0  ;;  %11628 = vmatprep.mubr.bf16.mxu1 %v7884_v36  ;;  %v7887_v42 = vrot.slane %v16530_v12, 4  ;;  %v7754_v36 = vld [vmem:[#allocation3 + $0x189] sm:$0xff]  ;;  %v7752_v56 = vld [vmem:[#allocation3 + $0x179] sm:$0xff] }
 0x466   : > { %18588 = vst [vmem:[#allocation60_spill] sm:$0xff] %v16535_v63  ;;  %v6306_v27 = vpop.f32.mrf.mxu1  ;;  %v7886_v63 = vsel %vm18595_vm3, %v7883_v5, %v7885_v18  ;;  %v16557_v57 = vpack.c.bf16 %v7753_v51, %v7752_v56 }
 0x467   : > { %18587 = vst [vmem:[#allocation133_spill] sm:$0xff] %v16533_v15  ;;  %v16538_v49 = vadd.f32 %v6306_v27, %v16201_v35  ;;  %v16540_v62 = vpop.f32.mrf.mxu0 }
 0x468   : > { %18590 = vst [vmem:[#allocation75_spill] sm:$0xff] %v16540_v62  ;;  %v11371_v60 = vpop.f32.mrf.mxu1 }
 0x469   : > { %18589 = vst [vmem:[#allocation76_spill] sm:$0xff] %v16538_v49  ;;  %v16545_v34 = vadd.f32 %v11371_v60, %v18591_v8  ;;  %v16547_v10 = vpop.f32.mrf.mxu0  ;;  %v7755_v60 = vld [vmem:[#allocation3 + $0x191] sm:$0xff]  ;;  %v9105_v8 = vld [vmem:[%s12609_s27 + $0x19] sm:$0xff]  ;;  %v7888_v49 = vsel %vm18596_vm14, %v7885_v18, %v7887_v42 }
 0x46a   : > { %18593 = vst [vmem:[#allocation61_spill] sm:$0xff] %v16547_v10  ;;  %11697 = vmatmul.mubr.bf16.gmra.mxu0 %v16527_v21  ;;  %v6309_v35 = vpop.f32.mrf.mxu1  ;;  %v16562_v15 = vpack.c.bf16 %v7755_v60, %v7754_v36  ;;  %v9107_v60 = vld [vmem:[%s12609_s27 + $0x29] sm:$0xff] }
 0x46b   : > { %18592 = vst [vmem:[#allocation146_spill] sm:$0xff] %v16545_v34  ;;  %11700 = vmatprep.mubr.bf16.mxu0 %v16530_v12  ;;  %v16552_v27 = vadd.f32 %v6309_v35, %v16219_v30  ;;  %v16554_v62 = vpop.f32.mrf.mxu0  ;;  %v9106_v34 = vld [vmem:[%s12609_s27 + $0x21] sm:$0xff]  ;;  %v18597_v12 = vld [vmem:[#allocation111_spill] sm:$0xff] }
 0x46c   : > { %18594 = vst [vmem:[#allocation136_spill] sm:$0xff] %v16554_v62  ;;  %v11374_v10 = vpop.f32.mrf.mxu1  ;;  %11629 = vmatmul.mubr.bf16.gmra.mxu1 %v7886_v63  ;;  %v9153_v51 = vpack.c.bf16 %v9106_v34, %v9105_v8  ;;  %v7889_v63 = vrot.slane %v16557_v57, 4  ;;  %v9108_v8 = vld [vmem:[%s12609_s27 + $0x31] sm:$0xff]  ;;  %v9109_v62 = vld [vmem:[%s12609_s27 + $0x39] sm:$0xff] }
 0x46d   : > { %v16565_v24 = vadd.f32 %v11374_v10, %v18597_v12  ;;  %v16567_v30 = vpop.f32.mrf.mxu0  ;;  %11632 = vmatprep.mubr.bf16.mxu1 %v7888_v49  ;;  %v7891_v12 = vrot.slane %v16562_v15, 4  ;;  %v7757_v49 = vld [vmem:[#allocation3 + $0x1a1] sm:$0xff] }
 0x46e   : > { %18598 = vst [vmem:[#allocation62_spill] sm:$0xff] %v16567_v30  ;;  %v6322_v5 = vpop.f32.mrf.mxu1  ;;  %v7890_v30 = vsel %vm18604_vm12, %v7887_v42, %v7889_v63 }
 0x46f   : > { %v16570_v35 = vadd.f32 %v6322_v5, %v16226_v59  ;;  %v16572_v56 = vpop.f32.mrf.mxu0  ;;  %v7756_v59 = vld [vmem:[#allocation3 + $0x199] sm:$0xff] }
 0x470   : > { %18599 = vst [vmem:[#allocation77_spill] sm:$0xff] %v16572_v56  ;;  %v11375_v18 = vpop.f32.mrf.mxu1 }
 0x471   : > { %v16577_v10 = vadd.f32 %v11375_v18, %v16228_v39  ;;  %v16579_v36 = vpop.f32.mrf.mxu0  ;;  %v9110_v39 = vld [vmem:[%s12609_s27 + $0x41] sm:$0xff] }
 0x472   : > { %18601 = vst [vmem:[#allocation147_spill] sm:$0xff] %v16579_v36  ;;  %11701 = vmatmul.mubr.bf16.gmra.mxu0 %v16557_v57  ;;  %v6325_v34 = vpop.f32.mrf.mxu1  ;;  %v7892_v36 = vsel %vm18605_vm2, %v7889_v63, %v7891_v12  ;;  %v9155_v42 = vpack.c.bf16 %v9110_v39, %v9109_v62 }
 0x473   : > { %18600 = vst [vmem:[#allocation153_spill] sm:$0xff] %v16577_v10  ;;  %11784 = vmatprep.mubr.bf16.mxu0 %v9153_v51  ;;  %v16585_v5 = vadd.f32 %v6325_v34, %v16231_v54  ;;  %v16587_v56 = vpop.f32.mrf.mxu0  ;;  %v16598_v54 = vpack.c.bf16 %v7757_v49, %v7756_v59  ;;  %v9154_v34 = vpack.c.bf16 %v9108_v8, %v9107_v60  ;;  %v9111_v49 = vld [vmem:[%s12609_s27 + $0x49] sm:$0xff]  ;;  %v9112_v59 = vld [vmem:[%s12609_s27 + $0x51] sm:$0xff]  ;;  %v9114_v8 = vld [vmem:[%s12609_s27 + $0x61] sm:$0xff] }
 0x474   : > { %18603 = vst [vmem:[#allocation63_spill] sm:$0xff] %v16587_v56  ;;  %v11378_v18 = vpop.f32.mrf.mxu1  ;;  %11633 = vmatmul.mubr.bf16.gmra.mxu1 %v7890_v30 }
 0x475   : > { %18602 = vst [vmem:[#allocation137_spill] sm:$0xff] %v16585_v5  ;;  %v16594_v10 = vadd.f32 %v11378_v18, %v16236_v52  ;;  %v16596_v51 = vpop.f32.mrf.mxu0  ;;  %11636 = vmatprep.mubr.bf16.mxu1 %v7892_v36 }
 0x476   : > { %18606 = vst [vmem:[#allocation64_spill] sm:$0xff] %v16596_v51  ;;  %v6338_v56 = vpop.f32.mrf.mxu1  ;;  %v7893_v51 = vrot.slane %v16598_v54, 4 }
 0x477   : > { %v16601_v5 = vadd.f32 %v6338_v56, %v16243_v3  ;;  %v16603_v30 = vpop.f32.mrf.mxu0  ;;  %v9113_v56 = vld [vmem:[%s12609_s27 + $0x59] sm:$0xff] }
 0x478   : > { %18608 = vst [vmem:[#allocation81_spill] sm:$0xff] %v16603_v30  ;;  %v11379_v63 = vpop.f32.mrf.mxu1  ;;  %v7894_v3 = vsel %vm18611_vm7, %v7891_v12, %v7893_v51 }
 0x479   : > { %18607 = vst [vmem:[#allocation140_spill] sm:$0xff] %v16601_v5  ;;  %v16606_v52 = vadd.f32 %v11379_v63, %v16245_v47  ;;  %v11530_v18 = vpop.f32.mrf.mxu0  ;;  %v9157_v63 = vpack.c.bf16 %v9114_v8, %v9113_v56  ;;  %v9118_v56 = vld [vmem:[%s12609_s27 + $0x81] sm:$0xff] }
 0x47a   : > { %11785 = vmatmul.mubr.bf16.vlgmr.msra.gmra.mxu0 %v9154_v34  ;;  %v6341_v36 = vpop.f32.mrf.mxu1 }
 0x47b   : > { %18609 = vst [vmem:[#allocation157_spill] sm:$0xff] %v16606_v52  ;;  %11788 = vmatprep.mubr.bf16.mxu0 %v9155_v42  ;;  %v16612_v62 = vadd.f32 %v6341_v36, %v16250_v1  ;;  %v7323_v60 = vpop.f32.mrf.mxu0  ;;  %v9156_v42 = vpack.c.bf16 %v9112_v59, %v9111_v49  ;;  %v9117_v59 = vld [vmem:[%s12609_s27 + $0x79] sm:$0xff] }
 0x47c   : > { %v11382_v39 = vpop.f32.mrf.mxu1  ;;  %11637 = vmatmul.mubr.bf16.gmra.mxu1 %v7894_v3  ;;  %v18618_v52 = vld [vmem:[#allocation112_spill] sm:$0xff] }
 0x47d   : > { %18610 = vst [vmem:[#allocation155_spill] sm:$0xff] %v16612_v62  ;;  %v16618_v47 = vadd.f32 %v11382_v39, %v16265_v19  ;;  %v11531_v34 = vpop.f32.mrf.mxu0  ;;  %11720 = vmatprep.mubr.bf16.mxu1 %v16254_v50  ;;  %v9115_v39 = vld [vmem:[%s12609_s27 + $0x69] sm:$0xff] }
 0x47e   : > { %v6354_v1 = vpop.f32.mrf.mxu1 }
 0x47f   : > { %18612 = vst [vmem:[#allocation69_spill] sm:$0xff] %v16618_v47  ;;  %v16622_v36 = vadd.f32 %v6354_v1, %v16269_v43  ;;  %v7326_v12 = vpop.f32.mrf.mxu0  ;;  %v9116_v47 = vld [vmem:[%s12609_s27 + $0x71] sm:$0xff] }
 0x480   : > { %v11383_v51 = vpop.f32.mrf.mxu1  ;;  %v18616_v43 = vld [vmem:[#allocation120_spill] sm:$0xff] }
 0x481   : > { %18613 = vst [vmem:[#allocation65_spill] sm:$0xff] %v16622_v36  ;;  %v16625_v30 = vadd.f32 %v11383_v51, %v16275_v11  ;;  %v11534_v3 = vpop.f32.mrf.mxu0  ;;  %v9158_v11 = vpack.c.bf16 %v9116_v47, %v9115_v39  ;;  %v9119_v47 = vld [vmem:[%s12609_s27 + $0x89] sm:$0xff]  ;;  %v9120_v39 = vld [vmem:[%s12609_s27 + $0x91] sm:$0xff] }
 0x482   : > { %11789 = vmatmul.mubr.bf16.gmra.mxu0 %v9156_v42  ;;  %v6357_v19 = vpop.f32.mrf.mxu1 }
 0x483   : > { %18614 = vst [vmem:[#allocation143_spill] sm:$0xff] %v16625_v30  ;;  %11792 = vmatprep.mubr.bf16.mxu0 %v9157_v63  ;;  %v16630_v50 = vadd.f32 %v6357_v19, %v16281_v23  ;;  %v7339_v49 = vpop.f32.mrf.mxu0  ;;  %v9159_v63 = vpack.c.bf16 %v9118_v56, %v9117_v59  ;;  %v18617_v30 = vld [vmem:[#allocation107_spill] sm:$0xff] }
 0x484   : > { %v11466_v8 = vpop.f32.mrf.mxu1  ;;  %11721 = vmatmul.mubr.bf16.vlgmr.msra.gmra.mxu1 %v16263_v14 }
 0x485   : > { %18615 = vst [vmem:[#allocation66_spill] sm:$0xff] %v16630_v50  ;;  %v7042_v1 = vadd.f32 %v11466_v8, %v18616_v43  ;;  %v11535_v36 = vpop.f32.mrf.mxu0  ;;  %11724 = vmatprep.mubr.bf16.mxu1 %v16286_v31 }
 0x486   : > { %v7033_v42 = vpop.f32.mrf.mxu1 }
 0x487   : > { %v7516_v51 = vadd.f32 %v11530_v18, %v7042_v1  ;;  %v7034_v23 = vadd.f32 %v7033_v42, %v18617_v30  ;;  %v7342_v19 = vpop.f32.mrf.mxu0  ;;  %v18619_v18 = vld [vmem:[#allocation114_spill] sm:$0xff]  ;;  %v9121_v30 = vld [vmem:[%s12609_s27 + $0x99] sm:$0xff] }
 0x488   : > { %v11467_v50 = vpop.f32.mrf.mxu1  ;;  %v9122_v1 = vld [vmem:[%s12609_s27 + $0xa1] sm:$0xff] }
 0x489   : > { %v7514_v62 = vadd.f32 %v7323_v60, %v7034_v23  ;;  %v7045_v14 = vadd.f32 %v11467_v50, %v18618_v52  ;;  %v11538_v5 = vpop.f32.mrf.mxu0  ;;  %v16640_v8 = vadd.f32 %v7516_v51, %v16292_v53  ;;  %v18621_v52 = vld [vmem:[#allocation108_spill] sm:$0xff]  ;;  %v18623_v23 = vld [vmem:[#allocation118_spill] sm:$0xff] }
 0x48a   : > { %11793 = vmatmul.mubr.bf16.gmra.mxu0 %v9158_v11  ;;  %v7036_v31 = vpop.f32.mrf.mxu1  ;;  %v18622_v11 = vld [vmem:[#allocation121_spill] sm:$0xff] }
 0x48b   : > { %11796 = vmatprep.mubr.bf16.mxu0 %v9159_v63  ;;  %v7517_v59 = vadd.f32 %v11531_v34, %v7045_v14  ;;  %v7037_v56 = vadd.f32 %v7036_v31, %v18619_v18  ;;  %v7355_v43 = vpop.f32.mrf.mxu0  ;;  %v16648_v42 = vadd.f32 %v7514_v62, %v16298_v29  ;;  %v9160_v63 = vpack.c.bf16 %v9120_v39, %v9119_v47  ;;  %v18624_v29 = vld [vmem:[#allocation122_spill] sm:$0xff] }
 0x48c   : > { %v11470_v60 = vpop.f32.mrf.mxu1  ;;  %11725 = vmatmul.mubr.bf16.gmra.mxu1 %v18621_v52  ;;  %v9161_v31 = vpack.c.bf16 %v9122_v1, %v9121_v30  ;;  %v9124_v30 = vld [vmem:[%s12609_s27 + $0xb1] sm:$0xff] }
 0x48d   : > { %18620 = vst [vmem:[#allocation160_spill] sm:$0xff] %v16648_v42  ;;  %v7515_v50 = vadd.f32 %v7326_v12, %v7037_v56  ;;  %v7058_v53 = vadd.f32 %v11470_v60, %v18622_v11  ;;  %v11539_v51 = vpop.f32.mrf.mxu0  ;;  %11728 = vmatprep.mubr.bf16.mxu1 %v16317_v2  ;;  %v16654_v34 = vadd.f32 %v7517_v59, %v18623_v23  ;;  %v18625_v2 = vld [vmem:[#allocation116_spill] sm:$0xff]  ;;  %v18626_v11 = vld [vmem:[#allocation117_spill] sm:$0xff] }
 0x48e   : > { %v7049_v14 = vpop.f32.mrf.mxu1 }
 0x48f   : > { %v7520_v18 = vadd.f32 %v11534_v3, %v7058_v53  ;;  %v7050_v62 = vadd.f32 %v7049_v14, %v18624_v29  ;;  %v7358_v42 = vpop.f32.mrf.mxu0  ;;  %v16658_v12 = vadd.f32 %v7515_v50, %v16312_v44  ;;  %v9123_v3 = vld [vmem:[%s12609_s27 + $0xa9] sm:$0xff]  ;;  %v9125_v14 = vld [vmem:[%s12609_s27 + $0xb9] sm:$0xff]  ;;  %v9126_v44 = vld [vmem:[%s12609_s27 + $0xc1] sm:$0xff] }
 0x490   : > { %v11471_v56 = vpop.f32.mrf.mxu1  ;;  %v18627_v29 = vld [vmem:[#allocation40_spill] sm:$0xff] }
 0x491   : > { %v7518_v60 = vadd.f32 %v7339_v49, %v7050_v62  ;;  %v7061_v47 = vadd.f32 %v11471_v56, %v18625_v2  ;;  %v11542_v39 = vpop.f32.mrf.mxu0  ;;  %v16662_v59 = vadd.f32 %v7520_v18, %v16323_v45  ;;  %v18628_v62 = vld [vmem:[#allocation126_spill] sm:$0xff]  ;;  %v9163_v2 = vpack.c.bf16 %v9126_v44, %v9125_v14 }
 0x492   : > { %11797 = vmatmul.mubr.bf16.gmra.mxu0 %v9160_v63  ;;  %v7052_v52 = vpop.f32.mrf.mxu1  ;;  %v9128_v14 = vld [vmem:[%s12609_s27 + $0xd1] sm:$0xff] }
 0x493   : > { %11800 = vmatprep.mubr.bf16.mxu0 %v9161_v31  ;;  %v7521_v1 = vadd.f32 %v11535_v36, %v7061_v47  ;;  %v7053_v53 = vadd.f32 %v7052_v52, %v18626_v11  ;;  %v7371_v23 = vpop.f32.mrf.mxu0  ;;  %v16670_v50 = vadd.f32 %v7518_v60, %v16328_v0  ;;  %v9162_v31 = vpack.c.bf16 %v9124_v30, %v9123_v3  ;;  %v18629_v0 = vld [vmem:[#allocation123_spill] sm:$0xff] }
 0x494   : > { %v11474_v49 = vpop.f32.mrf.mxu1  ;;  %11729 = vmatmul.mubr.bf16.gmra.mxu1 %v16320_v7 }
 0x495   : > { %v7519_v63 = vadd.f32 %v7342_v19, %v7053_v53  ;;  %v7074_v45 = vadd.f32 %v11474_v49, %v18627_v29  ;;  %v11543_v18 = vpop.f32.mrf.mxu0  ;;  %11732 = vmatprep.mubr.bf16.mxu1 %v16347_v9  ;;  %v16676_v36 = vadd.f32 %v7521_v1, %v18628_v62  ;;  %v18630_v9 = vld [vmem:[#allocation110_spill] sm:$0xff]  ;;  %v18631_v49 = vld [vmem:[#allocation119_spill] sm:$0xff] }
 0x496   : > { %v7065_v56 = vpop.f32.mrf.mxu1  ;;  %v9129_v62 = vld [vmem:[%s12609_s27 + $0xd9] sm:$0xff] }
 0x497   : > { %v7524_v47 = vadd.f32 %v11538_v5, %v7074_v45  ;;  %v7066_v60 = vadd.f32 %v7065_v56, %v18629_v0  ;;  %v7374_v52 = vpop.f32.mrf.mxu0  ;;  %v16680_v7 = vadd.f32 %v7519_v63, %v16342_v46  ;;  %v9127_v5 = vld [vmem:[%s12609_s27 + $0xc9] sm:$0xff]  ;;  %v9130_v46 = vld [vmem:[%s12609_s27 + $0xe1] sm:$0xff] }
 0x498   : > { %v11475_v19 = vpop.f32.mrf.mxu1  ;;  %v18632_v56 = vld [vmem:[#allocation124_spill] sm:$0xff]  ;;  %v18633_v0 = vld [vmem:[#allocation37_spill] sm:$0xff] }
 0x499   : > { %v7522_v11 = vadd.f32 %v7355_v43, %v7066_v60  ;;  %v7077_v3 = vadd.f32 %v11475_v19, %v18630_v9  ;;  %v11546_v30 = vpop.f32.mrf.mxu0  ;;  %v16684_v1 = vadd.f32 %v7524_v47, %v16353_v48  ;;  %v9165_v19 = vpack.c.bf16 %v9130_v46, %v9129_v62  ;;  %v18636_v46 = vld [vmem:[#allocation125_spill] sm:$0xff] }
 0x49a   : > { %11801 = vmatmul.mubr.bf16.gmra.mxu0 %v9162_v31  ;;  %v7068_v53 = vpop.f32.mrf.mxu1 }
 0x49b   : > { %11804 = vmatprep.mubr.bf16.mxu0 %v9163_v2  ;;  %v7525_v44 = vadd.f32 %v11539_v51, %v7077_v3  ;;  %v7069_v29 = vadd.f32 %v7068_v53, %v18631_v49  ;;  %v7387_v45 = vpop.f32.mrf.mxu0  ;;  %v16692_v63 = vadd.f32 %v7522_v11, %v16358_v41  ;;  %v9164_v2 = vpack.c.bf16 %v9128_v14, %v9127_v5  ;;  %v18634_v41 = vld [vmem:[#allocation113_spill] sm:$0xff] }
 0x49c   : > { %v11478_v43 = vpop.f32.mrf.mxu1  ;;  %11733 = vmatmul.mubr.bf16.gmra.mxu1 %v16350_v33 }
 0x49d   : > { %v7523_v31 = vadd.f32 %v7358_v42, %v7069_v29  ;;  %v7090_v48 = vadd.f32 %v11478_v43, %v18632_v56  ;;  %v11547_v47 = vpop.f32.mrf.mxu0  ;;  %11736 = vmatprep.mubr.bf16.mxu1 %v16377_v40  ;;  %v16698_v51 = vadd.f32 %v7525_v44, %v18633_v0  ;;  %v18635_v40 = vld [vmem:[#allocation52_spill] sm:$0xff]  ;;  %v18637_v0 = vld [vmem:[#allocation47_spill] sm:$0xff] }
 0x49e   : > { %v7081_v60 = vpop.f32.mrf.mxu1  ;;  %v9132_v29 = vld [vmem:[%s12609_s27 + $0xf1] sm:$0xff] }
 0x49f   : > { %v7528_v9 = vadd.f32 %v11542_v39, %v7090_v48  ;;  %v7082_v11 = vadd.f32 %v7081_v60, %v18634_v41  ;;  %v7390_v3 = vpop.f32.mrf.mxu0  ;;  %v16702_v33 = vadd.f32 %v7523_v31, %v16372_v37  ;;  %v9131_v39 = vld [vmem:[%s12609_s27 + $0xe9] sm:$0xff]  ;;  %v9133_v48 = vld [vmem:[%s12609_s27 + $0xf9] sm:$0xff]  ;;  %v9134_v37 = vld [vmem:[%s12609_s27 + $0x101] sm:$0xff] }
 0x4a0   : > { %v11479_v42 = vpop.f32.mrf.mxu1 }
 0x4a1   : > { %v7526_v53 = vadd.f32 %v7371_v23, %v7082_v11  ;;  %v7093_v5 = vadd.f32 %v11479_v42, %v18635_v40  ;;  %v11550_v14 = vpop.f32.mrf.mxu0  ;;  %v16706_v44 = vadd.f32 %v7528_v9, %v16383_v38  ;;  %v18638_v9 = vld [vmem:[#allocation134_spill] sm:$0xff]  ;;  %v9167_v11 = vpack.c.bf16 %v9134_v37, %v9133_v48  ;;  %v18641_v48 = vld [vmem:[#allocation91_spill] sm:$0xff] }
 0x4a2   : > { %11805 = vmatmul.mubr.bf16.gmra.mxu0 %v9164_v2  ;;  %v7084_v49 = vpop.f32.mrf.mxu1 }
 0x4a3   : > { %11808 = vmatprep.mubr.bf16.mxu0 %v9165_v19  ;;  %v7529_v62 = vadd.f32 %v11543_v18, %v7093_v5  ;;  %v7085_v43 = vadd.f32 %v7084_v49, %v18636_v46  ;;  %v7403_v56 = vpop.f32.mrf.mxu0  ;;  %v16714_v31 = vadd.f32 %v7526_v53, %v16388_v55  ;;  %v9166_v19 = vpack.c.bf16 %v9132_v29, %v9131_v39  ;;  %v18639_v55 = vld [vmem:[#allocation54_spill] sm:$0xff] }
 0x4a4   : > { %v11482_v23 = vpop.f32.mrf.mxu1  ;;  %11737 = vmatmul.mubr.bf16.gmra.mxu1 %v16380_v28  ;;  %v9136_v46 = vld [vmem:[%s12609_s27 + $0x111] sm:$0xff] }
 0x4a5   : > { %v7527_v2 = vadd.f32 %v7374_v52, %v7085_v43  ;;  %v7106_v38 = vadd.f32 %v11482_v23, %v18637_v0  ;;  %v11551_v60 = vpop.f32.mrf.mxu0  ;;  %11740 = vmatprep.mubr.bf16.mxu1 %v16407_v61  ;;  %v16720_v18 = vadd.f32 %v7529_v62, %v18638_v9  ;;  %v18640_v61 = vld [vmem:[#allocation92_spill] sm:$0xff]  ;;  %v18643_v9 = vld [vmem:[#allocation131_spill] sm:$0xff] }
 0x4a6   : > { %v7097_v41 = vpop.f32.mrf.mxu1  ;;  %v9137_v0 = vld [vmem:[%s12609_s27 + $0x119] sm:$0xff] }
 0x4a7   : > { %v7532_v42 = vadd.f32 %v11546_v30, %v7106_v38  ;;  %v7098_v53 = vadd.f32 %v7097_v41, %v18639_v55  ;;  %v7406_v40 = vpop.f32.mrf.mxu0  ;;  %v16724_v28 = vadd.f32 %v7527_v2, %v16402_v25  ;;  %v9135_v30 = vld [vmem:[%s12609_s27 + $0x109] sm:$0xff]  ;;  %v9138_v25 = vld [vmem:[%s12609_s27 + $0x121] sm:$0xff] }
 0x4a8   : > { %v11483_v52 = vpop.f32.mrf.mxu1  ;;  %v18642_v38 = vld [vmem:[#allocation41_spill] sm:$0xff] }
 0x4a9   : > { %v7530_v5 = vadd.f32 %v7387_v45, %v7098_v53  ;;  %v7109_v49 = vadd.f32 %v11483_v52, %v18640_v61  ;;  %v11554_v39 = vpop.f32.mrf.mxu0  ;;  %v16728_v29 = vadd.f32 %v7532_v42, %v16413_v32  ;;  %v18644_v42 = vld [vmem:[#allocation132_spill] sm:$0xff]  ;;  %v9169_v53 = vpack.c.bf16 %v9138_v25, %v9137_v0 }
 0x4aa   : > { %11809 = vmatmul.mubr.bf16.gmra.mxu0 %v9166_v19  ;;  %v7100_v62 = vpop.f32.mrf.mxu1  ;;  %v18648_v25 = vld [vmem:[#allocation44_spill] sm:$0xff] }
 0x4ab   : > { %11812 = vmatprep.mubr.bf16.mxu0 %v9167_v11  ;;  %v7533_v43 = vadd.f32 %v11547_v47, %v7109_v49  ;;  %v7101_v37 = vadd.f32 %v7100_v62, %v18641_v48  ;;  %v7419_v23 = vpop.f32.mrf.mxu0  ;;  %v16736_v2 = vadd.f32 %v7530_v5, %v16418_v26  ;;  %v9168_v11 = vpack.c.bf16 %v9136_v46, %v9135_v30  ;;  %v18645_v26 = vld [vmem:[#allocation42_spill] sm:$0xff] }
 0x4ac   : > { %v11486_v45 = vpop.f32.mrf.mxu1  ;;  %11741 = vmatmul.mubr.bf16.gmra.mxu1 %v18642_v38 }
 0x4ad   : > { %v7531_v19 = vadd.f32 %v7390_v3, %v7101_v37  ;;  %v7122_v32 = vadd.f32 %v11486_v45, %v18643_v9  ;;  %v11555_v41 = vpop.f32.mrf.mxu0  ;;  %11744 = vmatprep.mubr.bf16.mxu1 %v16437_v13  ;;  %v16742_v47 = vadd.f32 %v7533_v43, %v18644_v42  ;;  %v18646_v13 = vld [vmem:[#allocation53_spill] sm:$0xff]  ;;  %v9140_v37 = vld [vmem:[%s12609_s27 + $0x131] sm:$0xff] }
 0x4ae   : > { %v7113_v55 = vpop.f32.mrf.mxu1  ;;  %v9141_v9 = vld [vmem:[%s12609_s27 + $0x139] sm:$0xff] }
 0x4af   : > { %v7536_v52 = vadd.f32 %v11550_v14, %v7122_v32  ;;  %v7114_v5 = vadd.f32 %v7113_v55, %v18645_v26  ;;  %v7422_v61 = vpop.f32.mrf.mxu0  ;;  %v16746_v3 = vadd.f32 %v7531_v19, %v16432_v4  ;;  %v9139_v14 = vld [vmem:[%s12609_s27 + $0x129] sm:$0xff]  ;;  %v9142_v4 = vld [vmem:[%s12609_s27 + $0x141] sm:$0xff] }
 0x4b0   : > { %v11487_v49 = vpop.f32.mrf.mxu1  ;;  %v18650_v32 = vld [vmem:[#allocation55_spill] sm:$0xff] }
 0x4b1   : > { %v7534_v62 = vadd.f32 %v7403_v56, %v7114_v5  ;;  %v7125_v30 = vadd.f32 %v11487_v49, %v18646_v13  ;;  %v11558_v46 = vpop.f32.mrf.mxu0  ;;  %v16750_v43 = vadd.f32 %v7536_v52, %v16443_v58  ;;  %v18651_v42 = vld [vmem:[#allocation127_spill] sm:$0xff]  ;;  %v18652_v52 = vld [vmem:[#allocation129_spill] sm:$0xff]  ;;  %v9171_v5 = vpack.c.bf16 %v9142_v4, %v9141_v9  ;;  %v18658_v4 = vld [vmem:[#allocation38_spill] sm:$0xff] }
 0x4b2   : > { %11813 = vmatmul.mubr.bf16.gmra.mxu0 %v9168_v11  ;;  %v7116_v48 = vpop.f32.mrf.mxu1 }
 0x4b3   : > { %18647 = vst [vmem:[#allocation156_spill] sm:$0xff] %v16750_v43  ;;  %11816 = vmatprep.mubr.bf16.mxu0 %v9169_v53  ;;  %v7537_v0 = vadd.f32 %v11551_v60, %v7125_v30  ;;  %v7117_v45 = vadd.f32 %v7116_v48, %v18648_v25  ;;  %v7435_v38 = vpop.f32.mrf.mxu0  ;;  %v16758_v19 = vadd.f32 %v7534_v62, %v16448_v20  ;;  %v18654_v20 = vld [vmem:[#allocation43_spill] sm:$0xff] }
 0x4b4   : > { %v11490_v56 = vpop.f32.mrf.mxu1  ;;  %11745 = vmatmul.mubr.bf16.gmra.mxu1 %v18650_v32  ;;  %v9170_v53 = vpack.c.bf16 %v9140_v37, %v9139_v14 }
 0x4b5   : > { %18649 = vst [vmem:[#allocation71_spill] sm:$0xff] %v16758_v19  ;;  %v7535_v11 = vadd.f32 %v7406_v40, %v7117_v45  ;;  %v7138_v58 = vadd.f32 %v11490_v56, %v18651_v42  ;;  %v11559_v55 = vpop.f32.mrf.mxu0  ;;  %11748 = vmatprep.mubr.bf16.mxu1 %v16467_v6  ;;  %v16764_v60 = vadd.f32 %v7537_v0, %v18652_v52  ;;  %v18656_v6 = vld [vmem:[#allocation138_spill] sm:$0xff]  ;;  %v9145_v42 = vld [vmem:[%s12609_s27 + $0x159] sm:$0xff] }
 0x4b6   : > { %v7129_v26 = vpop.f32.mrf.mxu1  ;;  %v9144_v45 = vld [vmem:[%s12609_s27 + $0x151] sm:$0xff]  ;;  %v18661_v52 = vld [vmem:[#allocation45_spill] sm:$0xff] }
 0x4b7   : > { %18653 = vst [vmem:[#allocation163_spill] sm:$0xff] %v16764_v60  ;;  %v7540_v49 = vadd.f32 %v11554_v39, %v7138_v58  ;;  %v7130_v62 = vadd.f32 %v7129_v26, %v18654_v20  ;;  %v7438_v13 = vpop.f32.mrf.mxu0  ;;  %v16768_v40 = vadd.f32 %v7535_v11, %v16462_v16  ;;  %v9143_v39 = vld [vmem:[%s12609_s27 + $0x149] sm:$0xff]  ;;  %v9146_v16 = vld [vmem:[%s12609_s27 + $0x161] sm:$0xff] }
 0x4b8   : > { %v11491_v30 = vpop.f32.mrf.mxu1  ;;  %v18660_v58 = vld [vmem:[#allocation48_spill] sm:$0xff]  ;;  %v18663_v20 = vld [vmem:[#allocation57_spill] sm:$0xff] }
 0x4b9   : > { %18655 = vst [vmem:[#allocation162_spill] sm:$0xff] %v16768_v40  ;;  %v7538_v48 = vadd.f32 %v7419_v23, %v7130_v62  ;;  %v7141_v14 = vadd.f32 %v11491_v30, %v18656_v6  ;;  %v11562_v37 = vpop.f32.mrf.mxu0  ;;  %v16772_v0 = vadd.f32 %v7540_v49, %v16473_v22  ;;  %v18662_v49 = vld [vmem:[#allocation141_spill] sm:$0xff]  ;;  %v9173_v30 = vpack.c.bf16 %v9146_v16, %v9145_v42  ;;  %v9148_v42 = vld [vmem:[%s12609_s27 + $0x171] sm:$0xff] }
 0x4ba   : > { %11817 = vmatmul.mubr.bf16.gmra.mxu0 %v9170_v53  ;;  %v7132_v25 = vpop.f32.mrf.mxu1 }
 0x4bb   : > { %18657 = vst [vmem:[#allocation158_spill] sm:$0xff] %v16772_v0  ;;  %11820 = vmatprep.mubr.bf16.mxu0 %v9171_v5  ;;  %v7541_v9 = vadd.f32 %v11555_v41, %v7141_v14  ;;  %v7133_v56 = vadd.f32 %v7132_v25, %v18658_v4  ;;  %v7451_v32 = vpop.f32.mrf.mxu0  ;;  %v16780_v11 = vadd.f32 %v7538_v48, %v16478_v17  ;;  %v18665_v17 = vld [vmem:[#allocation56_spill] sm:$0xff]  ;;  %v18666_v25 = vld [vmem:[#allocation58_spill] sm:$0xff] }
 0x4bc   : > { %v11494_v23 = vpop.f32.mrf.mxu1  ;;  %11749 = vmatmul.mubr.bf16.gmra.mxu1 %v18660_v58  ;;  %v9172_v5 = vpack.c.bf16 %v9144_v45, %v9143_v39 }
 0x4bd   : > { %18659 = vst [vmem:[#allocation67_spill] sm:$0xff] %v16780_v11  ;;  %v7539_v53 = vadd.f32 %v7422_v61, %v7133_v56  ;;  %v7154_v22 = vadd.f32 %v11494_v23, %v18661_v52  ;;  %v11563_v26 = vpop.f32.mrf.mxu0  ;;  %11752 = vmatprep.mubr.bf16.mxu1 %v18662_v49  ;;  %v16786_v41 = vadd.f32 %v7541_v9, %v18663_v20  ;;  %v18668_v23 = vld [vmem:[#allocation139_spill] sm:$0xff]  ;;  %v18669_v9 = vld [vmem:[#allocation128_spill] sm:$0xff] }
 0x4be   : > { %v7145_v62 = vpop.f32.mrf.mxu1 }
 0x4bf   : > { %18664 = vst [vmem:[#allocation72_spill] sm:$0xff] %v16786_v41  ;;  %v7544_v6 = vadd.f32 %v11558_v46, %v7154_v22  ;;  %v7146_v48 = vadd.f32 %v7145_v62, %v18665_v17  ;;  %v7454_v14 = vpop.f32.mrf.mxu0  ;;  %v16790_v61 = vadd.f32 %v7539_v53, %v18666_v25  ;;  %v9147_v46 = vld [vmem:[%s12609_s27 + $0x169] sm:$0xff]  ;;  %v9149_v62 = vld [vmem:[%s12609_s27 + $0x179] sm:$0xff]  ;;  %v9150_v53 = vld [vmem:[%s12609_s27 + $0x181] sm:$0xff] }
 0x4c0   : > { %v11495_v4 = vpop.f32.mrf.mxu1  ;;  %v18671_v22 = vld [vmem:[#allocation130_spill] sm:$0xff]  ;;  %v18672_v17 = vld [vmem:[#allocation145_spill] sm:$0xff] }
 0x4c1   : > { %18667 = vst [vmem:[#allocation68_spill] sm:$0xff] %v16790_v61  ;;  %v7542_v56 = vadd.f32 %v7435_v38, %v7146_v48  ;;  %v7157_v39 = vadd.f32 %v11495_v4, %v18668_v23  ;;  %v11566_v45 = vpop.f32.mrf.mxu0  ;;  %v16794_v58 = vadd.f32 %v7544_v6, %v18669_v9  ;;  %v18674_v48 = vld [vmem:[#allocation135_spill] sm:$0xff]  ;;  %v18675_v4 = vld [vmem:[#allocation46_spill] sm:$0xff] }
 0x4c2   : > { %11821 = vmatmul.mubr.bf16.gmra.mxu0 %v9172_v5  ;;  %v7148_v52 = vpop.f32.mrf.mxu1  ;;  %v18676_v9 = vld [vmem:[#allocation59_spill] sm:$0xff] }
 0x4c3   : > { %18670 = vst [vmem:[#allocation73_spill] sm:$0xff] %v16794_v58  ;;  %11824 = vmatprep.mubr.bf16.mxu0 %v9173_v30  ;;  %v7545_v16 = vadd.f32 %v11559_v55, %v7157_v39  ;;  %v7149_v49 = vadd.f32 %v7148_v52, %v18671_v22  ;;  %v7467_v20 = vpop.f32.mrf.mxu0  ;;  %v16802_v25 = vadd.f32 %v7542_v56, %v18672_v17  ;;  %v18678_v56 = vld [vmem:[#allocation70_spill] sm:$0xff]  ;;  %v18679_v58 = vld [vmem:[#allocation151_spill] sm:$0xff] }
 0x4c4   : > { %v11498_v38 = vpop.f32.mrf.mxu1  ;;  %11753 = vmatmul.mubr.bf16.gmra.mxu1 %v18674_v48  ;;  %v9174_v30 = vpack.c.bf16 %v9148_v42, %v9147_v46  ;;  %v9175_v52 = vpack.c.bf16 %v9150_v53, %v9149_v62  ;;  %v18682_v46 = vld [vmem:[#allocation133_spill] sm:$0xff]  ;;  %v9152_v62 = vld [vmem:[%s12609_s27 + $0x191] sm:$0xff] }
 0x4c5   : > { %18673 = vst [vmem:[#allocation169_spill] sm:$0xff] %v16802_v25  ;;  %v7543_v5 = vadd.f32 %v7438_v13, %v7149_v49  ;;  %v7170_v6 = vadd.f32 %v11498_v38, %v18675_v4  ;;  %v11567_v23 = vpop.f32.mrf.mxu0  ;;  %11756 = vmatprep.mubr.bf16.mxu1 %v16527_v21  ;;  %v16808_v55 = vadd.f32 %v7545_v16, %v18676_v9  ;;  %v18681_v38 = vld [vmem:[#allocation148_spill] sm:$0xff]  ;;  %v9151_v9 = vld [vmem:[%s12609_s27 + $0x189] sm:$0xff]  ;;  %s12332_s27 = sshll.u32 %s12412_s11, 4  ;;  %s12333_s27 = int_to_ptr.vmem [resolvable:$false] %s12332_s27 }
 0x4c6   : > { %v7161_v39 = vpop.f32.mrf.mxu1  ;;  %v18684_v53 = vld [vmem:[#allocation142_spill] sm:$0xff]  ;;  %s12334_s1 = scalar_lea.vmem %s12333_s27, 12288  ;;  %p12335_p5 = scmp.lt.s32.totalorder %s17398_s18, %s12333_s27 }
 0x4c7   : > { %18677 = vst [vmem:[#allocation168_spill] sm:$0xff] %v16808_v55  ;;  %v7548_v22 = vadd.f32 %v11562_v37, %v7170_v6  ;;  %v7162_v17 = vadd.f32 %v7161_v39, %v18678_v56  ;;  %v7470_v25 = vpop.f32.mrf.mxu0  ;;  %v16812_v48 = vadd.f32 %v7543_v5, %v18679_v58  ;;  %v18685_v56 = vld [vmem:[#allocation76_spill] sm:$0xff]  ;;  %p12336_p3 = scmp.lt.s32.totalorder %s12334_s1, %s12328_s30 }
 0x4c8   : > { %v11499_v13 = vpop.f32.mrf.mxu1 }
 0x4c9   : > { %18680 = vst [vmem:[#allocation164_spill] sm:$0xff] %v16812_v48  ;;  %v7546_v49 = vadd.f32 %v7451_v32, %v7162_v17  ;;  %v7173_v4 = vadd.f32 %v11499_v13, %v18681_v38  ;;  %v16816_v42 = vadd.f32 %v7548_v22, %v18682_v46  ;;  %v18687_v32 = vld [vmem:[#allocation144_spill] sm:$0xff]  ;;  %v18688_v13 = vld [vmem:[#allocation49_spill] sm:$0xff]  ;;  %v9176_v22 = vpack.c.bf16 %v9152_v62, %v9151_v9  ;;  %p12337_p7 = por %p12336_p3, %p12335_p5 }
 0x4ca   : > { %v11570_v21 = vpop.f32.mrf.mxu0  ;;  %11825 = vmatmul.mubr.bf16.gmra.mxu0 %v9174_v30  ;;  %v7164_v16 = vpop.f32.mrf.mxu1 }
 0x4cb   : > { %18683 = vst [vmem:[#allocation20_spill] sm:$0xff] %v16816_v42  ;;  %11828 = vmatprep.mubr.bf16.mxu0 %v9175_v52  ;;  %v7549_v37 = vadd.f32 %v11563_v26, %v7173_v4  ;;  %v7165_v6 = vadd.f32 %v7164_v16, %v18684_v53  ;;  %v16822_v58 = vadd.f32 %v7546_v49, %v18685_v56  ;;  %v18689_v52 = vld [vmem:[#allocation146_spill] sm:$0xff]  ;;  %v18691_v16 = vld [vmem:[#allocation149_spill] sm:$0xff]  ;;  %p12338_p9 = pnand %p12337_p7, %p12331_p0 }
 0x4cc   : > { %v7483_v39 = vpop.f32.mrf.mxu0  ;;  %v11502_v5 = vpop.f32.mrf.mxu1  ;;  %11757 = vmatmul.mubr.bf16.gmra.mxu1 %v18687_v32 }
 0x4cd   : > { %18686 = vst [vmem:[#allocation74_spill] sm:$0xff] %v16822_v58  ;;  %v7547_v17 = vadd.f32 %v7454_v14, %v7165_v6  ;;  %v7186_v30 = vadd.f32 %v11502_v5, %v18688_v13  ;;  %11760 = vmatprep.mubr.bf16.mxu1 %v16557_v57  ;;  %v16828_v46 = vadd.f32 %v7549_v37, %v18689_v52  ;;  %v18693_v14 = vld [vmem:[#allocation60_spill] sm:$0xff]  ;;  %v18695_v37 = vld [vmem:[#allocation75_spill] sm:$0xff] }
 0x4ce   : > { %v11571_v38 = vpop.f32.mrf.mxu0  ;;  %v7177_v26 = vpop.f32.mrf.mxu1 }
 0x4cf   : > { %18690 = vst [vmem:[#allocation18_spill] sm:$0xff] %v16828_v46  ;;  %v7552_v4 = vadd.f32 %v11566_v45, %v7186_v30  ;;  %v7178_v53 = vadd.f32 %v7177_v26, %v18691_v16  ;;  %v16832_v49 = vadd.f32 %v7547_v17, %v16552_v27 }
 0x4d0   : > { %v7486_v42 = vpop.f32.mrf.mxu0  ;;  %v11503_v56 = vpop.f32.mrf.mxu1 }
 0x4d1   : > { %18692 = vst [vmem:[#allocation167_spill] sm:$0xff] %v16832_v49  ;;  %v7550_v32 = vadd.f32 %v7467_v20, %v7178_v53  ;;  %v7189_v6 = vadd.f32 %v11503_v56, %v18693_v14  ;;  %v16836_v57 = vadd.f32 %v7552_v4, %v16565_v24  ;;  %v18697_v20 = vld [vmem:[#allocation61_spill] sm:$0xff]  ;;  %v7759_v24 = vld [vmem:[#allocation3 + $0x1b1] sm:$0xff]  ;;  %v18700_v56 = vld [vmem:[#allocation136_spill] sm:$0xff] }
 0x4d2   : > { %v11574_v5 = vpop.f32.mrf.mxu0  ;;  %11829 = vmatmul.mubr.bf16.gmra.mxu0 %v9176_v22  ;;  %v7180_v9 = vpop.f32.mrf.mxu1  ;;  %v7758_v22 = vld [vmem:[#allocation3 + $0x1a9] sm:$0xff] }
 0x4d3   : > { %18694 = vst [vmem:[#allocation150_spill] sm:$0xff] %v16836_v57  ;;  %v7553_v62 = vadd.f32 %v11567_v23, %v7189_v6  ;;  %v7181_v13 = vadd.f32 %v7180_v9, %v18695_v37  ;;  %v16840_v30 = vadd.f32 %v7550_v32, %v16570_v35  ;;  %v18698_v4 = vld [vmem:[#allocation153_spill] sm:$0xff]  ;;  %v18703_v37 = vld [vmem:[#allocation62_spill] sm:$0xff] }
 0x4d4   : > { %v7499_v45 = vpop.f32.mrf.mxu0  ;;  %v11506_v52 = vpop.f32.mrf.mxu1  ;;  %11761 = vmatmul.mubr.bf16.gmra.mxu1 %v16562_v15  ;;  %v18701_v32 = vld [vmem:[#allocation137_spill] sm:$0xff] }
 0x4d5   : > { %18696 = vst [vmem:[#allocation180_spill] sm:$0xff] %v16840_v30  ;;  %v7551_v27 = vadd.f32 %v7470_v25, %v7181_v13  ;;  %v7202_v17 = vadd.f32 %v11506_v52, %v18697_v20  ;;  %11764 = vmatprep.mubr.bf16.mxu1 %v16598_v54  ;;  %v16846_v16 = vadd.f32 %v7553_v62, %v18698_v4  ;;  %v18705_v4 = vld [vmem:[#allocation77_spill] sm:$0xff] }
 0x4d6   : > { %v11575_v26 = vpop.f32.mrf.mxu0  ;;  %v7193_v23 = vpop.f32.mrf.mxu1  ;;  %v7786_v25 = vpack.c.bf16 %v7759_v24, %v7758_v22  ;;  %v18709_v24 = vld [vmem:[#allocation157_spill] sm:$0xff] }
 0x4d7   : > { %18699 = vst [vmem:[#allocation179_spill] sm:$0xff] %v16846_v16  ;;  %v7556_v53 = vadd.f32 %v11570_v21, %v7202_v17  ;;  %v7194_v14 = vadd.f32 %v7193_v23, %v18700_v56  ;;  %v16850_v6 = vadd.f32 %v7551_v27, %v18701_v32  ;;  %v18706_v17 = vld [vmem:[#allocation140_spill] sm:$0xff]  ;;  %v18708_v32 = vld [vmem:[#allocation147_spill] sm:$0xff] }
 0x4d8   : > { %v7502_v35 = vpop.f32.mrf.mxu0  ;;  %v11507_v15 = vpop.f32.mrf.mxu1 }
 0x4d9   : > { %18702 = vst [vmem:[#allocation175_spill] sm:$0xff] %v16850_v6  ;;  %v7554_v9 = vadd.f32 %v7483_v39, %v7194_v14  ;;  %v7205_v13 = vadd.f32 %v11507_v15, %v18703_v37  ;;  %v16854_v54 = vadd.f32 %v7556_v53, %v16594_v10  ;;  %v18711_v53 = vld [vmem:[#allocation63_spill] sm:$0xff] }
 0x4da   : > { %v11658_v52 = vpop.f32.mrf.mxu0  ;;  %v7196_v20 = vpop.f32.mrf.mxu1 }
 0x4db   : > { %18704 = vst [vmem:[#allocation21_spill] sm:$0xff] %v16854_v54  ;;  %v7557_v62 = vadd.f32 %v11571_v38, %v7205_v13  ;;  %v7197_v16 = vadd.f32 %v7196_v20, %v18705_v4  ;;  %v16858_v23 = vadd.f32 %v7554_v9, %v18706_v17  ;;  %v18712_v13 = vld [vmem:[#allocation155_spill] sm:$0xff]  ;;  %v18714_v17 = vld [vmem:[#allocation64_spill] sm:$0xff] }
 0x4dc   : > { %v8274_v21 = vpop.f32.mrf.mxu0  ;;  %v11510_v56 = vpop.f32.mrf.mxu1  ;;  %11765 = vmatmul.mubr.bf16.gmra.mxu1 %v7786_v25 }
 0x4dd   : > { %18707 = vst [vmem:[#allocation152_spill] sm:$0xff] %v16858_v23  ;;  %v7555_v27 = vadd.f32 %v7486_v42, %v7197_v16  ;;  %v7218_v22 = vadd.f32 %v11510_v56, %v18708_v32  ;;  %v16862_v14 = vadd.f32 %v7557_v62, %v18709_v24  ;;  %v18715_v42 = vld [vmem:[#allocation69_spill] sm:$0xff] }
 0x4de   : > { %v11659_v39 = vpop.f32.mrf.mxu0  ;;  %v7209_v15 = vpop.f32.mrf.mxu1  ;;  %v18717_v62 = vld [vmem:[#allocation81_spill] sm:$0xff] }
 0x4df   : > { %18710 = vst [vmem:[#allocation22_spill] sm:$0xff] %v16862_v14  ;;  %v7560_v10 = vadd.f32 %v11574_v5, %v7218_v22  ;;  %v7210_v37 = vadd.f32 %v7209_v15, %v18711_v53  ;;  %v16866_v20 = vadd.f32 %v7555_v27, %v18712_v13  ;;  %v18718_v5 = vld [vmem:[#allocation65_spill] sm:$0xff] }
 0x4e0   : > { %v8277_v38 = vpop.f32.mrf.mxu0  ;;  %v11511_v4 = vpop.f32.mrf.mxu1 }
 0x4e1   : > { %18713 = vst [vmem:[#allocation154_spill] sm:$0xff] %v16866_v20  ;;  %v7558_v9 = vadd.f32 %v7499_v45, %v7210_v37  ;;  %v7221_v23 = vadd.f32 %v11511_v4, %v18714_v17  ;;  %v16870_v16 = vadd.f32 %v7560_v10, %v18715_v42  ;;  %v18720_v45 = vld [vmem:[#allocation143_spill] sm:$0xff]  ;;  %v18722_v42 = vld [vmem:[#allocation66_spill] sm:$0xff] }
 0x4e2   : > { %v11662_v25 = vpop.f32.mrf.mxu0  ;;  %v7212_v56 = vpop.f32.mrf.mxu1 }
 0x4e3   : > { %18716 = vst [vmem:[#allocation95_spill] sm:$0xff] %v16870_v16  ;;  %v7561_v32 = vadd.f32 %v11575_v26, %v7221_v23  ;;  %v7213_v24 = vadd.f32 %v7212_v56, %v18717_v62  ;;  %v16874_v22 = vadd.f32 %v7558_v9, %v18718_v5 }
 0x4e4   : > { %v8290_v14 = vpop.f32.mrf.mxu0  ;;  %v11594_v15 = vpop.f32.mrf.mxu1 }
 0x4e5   : > { %18719 = vst [vmem:[#allocation24_spill] sm:$0xff] %v16874_v22  ;;  %v7559_v53 = vadd.f32 %v7502_v35, %v7213_v24  ;;  %v16876_v27 = vadd.f32 %v11658_v52, %v11594_v15  ;;  %v16879_v37 = vadd.f32 %v7561_v32, %v18720_v45 }
 0x4e6   : > { %v11663_v13 = vpop.f32.mrf.mxu0  ;;  %v8001_v4 = vpop.f32.mrf.mxu1 }
 0x4e7   : > { %18721 = vst [vmem:[#allocation78_spill] sm:$0xff] %v16879_v37  ;;  %v16881_v17 = vadd.f32 %v8274_v21, %v8001_v4  ;;  %v16884_v26 = vadd.f32 %v7559_v53, %v18722_v42 }
 0x4e8   : > { %v8293_v10 = vpop.f32.mrf.mxu0  ;;  %v11595_v23 = vpop.f32.mrf.mxu1 }
 0x4e9   : > { %18723 = vst [vmem:[#allocation19_spill] sm:$0xff] %v16884_v26  ;;  %v16886_v56 = vadd.f32 %v11659_v39, %v11595_v23 }
 0x4ea   : > { %v11666_v9 = vpop.f32.mrf.mxu0  ;;  %v8004_v62 = vpop.f32.mrf.mxu1 }
 0x4eb   : > { %v16888_v5 = vadd.f32 %v8277_v38, %v8004_v62 }
 0x4ec   : > { %v8306_v35 = vpop.f32.mrf.mxu0  ;;  %v11598_v52 = vpop.f32.mrf.mxu1 }
 0x4ed   : > { %v16890_v24 = vadd.f32 %v11662_v25, %v11598_v52 }
 0x4ee   : > { %v11667_v32 = vpop.f32.mrf.mxu0  ;;  %v8017_v15 = vpop.f32.mrf.mxu1 }
 0x4ef   : > { %v16892_v45 = vadd.f32 %v8290_v14, %v8017_v15 }
 0x4f0   : > { %v8309_v21 = vpop.f32.mrf.mxu0  ;;  %v11599_v4 = vpop.f32.mrf.mxu1 }
 0x4f1   : > { %v16894_v37 = vadd.f32 %v11663_v13, %v11599_v4 }
 0x4f2   : > { %v11670_v53 = vpop.f32.mrf.mxu0  ;;  %v8020_v42 = vpop.f32.mrf.mxu1 }
 0x4f3   : > { %v16896_v39 = vadd.f32 %v8293_v10, %v8020_v42 }
 0x4f4   : > { %v8322_v23 = vpop.f32.mrf.mxu0  ;;  %v11602_v26 = vpop.f32.mrf.mxu1 }
 0x4f5   : > { %v16898_v38 = vadd.f32 %v11666_v9, %v11602_v26 }
 0x4f6   : > { %v11671_v62 = vpop.f32.mrf.mxu0  ;;  %v8033_v22 = vpop.f32.mrf.mxu1 }
 0x4f7   : > { %v16900_v25 = vadd.f32 %v8306_v35, %v8033_v22 }
 0x4f8   : > { %v8325_v52 = vpop.f32.mrf.mxu0  ;;  %v11603_v16 = vpop.f32.mrf.mxu1 }
 0x4f9   : > { %v16902_v14 = vadd.f32 %v11667_v32, %v11603_v16 }
 0x4fa   : > { %v11674_v15 = vpop.f32.mrf.mxu0  ;;  %v8036_v20 = vpop.f32.mrf.mxu1 }
 0x4fb   : > { %v16904_v13 = vadd.f32 %v8309_v21, %v8036_v20 }
 0x4fc   : > { %v8338_v4 = vpop.f32.mrf.mxu0  ;;  %v11606_v54 = vpop.f32.mrf.mxu1 }
 0x4fd   : > { %v16906_v10 = vadd.f32 %v11670_v53, %v11606_v54 }
 0x4fe   : > { %v11675_v42 = vpop.f32.mrf.mxu0  ;;  %v8049_v6 = vpop.f32.mrf.mxu1 }
 0x4ff   : > { %v16908_v26 = vadd.f32 %v8322_v23, %v8049_v6 }
 0x500   : > { %v8341_v9 = vpop.f32.mrf.mxu0  ;;  %v11607_v30 = vpop.f32.mrf.mxu1 }
 0x501   : > { %v16910_v22 = vadd.f32 %v11671_v62, %v11607_v30 }
 0x502   : > { %v11678_v35 = vpop.f32.mrf.mxu0  ;;  %v8052_v57 = vpop.f32.mrf.mxu1 }
 0x503   : > { %v16912_v16 = vadd.f32 %v8325_v52, %v8052_v57 }
 0x504   : > { %v8354_v32 = vpop.f32.mrf.mxu0  ;;  %v11610_v49 = vpop.f32.mrf.mxu1 }
 0x505   : > { %v16914_v20 = vadd.f32 %v11674_v15, %v11610_v49 }
 0x506   : > { %v11679_v21 = vpop.f32.mrf.mxu0  ;;  %v8065_v46 = vpop.f32.mrf.mxu1 }
 0x507   : > { %v16916_v54 = vadd.f32 %v8338_v4, %v8065_v46 }
 0x508   : > { %v8357_v53 = vpop.f32.mrf.mxu0  ;;  %v11611_v58 = vpop.f32.mrf.mxu1 }
 0x509   : > { %v16918_v6 = vadd.f32 %v11675_v42, %v11611_v58 }
 0x50a   : > { %v11682_v23 = vpop.f32.mrf.mxu0  ;;  %v8068_v48 = vpop.f32.mrf.mxu1 }
 0x50b   : > { %v16920_v30 = vadd.f32 %v8341_v9, %v8068_v48 }
 0x50c   : > { %v8370_v62 = vpop.f32.mrf.mxu0  ;;  %v11614_v55 = vpop.f32.mrf.mxu1 }
 0x50d   : > { %v16922_v57 = vadd.f32 %v11678_v35, %v11614_v55 }
 0x50e   : > { %v11683_v52 = vpop.f32.mrf.mxu0  ;;  %v8081_v61 = vpop.f32.mrf.mxu1 }
 0x50f   : > { %18724 = vst [vmem:[#allocation79_spill] sm:$0xff] %v16922_v57  ;;  %v16924_v49 = vadd.f32 %v8354_v32, %v8081_v61 }
 0x510   : > { %v8373_v15 = vpop.f32.mrf.mxu0  ;;  %v11615_v41 = vpop.f32.mrf.mxu1 }
 0x511   : > { %18725 = vst [vmem:[#allocation26_spill] sm:$0xff] %v16924_v49  ;;  %v16926_v46 = vadd.f32 %v11679_v21, %v11615_v41 }
 0x512   : > { %v11686_v4 = vpop.f32.mrf.mxu0  ;;  %v8084_v11 = vpop.f32.mrf.mxu1 }
 0x513   : > { %18726 = vst [vmem:[#allocation159_spill] sm:$0xff] %v16926_v46  ;;  %v16928_v58 = vadd.f32 %v8357_v53, %v8084_v11 }
 0x514   : > { %v8386_v42 = vpop.f32.mrf.mxu0  ;;  %v11618_v0 = vpop.f32.mrf.mxu1 }
 0x515   : > { %18727 = vst [vmem:[#allocation23_spill] sm:$0xff] %v16928_v58  ;;  %v16930_v48 = vadd.f32 %v11682_v23, %v11618_v0 }
 0x516   : > { %v11687_v9 = vpop.f32.mrf.mxu0  ;;  %v8097_v40 = vpop.f32.mrf.mxu1 }
 0x517   : > { %18728 = vst [vmem:[#allocation80_spill] sm:$0xff] %v16930_v48  ;;  %v16932_v55 = vadd.f32 %v8370_v62, %v8097_v40 }
 0x518   : > { %v8389_v35 = vpop.f32.mrf.mxu0  ;;  %v11619_v60 = vpop.f32.mrf.mxu1 }
 0x519   : > { %18729 = vst [vmem:[#allocation27_spill] sm:$0xff] %v16932_v55  ;;  %v16934_v61 = vadd.f32 %v11683_v52, %v11619_v60 }
 0x51a   : > { %v11690_v32 = vpop.f32.mrf.mxu0  ;;  %v8100_v19 = vpop.f32.mrf.mxu1 }
 0x51b   : > { %18730 = vst [vmem:[#allocation28_spill] sm:$0xff] %v16934_v61  ;;  %v16936_v41 = vadd.f32 %v8373_v15, %v8100_v19 }
 0x51c   : > { %v8402_v21 = vpop.f32.mrf.mxu0  ;;  %v11622_v46 = vpop.f32.mrf.mxu1 }
 0x51d   : > { %18731 = vst [vmem:[#allocation166_spill] sm:$0xff] %v16936_v41  ;;  %v16938_v11 = vadd.f32 %v11686_v4, %v11622_v46 }
 0x51e   : > { %v11691_v53 = vpop.f32.mrf.mxu0  ;;  %v8113_v58 = vpop.f32.mrf.mxu1 }
 0x51f   : > { %18732 = vst [vmem:[#allocation161_spill] sm:$0xff] %v16938_v11  ;;  %v16940_v0 = vadd.f32 %v8386_v42, %v8113_v58 }
 0x520   : > { %v8405_v23 = vpop.f32.mrf.mxu0  ;;  %v11623_v48 = vpop.f32.mrf.mxu1 }
 0x521   : > { %18733 = vst [vmem:[#allocation170_spill] sm:$0xff] %v16940_v0  ;;  %v16942_v40 = vadd.f32 %v11687_v9, %v11623_v48 }
 0x522   : > { %v11694_v62 = vpop.f32.mrf.mxu0  ;;  %v8116_v55 = vpop.f32.mrf.mxu1 }
 0x523   : > { %18734 = vst [vmem:[#allocation30_spill] sm:$0xff] %v16942_v40  ;;  %v16944_v60 = vadd.f32 %v8389_v35, %v8116_v55 }
 0x524   : > { %v8418_v52 = vpop.f32.mrf.mxu0  ;;  %v11626_v61 = vpop.f32.mrf.mxu1 }
 0x525   : > { %18735 = vst [vmem:[#allocation82_spill] sm:$0xff] %v16944_v60  ;;  %v16946_v19 = vadd.f32 %v11690_v32, %v11626_v61 }
 0x526   : > { %v11695_v15 = vpop.f32.mrf.mxu0  ;;  %v8129_v41 = vpop.f32.mrf.mxu1 }
 0x527   : > { %18736 = vst [vmem:[#allocation171_spill] sm:$0xff] %v16946_v19  ;;  %v16948_v46 = vadd.f32 %v8402_v21, %v8129_v41 }
 0x528   : > { %v8421_v4 = vpop.f32.mrf.mxu0  ;;  %v11627_v11 = vpop.f32.mrf.mxu1 }
 0x529   : > { %18737 = vst [vmem:[#allocation165_spill] sm:$0xff] %v16948_v46  ;;  %v16950_v58 = vadd.f32 %v11691_v53, %v11627_v11 }
 0x52a   : > { %v11698_v42 = vpop.f32.mrf.mxu0  ;;  %v8132_v0 = vpop.f32.mrf.mxu1 }
 0x52b   : > { %18738 = vst [vmem:[#allocation83_spill] sm:$0xff] %v16950_v58  ;;  %v16952_v48 = vadd.f32 %v8405_v23, %v8132_v0 }
 0x52c   : > { %v8434_v9 = vpop.f32.mrf.mxu0  ;;  %v11630_v40 = vpop.f32.mrf.mxu1 }
 0x52d   : > { %18739 = vst [vmem:[#allocation172_spill] sm:$0xff] %v16952_v48  ;;  %v16954_v55 = vadd.f32 %v11694_v62, %v11630_v40 }
 0x52e   : > { %v11699_v35 = vpop.f32.mrf.mxu0  ;;  %v8145_v60 = vpop.f32.mrf.mxu1 }
 0x52f   : > { %18740 = vst [vmem:[#allocation25_spill] sm:$0xff] %v16954_v55  ;;  %v16956_v61 = vadd.f32 %v8418_v52, %v8145_v60 }
 0x530   : > { %v8437_v32 = vpop.f32.mrf.mxu0  ;;  %v11631_v19 = vpop.f32.mrf.mxu1 }
 0x531   : > { %18741 = vst [vmem:[#allocation32_spill] sm:$0xff] %v16956_v61  ;;  %v16958_v41 = vadd.f32 %v11695_v15, %v11631_v19 }
 0x532   : > { %v11702_v21 = vpop.f32.mrf.mxu0  ;;  %v8148_v46 = vpop.f32.mrf.mxu1 }
 0x533   : > { %18742 = vst [vmem:[#allocation29_spill] sm:$0xff] %v16958_v41  ;;  %v16960_v11 = vadd.f32 %v8421_v4, %v8148_v46 }
 0x534   : > { %v8450_v53 = vpop.f32.mrf.mxu0  ;;  %v11634_v58 = vpop.f32.mrf.mxu1 }
 0x535   : > { %18743 = vst [vmem:[#allocation84_spill] sm:$0xff] %v16960_v11  ;;  %v16962_v0 = vadd.f32 %v11698_v42, %v11634_v58 }
 0x536   : > { %v11703_v23 = vpop.f32.mrf.mxu0  ;;  %v8161_v48 = vpop.f32.mrf.mxu1 }
 0x537   : > { %18744 = vst [vmem:[#allocation173_spill] sm:$0xff] %v16962_v0  ;;  %v16964_v40 = vadd.f32 %v8434_v9, %v8161_v48 }
 0x538   : > { %v8453_v62 = vpop.f32.mrf.mxu0  ;;  %v11635_v55 = vpop.f32.mrf.mxu1 }
 0x539   : > { %18745 = vst [vmem:[#allocation176_spill] sm:$0xff] %v16964_v40  ;;  %v16966_v60 = vadd.f32 %v11699_v35, %v11635_v55  ;;  %v16979_v55 = vld [vmem:[%s17450_s8] ss:$0 sm:$0xff] }
 0x53a   : > { %v11786_v52 = vpop.f32.mrf.mxu0  ;;  %v8164_v61 = vpop.f32.mrf.mxu1 }
 0x53b   : > { %18746 = vst [vmem:[#allocation33_spill] sm:$0xff] %v16966_v60  ;;  %v16968_v19 = vadd.f32 %v8437_v32, %v8164_v61 }
 0x53c   : > { %v9275_v15 = vpop.f32.mrf.mxu0  ;;  %v11638_v41 = vpop.f32.mrf.mxu1 }
 0x53d   : > { %18747 = vst [vmem:[#allocation86_spill] sm:$0xff] %v16968_v19  ;;  %v16970_v46 = vadd.f32 %v11702_v21, %v11638_v41  ;;  %v9475_v41 = vmul.f32 %v11786_v52, %v16979_v55 }
 0x53e   : > { %v11787_v4 = vpop.f32.mrf.mxu0  ;;  %v8177_v11 = vpop.f32.mrf.mxu1 }
 0x53f   : > { %18748 = vst [vmem:[#allocation177_spill] sm:$0xff] %v16970_v46  ;;  %v16972_v58 = vadd.f32 %v8450_v53, %v8177_v11  ;;  %v16988_v53 = vld [vmem:[%s17451_s9] ss:$0 sm:$0xff] }
 0x540   : > { %v9278_v42 = vpop.f32.mrf.mxu0  ;;  %v11639_v0 = vpop.f32.mrf.mxu1  ;;  %v18752_v46 = vld [vmem:[#allocation160_spill] sm:$0xff] }
 0x541   : > { %18749 = vst [vmem:[#allocation174_spill] sm:$0xff] %v16972_v58  ;;  %v16974_v48 = vadd.f32 %v11703_v23, %v11639_v0  ;;  %v16993_v0 = vld [vmem:[%s17447_s5] ss:$0 sm:$0xff] }
 0x542   : > { %v11790_v9 = vpop.f32.mrf.mxu0  ;;  %v8180_v40 = vpop.f32.mrf.mxu1 }
 0x543   : > { %18750 = vst [vmem:[#allocation90_spill] sm:$0xff] %v16974_v48  ;;  %v16981_v35 = vadd.f32 %v8453_v62, %v8180_v40  ;;  %v9530_v48 = vadd.f32 %v16988_v53, %v9475_v41 }
 0x544   : > { %v9291_v61 = vpop.f32.mrf.mxu0  ;;  %v11722_v32 = vpop.f32.mrf.mxu1 }
 0x545   : > { %18751 = vst [vmem:[#allocation34_spill] sm:$0xff] %v16981_v35  ;;  %v8757_v21 = vadd.f32 %v11722_v32, %v16876_v27  ;;  %v17000_v27 = vld [vmem:[%s17448_s6] ss:$0 sm:$0xff]  ;;  %v9473_v32 = vmul.f32 %v16979_v55, %v9275_v15 }
 0x546   : > { %v11791_v11 = vpop.f32.mrf.mxu0  ;;  %v8564_v23 = vpop.f32.mrf.mxu1 }
 0x547   : > { %v8853_v40 = vadd.f32 %v8757_v21, %v16640_v8  ;;  %v8755_v62 = vadd.f32 %v8564_v23, %v16881_v17  ;;  %v9476_v17 = vmul.f32 %v11787_v4, %v16979_v55  ;;  %v9474_v21 = vmul.f32 %v16979_v55, %v9278_v42 }
 0x548   : > { %v9294_v52 = vpop.f32.mrf.mxu0  ;;  %v11723_v35 = vpop.f32.mrf.mxu1 }
 0x549   : > { %v9004_v58 = vmul.f32 %v16993_v0, %v8853_v40  ;;  %v8851_v19 = vadd.f32 %v8755_v62, %v18752_v46  ;;  %v8758_v60 = vadd.f32 %v11723_v35, %v16886_v56  ;;  %v9528_v46 = vadd.f32 %v16988_v53, %v9473_v32 }
 0x54a   : > { %v11794_v8 = vpop.f32.mrf.mxu0  ;;  %v8567_v23 = vpop.f32.mrf.mxu1  ;;  %v9479_v56 = vmul.f32 %v11790_v9, %v16979_v55 }
 0x54b   : > { %v9059_v49 = vadd.f32 %v17000_v27, %v9004_v58  ;;  %v9002_v15 = vmul.f32 %v16993_v0, %v8851_v19  ;;  %v8854_v43 = vadd.f32 %v8758_v60, %v16654_v34  ;;  %v8756_v41 = vadd.f32 %v8567_v23, %v16888_v5 }
 0x54c   : > { %v17014_v40 = vpop.f32.mrf.mxu0  ;;  %v11726_v35 = vpop.f32.mrf.mxu1  ;;  %v9531_v34 = vadd.f32 %v16988_v53, %v9476_v17  ;;  %v9529_v5 = vadd.f32 %v16988_v53, %v9474_v21 }
 0x54d   : > { %v9578_v62 = vadd.f32 %v9530_v48, %v9059_v49  ;;  %v9057_v4 = vadd.f32 %v17000_v27, %v9002_v15  ;;  %v9005_v42 = vmul.f32 %v16993_v0, %v8854_v43  ;;  %v8852_v58 = vadd.f32 %v8756_v41, %v16658_v12 }
 0x54e   : > { %v17021_v19 = vpop.f32.mrf.mxu0  ;;  %v8761_v60 = vadd.f32 %v11726_v35, %v16890_v24  ;;  %v8580_v32 = vpop.f32.mrf.mxu1  ;;  %v9534_v43 = vadd.f32 %v16988_v53, %v9479_v56  ;;  %v9477_v41 = vmul.f32 %v16979_v55, %v9291_v61 }
 0x54f   : > { %v9626_v23 = vmax.f32 %v9578_v62, 0.0  ;;  %v9576_v9 = vadd.f32 %v9528_v46, %v9057_v4  ;;  %v9060_v49 = vadd.f32 %v17000_v27, %v9005_v42  ;;  %v9003_v48 = vmul.f32 %v16993_v0, %v8852_v58 }
 0x550   : > { %v9310_v15 = vpop.f32.mrf.mxu0  ;;  %v8857_v12 = vadd.f32 %v8761_v60, %v16662_v59  ;;  %v8759_v17 = vadd.f32 %v8580_v32, %v16892_v45  ;;  %v11727_v57 = vpop.f32.mrf.mxu1  ;;  %v9480_v45 = vmul.f32 %v11791_v11, %v16979_v55  ;;  %v9478_v62 = vmul.f32 %v16979_v55, %v9294_v52 }
 0x551   : > { %9674 = vst [vmem:[%s17034_s29 + $0x10] sm:$0xff] %v9626_v23  ;;  %v9624_v24 = vmax.f32 %v9576_v9, 0.0  ;;  %v9579_v21 = vadd.f32 %v9531_v34, %v9060_v49  ;;  %v9058_v46 = vadd.f32 %v17000_v27, %v9003_v48  ;;  %v8762_v35 = vadd.f32 %v11727_v57, %v16894_v37 }
 0x552   : > { %v11798_v56 = vpop.f32.mrf.mxu0  ;;  %v9008_v59 = vmul.f32 %v16993_v0, %v8857_v12  ;;  %v8855_v61 = vadd.f32 %v8759_v17, %v16670_v50  ;;  %v8583_v4 = vpop.f32.mrf.mxu1  ;;  %v9532_v57 = vadd.f32 %v16988_v53, %v9477_v41  ;;  %v9483_v11 = vmul.f32 %v11794_v8, %v16979_v55 }
 0x553   : > { %9672 = vst [vmem:[%s17034_s29] sm:$0xff] %v9624_v24  ;;  %v9627_v42 = vmax.f32 %v9579_v21, 0.0  ;;  %v9577_v58 = vadd.f32 %v9529_v5, %v9058_v46  ;;  %v8858_v34 = vadd.f32 %v8762_v35, %v16676_v36  ;;  %v8760_v60 = vadd.f32 %v8583_v4, %v16896_v39 }
 0x554   : > { %v17046_v32 = vpop.f32.mrf.mxu0  ;;  %v9063_v37 = vadd.f32 %v17000_v27, %v9008_v59  ;;  %v9006_v50 = vmul.f32 %v16993_v0, %v8855_v61  ;;  %v11730_v52 = vpop.f32.mrf.mxu1  ;;  %v9535_v12 = vadd.f32 %v16988_v53, %v9480_v45  ;;  %v9533_v41 = vadd.f32 %v16988_v53, %v9478_v62 }
 0x555   : > { %9675 = vst [vmem:[%s17034_s29 + $0x18] sm:$0xff] %v9627_v42  ;;  %v9625_v23 = vmax.f32 %v9577_v58, 0.0  ;;  %v9009_v5 = vmul.f32 %v16993_v0, %v8858_v34  ;;  %v8856_v36 = vadd.f32 %v8760_v60, %v16680_v7  ;;  %v8765_v39 = vadd.f32 %v11730_v52, %v16898_v38 }
 0x556   : > { %v17056_v9 = vpop.f32.mrf.mxu0  ;;  %v9582_v49 = vadd.f32 %v9534_v43, %v9063_v37  ;;  %v9061_v48 = vadd.f32 %v17000_v27, %v9006_v50  ;;  %v8596_v17 = vpop.f32.mrf.mxu1  ;;  %v9538_v35 = vadd.f32 %v16988_v53, %v9483_v11  ;;  %v9481_v59 = vmul.f32 %v16979_v55, %v17014_v40 }
 0x557   : > { %9673 = vst [vmem:[%s17034_s29 + $0x8] sm:$0xff] %v9625_v23  ;;  %v9064_v8 = vadd.f32 %v17000_v27, %v9009_v5  ;;  %v9007_v24 = vmul.f32 %v16993_v0, %v8856_v36  ;;  %v8861_v7 = vadd.f32 %v8765_v39, %v16684_v1  ;;  %v8763_v38 = vadd.f32 %v8596_v17, %v16900_v25 }
 0x558   : > { %v9326_v21 = vpop.f32.mrf.mxu0  ;;  %v9630_v46 = vmax.f32 %v9582_v49, 0.0  ;;  %v9580_v43 = vadd.f32 %v9532_v57, %v9061_v48  ;;  %v11731_v61 = vpop.f32.mrf.mxu1  ;;  %v9484_v58 = vmul.f32 %v17021_v19, %v16979_v55  ;;  %v9482_v40 = vmul.f32 %v16979_v55, %v9310_v15 }
 0x559   : > { %v9583_v45 = vadd.f32 %v9535_v12, %v9064_v8  ;;  %v9062_v62 = vadd.f32 %v17000_v27, %v9007_v24  ;;  %v9012_v4 = vmul.f32 %v16993_v0, %v8861_v7  ;;  %v8859_v42 = vadd.f32 %v8763_v38, %v16692_v63 }
 0x55a   : > { %v11802_v1 = vpop.f32.mrf.mxu0  ;;  %9678 = vst [vmem:[%s17034_s29 + $0x30] sm:$0xff] %v9630_v46  ;;  %v9628_v25 = vmax.f32 %v9580_v43, 0.0  ;;  %v8766_v34 = vadd.f32 %v11731_v61, %v16902_v14  ;;  %v8599_v60 = vpop.f32.mrf.mxu1  ;;  %v9536_v63 = vadd.f32 %v16988_v53, %v9481_v59  ;;  %v9487_v14 = vmul.f32 %v11798_v56, %v16979_v55 }
 0x55b   : > { %v9631_v37 = vmax.f32 %v9583_v45, 0.0  ;;  %v9581_v57 = vadd.f32 %v9533_v41, %v9062_v62  ;;  %v9067_v50 = vadd.f32 %v17000_v27, %v9012_v4  ;;  %v9010_v11 = vmul.f32 %v16993_v0, %v8859_v42 }
 0x55c   : > { %v17079_v52 = vpop.f32.mrf.mxu0  ;;  %9676 = vst [vmem:[%s17034_s29 + $0x20] sm:$0xff] %v9628_v25  ;;  %v8862_v23 = vadd.f32 %v8766_v34, %v16698_v51  ;;  %v8764_v19 = vadd.f32 %v8599_v60, %v16904_v13  ;;  %v11734_v15 = vpop.f32.mrf.mxu1  ;;  %v9539_v12 = vadd.f32 %v16988_v53, %v9484_v58  ;;  %v9537_v51 = vadd.f32 %v16988_v53, %v9482_v40 }
 0x55d   : > { %9679 = vst [vmem:[%s17034_s29 + $0x38] sm:$0xff] %v9631_v37  ;;  %v9629_v5 = vmax.f32 %v9581_v57, 0.0  ;;  %v9586_v36 = vadd.f32 %v9538_v35, %v9067_v50  ;;  %v9065_v39 = vadd.f32 %v17000_v27, %v9010_v11  ;;  %v8769_v49 = vadd.f32 %v11734_v15, %v16906_v10 }
 0x55e   : > { %v17089_v48 = vpop.f32.mrf.mxu0  ;;  %v9013_v41 = vmul.f32 %v16993_v0, %v8862_v23  ;;  %v8860_v13 = vadd.f32 %v8764_v19, %v16702_v33  ;;  %v8612_v56 = vpop.f32.mrf.mxu1  ;;  %v9542_v43 = vadd.f32 %v16988_v53, %v9487_v14  ;;  %v9485_v35 = vmul.f32 %v16979_v55, %v17046_v32 }
 0x55f   : > { %9677 = vst [vmem:[%s17034_s29 + $0x28] sm:$0xff] %v9629_v5  ;;  %v9634_v17 = vmax.f32 %v9586_v36, 0.0  ;;  %v9584_v8 = vadd.f32 %v9536_v63, %v9065_v39  ;;  %v8865_v24 = vadd.f32 %v8769_v49, %v16706_v44  ;;  %v8767_v7 = vadd.f32 %v8612_v56, %v16908_v26 }
 0x560   : > { %v9342_v10 = vpop.f32.mrf.mxu0  ;;  %v9068_v38 = vadd.f32 %v17000_v27, %v9013_v41  ;;  %v9011_v46 = vmul.f32 %v16993_v0, %v8860_v13  ;;  %v11735_v33 = vpop.f32.mrf.mxu1  ;;  %v9488_v42 = vmul.f32 %v17056_v9, %v16979_v55  ;;  %v9486_v25 = vmul.f32 %v16979_v55, %v9326_v21 }
 0x561   : > { %9682 = vst [vmem:[%s17034_s29 + $0x50] sm:$0xff] %v9634_v17  ;;  %v9632_v59 = vmax.f32 %v9584_v8, 0.0  ;;  %v9016_v61 = vmul.f32 %v16993_v0, %v8865_v24  ;;  %v8863_v44 = vadd.f32 %v8767_v7, %v16714_v31  ;;  %v8770_v26 = vadd.f32 %v11735_v33, %v16910_v22 }
 0x562   : > { %v11806_v45 = vpop.f32.mrf.mxu0  ;;  %v9587_v62 = vadd.f32 %v9539_v12, %v9068_v38  ;;  %v9066_v4 = vadd.f32 %v17000_v27, %v9011_v46  ;;  %v8615_v58 = vpop.f32.mrf.mxu1  ;;  %v9540_v57 = vadd.f32 %v16988_v53, %v9485_v35  ;;  %v9491_v9 = vmul.f32 %v11802_v1, %v16979_v55 }
 0x563   : > { %9680 = vst [vmem:[%s17034_s29 + $0x40] sm:$0xff] %v9632_v59  ;;  %v9071_v32 = vadd.f32 %v17000_v27, %v9016_v61  ;;  %v9014_v34 = vmul.f32 %v16993_v0, %v8863_v44  ;;  %v8866_v31 = vadd.f32 %v8770_v26, %v16720_v18  ;;  %v8768_v22 = vadd.f32 %v8615_v58, %v16912_v16 }
 0x564   : > { %v17116_v40 = vpop.f32.mrf.mxu0  ;;  %v9635_v60 = vmax.f32 %v9587_v62, 0.0  ;;  %v9585_v37 = vadd.f32 %v9537_v51, %v9066_v4  ;;  %v11738_v21 = vpop.f32.mrf.mxu1  ;;  %v9543_v19 = vadd.f32 %v16988_v53, %v9488_v42  ;;  %v9541_v14 = vadd.f32 %v16988_v53, %v9486_v25  ;;  %v18753_v4 = vld [vmem:[#allocation79_spill] sm:$0xff] }
 0x565   : > { %v9590_v50 = vadd.f32 %v9542_v43, %v9071_v32  ;;  %v9069_v11 = vadd.f32 %v17000_v27, %v9014_v34  ;;  %v9017_v63 = vmul.f32 %v16993_v0, %v8866_v31  ;;  %v8864_v23 = vadd.f32 %v8768_v22, %v16724_v28 }
 0x566   : > { %v17123_v18 = vpop.f32.mrf.mxu0  ;;  %9683 = vst [vmem:[%s17034_s29 + $0x58] sm:$0xff] %v9635_v60  ;;  %v9633_v16 = vmax.f32 %v9585_v37, 0.0  ;;  %v8773_v1 = vadd.f32 %v11738_v21, %v16914_v20  ;;  %v8628_v15 = vpop.f32.mrf.mxu1  ;;  %v9546_v28 = vadd.f32 %v16988_v53, %v9491_v9  ;;  %v9489_v51 = vmul.f32 %v16979_v55, %v17079_v52  ;;  %v18754_v60 = vld [vmem:[#allocation156_spill] sm:$0xff]  ;;  %v18755_v37 = vld [vmem:[#allocation26_spill] sm:$0xff] }
 0x567   : > { %v9638_v5 = vmax.f32 %v9590_v50, 0.0  ;;  %v9588_v36 = vadd.f32 %v9540_v57, %v9069_v11  ;;  %v9072_v39 = vadd.f32 %v17000_v27, %v9017_v63  ;;  %v9015_v49 = vmul.f32 %v16993_v0, %v8864_v23 }
 0x568   : > { %v9358_v12 = vpop.f32.mrf.mxu0  ;;  %9681 = vst [vmem:[%s17034_s29 + $0x48] sm:$0xff] %v9633_v16  ;;  %v8869_v41 = vadd.f32 %v8773_v1, %v16728_v29  ;;  %v8771_v13 = vadd.f32 %v8628_v15, %v16916_v54  ;;  %v11739_v20 = vpop.f32.mrf.mxu1  ;;  %v9492_v29 = vmul.f32 %v17089_v48, %v16979_v55  ;;  %v9490_v52 = vmul.f32 %v16979_v55, %v9342_v10  ;;  %v18756_v1 = vld [vmem:[#allocation71_spill] sm:$0xff] }
 0x569   : > { %9686 = vst [vmem:[%s17034_s29 + $0x70] sm:$0xff] %v9638_v5  ;;  %v9636_v56 = vmax.f32 %v9588_v36, 0.0  ;;  %v9591_v17 = vadd.f32 %v9543_v19, %v9072_v39  ;;  %v9070_v8 = vadd.f32 %v17000_v27, %v9015_v49  ;;  %v8774_v24 = vadd.f32 %v11739_v20, %v16918_v6  ;;  %v18757_v49 = vld [vmem:[#allocation159_spill] sm:$0xff] }
 0x56a   : > { %v11810_v7 = vpop.f32.mrf.mxu0  ;;  %v9020_v38 = vmul.f32 %v16993_v0, %v8869_v41  ;;  %v8867_v46 = vadd.f32 %v8771_v13, %v16736_v2  ;;  %v8631_v54 = vpop.f32.mrf.mxu1  ;;  %v9544_v2 = vadd.f32 %v16988_v53, %v9489_v51  ;;  %v9495_v48 = vmul.f32 %v11806_v45, %v16979_v55 }
 0x56b   : > { %9684 = vst [vmem:[%s17034_s29 + $0x60] sm:$0xff] %v9636_v56  ;;  %v9639_v43 = vmax.f32 %v9591_v17, 0.0  ;;  %v9589_v35 = vadd.f32 %v9541_v14, %v9070_v8  ;;  %v8870_v33 = vadd.f32 %v8774_v24, %v16742_v47  ;;  %v8772_v59 = vadd.f32 %v8631_v54, %v16920_v30  ;;  %v18758_v24 = vld [vmem:[#allocation163_spill] sm:$0xff] }
 0x56c   : > { %v17148_v6 = vpop.f32.mrf.mxu0  ;;  %v9075_v61 = vadd.f32 %v17000_v27, %v9020_v38  ;;  %v9018_v44 = vmul.f32 %v16993_v0, %v8867_v46  ;;  %v11742_v10 = vpop.f32.mrf.mxu1  ;;  %v9547_v32 = vadd.f32 %v16988_v53, %v9492_v29  ;;  %v9545_v34 = vadd.f32 %v16988_v53, %v9490_v52 }
 0x56d   : > { %9687 = vst [vmem:[%s17034_s29 + $0x78] sm:$0xff] %v9639_v43  ;;  %v9637_v26 = vmax.f32 %v9589_v35, 0.0  ;;  %v9021_v62 = vmul.f32 %v16993_v0, %v8870_v33  ;;  %v8868_v47 = vadd.f32 %v8772_v59, %v16746_v3  ;;  %v8777_v30 = vadd.f32 %v11742_v10, %v18753_v4  ;;  %v18760_v35 = vld [vmem:[#allocation80_spill] sm:$0xff] }
 0x56e   : > { %v17158_v42 = vpop.f32.mrf.mxu0  ;;  %v9594_v25 = vadd.f32 %v9546_v28, %v9075_v61  ;;  %v9073_v58 = vadd.f32 %v17000_v27, %v9018_v44  ;;  %v8644_v31 = vpop.f32.mrf.mxu1  ;;  %v9550_v11 = vadd.f32 %v16988_v53, %v9495_v48  ;;  %v9493_v63 = vmul.f32 %v16979_v55, %v17116_v40  ;;  %v18761_v48 = vld [vmem:[#allocation162_spill] sm:$0xff] }
 0x56f   : > { %9685 = vst [vmem:[%s17034_s29 + $0x68] sm:$0xff] %v9637_v26  ;;  %v9076_v45 = vadd.f32 %v17000_v27, %v9021_v62  ;;  %v9019_v22 = vmul.f32 %v16993_v0, %v8868_v47  ;;  %v8873_v3 = vadd.f32 %v8777_v30, %v18754_v60  ;;  %v8775_v57 = vadd.f32 %v8644_v31, %v18755_v37  ;;  %v18762_v47 = vld [vmem:[#allocation158_spill] sm:$0xff]  ;;  %v18763_v30 = vld [vmem:[#allocation27_spill] sm:$0xff] }
 0x570   : > { %v9374_v9 = vpop.f32.mrf.mxu0  ;;  %v9642_v21 = vmax.f32 %v9594_v25, 0.0  ;;  %v9592_v50 = vadd.f32 %v9544_v2, %v9073_v58  ;;  %v11743_v23 = vpop.f32.mrf.mxu1  ;;  %v9496_v39 = vmul.f32 %v17123_v18, %v16979_v55  ;;  %v9494_v40 = vmul.f32 %v16979_v55, %v9358_v12  ;;  %v18759_v18 = vld [vmem:[#allocation23_spill] sm:$0xff] }
 0x571   : > { %v9595_v16 = vadd.f32 %v9547_v32, %v9076_v45  ;;  %v9074_v19 = vadd.f32 %v17000_v27, %v9019_v22  ;;  %v9024_v14 = vmul.f32 %v16993_v0, %v8873_v3  ;;  %v8871_v15 = vadd.f32 %v8775_v57, %v18756_v1  ;;  %v18764_v37 = vld [vmem:[#allocation67_spill] sm:$0xff] }
 0x572   : > { %v11814_v5 = vpop.f32.mrf.mxu0  ;;  %9690 = vst [vmem:[%s17034_s29 + $0x90] sm:$0xff] %v9642_v21  ;;  %v9640_v36 = vmax.f32 %v9592_v50, 0.0  ;;  %v8778_v28 = vadd.f32 %v11743_v23, %v18757_v49  ;;  %v8647_v41 = vpop.f32.mrf.mxu1  ;;  %v9548_v8 = vadd.f32 %v16988_v53, %v9493_v63  ;;  %v9499_v29 = vmul.f32 %v11810_v7, %v16979_v55  ;;  %v18765_v21 = vld [vmem:[#allocation28_spill] sm:$0xff] }
 0x573   : > { %v9643_v51 = vmax.f32 %v9595_v16, 0.0  ;;  %v9593_v13 = vadd.f32 %v9545_v34, %v9074_v19  ;;  %v9079_v20 = vadd.f32 %v17000_v27, %v9024_v14  ;;  %v9022_v56 = vmul.f32 %v16993_v0, %v8871_v15  ;;  %v18766_v15 = vld [vmem:[#allocation72_spill] sm:$0xff] }
 0x574   : > { %v17181_v17 = vpop.f32.mrf.mxu0  ;;  %9688 = vst [vmem:[%s17034_s29 + $0x80] sm:$0xff] %v9640_v36  ;;  %v8874_v38 = vadd.f32 %v8778_v28, %v18758_v24  ;;  %v8776_v46 = vadd.f32 %v8647_v41, %v18759_v18  ;;  %v11746_v12 = vpop.f32.mrf.mxu1  ;;  %v9551_v61 = vadd.f32 %v16988_v53, %v9496_v39  ;;  %v9549_v44 = vadd.f32 %v16988_v53, %v9494_v40  ;;  %v18767_v39 = vld [vmem:[#allocation166_spill] sm:$0xff] }
 0x575   : > { %9691 = vst [vmem:[%s17034_s29 + $0x98] sm:$0xff] %v9643_v51  ;;  %v9641_v52 = vmax.f32 %v9593_v13, 0.0  ;;  %v9598_v54 = vadd.f32 %v9550_v11, %v9079_v20  ;;  %v9077_v43 = vadd.f32 %v17000_v27, %v9022_v56  ;;  %v8781_v33 = vadd.f32 %v11746_v12, %v18760_v35  ;;  %v18769_v12 = vld [vmem:[#allocation161_spill] sm:$0xff] }
 0x576   : > { %v17191_v59 = vpop.f32.mrf.mxu0  ;;  %v9025_v2 = vmul.f32 %v16993_v0, %v8874_v38  ;;  %v8872_v10 = vadd.f32 %v8776_v46, %v18761_v48  ;;  %v8660_v7 = vpop.f32.mrf.mxu1  ;;  %v9554_v31 = vadd.f32 %v16988_v53, %v9499_v29  ;;  %v9497_v45 = vmul.f32 %v16979_v55, %v17148_v6 }
 0x577   : > { %9689 = vst [vmem:[%s17034_s29 + $0x88] sm:$0xff] %v9641_v52  ;;  %v9646_v26 = vmax.f32 %v9598_v54, 0.0  ;;  %v9596_v62 = vadd.f32 %v9548_v8, %v9077_v43  ;;  %v8877_v4 = vadd.f32 %v8781_v33, %v18762_v47  ;;  %v8779_v25 = vadd.f32 %v8660_v7, %v18763_v30  ;;  %v18768_v8 = vld [vmem:[#allocation68_spill] sm:$0xff]  ;;  %v18771_v7 = vld [vmem:[#allocation170_spill] sm:$0xff] }
 0x578   : > { %v9390_v58 = vpop.f32.mrf.mxu0  ;;  %v9080_v32 = vadd.f32 %v17000_v27, %v9025_v2  ;;  %v9023_v34 = vmul.f32 %v16993_v0, %v8872_v10  ;;  %v11747_v22 = vpop.f32.mrf.mxu1  ;;  %v9500_v16 = vmul.f32 %v17158_v42, %v16979_v55  ;;  %v9498_v19 = vmul.f32 %v16979_v55, %v9374_v9 }
 0x579   : > { %9694 = vst [vmem:[%s17034_s29 + $0xb0] sm:$0xff] %v9646_v26  ;;  %v9644_v60 = vmax.f32 %v9596_v62, 0.0  ;;  %v9028_v3 = vmul.f32 %v16993_v0, %v8877_v4  ;;  %v8875_v57 = vadd.f32 %v8779_v25, %v18764_v37  ;;  %v8782_v50 = vadd.f32 %v11747_v22, %v18765_v21  ;;  %v18772_v25 = vld [vmem:[#allocation30_spill] sm:$0xff]  ;;  %v18774_v21 = vld [vmem:[#allocation168_spill] sm:$0xff] }
 0x57a   : > { %v11818_v11 = vpop.f32.mrf.mxu0  ;;  %v9599_v63 = vadd.f32 %v9551_v61, %v9080_v32  ;;  %v9078_v23 = vadd.f32 %v17000_v27, %v9023_v34  ;;  %v8663_v14 = vpop.f32.mrf.mxu1  ;;  %v9552_v51 = vadd.f32 %v16988_v53, %v9497_v45  ;;  %v9503_v42 = vmul.f32 %v11814_v5, %v16979_v55  ;;  %v18773_v45 = vld [vmem:[#allocation169_spill] sm:$0xff] }
 0x57b   : > { %9692 = vst [vmem:[%s17034_s29 + $0xa0] sm:$0xff] %v9644_v60  ;;  %v9083_v6 = vadd.f32 %v17000_v27, %v9028_v3  ;;  %v9026_v1 = vmul.f32 %v16993_v0, %v8875_v57  ;;  %v8878_v36 = vadd.f32 %v8782_v50, %v18766_v15  ;;  %v8780_v49 = vadd.f32 %v8663_v14, %v18767_v39 }
 0x57c   : > { %v17218_v28 = vpop.f32.mrf.mxu0  ;;  %v9647_v40 = vmax.f32 %v9599_v63, 0.0  ;;  %v9597_v41 = vadd.f32 %v9549_v44, %v9078_v23  ;;  %v11750_v9 = vpop.f32.mrf.mxu1  ;;  %v9555_v46 = vadd.f32 %v16988_v53, %v9500_v16  ;;  %v9553_v29 = vadd.f32 %v16988_v53, %v9498_v19  ;;  %v18770_v44 = vld [vmem:[#allocation73_spill] sm:$0xff]  ;;  %v18775_v63 = vld [vmem:[#allocation82_spill] sm:$0xff] }
 0x57d   : > { %v9602_v13 = vadd.f32 %v9554_v31, %v9083_v6  ;;  %v9081_v20 = vadd.f32 %v17000_v27, %v9026_v1  ;;  %v9029_v56 = vmul.f32 %v16993_v0, %v8878_v36  ;;  %v8876_v24 = vadd.f32 %v8780_v49, %v18768_v8  ;;  %v18776_v36 = vld [vmem:[#allocation164_spill] sm:$0xff]  ;;  %v18777_v49 = vld [vmem:[#allocation171_spill] sm:$0xff] }
 0x57e   : > { %v17225_v38 = vpop.f32.mrf.mxu0  ;;  %9695 = vst [vmem:[%s17034_s29 + $0xb8] sm:$0xff] %v9647_v40  ;;  %v9645_v18 = vmax.f32 %v9597_v41, 0.0  ;;  %v8785_v5 = vadd.f32 %v11750_v9, %v18769_v12  ;;  %v8676_v52 = vpop.f32.mrf.mxu1  ;;  %v9558_v2 = vadd.f32 %v16988_v53, %v9503_v42  ;;  %v9501_v10 = vmul.f32 %v16979_v55, %v17181_v17  ;;  %v18778_v8 = vld [vmem:[#allocation20_spill] sm:$0xff] }
 0x57f   : > { %v9650_v54 = vmax.f32 %v9602_v13, 0.0  ;;  %v9600_v43 = vadd.f32 %v9552_v51, %v9081_v20  ;;  %v9084_v35 = vadd.f32 %v17000_v27, %v9029_v56  ;;  %v9027_v33 = vmul.f32 %v16993_v0, %v8876_v24 }
 0x580   : > { %v9406_v61 = vpop.f32.mrf.mxu0  ;;  %9693 = vst [vmem:[%s17034_s29 + $0xa8] sm:$0xff] %v9645_v18  ;;  %v8881_v48 = vadd.f32 %v8785_v5, %v18770_v44  ;;  %v8783_v26 = vadd.f32 %v8676_v52, %v18771_v7  ;;  %v11751_v62 = vpop.f32.mrf.mxu1  ;;  %v9504_v60 = vmul.f32 %v17191_v59, %v16979_v55  ;;  %v9502_v17 = vmul.f32 %v16979_v55, %v9390_v58  ;;  %v18779_v18 = vld [vmem:[#allocation165_spill] sm:$0xff]  ;;  %v18780_v44 = vld [vmem:[#allocation74_spill] sm:$0xff] }
 0x581   : > { %9698 = vst [vmem:[%s17034_s29 + $0xd0] sm:$0xff] %v9650_v54  ;;  %v9648_v47 = vmax.f32 %v9600_v43, 0.0  ;;  %v9603_v4 = vadd.f32 %v9555_v46, %v9084_v35  ;;  %v9082_v30 = vadd.f32 %v17000_v27, %v9027_v33  ;;  %v8786_v32 = vadd.f32 %v11751_v62, %v18772_v25  ;;  %v18781_v62 = vld [vmem:[#allocation83_spill] sm:$0xff] }
 0x582   : > { %v11822_v34 = vpop.f32.mrf.mxu0  ;;  %v9032_v31 = vmul.f32 %v16993_v0, %v8881_v48  ;;  %v8879_v22 = vadd.f32 %v8783_v26, %v18773_v45  ;;  %v8679_v3 = vpop.f32.mrf.mxu1  ;;  %v9556_v14 = vadd.f32 %v16988_v53, %v9501_v10  ;;  %v9507_v59 = vmul.f32 %v11818_v11, %v16979_v55 }
 0x583   : > { %9696 = vst [vmem:[%s17034_s29 + $0xc0] sm:$0xff] %v9648_v47  ;;  %v9651_v37 = vmax.f32 %v9603_v4, 0.0  ;;  %v9601_v57 = vadd.f32 %v9553_v29, %v9082_v30  ;;  %v8882_v50 = vadd.f32 %v8786_v32, %v18774_v21  ;;  %v8784_v23 = vadd.f32 %v8679_v3, %v18775_v63  ;;  %v18784_v63 = vld [vmem:[#allocation25_spill] sm:$0xff] }
 0x584   : > { %v17250_v16 = vpop.f32.mrf.mxu0  ;;  %v9087_v19 = vadd.f32 %v17000_v27, %v9032_v31  ;;  %v9030_v6 = vmul.f32 %v16993_v0, %v8879_v22  ;;  %v11754_v58 = vpop.f32.mrf.mxu1  ;;  %v9559_v9 = vadd.f32 %v16988_v53, %v9504_v60  ;;  %v9557_v13 = vadd.f32 %v16988_v53, %v9502_v17  ;;  %v18782_v60 = vld [vmem:[#allocation18_spill] sm:$0xff] }
 0x585   : > { %9699 = vst [vmem:[%s17034_s29 + $0xd8] sm:$0xff] %v9651_v37  ;;  %v9649_v1 = vmax.f32 %v9601_v57, 0.0  ;;  %v9033_v15 = vmul.f32 %v16993_v0, %v8882_v50  ;;  %v8880_v39 = vadd.f32 %v8784_v23, %v18776_v36  ;;  %v8789_v40 = vadd.f32 %v11754_v58, %v18777_v49  ;;  %v18786_v36 = vld [vmem:[#allocation150_spill] sm:$0xff]  ;;  %v18787_v49 = vld [vmem:[#allocation32_spill] sm:$0xff] }
 0x586   : > { %v17260_v41 = vpop.f32.mrf.mxu0  ;;  %v9606_v51 = vadd.f32 %v9558_v2, %v9087_v19  ;;  %v9085_v42 = vadd.f32 %v17000_v27, %v9030_v6  ;;  %v8692_v20 = vpop.f32.mrf.mxu1  ;;  %v9562_v52 = vadd.f32 %v16988_v53, %v9507_v59  ;;  %v9505_v54 = vmul.f32 %v16979_v55, %v17218_v28  ;;  %v18785_v59 = vld [vmem:[#allocation167_spill] sm:$0xff] }
 0x587   : > { %9697 = vst [vmem:[%s17034_s29 + $0xc8] sm:$0xff] %v9649_v1  ;;  %v9088_v11 = vadd.f32 %v17000_v27, %v9033_v15  ;;  %v9031_v56 = vmul.f32 %v16993_v0, %v8880_v39  ;;  %v8885_v24 = vadd.f32 %v8789_v40, %v18778_v8  ;;  %v8787_v46 = vadd.f32 %v8692_v20, %v18779_v18 }
 0x588   : > { %v9422_v29 = vpop.f32.mrf.mxu0  ;;  %v9654_v12 = vmax.f32 %v9606_v51, 0.0  ;;  %v9604_v5 = vadd.f32 %v9556_v14, %v9085_v42  ;;  %v11755_v43 = vpop.f32.mrf.mxu1  ;;  %v9508_v26 = vmul.f32 %v17225_v38, %v16979_v55  ;;  %v9506_v28 = vmul.f32 %v16979_v55, %v9406_v61  ;;  %v18783_v38 = vld [vmem:[#allocation172_spill] sm:$0xff] }
 0x589   : > { %v9607_v35 = vadd.f32 %v9559_v9, %v9088_v11  ;;  %v9086_v33 = vadd.f32 %v17000_v27, %v9031_v56  ;;  %v9036_v2 = vmul.f32 %v16993_v0, %v8885_v24  ;;  %v8883_v48 = vadd.f32 %v8787_v46, %v18780_v44  ;;  %v18788_v24 = vld [vmem:[#allocation180_spill] sm:$0xff]  ;;  %v18789_v46 = vld [vmem:[#allocation29_spill] sm:$0xff] }
 0x58a   : > { %v11826_v10 = vpop.f32.mrf.mxu0  ;;  %9702 = vst [vmem:[%s17034_s29 + $0xf0] sm:$0xff] %v9654_v12  ;;  %v9652_v7 = vmax.f32 %v9604_v5, 0.0  ;;  %v8790_v47 = vadd.f32 %v11755_v43, %v18781_v62  ;;  %v8695_v4 = vpop.f32.mrf.mxu1  ;;  %v9560_v22 = vadd.f32 %v16988_v53, %v9505_v54  ;;  %v9511_v37 = vmul.f32 %v11822_v34, %v16979_v55 }
 0x58b   : > { %v9655_v30 = vmax.f32 %v9607_v35, 0.0  ;;  %v9605_v25 = vadd.f32 %v9557_v13, %v9086_v33  ;;  %v9091_v32 = vadd.f32 %v17000_v27, %v9036_v2  ;;  %v9034_v31 = vmul.f32 %v16993_v0, %v8883_v48  ;;  %v18790_v2 = vld [vmem:[#allocation179_spill] sm:$0xff]  ;;  %v18791_v48 = vld [vmem:[#allocation84_spill] sm:$0xff] }
 0x58c   : > { %v17283_v45 = vpop.f32.mrf.mxu0  ;;  %9700 = vst [vmem:[%s17034_s29 + $0xe0] sm:$0xff] %v9652_v7  ;;  %v8886_v17 = vadd.f32 %v8790_v47, %v18782_v60  ;;  %v8788_v3 = vadd.f32 %v8695_v4, %v18783_v38  ;;  %v11758_v61 = vpop.f32.mrf.mxu1  ;;  %v9563_v19 = vadd.f32 %v16988_v53, %v9508_v26  ;;  %v9561_v6 = vadd.f32 %v16988_v53, %v9506_v28  ;;  %v18793_v38 = vld [vmem:[#allocation173_spill] sm:$0xff] }
 0x58d   : > { %9703 = vst [vmem:[%s17034_s29 + $0xf8] sm:$0xff] %v9655_v30  ;;  %v9653_v57 = vmax.f32 %v9605_v25, 0.0  ;;  %v9610_v21 = vadd.f32 %v9562_v52, %v9091_v32  ;;  %v9089_v50 = vadd.f32 %v17000_v27, %v9034_v31  ;;  %v8793_v23 = vadd.f32 %v11758_v61, %v18784_v63  ;;  %v18792_v32 = vld [vmem:[#allocation175_spill] sm:$0xff] }
 0x58e   : > { %v9037_v14 = vmul.f32 %v16993_v0, %v8886_v17  ;;  %v8884_v58 = vadd.f32 %v8788_v3, %v18785_v59  ;;  %v8708_v1 = vpop.f32.mrf.mxu1  ;;  %v11827_v51 = vpop.f32.mrf.mxu0  ;;  %v9566_v13 = vadd.f32 %v16988_v53, %v9511_v37  ;;  %v9509_v20 = vmul.f32 %v16979_v55, %v17250_v16 }
 0x58f   : > { %9701 = vst [vmem:[%s17034_s29 + $0xe8] sm:$0xff] %v9653_v57  ;;  %v9658_v34 = vmax.f32 %v9610_v21, 0.0  ;;  %v9608_v15 = vadd.f32 %v9560_v22, %v9089_v50  ;;  %v8889_v39 = vadd.f32 %v8793_v23, %v18786_v36  ;;  %v8791_v40 = vadd.f32 %v8708_v1, %v18787_v49  ;;  %v18794_v23 = vld [vmem:[#allocation21_spill] sm:$0xff] }
 0x590   : > { %v9092_v42 = vadd.f32 %v17000_v27, %v9037_v14  ;;  %v9035_v9 = vmul.f32 %v16993_v0, %v8884_v58  ;;  %v11759_v11 = vpop.f32.mrf.mxu1  ;;  %v9512_v54 = vmul.f32 %v17260_v41, %v16979_v55  ;;  %v9510_v43 = vmul.f32 %v16979_v55, %v9422_v29  ;;  %v9438_v26 = vpop.f32.mrf.mxu0  ;;  %v18796_v36 = vld [vmem:[#allocation33_spill] sm:$0xff] }
 0x591   : > { %9706 = vst [vmem:[%s17034_s29 + $0x110] sm:$0xff] %v9658_v34  ;;  %v9656_v56 = vmax.f32 %v9608_v15, 0.0  ;;  %v9040_v8 = vmul.f32 %v16993_v0, %v8889_v39  ;;  %v8887_v18 = vadd.f32 %v8791_v40, %v18788_v24  ;;  %v8794_v12 = vadd.f32 %v11759_v11, %v18789_v46  ;;  %v18797_v40 = vld [vmem:[#allocation152_spill] sm:$0xff]  ;;  %v18799_v24 = vld [vmem:[#allocation86_spill] sm:$0xff] }
 0x592   : > { %v9611_v5 = vadd.f32 %v9563_v19, %v9092_v42  ;;  %v9090_v52 = vadd.f32 %v17000_v27, %v9035_v9  ;;  %v8711_v35 = vpop.f32.mrf.mxu1  ;;  %v9564_v28 = vadd.f32 %v16988_v53, %v9509_v20  ;;  %v9515_v41 = vmul.f32 %v11826_v10, %v16979_v55  ;;  %v11830_v50 = vpop.f32.mrf.mxu0 }
 0x593   : > { %9704 = vst [vmem:[%s17034_s29 + $0x100] sm:$0xff] %v9656_v56  ;;  %v9095_v16 = vadd.f32 %v17000_v27, %v9040_v8  ;;  %v9038_v33 = vmul.f32 %v16993_v0, %v8887_v18  ;;  %v8890_v44 = vadd.f32 %v8794_v12, %v18790_v2  ;;  %v8792_v7 = vadd.f32 %v8711_v35, %v18791_v48  ;;  %v18798_v56 = vld [vmem:[#allocation22_spill] sm:$0xff]  ;;  %v18801_v2 = vld [vmem:[#allocation177_spill] sm:$0xff] }
 0x594   : > { %v9659_v62 = vmax.f32 %v9611_v5, 0.0  ;;  %v9609_v47 = vadd.f32 %v9561_v6, %v9090_v52  ;;  %v11762_v4 = vpop.f32.mrf.mxu1  ;;  %v9567_v60 = vadd.f32 %v16988_v53, %v9512_v54  ;;  %v9565_v17 = vadd.f32 %v16988_v53, %v9510_v43  ;;  %v18795_v6 = vld [vmem:[#allocation176_spill] sm:$0xff]  ;;  %v9451_v46 = vpop.f32.mrf.mxu0 }
 0x595   : > { %v9614_v29 = vadd.f32 %v9566_v13, %v9095_v16  ;;  %v9093_v30 = vadd.f32 %v17000_v27, %v9038_v33  ;;  %v9041_v25 = vmul.f32 %v16993_v0, %v8890_v44  ;;  %v8888_v31 = vadd.f32 %v8792_v7, %v18792_v32  ;;  %v18800_v16 = vld [vmem:[#allocation154_spill] sm:$0xff] }
 0x596   : > { %9707 = vst [vmem:[%s17034_s29 + $0x118] sm:$0xff] %v9659_v62  ;;  %v9657_v22 = vmax.f32 %v9609_v47, 0.0  ;;  %v8797_v3 = vadd.f32 %v11762_v4, %v18793_v38  ;;  %v8724_v37 = vpop.f32.mrf.mxu1  ;;  %v9570_v63 = vadd.f32 %v16988_v53, %v9515_v41  ;;  %v9513_v14 = vmul.f32 %v16979_v55, %v17283_v45  ;;  %v18802_v4 = vld [vmem:[#allocation95_spill] sm:$0xff]  ;;  %v11831_v32 = vpop.f32.mrf.mxu0 }
 0x597   : > { %v9662_v10 = vmax.f32 %v9614_v29, 0.0  ;;  %v9612_v61 = vadd.f32 %v9564_v28, %v9093_v30  ;;  %v9096_v57 = vadd.f32 %v17000_v27, %v9041_v25  ;;  %v9039_v21 = vmul.f32 %v16993_v0, %v8888_v31  ;;  %v18803_v30 = vld [vmem:[#allocation174_spill] sm:$0xff] }
 0x598   : > { %9705 = vst [vmem:[%s17034_s29 + $0x108] sm:$0xff] %v9657_v22  ;;  %v8893_v19 = vadd.f32 %v8797_v3, %v18794_v23  ;;  %v8795_v59 = vadd.f32 %v8724_v37, %v18795_v6  ;;  %v11763_v58 = vpop.f32.mrf.mxu1  ;;  %v9516_v9 = vmul.f32 %v11827_v51, %v16979_v55  ;;  %v9514_v13 = vmul.f32 %v16979_v55, %v9438_v26 }
 0x599   : > { %9710 = vst [vmem:[%s17034_s29 + $0x130] sm:$0xff] %v9662_v10  ;;  %v9660_v1 = vmax.f32 %v9612_v61, 0.0  ;;  %v9615_v34 = vadd.f32 %v9567_v60, %v9096_v57  ;;  %v9094_v15 = vadd.f32 %v17000_v27, %v9039_v21  ;;  %v8798_v39 = vadd.f32 %v11763_v58, %v18796_v36  ;;  %v18804_v61 = vld [vmem:[#allocation24_spill] sm:$0xff]  ;;  %v9454_v58 = vpop.f32.mrf.mxu0  ;;  %v18807_v36 = vld [vmem:[#allocation34_spill] sm:$0xff] }
 0x59a   : > { %v9044_v49 = vmul.f32 %v16993_v0, %v8893_v19  ;;  %v8891_v42 = vadd.f32 %v8795_v59, %v18797_v40  ;;  %v8727_v45 = vpop.f32.mrf.mxu1  ;;  %v9568_v5 = vadd.f32 %v16988_v53, %v9513_v14  ;;  %v9519_v51 = vmul.f32 %v11830_v50, %v16979_v55  ;;  %v18805_v50 = vld [vmem:[#allocation90_spill] sm:$0xff] }
 0x59b   : > { %9708 = vst [vmem:[%s17034_s29 + $0x120] sm:$0xff] %v9660_v1  ;;  %v9663_v20 = vmax.f32 %v9615_v34, 0.0  ;;  %v9613_v11 = vadd.f32 %v9565_v17, %v9094_v15  ;;  %v8894_v8 = vadd.f32 %v8798_v39, %v18798_v56  ;;  %v8796_v18 = vadd.f32 %v8727_v45, %v18799_v24  ;;  %v18806_v34 = vld [vmem:[#allocation78_spill] sm:$0xff] }
 0x59c   : > { %v9099_v12 = vadd.f32 %v17000_v27, %v9044_v49  ;;  %v9042_v52 = vmul.f32 %v16993_v0, %v8891_v42  ;;  %v11766_v54 = vpop.f32.mrf.mxu1  ;;  %v9571_v26 = vadd.f32 %v16988_v53, %v9516_v9  ;;  %v9569_v62 = vadd.f32 %v16988_v53, %v9514_v13 }
 0x59d   : > { %9711 = vst [vmem:[%s17034_s29 + $0x138] sm:$0xff] %v9663_v20  ;;  %v9661_v43 = vmax.f32 %v9613_v11, 0.0  ;;  %v9045_v35 = vmul.f32 %v16993_v0, %v8894_v8  ;;  %v8892_v33 = vadd.f32 %v8796_v18, %v18800_v16  ;;  %v8801_v44 = vadd.f32 %v11766_v54, %v18801_v2  ;;  %v18808_v20 = vld [vmem:[#allocation19_spill] sm:$0xff] }
 0x59e   : > { %v9618_v48 = vadd.f32 %v9570_v63, %v9099_v12  ;;  %v9097_v7 = vadd.f32 %v17000_v27, %v9042_v52  ;;  %v8740_v47 = vpop.f32.mrf.mxu1  ;;  %v9574_v60 = vadd.f32 %v16988_v53, %v9519_v51  ;;  %v9517_v17 = vmul.f32 %v16979_v55, %v9451_v46 }
 0x59f   : > { %9709 = vst [vmem:[%s17034_s29 + $0x128] sm:$0xff] %v9661_v43  ;;  %v9100_v28 = vadd.f32 %v17000_v27, %v9045_v35  ;;  %v9043_v41 = vmul.f32 %v16993_v0, %v8892_v33  ;;  %v8897_v29 = vadd.f32 %v8801_v44, %v18802_v4  ;;  %v8799_v25 = vadd.f32 %v8740_v47, %v18803_v30 }
 0x5a0   : > { %v9666_v31 = vmax.f32 %v9618_v48, 0.0  ;;  %v9616_v22 = vadd.f32 %v9568_v5, %v9097_v7  ;;  %v11767_v38 = vpop.f32.mrf.mxu1  ;;  %v9520_v1 = vmul.f32 %v11831_v32, %v16979_v55  ;;  %v9572_v42 = vadd.f32 %v16988_v53, %v9517_v17 }
 0x5a1   : > { %v9619_v3 = vadd.f32 %v9571_v26, %v9100_v28  ;;  %v9098_v37 = vadd.f32 %v17000_v27, %v9043_v41  ;;  %v9048_v10 = vmul.f32 %v16993_v0, %v8897_v29  ;;  %v8895_v57 = vadd.f32 %v8799_v25, %v18804_v61 }
 0x5a2   : > { %9714 = vst [vmem:[%s17034_s29 + $0x150] sm:$0xff] %v9666_v31  ;;  %v9664_v21 = vmax.f32 %v9616_v22, 0.0  ;;  %v8802_v63 = vadd.f32 %v11767_v38, %v18805_v50  ;;  %v8743_v23 = vpop.f32.mrf.mxu1  ;;  %v9518_v45 = vmul.f32 %v16979_v55, %v9454_v58  ;;  %v9575_v24 = vadd.f32 %v16988_v53, %v9520_v1  ;;  %v12191_v55 = vld [vmem:[%s17451_s9] ss:$0 sm:$0xff] }
 0x5a3   : > { %v9667_v19 = vmax.f32 %v9619_v3, 0.0  ;;  %v9617_v14 = vadd.f32 %v9569_v62, %v9098_v37  ;;  %v9103_v6 = vadd.f32 %v17000_v27, %v9048_v10  ;;  %v9046_v59 = vmul.f32 %v16993_v0, %v8895_v57 }
 0x5a4   : > { %9712 = vst [vmem:[%s17034_s29 + $0x140] sm:$0xff] %v9664_v21  ;;  %v8898_v15 = vadd.f32 %v8802_v63, %v18806_v34  ;;  %v8800_v39 = vadd.f32 %v8743_v23, %v18807_v36  ;;  %v9573_v52 = vadd.f32 %v12191_v55, %v9518_v45 }
 0x5a5   : > { %9715 = vst [vmem:[%s17034_s29 + $0x158] sm:$0xff] %v9667_v19  ;;  %v9665_v49 = vmax.f32 %v9617_v14, 0.0  ;;  %v9622_v40 = vadd.f32 %v9574_v60, %v9103_v6  ;;  %v9101_v9 = vadd.f32 %v17000_v27, %v9046_v59 }
 0x5a6   : > { %v9049_v13 = vmul.f32 %v16993_v0, %v8898_v15  ;;  %v8896_v11 = vadd.f32 %v8800_v39, %v18808_v20 }
 0x5a7   : > { %9713 = vst [vmem:[%s17034_s29 + $0x148] sm:$0xff] %v9665_v49  ;;  %v9670_v56 = vmax.f32 %v9622_v40, 0.0  ;;  %v9620_v8 = vadd.f32 %v9572_v42, %v9101_v9 }
 0x5a8   : > { %v9104_v18 = vadd.f32 %v17000_v27, %v9049_v13  ;;  %v9047_v46 = vmul.f32 %v16993_v0, %v8896_v11 }
 0x5a9   : > { %9718 = vst [vmem:[%s17034_s29 + $0x170] sm:$0xff] %v9670_v56  ;;  %v9668_v12 = vmax.f32 %v9620_v8, 0.0 }
 0x5aa   : > { %v9623_v5 = vadd.f32 %v9575_v24, %v9104_v18  ;;  %v9102_v51 = vadd.f32 %v17000_v27, %v9047_v46 }
 0x5ab   : > { %9716 = vst [vmem:[%s17034_s29 + $0x160] sm:$0xff] %v9668_v12 }
 0x5ac   : > { %v9671_v53 = vmax.f32 %v9623_v5, 0.0  ;;  %v9621_v54 = vadd.f32 %v9573_v52, %v9102_v51 }
 0x5ae   : > { %9719 = vst [vmem:[%s17034_s29 + $0x178] sm:$0xff] %v9671_v53  ;;  %v9669_v0 = vmax.f32 %v9621_v54, 0.0 }
 0x5b0   : > { %9717 = vst [vmem:[%s17034_s29 + $0x168] sm:$0xff] %v9669_v0 }
 0x5b1   : > { %12341 = shalt.err (!%p12338_p9)
}
 0x5b2   : > { %s12342_s19 = scalar_lea.hbm %s17395_s7, 6144  ;;  %s12346_s12 = scalar_lea.hbm %s17452_s10, 12288 }
 0x5b3   : > { %p12343_p1 = scmp.ne.s32.totalorder %s17395_s7, %s12342_s19  ;;  %p12347_p11 = scmp.lt.s32.totalorder %s17395_s7, %s17452_s10 }
 0x5b4   : > { %p12348_p13 = scmp.lt.s32.totalorder %s12346_s12, %s12342_s19 }
 0x5b5   : > { %p12344_p8 = pnand %p12343_p1, %p18809_p6 }
 0x5b6   : > { %p12349_p2 = por %p12348_p13, %p12347_p11 }
 0x5b7   : > { %p12345_p10 = pneg %p12344_p8 }
 0x5b9   : > { %p12350_p4 = pnand %p12349_p2, %p12345_p10 }
 0x5bb   : > { %12353 = shalt.err (!%p12350_p4)
}
 0x5bc   : > { %s12413_s23 = smov 128   ;;  %s12414_s4 = smov 8  }
 0x5bd   : > { %11963 = dma.vmem_to_hbm [thread:$0]  (%p18809_p6), %s17398_s18, 6144, %s17395_s7, %s9721_s17, %s12413_s23, %s12413_s23, %s12414_s4  }
 0x5be PF: > { %s9749_s30 = sand.u32 1, %s12388_s13   ;;  %p18810_p12 = scmp.ne.s32.totalorder %s17604_s20, 0 }
 0x5bf   : > { %p18811_p0 = scmp.ge.s32.totalorder %s12400_s16, 2  ;;  %s9750_s11 = scalar_lea.sflag [#allocation6], %s9749_s30 }
 0x5c1   : > { %p11980_p5 = pnand %p18811_p0, %p18810_p12 }
 0x5c3   : > { %p11981_p3 = pneg %p11980_p5 }
 0x5c5   : > { %12383 = dma.done.wait (%p11981_p3), %s9750_s11, 6144  }
 0x5c6   : > { %12385 = vsyncadd (%p11981_p3), %s9750_s11, 4294961152  ;;  %s18812_s27 = sld [smem:[#allocation17_spill]]  ;;  %p25_p7 = scmp.ge.s32.totalorder %s12550_s26, 4  }
 0x5c7   : > { %s18813_s13 = smov %s12392_s14  ;;  %s18814_s14 = smov %s12396_s15 }
 0x5c8   : > { %s18816_s16 = smov %s12550_s26  ;;  %27 = sbr.rel (!%p25_p7) target bundleno = 11 (0xb), region = 133 }
 0x5cc   : > { %s18815_s15 = smov %s18812_s27 }
 0x5cd   :  { %9755 = vsyncpa [#allocation5], 1 }
 0x5ce   :  { %9757 = vsyncpa [#allocation5 + $0x1], 1 }
 0x5cf   :  { %9758 = vsyncpa [#allocation8], 1 }
 0x5d0   :  { %9759 = vsyncpa [#allocation11], 1 }
 0x5d1   :  { %9760 = vsyncpa [#allocation6], 1 }
 0x5d2   :  { %9762 = vsyncpa [#allocation6 + $0x1], 1 }

</bundles_post_ra>
